<compile_context>
chip_gen: v6e
topology: v6e:2x2x1
jax: 0.10.0
libtpu: 0.0.40
codegen_flags: <defaults>
</compile_context>

<pallas_src>
import functools

import jax
import jax.numpy as jnp
from jax.experimental import pallas as pl
from jax.experimental.pallas import tpu as pltpu

LN_EPS = 1e-5   # nn.LayerNorm default
BN_EPS = 1e-5   # nn.BatchNorm1d default
L2_EPS = 1e-12  # F.normalize default


def _round_up(x, m):
    return ((x + m - 1) // m) * m


def _device_kind():
    try:
        return getattr(jax.devices()[0], "device_kind", "").lower()
    except Exception:
        return ""


def _num_tensorcores(kind):
    # v7x exposes 2 TensorCores per chip; v5e / v6e have one.
    return 2 if "v7" in kind else 1


def _has_bf16_valu(kind):
    # v5e and older have f32-only VPUs; v6e / v7x have bf16 VALUs.
    return not any(t in kind for t in ("v2", "v3", "v4", "v5"))


# ----------------------------------------------------------------------------
# Fused kernel: all FinetuningLayers + BatchNorm head in one body.
# ----------------------------------------------------------------------------
def _fused_net_kernel(x_ref, w1_ref, b1_ref, w2_ref, b2_ref,
                      bn_scale_ref, bn_shift_ref, cw_ref, cb_ref,
                      logits_ref, feat_ref, *, num_layers, h_chunk, bf16_hidden):
    # Residual stream stays f32 throughout; matmul operands drop to bf16.
    x = x_ref[...].astype(jnp.float32)                      # (BM, D)
    H = w2_ref.shape[1]
    n_chunks = H // h_chunk

    # TODO(synk): convert to lax.fori_loop(..., unroll=True) if num_layers grows
    # beyond a handful (static unrolling is fine at L=2).
    for li in range(num_layers):
        w2 = w2_ref[li]                                      # (H, D)  bf16
        b2 = b2_ref[li]                                      # (1, D)  f32
        for p in range(2):   # p=0: norm1 pass (res1), p=1: norm2 pass (res2)
            # LN affine already folded into these (per-pass copies).
            w1 = w1_ref[2 * li + p]                          # (D, H)  bf16
            b1 = b1_ref[2 * li + p]                          # (1, H)  f32

            mu = jnp.mean(x, axis=-1, keepdims=True)
            var = jnp.mean((x - mu) ** 2, axis=-1, keepdims=True)
            xn = ((x - mu) * jax.lax.rsqrt(var + LN_EPS)).astype(jnp.bfloat16)

            y = jnp.zeros_like(x)                            # (BM, D) f32
            for c in range(n_chunks):
                sl = slice(c * h_chunk, (c + 1) * h_chunk)
                # MXU hot path: bf16 operands, f32 accumulate.
                hc = jnp.dot(xn, w1[:, sl], preferred_element_type=jnp.float32)
                if bf16_hidden:
                    # bf16 bias-add + ReLU (v6e/v7x): halves bytes on the
                    # largest intermediate feeding the second matmul.
                    hc = jnp.maximum(hc.astype(jnp.bfloat16)
                                     + b1[:, sl].astype(jnp.bfloat16), 0.0)
                else:
                    # v5e: f32 epilogue, live range bounded by H-chunking.
                    hc = jnp.maximum(hc + b1[:, sl], 0.0).astype(jnp.bfloat16)
                y = y + jnp.dot(hc, w2[sl, :], preferred_element_type=jnp.float32)
            # TODO(synk): dropout / dropout1 / dropout2 omitted (p=0, eval -> identity).
            x = x + y + b2                                   # residual (+ linear2 bias)

    # Head: folded BatchNorm1d (eval) -> Linear; feature = L2-norm(BN output).
    xb = x * bn_scale_ref[...] + bn_shift_ref[...]
    logits = jnp.dot(xb.astype(jnp.bfloat16), cw_ref[...],
                     preferred_element_type=jnp.float32) + cb_ref[...]
    sq = jnp.sum(xb * xb, axis=-1, keepdims=True)
    # F.normalize(p=2, dim=1): x / max(||x||, eps)  ==  x * rsqrt(max(sq, eps^2))
    feat = xb * jax.lax.rsqrt(jnp.maximum(sq, L2_EPS * L2_EPS))

    logits_ref[...] = logits.astype(logits_ref.dtype)        # lane-dense padded slab
    feat_ref[...] = feat.astype(feat_ref.dtype)


def _fused_forward(x, w1f, b1f, w2, b2, bn_scale, bn_shift, cw, cb,
                   *, block_m, h_chunk, bf16_hidden):
    Bp, D = x.shape
    L2p, _, H = w1f.shape       # L2p = 2 * num_layers (per-pass folded copies)
    num_layers = L2p // 2
    Cp = cw.shape[1]

    def full(shape):
        # Grid-invariant full-array block (weights/params resident in VMEM).
        # TODO(synk): if num_layers / d_hid grow enough to pressure v7x's 32 MiB
        # scoped VMEM, add a layer grid axis ('arbitrary') instead of raising
        # vmem_limit_bytes.
        return pl.BlockSpec(shape, lambda i, _n=len(shape): (0,) * _n)

    kern = functools.partial(_fused_net_kernel, num_layers=num_layers,
                             h_chunk=h_chunk, bf16_hidden=bf16_hidden)
    return pl.pallas_call(
        kern,
        out_shape=(jax.ShapeDtypeStruct((Bp, Cp), jnp.float32),
                   jax.ShapeDtypeStruct((Bp, D), jnp.float32)),
        grid_spec=pltpu.PrefetchScalarGridSpec(
            num_scalar_prefetch=0,
            grid=(Bp // block_m,),
            in_specs=[
                pl.BlockSpec((block_m, D), lambda i: (i, 0)),   # x tile
                full((L2p, D, H)),                              # folded W1^T (bf16)
                full((L2p, 1, H)),                              # folded b1 (f32)
                full((num_layers, H, D)),                       # W2^T (bf16)
                full((num_layers, 1, D)),                       # b2 (f32)
                full((1, D)), full((1, D)),                     # folded BN scale/shift
                full((D, Cp)),                                  # classifier W^T (padded, bf16)
                full((1, Cp)),                                  # classifier bias (padded, f32)
            ],
            out_specs=[
                pl.BlockSpec((block_m, Cp), lambda i: (i, 0)),  # logits (128-lane dense)
                pl.BlockSpec((block_m, D), lambda i: (i, 0)),   # normalized feature
            ],
        ),
        compiler_params=pltpu.CompilerParams(
            # Batch grid is embarrassingly parallel; on v7x the 2-step grid is
            # sharded across both TensorCores, on v5e/v6e the grid is (1,).
            dimension_semantics=("parallel",)),
    )(x, w1f, b1f, w2, b2, bn_scale, bn_shift, cw, cb)


# ----------------------------------------------------------------------------
# Parameter init (torch-like defaults, deterministic), weights stored bf16
# ----------------------------------------------------------------------------
def _linear_params(key, fan_in, fan_out):
    kw, kb = jax.random.split(key)
    bound = 1.0 / (fan_in ** 0.5)
    # stored transposed: (in, out) so the kernel computes x @ W^T + b
    wt = jax.random.uniform(kw, (fan_in, fan_out), jnp.float32, -bound, bound)
    b = jax.random.uniform(kb, (1, fan_out), jnp.float32, -bound, bound)
    return wt, b


def init_params(key, embed_dim, d_hid, num_classes, num_layers):
    keys = jax.random.split(key, num_layers + 1)
    w1s, b1s, w2s, b2s = [], [], [], []
    for li in range(num_layers):
        k1, k2 = jax.random.split(keys[li])
        w1t, b1 = _linear_params(k1, embed_dim, d_hid)
        w2t, b2 = _linear_params(k2, d_hid, embed_dim)
        w1s.append(w1t); b1s.append(b1); w2s.append(w2t); b2s.append(b2)
    cw, cb = _linear_params(keys[-1], embed_dim, num_classes)
    return {
        # linear1 kept in f32 here; it is LN-folded and cast to bf16 in the wrapper.
        "w1t": jnp.stack(w1s),                              # (L, D, H) f32
        "b1":  jnp.stack(b1s),                              # (L, 1, H) f32
        "w2t": jnp.stack(w2s).astype(jnp.bfloat16),         # (L, H, D) bf16
        "b2":  jnp.stack(b2s),                              # (L, 1, D) f32
        "ln1_g": jnp.ones((num_layers, 1, embed_dim), jnp.float32),
        "ln1_b": jnp.zeros((num_layers, 1, embed_dim), jnp.float32),
        "ln2_g": jnp.ones((num_layers, 1, embed_dim), jnp.float32),
        "ln2_b": jnp.zeros((num_layers, 1, embed_dim), jnp.float32),
        "bn_gamma": jnp.ones((1, embed_dim), jnp.float32),
        "bn_beta": jnp.zeros((1, embed_dim), jnp.float32),
        "bn_mean": jnp.zeros((1, embed_dim), jnp.float32),
        "bn_var": jnp.ones((1, embed_dim), jnp.float32),
        "cls_wt": cw.astype(jnp.bfloat16),                  # (D, C) bf16
        "cls_b": cb,                                        # (1, C) f32
    }


def _fold_params(params):
    """Fold LayerNorm affine into linear1 (per pass) and BN into scale/shift."""
    w1 = params["w1t"].astype(jnp.float32)                   # (L, D, H)
    b1 = params["b1"]                                        # (L, 1, H)
    L, D, H = w1.shape
    ln_g = jnp.stack([params["ln1_g"][:, 0, :],
                      params["ln2_g"][:, 0, :]], axis=1)     # (L, 2, D)
    ln_b = jnp.stack([params["ln1_b"][:, 0, :],
                      params["ln2_b"][:, 0, :]], axis=1)     # (L, 2, D)
    # W1'_{l,p} = diag(gamma_{l,p}) @ W1_l ; b1'_{l,p} = b1_l + beta_{l,p} @ W1_l
    w1f = (ln_g[:, :, :, None] * w1[:, None, :, :])          # (L, 2, D, H)
    b1f = b1[:, None, :, :] + jnp.einsum("lpd,ldh->lph", ln_b, w1)[:, :, None, :]
    w1f = w1f.reshape(2 * L, D, H).astype(jnp.bfloat16)      # (2L, D, H) bf16
    b1f = b1f.reshape(2 * L, 1, H)                           # (2L, 1, H) f32
    # BatchNorm1d (eval): y = (x - mean) * g / sqrt(var+eps) + b = x*scale + shift
    bn_scale = params["bn_gamma"] * jax.lax.rsqrt(params["bn_var"] + BN_EPS)
    bn_shift = params["bn_beta"] - params["bn_mean"] * bn_scale
    return w1f, b1f, bn_scale, bn_shift


# ----------------------------------------------------------------------------
# Full network forward (matches torch return structure: ([logits], [feat]))
# ----------------------------------------------------------------------------
def finetuning_network_forward(feats, params, *, block_m=None):
    B, D = feats.shape
    C = params["cls_wt"].shape[1]
    H = params["w1t"].shape[2]

    kind = _device_kind()
    n_tc = _num_tensorcores(kind)
    bf16_hidden = _has_bf16_valu(kind)

    if block_m is None:
        # Single-TC (v5e/v6e): one grid step, no padded-row work, no extra
        # per-step overhead.  v7x: split evenly across the two TensorCores.
        block_m = _round_up(pl.cdiv(B, n_tc), 8)
    Bp = _round_up(B, block_m)                # no silently-dropped tail rows
    Cp = _round_up(C, 128)                    # lane-dense classifier output

    # v5e: chunk H to bound the live f32 hidden activation; bf16-VALU chips
    # keep full H and use the bf16 epilogue instead.
    h_chunk = H if bf16_hidden else (256 if H % 256 == 0 else H)

    w1f, b1f, bn_scale, bn_shift = _fold_params(params)

    x = feats.astype(jnp.float32)
    if Bp != B:
        x = jnp.pad(x, ((0, Bp - B), (0, 0)))
    cw, cb = params["cls_wt"], params["cls_b"]
    if Cp != C:
        cw = jnp.pad(cw, ((0, 0), (0, Cp - C)))
        cb = jnp.pad(cb, ((0, 0), (0, Cp - C)))

    logits_pad, feat_pad = _fused_forward(
        x, w1f, b1f, params["w2t"], params["b2"], bn_scale, bn_shift, cw, cb,
        block_m=block_m, h_chunk=h_chunk, bf16_hidden=bf16_hidden)

    logits = logits_pad[:B, :C]
    feat_n = feat_pad[:B]
    return [logits], [feat_n]


if __name__ == "__main__":
    B = 200          # batch (deliberately NOT a multiple of 128)
    EMBED_DIM = 128  # embed_dim
    D_HID = 4 * EMBED_DIM
    NUM_CLASSES = 16
    NUM_LAYERS = 2

    key = jax.random.PRNGKey(0)
    kx, kp = jax.random.split(key)
    feats = jax.random.normal(kx, (B, EMBED_DIM), jnp.float32)
    params = init_params(kp, EMBED_DIM, D_HID, NUM_CLASSES, NUM_LAYERS)

    x_list, feat_list = finetuning_network_forward(feats, params)
    logits = jax.block_until_ready(x_list[0])
    feat_n = jax.block_until_ready(feat_list[0])

    assert logits.shape == (B, NUM_CLASSES)
    assert feat_n.shape == (B, EMBED_DIM)
    assert bool(jnp.all(jnp.isfinite(logits)))
    assert bool(jnp.all(jnp.isfinite(feat_n)))
    print("KERNEL_OK")
</pallas_src>

<mosaic_0001>
module attributes {stable_mosaic.version = 11 : i64} {
  func.func @_fused_net_kernel(%arg0: i32, %arg1: memref<200x128xf32, #tpu.memory_space<vmem>>, %arg2: memref<4x128x512xbf16, #tpu.memory_space<vmem>>, %arg3: memref<4x1x512xf32, #tpu.memory_space<vmem>>, %arg4: memref<2x512x128xbf16, #tpu.memory_space<vmem>>, %arg5: memref<2x1x128xf32, #tpu.memory_space<vmem>>, %arg6: memref<1x128xf32, #tpu.memory_space<vmem>>, %arg7: memref<1x128xf32, #tpu.memory_space<vmem>>, %arg8: memref<128x128xbf16, #tpu.memory_space<vmem>>, %arg9: memref<1x128xf32, #tpu.memory_space<vmem>>, %arg10: memref<200x128xf32, #tpu.memory_space<vmem>>, %arg11: memref<200x128xf32, #tpu.memory_space<vmem>>) attributes {dimension_semantics = [#tpu.dimension_semantics<parallel>], iteration_bounds = array<i64: 1>, scalar_prefetch = 0 : i64, scratch_operands = 0 : i64, tpu.core_type = #tpu.core_type<tc>, window_params = [{transform_indices = @transform_0, window_bounds = array<i64: 200, 128>}, {pipeline_mode = #tpu.pipeline_mode<synchronous>, transform_indices = @transform_1, window_bounds = array<i64: 4, 128, 512>}, {pipeline_mode = #tpu.pipeline_mode<synchronous>, transform_indices = @transform_2, window_bounds = array<i64: 4, 1, 512>}, {pipeline_mode = #tpu.pipeline_mode<synchronous>, transform_indices = @transform_3, window_bounds = array<i64: 2, 512, 128>}, {pipeline_mode = #tpu.pipeline_mode<synchronous>, transform_indices = @transform_4, window_bounds = array<i64: 2, 1, 128>}, {pipeline_mode = #tpu.pipeline_mode<synchronous>, transform_indices = @transform_5, window_bounds = array<i64: 1, 128>}, {pipeline_mode = #tpu.pipeline_mode<synchronous>, transform_indices = @transform_6, window_bounds = array<i64: 1, 128>}, {pipeline_mode = #tpu.pipeline_mode<synchronous>, transform_indices = @transform_7, window_bounds = array<i64: 128, 128>}, {pipeline_mode = #tpu.pipeline_mode<synchronous>, transform_indices = @transform_8, window_bounds = array<i64: 1, 128>}, {transform_indices = @transform_9, window_bounds = array<i64: 200, 128>}, {transform_indices = @transform_10, window_bounds = array<i64: 200, 128>}]} {
    %c0 = arith.constant 0 : index
    %c0_0 = arith.constant 0 : index
    %0 = vector.load %arg1[%c0, %c0_0] : memref<200x128xf32, #tpu.memory_space<vmem>>, vector<200x128xf32>
    %c0_1 = arith.constant 0 : index
    %c0_2 = arith.constant 0 : index
    %c0_3 = arith.constant 0 : index
    %1 = vector.load %arg4[%c0_1, %c0_2, %c0_3] : memref<2x512x128xbf16, #tpu.memory_space<vmem>>, vector<1x512x128xbf16>
    %2 = vector.shape_cast %1 : vector<1x512x128xbf16> to vector<512x128xbf16>
    %c0_4 = arith.constant 0 : index
    %c0_5 = arith.constant 0 : index
    %c0_6 = arith.constant 0 : index
    %3 = vector.load %arg5[%c0_4, %c0_5, %c0_6] : memref<2x1x128xf32, #tpu.memory_space<vmem>>, vector<1x1x128xf32>
    %4 = vector.shape_cast %3 : vector<1x1x128xf32> to vector<1x128xf32>
    %c0_7 = arith.constant 0 : index
    %c0_8 = arith.constant 0 : index
    %c0_9 = arith.constant 0 : index
    %5 = vector.load %arg2[%c0_7, %c0_8, %c0_9] : memref<4x128x512xbf16, #tpu.memory_space<vmem>>, vector<1x128x512xbf16>
    %6 = vector.shape_cast %5 : vector<1x128x512xbf16> to vector<128x512xbf16>
    %c0_10 = arith.constant 0 : index
    %c0_11 = arith.constant 0 : index
    %c0_12 = arith.constant 0 : index
    %7 = vector.load %arg3[%c0_10, %c0_11, %c0_12] : memref<4x1x512xf32, #tpu.memory_space<vmem>>, vector<1x1x512xf32>
    %8 = vector.shape_cast %7 : vector<1x1x512xf32> to vector<1x512xf32>
    %cst = arith.constant dense<0.000000e+00> : vector<200xf32>
    %9 = vector.multi_reduction <add>, %0, %cst [1] : vector<200x128xf32> to vector<200xf32>
    %10 = vector.shape_cast %9 : vector<200xf32> to vector<200x1xf32>
    %cst_13 = arith.constant 1.280000e+02 : f32
    %11 = vector.broadcast %cst_13 : f32 to vector<200x1xf32>
    %12 = arith.divf %10, %11 : vector<200x1xf32>
    %13 = vector.broadcast %12 : vector<200x1xf32> to vector<200x128xf32>
    %14 = arith.subf %0, %13 : vector<200x128xf32>
    %15 = arith.mulf %14, %14 : vector<200x128xf32>
    %cst_14 = arith.constant dense<0.000000e+00> : vector<200xf32>
    %16 = vector.multi_reduction <add>, %15, %cst_14 [1] : vector<200x128xf32> to vector<200xf32>
    %17 = vector.shape_cast %16 : vector<200xf32> to vector<200x1xf32>
    %cst_15 = arith.constant 1.280000e+02 : f32
    %18 = vector.broadcast %cst_15 : f32 to vector<200x1xf32>
    %19 = arith.divf %17, %18 : vector<200x1xf32>
    %20 = vector.broadcast %12 : vector<200x1xf32> to vector<200x128xf32>
    %21 = arith.subf %0, %20 : vector<200x128xf32>
    %cst_16 = arith.constant 9.99999974E-6 : f32
    %22 = vector.broadcast %cst_16 : f32 to vector<200x1xf32>
    %23 = arith.addf %19, %22 : vector<200x1xf32>
    %24 = math.rsqrt %23 : vector<200x1xf32>
    %25 = vector.broadcast %24 : vector<200x1xf32> to vector<200x128xf32>
    %26 = arith.mulf %21, %25 : vector<200x128xf32>
    %27 = arith.truncf %26 : vector<200x128xf32> to vector<200x128xbf16>
    %cst_17 = arith.constant 0.000000e+00 : f32
    %28 = vector.broadcast %cst_17 : f32 to vector<200x128xf32>
    %cst_18 = arith.constant dense<0.000000e+00> : vector<200x512xf32>
    %29 = tpu.matmul %27, %6, %cst_18 {dimension_numbers = #tpu.dot_dimension_numbers<[1], [0], [0], [1], [0, 0, 1, 1], [], []>} : vector<200x128xbf16>, vector<128x512xbf16>, vector<200x512xf32> -> vector<200x512xf32>
    %30 = arith.truncf %29 : vector<200x512xf32> to vector<200x512xbf16>
    %31 = arith.truncf %8 : vector<1x512xf32> to vector<1x512xbf16>
    %32 = vector.broadcast %31 : vector<1x512xbf16> to vector<200x512xbf16>
    %33 = arith.addf %30, %32 : vector<200x512xbf16>
    %cst_19 = arith.constant 0.000000e+00 : bf16
    %34 = vector.broadcast %cst_19 : bf16 to vector<200x512xbf16>
    %35 = arith.maximumf %33, %34 : vector<200x512xbf16>
    %cst_20 = arith.constant dense<0.000000e+00> : vector<200x128xf32>
    %36 = tpu.matmul %35, %2, %cst_20 {dimension_numbers = #tpu.dot_dimension_numbers<[1], [0], [0], [1], [0, 0, 1, 1], [], []>} : vector<200x512xbf16>, vector<512x128xbf16>, vector<200x128xf32> -> vector<200x128xf32>
    %37 = arith.addf %28, %36 : vector<200x128xf32>
    %38 = arith.addf %0, %37 : vector<200x128xf32>
    %39 = vector.broadcast %4 : vector<1x128xf32> to vector<200x128xf32>
    %40 = arith.addf %38, %39 : vector<200x128xf32>
    %c1 = arith.constant 1 : index
    %c0_21 = arith.constant 0 : index
    %c0_22 = arith.constant 0 : index
    %41 = vector.load %arg2[%c1, %c0_21, %c0_22] : memref<4x128x512xbf16, #tpu.memory_space<vmem>>, vector<1x128x512xbf16>
    %42 = vector.shape_cast %41 : vector<1x128x512xbf16> to vector<128x512xbf16>
    %c1_23 = arith.constant 1 : index
    %c0_24 = arith.constant 0 : index
    %c0_25 = arith.constant 0 : index
    %43 = vector.load %arg3[%c1_23, %c0_24, %c0_25] : memref<4x1x512xf32, #tpu.memory_space<vmem>>, vector<1x1x512xf32>
    %44 = vector.shape_cast %43 : vector<1x1x512xf32> to vector<1x512xf32>
    %cst_26 = arith.constant dense<0.000000e+00> : vector<200xf32>
    %45 = vector.multi_reduction <add>, %40, %cst_26 [1] : vector<200x128xf32> to vector<200xf32>
    %46 = vector.shape_cast %45 : vector<200xf32> to vector<200x1xf32>
    %cst_27 = arith.constant 1.280000e+02 : f32
    %47 = vector.broadcast %cst_27 : f32 to vector<200x1xf32>
    %48 = arith.divf %46, %47 : vector<200x1xf32>
    %49 = vector.broadcast %48 : vector<200x1xf32> to vector<200x128xf32>
    %50 = arith.subf %40, %49 : vector<200x128xf32>
    %51 = arith.mulf %50, %50 : vector<200x128xf32>
    %cst_28 = arith.constant dense<0.000000e+00> : vector<200xf32>
    %52 = vector.multi_reduction <add>, %51, %cst_28 [1] : vector<200x128xf32> to vector<200xf32>
    %53 = vector.shape_cast %52 : vector<200xf32> to vector<200x1xf32>
    %cst_29 = arith.constant 1.280000e+02 : f32
    %54 = vector.broadcast %cst_29 : f32 to vector<200x1xf32>
    %55 = arith.divf %53, %54 : vector<200x1xf32>
    %56 = vector.broadcast %48 : vector<200x1xf32> to vector<200x128xf32>
    %57 = arith.subf %40, %56 : vector<200x128xf32>
    %cst_30 = arith.constant 9.99999974E-6 : f32
    %58 = vector.broadcast %cst_30 : f32 to vector<200x1xf32>
    %59 = arith.addf %55, %58 : vector<200x1xf32>
    %60 = math.rsqrt %59 : vector<200x1xf32>
    %61 = vector.broadcast %60 : vector<200x1xf32> to vector<200x128xf32>
    %62 = arith.mulf %57, %61 : vector<200x128xf32>
    %63 = arith.truncf %62 : vector<200x128xf32> to vector<200x128xbf16>
    %cst_31 = arith.constant 0.000000e+00 : f32
    %64 = vector.broadcast %cst_31 : f32 to vector<200x128xf32>
    %cst_32 = arith.constant dense<0.000000e+00> : vector<200x512xf32>
    %65 = tpu.matmul %63, %42, %cst_32 {dimension_numbers = #tpu.dot_dimension_numbers<[1], [0], [0], [1], [0, 0, 1, 1], [], []>} : vector<200x128xbf16>, vector<128x512xbf16>, vector<200x512xf32> -> vector<200x512xf32>
    %66 = arith.truncf %65 : vector<200x512xf32> to vector<200x512xbf16>
    %67 = arith.truncf %44 : vector<1x512xf32> to vector<1x512xbf16>
    %68 = vector.broadcast %67 : vector<1x512xbf16> to vector<200x512xbf16>
    %69 = arith.addf %66, %68 : vector<200x512xbf16>
    %cst_33 = arith.constant 0.000000e+00 : bf16
    %70 = vector.broadcast %cst_33 : bf16 to vector<200x512xbf16>
    %71 = arith.maximumf %69, %70 : vector<200x512xbf16>
    %cst_34 = arith.constant dense<0.000000e+00> : vector<200x128xf32>
    %72 = tpu.matmul %71, %2, %cst_34 {dimension_numbers = #tpu.dot_dimension_numbers<[1], [0], [0], [1], [0, 0, 1, 1], [], []>} : vector<200x512xbf16>, vector<512x128xbf16>, vector<200x128xf32> -> vector<200x128xf32>
    %73 = arith.addf %64, %72 : vector<200x128xf32>
    %74 = arith.addf %40, %73 : vector<200x128xf32>
    %75 = vector.broadcast %4 : vector<1x128xf32> to vector<200x128xf32>
    %76 = arith.addf %74, %75 : vector<200x128xf32>
    %c1_35 = arith.constant 1 : index
    %c0_36 = arith.constant 0 : index
    %c0_37 = arith.constant 0 : index
    %77 = vector.load %arg4[%c1_35, %c0_36, %c0_37] : memref<2x512x128xbf16, #tpu.memory_space<vmem>>, vector<1x512x128xbf16>
    %78 = vector.shape_cast %77 : vector<1x512x128xbf16> to vector<512x128xbf16>
    %c1_38 = arith.constant 1 : index
    %c0_39 = arith.constant 0 : index
    %c0_40 = arith.constant 0 : index
    %79 = vector.load %arg5[%c1_38, %c0_39, %c0_40] : memref<2x1x128xf32, #tpu.memory_space<vmem>>, vector<1x1x128xf32>
    %80 = vector.shape_cast %79 : vector<1x1x128xf32> to vector<1x128xf32>
    %c2 = arith.constant 2 : index
    %c0_41 = arith.constant 0 : index
    %c0_42 = arith.constant 0 : index
    %81 = vector.load %arg2[%c2, %c0_41, %c0_42] : memref<4x128x512xbf16, #tpu.memory_space<vmem>>, vector<1x128x512xbf16>
    %82 = vector.shape_cast %81 : vector<1x128x512xbf16> to vector<128x512xbf16>
    %c2_43 = arith.constant 2 : index
    %c0_44 = arith.constant 0 : index
    %c0_45 = arith.constant 0 : index
    %83 = vector.load %arg3[%c2_43, %c0_44, %c0_45] : memref<4x1x512xf32, #tpu.memory_space<vmem>>, vector<1x1x512xf32>
    %84 = vector.shape_cast %83 : vector<1x1x512xf32> to vector<1x512xf32>
    %cst_46 = arith.constant dense<0.000000e+00> : vector<200xf32>
    %85 = vector.multi_reduction <add>, %76, %cst_46 [1] : vector<200x128xf32> to vector<200xf32>
    %86 = vector.shape_cast %85 : vector<200xf32> to vector<200x1xf32>
    %cst_47 = arith.constant 1.280000e+02 : f32
    %87 = vector.broadcast %cst_47 : f32 to vector<200x1xf32>
    %88 = arith.divf %86, %87 : vector<200x1xf32>
    %89 = vector.broadcast %88 : vector<200x1xf32> to vector<200x128xf32>
    %90 = arith.subf %76, %89 : vector<200x128xf32>
    %91 = arith.mulf %90, %90 : vector<200x128xf32>
    %cst_48 = arith.constant dense<0.000000e+00> : vector<200xf32>
    %92 = vector.multi_reduction <add>, %91, %cst_48 [1] : vector<200x128xf32> to vector<200xf32>
    %93 = vector.shape_cast %92 : vector<200xf32> to vector<200x1xf32>
    %cst_49 = arith.constant 1.280000e+02 : f32
    %94 = vector.broadcast %cst_49 : f32 to vector<200x1xf32>
    %95 = arith.divf %93, %94 : vector<200x1xf32>
    %96 = vector.broadcast %88 : vector<200x1xf32> to vector<200x128xf32>
    %97 = arith.subf %76, %96 : vector<200x128xf32>
    %cst_50 = arith.constant 9.99999974E-6 : f32
    %98 = vector.broadcast %cst_50 : f32 to vector<200x1xf32>
    %99 = arith.addf %95, %98 : vector<200x1xf32>
    %100 = math.rsqrt %99 : vector<200x1xf32>
    %101 = vector.broadcast %100 : vector<200x1xf32> to vector<200x128xf32>
    %102 = arith.mulf %97, %101 : vector<200x128xf32>
    %103 = arith.truncf %102 : vector<200x128xf32> to vector<200x128xbf16>
    %cst_51 = arith.constant 0.000000e+00 : f32
    %104 = vector.broadcast %cst_51 : f32 to vector<200x128xf32>
    %cst_52 = arith.constant dense<0.000000e+00> : vector<200x512xf32>
    %105 = tpu.matmul %103, %82, %cst_52 {dimension_numbers = #tpu.dot_dimension_numbers<[1], [0], [0], [1], [0, 0, 1, 1], [], []>} : vector<200x128xbf16>, vector<128x512xbf16>, vector<200x512xf32> -> vector<200x512xf32>
    %106 = arith.truncf %105 : vector<200x512xf32> to vector<200x512xbf16>
    %107 = arith.truncf %84 : vector<1x512xf32> to vector<1x512xbf16>
    %108 = vector.broadcast %107 : vector<1x512xbf16> to vector<200x512xbf16>
    %109 = arith.addf %106, %108 : vector<200x512xbf16>
    %cst_53 = arith.constant 0.000000e+00 : bf16
    %110 = vector.broadcast %cst_53 : bf16 to vector<200x512xbf16>
    %111 = arith.maximumf %109, %110 : vector<200x512xbf16>
    %cst_54 = arith.constant dense<0.000000e+00> : vector<200x128xf32>
    %112 = tpu.matmul %111, %78, %cst_54 {dimension_numbers = #tpu.dot_dimension_numbers<[1], [0], [0], [1], [0, 0, 1, 1], [], []>} : vector<200x512xbf16>, vector<512x128xbf16>, vector<200x128xf32> -> vector<200x128xf32>
    %113 = arith.addf %104, %112 : vector<200x128xf32>
    %114 = arith.addf %76, %113 : vector<200x128xf32>
    %115 = vector.broadcast %80 : vector<1x128xf32> to vector<200x128xf32>
    %116 = arith.addf %114, %115 : vector<200x128xf32>
    %c3 = arith.constant 3 : index
    %c0_55 = arith.constant 0 : index
    %c0_56 = arith.constant 0 : index
    %117 = vector.load %arg2[%c3, %c0_55, %c0_56] : memref<4x128x512xbf16, #tpu.memory_space<vmem>>, vector<1x128x512xbf16>
    %118 = vector.shape_cast %117 : vector<1x128x512xbf16> to vector<128x512xbf16>
    %c3_57 = arith.constant 3 : index
    %c0_58 = arith.constant 0 : index
    %c0_59 = arith.constant 0 : index
    %119 = vector.load %arg3[%c3_57, %c0_58, %c0_59] : memref<4x1x512xf32, #tpu.memory_space<vmem>>, vector<1x1x512xf32>
    %120 = vector.shape_cast %119 : vector<1x1x512xf32> to vector<1x512xf32>
    %cst_60 = arith.constant dense<0.000000e+00> : vector<200xf32>
    %121 = vector.multi_reduction <add>, %116, %cst_60 [1] : vector<200x128xf32> to vector<200xf32>
    %122 = vector.shape_cast %121 : vector<200xf32> to vector<200x1xf32>
    %cst_61 = arith.constant 1.280000e+02 : f32
    %123 = vector.broadcast %cst_61 : f32 to vector<200x1xf32>
    %124 = arith.divf %122, %123 : vector<200x1xf32>
    %125 = vector.broadcast %124 : vector<200x1xf32> to vector<200x128xf32>
    %126 = arith.subf %116, %125 : vector<200x128xf32>
    %127 = arith.mulf %126, %126 : vector<200x128xf32>
    %cst_62 = arith.constant dense<0.000000e+00> : vector<200xf32>
    %128 = vector.multi_reduction <add>, %127, %cst_62 [1] : vector<200x128xf32> to vector<200xf32>
    %129 = vector.shape_cast %128 : vector<200xf32> to vector<200x1xf32>
    %cst_63 = arith.constant 1.280000e+02 : f32
    %130 = vector.broadcast %cst_63 : f32 to vector<200x1xf32>
    %131 = arith.divf %129, %130 : vector<200x1xf32>
    %132 = vector.broadcast %124 : vector<200x1xf32> to vector<200x128xf32>
    %133 = arith.subf %116, %132 : vector<200x128xf32>
    %cst_64 = arith.constant 9.99999974E-6 : f32
    %134 = vector.broadcast %cst_64 : f32 to vector<200x1xf32>
    %135 = arith.addf %131, %134 : vector<200x1xf32>
    %136 = math.rsqrt %135 : vector<200x1xf32>
    %137 = vector.broadcast %136 : vector<200x1xf32> to vector<200x128xf32>
    %138 = arith.mulf %133, %137 : vector<200x128xf32>
    %139 = arith.truncf %138 : vector<200x128xf32> to vector<200x128xbf16>
    %cst_65 = arith.constant 0.000000e+00 : f32
    %140 = vector.broadcast %cst_65 : f32 to vector<200x128xf32>
    %cst_66 = arith.constant dense<0.000000e+00> : vector<200x512xf32>
    %141 = tpu.matmul %139, %118, %cst_66 {dimension_numbers = #tpu.dot_dimension_numbers<[1], [0], [0], [1], [0, 0, 1, 1], [], []>} : vector<200x128xbf16>, vector<128x512xbf16>, vector<200x512xf32> -> vector<200x512xf32>
    %142 = arith.truncf %141 : vector<200x512xf32> to vector<200x512xbf16>
    %143 = arith.truncf %120 : vector<1x512xf32> to vector<1x512xbf16>
    %144 = vector.broadcast %143 : vector<1x512xbf16> to vector<200x512xbf16>
    %145 = arith.addf %142, %144 : vector<200x512xbf16>
    %cst_67 = arith.constant 0.000000e+00 : bf16
    %146 = vector.broadcast %cst_67 : bf16 to vector<200x512xbf16>
    %147 = arith.maximumf %145, %146 : vector<200x512xbf16>
    %cst_68 = arith.constant dense<0.000000e+00> : vector<200x128xf32>
    %148 = tpu.matmul %147, %78, %cst_68 {dimension_numbers = #tpu.dot_dimension_numbers<[1], [0], [0], [1], [0, 0, 1, 1], [], []>} : vector<200x512xbf16>, vector<512x128xbf16>, vector<200x128xf32> -> vector<200x128xf32>
    %149 = arith.addf %140, %148 : vector<200x128xf32>
    %150 = arith.addf %116, %149 : vector<200x128xf32>
    %151 = vector.broadcast %80 : vector<1x128xf32> to vector<200x128xf32>
    %152 = arith.addf %150, %151 : vector<200x128xf32>
    %c0_69 = arith.constant 0 : index
    %c0_70 = arith.constant 0 : index
    %153 = vector.load %arg6[%c0_69, %c0_70] : memref<1x128xf32, #tpu.memory_space<vmem>>, vector<1x128xf32>
    %154 = vector.broadcast %153 : vector<1x128xf32> to vector<200x128xf32>
    %155 = arith.mulf %152, %154 : vector<200x128xf32>
    %c0_71 = arith.constant 0 : index
    %c0_72 = arith.constant 0 : index
    %156 = vector.load %arg7[%c0_71, %c0_72] : memref<1x128xf32, #tpu.memory_space<vmem>>, vector<1x128xf32>
    %157 = vector.broadcast %156 : vector<1x128xf32> to vector<200x128xf32>
    %158 = arith.addf %155, %157 : vector<200x128xf32>
    %159 = arith.truncf %158 : vector<200x128xf32> to vector<200x128xbf16>
    %c0_73 = arith.constant 0 : index
    %c0_74 = arith.constant 0 : index
    %160 = vector.load %arg8[%c0_73, %c0_74] : memref<128x128xbf16, #tpu.memory_space<vmem>>, vector<128x128xbf16>
    %cst_75 = arith.constant dense<0.000000e+00> : vector<200x128xf32>
    %161 = tpu.matmul %159, %160, %cst_75 {dimension_numbers = #tpu.dot_dimension_numbers<[1], [0], [0], [1], [0, 0, 1, 1], [], []>} : vector<200x128xbf16>, vector<128x128xbf16>, vector<200x128xf32> -> vector<200x128xf32>
    %c0_76 = arith.constant 0 : index
    %c0_77 = arith.constant 0 : index
    %162 = vector.load %arg9[%c0_76, %c0_77] : memref<1x128xf32, #tpu.memory_space<vmem>>, vector<1x128xf32>
    %163 = vector.broadcast %162 : vector<1x128xf32> to vector<200x128xf32>
    %164 = arith.addf %161, %163 : vector<200x128xf32>
    %165 = arith.mulf %158, %158 : vector<200x128xf32>
    %cst_78 = arith.constant dense<0.000000e+00> : vector<200xf32>
    %166 = vector.multi_reduction <add>, %165, %cst_78 [1] : vector<200x128xf32> to vector<200xf32>
    %167 = vector.shape_cast %166 : vector<200xf32> to vector<200x1xf32>
    %cst_79 = arith.constant 1.000000e-24 : f32
    %168 = vector.broadcast %cst_79 : f32 to vector<200x1xf32>
    %169 = arith.maximumf %167, %168 : vector<200x1xf32>
    %170 = math.rsqrt %169 : vector<200x1xf32>
    %171 = vector.broadcast %170 : vector<200x1xf32> to vector<200x128xf32>
    %172 = arith.mulf %158, %171 : vector<200x128xf32>
    %c0_80 = arith.constant 0 : index
    %c0_81 = arith.constant 0 : index
    %173 = vector.load %arg10[%c0_80, %c0_81] : memref<200x128xf32, #tpu.memory_space<vmem>>, vector<200x128xf32>
    tpu.vector_store %arg10[%c0_80, %c0_81], %164 {strides = array<i32>} : memref<200x128xf32, #tpu.memory_space<vmem>>, vector<200x128xf32>,
    %c0_82 = arith.constant 0 : index
    %c0_83 = arith.constant 0 : index
    %174 = vector.load %arg11[%c0_82, %c0_83] : memref<200x128xf32, #tpu.memory_space<vmem>>, vector<200x128xf32>
    tpu.vector_store %arg11[%c0_82, %c0_83], %172 {strides = array<i32>} : memref<200x128xf32, #tpu.memory_space<vmem>>, vector<200x128xf32>,
    return
  }
  func.func @transform_0(%arg0: i32) -> (i32, i32) {
    %c0_i32 = arith.constant 0 : i32
    %c0_i32_0 = arith.constant 0 : i32
    return %arg0, %c0_i32 : i32, i32
  }
  func.func @transform_1(%arg0: i32) -> (i32, i32, i32) {
    %c0_i32 = arith.constant 0 : i32
    %c0_i32_0 = arith.constant 0 : i32
    %c0_i32_1 = arith.constant 0 : i32
    %c0_i32_2 = arith.constant 0 : i32
    return %c0_i32, %c0_i32_0, %c0_i32_1 : i32, i32, i32
  }
  func.func @transform_2(%arg0: i32) -> (i32, i32, i32) {
    %c0_i32 = arith.constant 0 : i32
    %c0_i32_0 = arith.constant 0 : i32
    %c0_i32_1 = arith.constant 0 : i32
    %c0_i32_2 = arith.constant 0 : i32
    return %c0_i32, %c0_i32_0, %c0_i32_1 : i32, i32, i32
  }
  func.func @transform_3(%arg0: i32) -> (i32, i32, i32) {
    %c0_i32 = arith.constant 0 : i32
    %c0_i32_0 = arith.constant 0 : i32
    %c0_i32_1 = arith.constant 0 : i32
    %c0_i32_2 = arith.constant 0 : i32
    return %c0_i32, %c0_i32_0, %c0_i32_1 : i32, i32, i32
  }
  func.func @transform_4(%arg0: i32) -> (i32, i32, i32) {
    %c0_i32 = arith.constant 0 : i32
    %c0_i32_0 = arith.constant 0 : i32
    %c0_i32_1 = arith.constant 0 : i32
    %c0_i32_2 = arith.constant 0 : i32
    return %c0_i32, %c0_i32_0, %c0_i32_1 : i32, i32, i32
  }
  func.func @transform_5(%arg0: i32) -> (i32, i32) {
    %c0_i32 = arith.constant 0 : i32
    %c0_i32_0 = arith.constant 0 : i32
    %c0_i32_1 = arith.constant 0 : i32
    return %c0_i32, %c0_i32_0 : i32, i32
  }
  func.func @transform_6(%arg0: i32) -> (i32, i32) {
    %c0_i32 = arith.constant 0 : i32
    %c0_i32_0 = arith.constant 0 : i32
    %c0_i32_1 = arith.constant 0 : i32
    return %c0_i32, %c0_i32_0 : i32, i32
  }
  func.func @transform_7(%arg0: i32) -> (i32, i32) {
    %c0_i32 = arith.constant 0 : i32
    %c0_i32_0 = arith.constant 0 : i32
    %c0_i32_1 = arith.constant 0 : i32
    return %c0_i32, %c0_i32_0 : i32, i32
  }
  func.func @transform_8(%arg0: i32) -> (i32, i32) {
    %c0_i32 = arith.constant 0 : i32
    %c0_i32_0 = arith.constant 0 : i32
    %c0_i32_1 = arith.constant 0 : i32
    return %c0_i32, %c0_i32_0 : i32, i32
  }
  func.func @transform_9(%arg0: i32) -> (i32, i32) {
    %c0_i32 = arith.constant 0 : i32
    %c0_i32_0 = arith.constant 0 : i32
    return %arg0, %c0_i32 : i32, i32
  }
  func.func @transform_10(%arg0: i32) -> (i32, i32) {
    %c0_i32 = arith.constant 0 : i32
    %c0_i32_0 = arith.constant 0 : i32
    return %arg0, %c0_i32 : i32, i32
  }
}

</mosaic_0001>

<bundles_post_ra>
// kernel: tpu_custom_call.1
= control target key start
LH: loop header
LB: loop body
LE: loop exit
PB: predicated region body
PF: predicated region fallthrough
CT: control target
= control target key end

     0   :  { %16 = vsyncpa [#allocation3], 0  ;;  %s10554_s0 = inlined_call_operand.hbm [shape: f32[200,128], index: 0, kind: input, shape index: {}]   ;;  %s10555_s1 = inlined_call_operand.hbm [shape: bf16[4,128,512], index: 1, kind: input, shape index: {}]   ;;  %s10556_s2 = inlined_call_operand.hbm [shape: f32[4,1,512], index: 2, kind: input, shape index: {}]   ;;  %s10557_s3 = inlined_call_operand.hbm [shape: bf16[2,512,128], index: 3, kind: input, shape index: {}]   ;;  %s10558_s4 = inlined_call_operand.vmem [shape: f32[2,1,128], index: 4, kind: input, shape index: {}]   ;;  %s10559_s5 = inlined_call_operand.vmem [shape: f32[1,128], index: 5, kind: input, shape index: {}]   ;;  %s10560_s6 = inlined_call_operand.vmem [shape: f32[1,128], index: 6, kind: input, shape index: {}]   ;;  %s10561_s7 = inlined_call_operand.hbm [shape: bf16[128,128], index: 7, kind: input, shape index: {}]   ;;  %s10562_s8 = inlined_call_operand.vmem [shape: f32[1,128], index: 8, kind: input, shape index: {}]   ;;  %s10563_s9 = inlined_call_operand.hbm [shape: f32[200,128], index: 9, kind: output, shape index: {0}]   ;;  %s10564_s10 = inlined_call_operand.hbm [shape: f32[200,128], index: 10, kind: output, shape index: {1}]  }
   0x1   :  { %17 = vsyncpa [#allocation6], 0 }
   0x2   :  { %18 = vsyncpa [#allocation9], 0 }
   0x3   :  { %19 = vsyncpa [#allocation4], 0 }
   0x4   :  { %20 = vsyncpa [#allocation13], 0  ;;  %s8354_s13 = smov [#allocation5]  }
   0x5   :  { %s38_s14 = sshll.u32 %s8354_s13, 4  ;;  %s39_s14 = int_to_ptr.vmem [resolvable:$true] %s38_s14 }
   0x6   :  { %s8212_s15 = scalar_lea.vmem %s39_s14, 16384  ;;  %p8217_p1 = scmp.lt.s32.totalorder %s39_s14, %s39_s14 }
   0x7   :  { %p8213_p0 = scmp.ne.s32.totalorder %s39_s14, %s8212_s15  ;;  %p8218_p2 = scmp.lt.s32.totalorder %s8212_s15, %s8212_s15 }
   0x9   :  { %p8219_p3 = por %p8218_p2, %p8217_p1 }
   0xb   :  { %p8220_p4 = pnand %p8219_p3, %p8213_p0 }
   0xd   :  { %8223 = shalt.err (!%p8220_p4)
}
   0xe   :  { %s8355_s16 = smov 256   ;;  %s8356_s17 = smov 16  }
   0xf   :  { %44 = dma.hbm_to_vmem [thread:$0]  %s10555_s1, 16384, %s39_s14, [#allocation6], %s8355_s16, %s8355_s16, %s8356_s17  }
  0x10   :  { %s8357_s20 = smov [#allocation8]   ;;  %s8358_s22 = smov [#allocation2]  }
  0x11   :  { %s62_s21 = sshll.u32 %s8357_s20, 4  ;;  %s26_s23 = sshll.u32 %s8358_s22, 4  ;;  %s63_s21 = int_to_ptr.vmem [resolvable:$true] %s62_s21  ;;  %s27_s23 = int_to_ptr.vmem [resolvable:$true] %s26_s23 }
  0x12   :  { %s8232_s24 = scalar_lea.vmem %s63_s21, 8192  ;;  %p8237_p6 = scmp.lt.s32.totalorder %s63_s21, %s63_s21 }
  0x13   :  { %p8233_p5 = scmp.ne.s32.totalorder %s63_s21, %s8232_s24  ;;  %p8238_p7 = scmp.lt.s32.totalorder %s8232_s24, %s8232_s24 }
  0x15   :  { %p8239_p8 = por %p8238_p7, %p8237_p6 }
  0x17   :  { %p8240_p9 = pnand %p8239_p8, %p8233_p5 }
  0x19   :  { %8243 = shalt.err (!%p8240_p9)
}
  0x1a   :  { %s8359_s25 = smov 64   ;;  %s8360_s26 = smov 4  }
  0x1b   :  { %68 = dma.hbm_to_vmem [thread:$0]  %s10557_s3, 8192, %s63_s21, [#allocation9], %s8359_s25, %s8359_s25, %s8360_s26  }
  0x1c   :  { %s8252_s1 = scalar_lea.vmem %s27_s23, 3200  ;;  %p8257_p11 = scmp.lt.s32.totalorder %s27_s23, %s27_s23 }
  0x1d   :  { %p8253_p10 = scmp.ne.s32.totalorder %s27_s23, %s8252_s1  ;;  %p8258_p12 = scmp.lt.s32.totalorder %s8252_s1, %s8252_s1 }
  0x1f   :  { %p8259_p13 = por %p8258_p12, %p8257_p11 }
  0x21   :  { %p8260_p0 = pnand %p8259_p13, %p8253_p10 }
  0x23   :  { %8263 = shalt.err (!%p8260_p0)
}
  0x24   :  { %s8361_s29 = smov 128   ;;  %s8362_s30 = smov 8  }
  0x25   :  { %32 = dma.hbm_to_vmem [thread:$0]  %s10554_s0, 3200, %s27_s23, [#allocation3], %s8361_s29, %s8361_s29, %s8362_s30  }
  0x26   :  { %s8363_s13 = smov [#allocation7]   ;;  %s8364_s3 = smov [#allocation10]  }
  0x27   :  { %s50_s14 = sshll.u32 %s8363_s13, 4  ;;  %s80_s15 = sshll.u32 %s8364_s3, 4  ;;  %s51_s14 = int_to_ptr.vmem [resolvable:$true] %s50_s14  ;;  %s81_s15 = int_to_ptr.vmem [resolvable:$true] %s80_s15 }
  0x28   :  { %s8272_s16 = scalar_lea.vmem %s51_s14, 256  ;;  %p8277_p2 = scmp.lt.s32.totalorder %s51_s14, %s51_s14 }
  0x29   :  { %p8273_p1 = scmp.ne.s32.totalorder %s51_s14, %s8272_s16  ;;  %p8278_p3 = scmp.lt.s32.totalorder %s8272_s16, %s8272_s16 }
  0x2b   :  { %p8279_p4 = por %p8278_p3, %p8277_p2 }
  0x2d   :  { %p8280_p5 = pnand %p8279_p4, %p8273_p1 }
  0x2f   :  { %8283 = shalt.err (!%p8280_p5)
}
  0x30   :  { %56 = dma.hbm_to_vmem [thread:$0]  %s10556_s2, 256, %s51_s14, [#allocation6], %s8359_s25, %s8359_s25, %s8360_s26  }
  0x31   :  { %s8292_s0 = scalar_lea.vmem %s81_s15, 1024  ;;  %p8297_p7 = scmp.lt.s32.totalorder %s81_s15, %s81_s15 }
  0x32   :  { %p8293_p6 = scmp.ne.s32.totalorder %s81_s15, %s8292_s0  ;;  %p8298_p8 = scmp.lt.s32.totalorder %s8292_s0, %s8292_s0 }
  0x34   :  { %p8299_p9 = por %p8298_p8, %p8297_p7 }
  0x36   :  { %p8300_p10 = pnand %p8299_p9, %p8293_p6 }
  0x38   :  { %8303 = shalt.err (!%p8300_p10)
}
  0x39   :  { %86 = dma.hbm_to_vmem [thread:$0]  %s10561_s7, 1024, %s81_s15, [#allocation9], %s8359_s25, %s8359_s25, %s8360_s26  }
  0x3a   :  { %8344 = dma.done.wait [#allocation3], 3200  }
  0x3b   :  { %8345 = vsyncadd [#allocation3], 4294964096 }
  0x3c   :  { %8346 = dma.done.wait [#allocation6], 16640  }
  0x3d   :  { %8347 = vsyncadd [#allocation6], 4294950656 }
  0x3e   :  { %8348 = dma.done.wait [#allocation9], 9216  }
  0x3f   :  { %8349 = vsyncadd [#allocation9], 4294958080  ;;  %v119_v0 = vld [vmem:[#allocation2 + $0x70] sm:$0xff]  ;;  %v121_v1 = vld [vmem:[#allocation2 + $0x80] sm:$0xff]  ;;  %vm8367_vm0 = vmmov 0  }
  0x40   :  { %256 = vadd.xlane.f32.xlu0 %v119_v0  ;;  %260 = vadd.xlane.f32.xlu1 %v121_v1  ;;  %v120_v2 = vld [vmem:[#allocation2 + $0x78] sm:$0xff]  ;;  %v8452_v3 = vld [vmem:[#allocation2 + $0x88] sm:$0xff]  ;;  %v8455_v4 = vld [vmem:[#allocation2 + $0x90] sm:$0xff] }
  0x41   :  { %v8457_v5 = vld [vmem:[#allocation2 + $0x98] sm:$0xff]  ;;  %v8459_v6 = vld [vmem:[#allocation2 + $0xa0] sm:$0xff]  ;;  %v8461_v7 = vld [vmem:[#allocation2 + $0xa8] sm:$0xff] }
  0x42   :  { %v8465_v8 = vld [vmem:[#allocation2 + $0xb0] sm:$0xff]  ;;  %v8467_v9 = vld [vmem:[#allocation2 + $0xb8] sm:$0xff]  ;;  %v8471_v10 = vld [vmem:[#allocation2 + $0xc0] sm:$0xff] }
  0x43   :  { %v8473_v11 = vld [vmem:[#allocation2] sm:$0xff]  ;;  %v8477_v12 = vld [vmem:[#allocation2 + $0x8] sm:$0xff]  ;;  %v8481_v13 = vld [vmem:[#allocation2 + $0x10] sm:$0xff] }
  0x44   :  { %258 = vadd.xlane.f32.xlu0 %v120_v2  ;;  %262 = vadd.xlane.f32.xlu1 %v8452_v3  ;;  %v8483_v14 = vld [vmem:[#allocation2 + $0x18] sm:$0xff]  ;;  %v8485_v15 = vld [vmem:[#allocation2 + $0x20] sm:$0xff]  ;;  %v8489_v16 = vld [vmem:[#allocation2 + $0x28] sm:$0xff] }
  0x45   :  { %v8493_v17 = vld [vmem:[#allocation2 + $0x30] sm:$0xff]  ;;  %v8495_v18 = vld [vmem:[#allocation2 + $0x38] sm:$0xff]  ;;  %v8508_v35 = vld [vmem:[#allocation2 + $0x40] sm:$0xff] }
  0x46   :  { %v7599_v19 = vld [vmem:[#allocation5 + $0xe4] ss:$16 sps:$4 sm:$0xff]   ;;  %v7601_v20 = vld [vmem:[#allocation5 + $0xe0] ss:$16 sps:$4 sm:$0xff]   ;;  %v8526_v48 = vld [vmem:[#allocation2 + $0x50] sm:$0xff] }
  0x47   :  { %v7602_v21 = vld [vmem:[#allocation5 + $0xc4] ss:$16 sps:$4 sm:$0xff]   ;;  %v7604_v22 = vld [vmem:[#allocation5 + $0xc0] ss:$16 sps:$4 sm:$0xff]   ;;  %7567 = vmatprep.subr.bf16.mxu1 %v7599_v19  ;;  %677 = vmatprep.subr.bf16.mxu0 %v7599_v19 }
  0x48   :  { %264 = vadd.xlane.f32.xlu0 %v8455_v4  ;;  %266 = vadd.xlane.f32.xlu1 %v8457_v5  ;;  %v8518_v42 = vld [vmem:[#allocation2 + $0x48] sm:$0xff]  ;;  %v8534_v56 = vld [vmem:[#allocation2 + $0x58] sm:$0xff] }
  0x49   :  { %7575 = vmatpush1.bf16.msra.mxu1 %v7601_v20  ;;  %678 = vmatpush1.bf16.msra.mxu0 %v7601_v20  ;;  %v7605_v51 = vld [vmem:[#allocation5 + $0xa4] ss:$16 sps:$4 sm:$0xff]   ;;  %v7607_v52 = vld [vmem:[#allocation5 + $0xa0] ss:$16 sps:$4 sm:$0xff]  }
  0x4a   :  { %7568 = vmatprep.subr.bf16.mxu1 %v7602_v21  ;;  %679 = vmatprep.subr.bf16.mxu0 %v7602_v21  ;;  %v7608_v58 = vld [vmem:[#allocation5 + $0x84] ss:$16 sps:$4 sm:$0xff]   ;;  %v7610_v61 = vld [vmem:[#allocation5 + $0x80] ss:$16 sps:$4 sm:$0xff]  }
  0x4b   :  { %v7613_v19 = vld [vmem:[#allocation5 + $0x60] ss:$16 sps:$4 sm:$0xff]  }
  0x4c   :  { %268 = vadd.xlane.f32.xlu0 %v8459_v6  ;;  %270 = vadd.xlane.f32.xlu1 %v8461_v7 }
  0x4d   :  { %7576 = vmatpush1.bf16.msra.mxu1 %v7604_v22  ;;  %680 = vmatpush1.bf16.msra.mxu0 %v7604_v22  ;;  %v8553_v22 = vld [vmem:[#allocation2 + $0x68] sm:$0xff] }
  0x4e   :  { %7569 = vmatprep.subr.bf16.mxu1 %v7605_v51  ;;  %681 = vmatprep.subr.bf16.mxu0 %v7605_v51 }
  0x50   :  { %272 = vadd.xlane.f32.xlu0 %v8465_v8  ;;  %274 = vadd.xlane.f32.xlu1 %v8467_v9 }
  0x51   :  { %7577 = vmatpush1.bf16.msra.mxu1 %v7607_v52  ;;  %682 = vmatpush1.bf16.msra.mxu0 %v7607_v52 }
  0x52   :  { %7570 = vmatprep.subr.bf16.mxu1 %v7608_v58  ;;  %683 = vmatprep.subr.bf16.mxu0 %v7608_v58  ;;  %v10565_v58 = vmov 0  }
  0x53   :  { %779 = vmatprep.mubr.bf16.mxu1 %v10565_v58  ;;  %709 = vmatprep.mubr.bf16.mxu0 %v10565_v58 }
  0x54   :  { %276 = vadd.xlane.f32.xlu0 %v8471_v10  ;;  %228 = vadd.xlane.f32.xlu1 %v8473_v11 }
  0x55   :  { %7578 = vmatpush1.bf16.msra.mxu1 %v7610_v61  ;;  %684 = vmatpush1.bf16.msra.mxu0 %v7610_v61 }
  0x58   :  { %230 = vadd.xlane.f32.xlu0 %v8477_v12  ;;  %232 = vadd.xlane.f32.xlu1 %v8481_v13 }
  0x5c   :  { %234 = vadd.xlane.f32.xlu0 %v8483_v14  ;;  %236 = vadd.xlane.f32.xlu1 %v8485_v15 }
  0x60   :  { %238 = vadd.xlane.f32.xlu0 %v8489_v16  ;;  %240 = vadd.xlane.f32.xlu1 %v8493_v17 }
  0x64   :  { %242 = vadd.xlane.f32.xlu0 %v8495_v18 }
  0xc9   :  { %v257_v23 = vpop.xlane.xlu0 %256  ;;  %v261_v24 = vpop.xlane.xlu1 %260 }
  0xca   :  { %v293_v25 = vmul.f32 0.0078125, %v257_v23  ;;  %v295_v27 = vmul.f32 0.0078125, %v261_v24 }
  0xcc   :  { %v8500_v26 = vsub.f32 %v119_v0, %v293_v25  ;;  %v8506_v34 = vsub.f32 %v121_v1, %v295_v27  ;;  %v8542_v1 = vld [vmem:[#allocation2 + $0x60] sm:$0xff] }
  0xcd   :  { %v259_v28 = vpop.xlane.xlu0 %258  ;;  %v263_v29 = vpop.xlane.xlu1 %262 }
  0xce   :  { %v294_v30 = vmul.f32 0.0078125, %v259_v28  ;;  %v343_v31 = vmul.f32 %v8500_v26, %v8500_v26  ;;  %v296_v33 = vmul.f32 0.0078125, %v263_v29  ;;  %v345_v39 = vmul.f32 %v8506_v34, %v8506_v34  ;;  %v7616_v28 = vld [vmem:[#allocation5 + $0x40] ss:$16 sps:$4 sm:$0xff]  }
  0xd0   :  { %382 = vadd.xlane.f32.xlu1 %v343_v31  ;;  %v8504_v32 = vsub.f32 %v120_v2, %v294_v30  ;;  %v8516_v41 = vsub.f32 %v8452_v3, %v296_v33  ;;  %v7611_v3 = vld [vmem:[#allocation5 + $0x64] ss:$16 sps:$4 sm:$0xff]  }
  0xd1   :  { %v265_v36 = vpop.xlane.xlu0 %264  ;;  %v267_v37 = vpop.xlane.xlu1 %266  ;;  %7571 = vmatprep.subr.bf16.mxu1 %v7611_v3  ;;  %685 = vmatprep.subr.bf16.mxu0 %v7611_v3  ;;  %v7617_v33 = vld [vmem:[#allocation5 + $0x24] ss:$16 sps:$4 sm:$0xff]  }
  0xd2   :  { %v344_v38 = vmul.f32 %v8504_v32, %v8504_v32  ;;  %v297_v40 = vmul.f32 0.0078125, %v265_v36  ;;  %v346_v45 = vmul.f32 %v8516_v41, %v8516_v41  ;;  %v298_v46 = vmul.f32 0.0078125, %v267_v37  ;;  %7579 = vmatpush1.bf16.msra.mxu1 %v7613_v19  ;;  %686 = vmatpush1.bf16.msra.mxu0 %v7613_v19 }
  0xd4   :  { %384 = vadd.xlane.f32.xlu0 %v344_v38  ;;  %244 = vadd.xlane.f32.xlu1 %v8508_v35  ;;  %v8524_v47 = vsub.f32 %v8455_v4, %v297_v40  ;;  %v8532_v55 = vsub.f32 %v8457_v5, %v298_v46 }
  0xd5   :  { %v269_v43 = vpop.xlane.xlu0 %268  ;;  %v271_v44 = vpop.xlane.xlu1 %270 }
  0xd6   :  { %v347_v53 = vmul.f32 %v8524_v47, %v8524_v47  ;;  %v299_v54 = vmul.f32 0.0078125, %v269_v43  ;;  %v300_v59 = vmul.f32 0.0078125, %v271_v44  ;;  %v348_v62 = vmul.f32 %v8532_v55, %v8532_v55 }
  0xd8   :  { %246 = vadd.xlane.f32.xlu0 %v8518_v42  ;;  %386 = vadd.xlane.f32.xlu1 %v345_v39  ;;  %v8540_v0 = vsub.f32 %v8459_v6, %v299_v54  ;;  %v8545_v5 = vsub.f32 %v8461_v7, %v300_v59  ;;  %v7614_v7 = vld [vmem:[#allocation5 + $0x44] ss:$16 sps:$4 sm:$0xff]   ;;  %v7619_v39 = vld [vmem:[#allocation5 + $0x20] ss:$16 sps:$4 sm:$0xff]  }
  0xd9   :  { %v273_v49 = vpop.xlane.xlu0 %272  ;;  %v275_v50 = vpop.xlane.xlu1 %274  ;;  %7572 = vmatprep.subr.bf16.mxu1 %v7614_v7  ;;  %687 = vmatprep.subr.bf16.mxu0 %v7614_v7 }
  0xda   :  { %v301_v63 = vmul.f32 0.0078125, %v273_v49  ;;  %v302_v4 = vmul.f32 0.0078125, %v275_v50  ;;  %v349_v6 = vmul.f32 %v8540_v0, %v8540_v0  ;;  %v350_v25 = vmul.f32 %v8545_v5, %v8545_v5  ;;  %7580 = vmatpush1.bf16.msra.mxu1 %v7616_v28  ;;  %688 = vmatpush1.bf16.msra.mxu0 %v7616_v28  ;;  %v7622_v50 = vld [vmem:[#allocation5] ss:$16 sps:$4 sm:$0xff]  }
  0xdb   :  { %7573 = vmatprep.subr.bf16.mxu1 %v7617_v33  ;;  %689 = vmatprep.subr.bf16.mxu0 %v7617_v33 }
  0xdc   :  { %388 = vadd.xlane.f32.xlu0 %v346_v45  ;;  %248 = vadd.xlane.f32.xlu1 %v8526_v48  ;;  %v8551_v21 = vsub.f32 %v8465_v8, %v301_v63  ;;  %v8558_v27 = vsub.f32 %v8467_v9, %v302_v4  ;;  %v7620_v45 = vld [vmem:[#allocation5 + $0x4] ss:$16 sps:$4 sm:$0xff]   ;;  %v7625_v4 = vld [vmem:[#allocation5 + $0xec] ss:$16 sps:$4 sm:$0xff]  }
  0xdd   :  { %v277_v57 = vpop.xlane.xlu0 %276  ;;  %v229_v60 = vpop.xlane.xlu1 %228 }
  0xde   :  { %v303_v20 = vmul.f32 0.0078125, %v277_v57  ;;  %v351_v8 = vmul.f32 %v8551_v21, %v8551_v21  ;;  %v279_v30 = vmul.f32 0.0078125, %v229_v60  ;;  %v352_v9 = vmul.f32 %v8558_v27, %v8558_v27  ;;  %7581 = vmatpush1.bf16.msra.mxu1 %v7619_v39  ;;  %690 = vmatpush1.bf16.msra.mxu0 %v7619_v39 }
  0xdf   :  { %7574 = vmatprep.subr.bf16.mxu1 %v7620_v45  ;;  %691 = vmatprep.subr.bf16.mxu0 %v7620_v45 }
  0xe0   :  { %250 = vadd.xlane.f32.xlu0 %v8534_v56  ;;  %390 = vadd.xlane.f32.xlu1 %v347_v53  ;;  %v8564_v31 = vsub.f32 %v8471_v10, %v303_v20  ;;  %v8574_v44 = vsub.f32 %v8473_v11, %v279_v30 }
  0xe1   :  { %v231_v2 = vpop.xlane.xlu0 %230  ;;  %v233_v24 = vpop.xlane.xlu1 %232 }
  0xe2   :  { %v280_v29 = vmul.f32 0.0078125, %v231_v2  ;;  %v281_v36 = vmul.f32 0.0078125, %v233_v24  ;;  %v353_v40 = vmul.f32 %v8564_v31, %v8564_v31  ;;  %7582 = vmatpush1.bf16.msra.mxu1 %v7622_v50  ;;  %692 = vmatpush1.bf16.msra.mxu0 %v7622_v50 }
  0xe3   :  { %838 = vmatprep.subr.bf16.mxu1 %v7625_v4 }
  0xe4   :  { %392 = vadd.xlane.f32.xlu0 %v348_v62  ;;  %252 = vadd.xlane.f32.xlu1 %v8542_v1  ;;  %v8571_v10 = vsub.f32 %v8477_v12, %v280_v29  ;;  %v8577_v49 = vsub.f32 %v8481_v13, %v281_v36  ;;  %v329_v12 = vmul.f32 %v8574_v44, %v8574_v44 }
  0xe5   :  { %v235_v23 = vpop.xlane.xlu0 %234  ;;  %v237_v38 = vpop.xlane.xlu1 %236 }
  0xe6   :  { %v282_v43 = vmul.f32 0.0078125, %v235_v23  ;;  %v283_v46 = vmul.f32 0.0078125, %v237_v38  ;;  %v330_v51 = vmul.f32 %v8571_v10, %v8571_v10  ;;  %v331_v13 = vmul.f32 %v8577_v49, %v8577_v49 }
  0xe8   :  { %254 = vadd.xlane.f32.xlu0 %v8553_v22  ;;  %394 = vadd.xlane.f32.xlu1 %v349_v6  ;;  %v8584_v52 = vsub.f32 %v8483_v14, %v282_v43  ;;  %v8589_v57 = vsub.f32 %v8485_v15, %v283_v46 }
  0xe9   :  { %v239_v37 = vpop.xlane.xlu0 %238  ;;  %v241_v54 = vpop.xlane.xlu1 %240 }
  0xea   :  { %v284_v11 = vmul.f32 0.0078125, %v239_v37  ;;  %v332_v14 = vmul.f32 %v8584_v52, %v8584_v52  ;;  %v285_v60 = vmul.f32 0.0078125, %v241_v54  ;;  %v333_v62 = vmul.f32 %v8589_v57, %v8589_v57 }
  0xec   :  { %396 = vadd.xlane.f32.xlu0 %v350_v25  ;;  %398 = vadd.xlane.f32.xlu1 %v351_v8  ;;  %v8596_v61 = vsub.f32 %v8489_v16, %v284_v11  ;;  %v8606_v2 = vsub.f32 %v8493_v17, %v285_v60 }
  0xed   :  { %v243_v53 = vpop.xlane.xlu0 %242 }
  0xee   :  { %v286_v59 = vmul.f32 0.0078125, %v243_v53  ;;  %v334_v15 = vmul.f32 %v8596_v61, %v8596_v61  ;;  %v335_v3 = vmul.f32 %v8606_v2, %v8606_v2 }
  0xf0   :  { %400 = vadd.xlane.f32.xlu0 %v352_v9  ;;  %402 = vadd.xlane.f32.xlu1 %v353_v40  ;;  %v8603_v63 = vsub.f32 %v8495_v18, %v286_v59 }
  0xf2   :  { %v336_v16 = vmul.f32 %v8603_v63, %v8603_v63 }
  0xf4   :  { %356 = vadd.xlane.f32.xlu1 %v330_v51  ;;  %354 = vadd.xlane.f32.xlu0 %v329_v12 }
  0xf8   :  { %360 = vadd.xlane.f32.xlu1 %v332_v14  ;;  %358 = vadd.xlane.f32.xlu0 %v331_v13 }
  0xfc   :  { %364 = vadd.xlane.f32.xlu1 %v334_v15  ;;  %362 = vadd.xlane.f32.xlu0 %v333_v62 }
 0x100   :  { %368 = vadd.xlane.f32.xlu1 %v336_v16  ;;  %366 = vadd.xlane.f32.xlu0 %v335_v3 }
 0x159   :  { %v383_v19 = vpop.xlane.xlu1 %382 }
 0x15a   :  { %v418_v6 = vmul.f32 0.0078125, %v383_v19 }
 0x15c   :  { %v443_v20 = vadd.f32 1e-05, %v418_v6 }
 0x15d   :  { %v385_v18 = vpop.xlane.xlu0 %384  ;;  %v245_v23 = vpop.xlane.xlu1 %244 }
 0x15e   :  { %v419_v24 = vmul.f32 0.0078125, %v385_v18  ;;  %v287_v17 = vmul.f32 0.0078125, %v245_v23  ;;  %7863 = vrsqrt.f32 %v443_v20  ;;  %v7623_v23 = vld [vmem:[#allocation5 + $0xe8] ss:$16 sps:$4 sm:$0xff]  }
 0x160   :  { %v444_v7 = vadd.f32 1e-05, %v419_v24  ;;  %v8613_v25 = vsub.f32 %v8508_v35, %v287_v17 }
 0x161   :  { %v247_v28 = vpop.xlane.xlu0 %246  ;;  %v387_v8 = vpop.xlane.xlu1 %386 }
 0x162   :  { %7865 = vrsqrt.f32 %v444_v7  ;;  %v288_v29 = vmul.f32 0.0078125, %v247_v28  ;;  %v420_v30 = vmul.f32 0.0078125, %v387_v8  ;;  %v337_v33 = vmul.f32 %v8613_v25, %v8613_v25 }
 0x164   :  { %v445_v9 = vadd.f32 1e-05, %v420_v30  ;;  %370 = vadd.xlane.f32.xlu0 %v337_v33  ;;  %v8618_v36 = vsub.f32 %v8518_v42, %v288_v29  ;;  %v7626_v30 = vld [vmem:[#allocation5 + $0xc8] ss:$16 sps:$4 sm:$0xff]  }
 0x165   :  { %v389_v37 = vpop.xlane.xlu0 %388  ;;  %v249_v38 = vpop.xlane.xlu1 %248 }
 0x166   :  { %v421_v39 = vmul.f32 0.0078125, %v389_v37  ;;  %v289_v40 = vmul.f32 0.0078125, %v249_v38  ;;  %v338_v35 = vmul.f32 %v8618_v36, %v8618_v36  ;;  %7867 = vrsqrt.f32 %v445_v9  ;;  %v7631_v37 = vld [vmem:[#allocation5 + $0xac] ss:$16 sps:$4 sm:$0xff]  }
 0x168   :  { %v446_v43 = vadd.f32 1e-05, %v421_v39  ;;  %372 = vadd.xlane.f32.xlu1 %v338_v35  ;;  %v8623_v45 = vsub.f32 %v8526_v48, %v289_v40 }
 0x169   :  { %v251_v46 = vpop.xlane.xlu0 %250  ;;  %v391_v50 = vpop.xlane.xlu1 %390 }
 0x16a   :  { %7869 = vrsqrt.f32 %v446_v43  ;;  %v290_v51 = vmul.f32 0.0078125, %v251_v46  ;;  %v422_v12 = vmul.f32 0.0078125, %v391_v50  ;;  %v339_v42 = vmul.f32 %v8623_v45, %v8623_v45  ;;  %v7629_v50 = vld [vmem:[#allocation5 + $0xa8] ss:$16 sps:$4 sm:$0xff]  }
 0x16b   :  { %v7864_v11 = vpop.eup %7863 }
 0x16c   :  { %v447_v53 = vadd.f32 1e-05, %v422_v12  ;;  %374 = vadd.xlane.f32.xlu0 %v339_v42  ;;  %v8628_v54 = vsub.f32 %v8534_v56, %v290_v51  ;;  %v493_v15 = vmul.f32 %v7864_v11, %v8500_v26  ;;  %v7628_v26 = vld [vmem:[#allocation5 + $0xcc] ss:$16 sps:$4 sm:$0xff]  }
 0x16d   :  { %v393_v13 = vpop.xlane.xlu0 %392  ;;  %v253_v14 = vpop.xlane.xlu1 %252  ;;  %v7634_v12 = vld [vmem:[#allocation5 + $0x8c] ss:$16 sps:$4 sm:$0xff]  }
 0x16e   :  { %v423_v59 = vmul.f32 0.0078125, %v393_v13  ;;  %v291_v60 = vmul.f32 0.0078125, %v253_v14  ;;  %v340_v48 = vmul.f32 %v8628_v54, %v8628_v54  ;;  %7871 = vrsqrt.f32 %v447_v53 }
 0x16f   :  { %v7866_v62 = vpop.eup %7865 }
 0x170   :  { %v448_v16 = vadd.f32 1e-05, %v423_v59  ;;  %376 = vadd.xlane.f32.xlu1 %v340_v48  ;;  %v494_v3 = vmul.f32 %v7866_v62, %v8504_v32  ;;  %v8635_v4 = vsub.f32 %v8542_v1, %v291_v60  ;;  %v7632_v59 = vld [vmem:[#allocation5 + $0x88] ss:$16 sps:$4 sm:$0xff]   ;;  %v7637_v48 = vld [vmem:[#allocation5 + $0x6c] ss:$16 sps:$4 sm:$0xff]  }
 0x171   :  { %v255_v56 = vpop.xlane.xlu0 %254  ;;  %v395_v19 = vpop.xlane.xlu1 %394 }
 0x172   :  { %7873 = vrsqrt.f32 %v448_v16  ;;  %v292_v6 = vmul.f32 0.0078125, %v255_v56  ;;  %v424_v20 = vmul.f32 0.0078125, %v395_v19  ;;  %v8637_v18 = vpack.c.bf16 %v494_v3, %v493_v15 }
 0x173   :  { %v341_v24 = vmul.f32 %v8635_v4, %v8635_v4  ;;  %v7868_v1 = vpop.eup %7867 }
 0x174   :  { %v449_v17 = vadd.f32 1e-05, %v424_v20  ;;  %780 = vmatmul.mubr.bf16.vlgmr.msra.gmra.mxu1 %v8637_v18  ;;  %v8643_v32 = vsub.f32 %v8553_v22, %v292_v6  ;;  %v495_v22 = vmul.f32 %v7868_v1, %v8506_v34 }
 0x175   :  { %378 = vadd.xlane.f32.xlu0 %v341_v24  ;;  %v397_v7 = vpop.xlane.xlu0 %396  ;;  %v399_v28 = vpop.xlane.xlu1 %398  ;;  %789 = vmatprep.mubr.bf16.mxu1 %v10565_v58 }
 0x176   :  { %v425_v8 = vmul.f32 0.0078125, %v397_v7  ;;  %v342_v29 = vmul.f32 %v8643_v32, %v8643_v32  ;;  %839 = vmatpush1.bf16.msra.mxu1 %v7623_v23  ;;  %v426_v9 = vmul.f32 0.0078125, %v399_v28  ;;  %7875 = vrsqrt.f32 %v449_v17  ;;  %v7640_v17 = vld [vmem:[#allocation5 + $0x4c] ss:$16 sps:$4 sm:$0xff]  }
 0x177   :  { %v7870_v33 = vpop.eup %7869  ;;  %840 = vmatprep.subr.bf16.mxu1 %v7628_v26  ;;  %v7635_v26 = vld [vmem:[#allocation5 + $0x68] ss:$16 sps:$4 sm:$0xff]  }
 0x178   :  { %v450_v38 = vadd.f32 1e-05, %v425_v8  ;;  %380 = vadd.xlane.f32.xlu1 %v342_v29  ;;  %v496_v39 = vmul.f32 %v7870_v33, %v8516_v41  ;;  %v451_v51 = vadd.f32 1e-05, %v426_v9  ;;  %v7638_v29 = vld [vmem:[#allocation5 + $0x48] ss:$16 sps:$4 sm:$0xff]  }
 0x179   :  { %v401_v40 = vpop.xlane.xlu0 %400  ;;  %v403_v35 = vpop.xlane.xlu1 %402  ;;  %v7643_v9 = vld [vmem:[#allocation5 + $0x2c] ss:$16 sps:$4 sm:$0xff]  }
 0x17a   :  { %7877 = vrsqrt.f32 %v450_v38  ;;  %v427_v43 = vmul.f32 0.0078125, %v401_v40  ;;  %v8650_v46 = vpack.c.bf16 %v496_v39, %v495_v22  ;;  %841 = vmatpush1.bf16.msra.mxu1 %v7626_v30  ;;  %v428_v53 = vmul.f32 0.0078125, %v403_v35  ;;  %v7641_v40 = vld [vmem:[#allocation5 + $0x28] ss:$16 sps:$4 sm:$0xff]  }
 0x17b   :  { %842 = vmatprep.subr.bf16.mxu1 %v7631_v37  ;;  %v7872_v11 = vpop.eup %7871 }
 0x17c   :  { %v452_v42 = vadd.f32 1e-05, %v427_v43  ;;  %790 = vmatmul.mubr.bf16.gmra.mxu1 %v8650_v46  ;;  %v497_v16 = vmul.f32 %v7872_v11, %v8524_v47  ;;  %v453_v56 = vadd.f32 1e-05, %v428_v53  ;;  %v7644_v11 = vld [vmem:[#allocation5 + $0x8] ss:$16 sps:$4 sm:$0xff]  }
 0x17d   :  { %v355_v13 = vpop.xlane.xlu0 %354  ;;  %v357_v34 = vpop.xlane.xlu1 %356  ;;  %799 = vmatprep.mubr.bf16.mxu1 %v10565_v58 }
 0x17e   :  { %7879 = vrsqrt.f32 %v452_v42  ;;  %v404_v41 = vmul.f32 0.0078125, %v355_v13  ;;  %v405_v14 = vmul.f32 0.0078125, %v357_v34  ;;  %843 = vmatpush1.bf16.msra.mxu1 %v7629_v50 }
 0x17f   :  { %v7874_v60 = vpop.eup %7873  ;;  %7881 = vrsqrt.f32 %v451_v51  ;;  %844 = vmatprep.subr.bf16.mxu1 %v7634_v12  ;;  %v7646_v51 = vld [vmem:[#allocation5 + $0xc] ss:$16 sps:$4 sm:$0xff]  }
 0x180   :  { %v429_v62 = vadd.f32 1e-05, %v404_v41  ;;  %v430_v15 = vadd.f32 1e-05, %v405_v14  ;;  %v498_v3 = vmul.f32 %v7874_v60, %v8532_v55 }
 0x181   :  { %v359_v19 = vpop.xlane.xlu0 %358  ;;  %v361_v6 = vpop.xlane.xlu1 %360 }
 0x182   :  { %7883 = vrsqrt.f32 %v429_v62  ;;  %v406_v20 = vmul.f32 0.0078125, %v359_v19  ;;  %v407_v23 = vmul.f32 0.0078125, %v361_v6  ;;  %v8656_v24 = vpack.c.bf16 %v498_v3, %v497_v16  ;;  %845 = vmatpush1.bf16.msra.mxu1 %v7632_v59 }
 0x183   :  { %7885 = vrsqrt.f32 %v430_v15  ;;  %846 = vmatprep.subr.bf16.mxu1 %v7637_v48  ;;  %v7876_v47 = vpop.eup %7875 }
 0x184   :  { %v431_v1 = vadd.f32 1e-05, %v406_v20  ;;  %v432_v7 = vadd.f32 1e-05, %v407_v23  ;;  %800 = vmatmul.mubr.bf16.gmra.mxu1 %v8656_v24  ;;  %7887 = vrsqrt.f32 %v453_v56  ;;  %v499_v37 = vmul.f32 %v7876_v47, %v8540_v0  ;;  %v7650_v47 = vld [vmem:[#allocation8 + $0x30] sm:$0xff]  }
 0x185   :  { %v363_v55 = vpop.xlane.xlu0 %362  ;;  %v365_v28 = vpop.xlane.xlu1 %364  ;;  %809 = vmatprep.mubr.bf16.mxu1 %v10565_v58 }
 0x186   :  { %7889 = vrsqrt.f32 %v431_v1  ;;  %v408_v8 = vmul.f32 0.0078125, %v363_v55  ;;  %847 = vmatpush1.bf16.msra.mxu1 %v7635_v26  ;;  %v409_v33 = vmul.f32 0.0078125, %v365_v28  ;;  %v7654_v55 = vld [vmem:[#allocation8 + $0x28] sm:$0xff]   ;;  %v7651_v28 = vld [vmem:[#allocation8 + $0xf8] sm:$0xff]  }
 0x187   :  { %v7878_v30 = vpop.eup %7877  ;;  %7891 = vrsqrt.f32 %v432_v7  ;;  %848 = vmatprep.subr.bf16.mxu1 %v7640_v17 }
 0x188   :  { %v500_v38 = vmul.f32 %v7878_v30, %v8545_v5  ;;  %v433_v22 = vadd.f32 1e-05, %v408_v8  ;;  %v434_v43 = vadd.f32 1e-05, %v409_v33  ;;  %v7653_v8 = vld [vmem:[#allocation8 + $0xb8] sm:$0xff]   ;;  %v7656_v30 = vld [vmem:[#allocation8 + $0x20] sm:$0xff]  }
 0x189   :  { %v367_v50 = vpop.xlane.xlu0 %366  ;;  %v369_v42 = vpop.xlane.xlu1 %368  ;;  %v7657_v33 = vld [vmem:[#allocation8 + $0x58] sm:$0xff]  }
 0x18a   :  { %v8662_v39 = vpack.c.bf16 %v500_v38, %v499_v37  ;;  %849 = vmatpush1.bf16.msra.mxu1 %v7638_v29  ;;  %7893 = vrsqrt.f32 %v433_v22  ;;  %v410_v0 = vmul.f32 0.0078125, %v367_v50  ;;  %v411_v13 = vmul.f32 0.0078125, %v369_v42  ;;  %v7655_v29 = vld [vmem:[#allocation8 + $0x60] sm:$0xff]   ;;  %v7659_v37 = vld [vmem:[#allocation8 + $0x50] sm:$0xff]   ;;  %v7665_v50 = vld [vmem:[#allocation8 + $0x8] sm:$0xff]  }
 0x18b   :  { %v7880_v35 = vpop.eup %7879  ;;  %850 = vmatprep.subr.bf16.mxu1 %v7643_v9  ;;  %7895 = vrsqrt.f32 %v434_v43  ;;  %v7658_v9 = vld [vmem:[#allocation8 + $0x18] sm:$0xff]   ;;  %v7660_v38 = vld [vmem:[#allocation8 + $0xf0] sm:$0xff]   ;;  %v7664_v43 = vld [vmem:[#allocation8 + $0xe8] sm:$0xff]  }
 0x18c   :  { %v7882_v12 = vpop.eup %7881  ;;  %810 = vmatmul.mubr.bf16.gmra.mxu1 %v8662_v39  ;;  %v502_v5 = vmul.f32 %v7880_v35, %v8558_v27  ;;  %v435_v48 = vadd.f32 1e-05, %v410_v0  ;;  %v436_v27 = vadd.f32 1e-05, %v411_v13  ;;  %v7661_v22 = vld [vmem:[#allocation8 + $0x10] sm:$0xff]   ;;  %v7663_v35 = vld [vmem:[#allocation8 + $0x48] sm:$0xff]  }
 0x18d   :  { %819 = vmatprep.mubr.bf16.mxu1 %v10565_v58  ;;  %v501_v14 = vmul.f32 %v7882_v12, %v8551_v21  ;;  %v7667_v12 = vld [vmem:[#allocation8 + $0x40] sm:$0xff]   ;;  %v7673_v13 = vld [vmem:[#allocation8 + $0xd0] sm:$0xff]  }
 0x18e   :  { %851 = vmatpush1.bf16.msra.mxu1 %v7641_v40  ;;  %7897 = vrsqrt.f32 %v435_v48  ;;  %v7662_v40 = vld [vmem:[#allocation8 + $0xb0] sm:$0xff]   ;;  %v7668_v42 = vld [vmem:[#allocation8 + $0xe0] sm:$0xff]  }
 0x18f   :  { %v7884_v53 = vpop.eup %7883  ;;  %852 = vmatprep.subr.bf16.mxu1 %v7646_v51  ;;  %v8670_v62 = vpack.c.bf16 %v502_v5, %v501_v14  ;;  %7899 = vrsqrt.f32 %v436_v27  ;;  %v7666_v51 = vld [vmem:[#allocation8 + $0xa8] sm:$0xff]   ;;  %v7669_v0 = vld [vmem:[#allocation8] sm:$0xff]  }
 0x190   :  { %v7886_v34 = vpop.eup %7885  ;;  %v479_v41 = vmul.f32 %v7884_v53, %v8574_v44  ;;  %v7670_v5 = vld [vmem:[#allocation8 + $0xa0] sm:$0xff]   ;;  %v7672_v53 = vld [vmem:[#allocation8 + $0x98] sm:$0xff]   ;;  %v7676_v14 = vld [vmem:[#allocation8 + $0x88] sm:$0xff]  }
 0x191   :  { %v480_v59 = vmul.f32 %v7886_v34, %v8571_v10  ;;  %v7888_v60 = vpop.eup %7887  ;;  %v7674_v34 = vld [vmem:[#allocation8 + $0x90] sm:$0xff]  }
 0x192   :  { %853 = vmatpush1.bf16.msra.mxu1 %v7644_v11  ;;  %v503_v21 = vmul.f32 %v7888_v60, %v8564_v31  ;;  %v7671_v11 = vld [vmem:[#allocation8 + $0xd8] sm:$0xff]   ;;  %v7677_v60 = vld [vmem:[#allocation8 + $0xc0] sm:$0xff]  }
 0x193   :  { %v7890_v15 = vpop.eup %7889  ;;  %v504_v16 = vpack.c.bf16 %v480_v59, %v479_v41  ;;  %6820 = vmatprep.subr.bf16.mxu1 %v7651_v28  ;;  %v7675_v41 = vld [vmem:[#allocation8 + $0xc8] sm:$0xff]  }
 0x194   :  { %v7892_v3 = vpop.eup %7891  ;;  %820 = vmatmul.mubr.bf16.gmra.mxu1 %v8670_v62  ;;  %v481_v10 = vmul.f32 %v7890_v15, %v8577_v49  ;;  %v8678_v56 = vpack.c.bf16 %v503_v21, %v503_v21  ;;  %v7678_v15 = vld [vmem:[#allocation8 + $0x80] sm:$0xff]  }
 0x195   :  { %710 = vmatmul.mubr.bf16.vlgmr.msra.gmra.mxu0 %v504_v16  ;;  %829 = vmatprep.mubr.bf16.mxu1 %v10565_v58  ;;  %v482_v44 = vmul.f32 %v7892_v3, %v8584_v52 }
 0x196   :  { %719 = vmatprep.mubr.bf16.mxu0 %v10565_v58 }
 0x197   :  { %v7894_v19 = vpop.eup %7893  ;;  %v505_v6 = vpack.c.bf16 %v482_v44, %v481_v10 }
 0x198   :  { %v7896_v20 = vpop.eup %7895  ;;  %v483_v23 = vmul.f32 %v7894_v19, %v8589_v57  ;;  %v7647_v57 = vld [vmem:[#allocation8 + $0x78] sm:$0xff]  }
 0x199   :  { %v484_v31 = vmul.f32 %v7896_v20, %v8596_v61  ;;  %v7648_v61 = vld [vmem:[#allocation8 + $0x38] sm:$0xff]   ;;  %6726 = vmatprep.subr.bf16.mxu0 %v7647_v57 }
 0x19a   :  { %6727 = vmatpush3.bf16.msra.mxu0 %v7648_v61 }
 0x19b   :  { %v7898_v26 = vpop.eup %7897  ;;  %v506_v49 = vpack.c.bf16 %v484_v31, %v483_v23 }
 0x19c   :  { %830 = vmatmul.mubr.bf16.gmra.mxu1 %v8678_v56  ;;  %v7900_v17 = vpop.eup %7899  ;;  %v485_v52 = vmul.f32 %v7898_v26, %v8606_v2  ;;  %v7649_v2 = vld [vmem:[#allocation8 + $0x70] sm:$0xff]  }
 0x19d   :  { %720 = vmatmul.mubr.bf16.gmra.mxu0 %v505_v6  ;;  %870 = vmatprep.mubr.bf16.mxu1 %v10565_v58  ;;  %v486_v1 = vmul.f32 %v7900_v17, %v8603_v63  ;;  %v7652_v63 = vld [vmem:[#allocation8 + $0x68] sm:$0xff]  }
 0x19e   :  { %729 = vmatprep.mubr.bf16.mxu0 %v10565_v58  ;;  %6728 = vmatprep.subr.bf16.mxu0 %v7649_v2 }
 0x19f   :  { %v507_v7 = vpack.c.bf16 %v486_v1, %v485_v52  ;;  %6729 = vmatpush3.bf16.msra.mxu0 %v7650_v47 }
 0x1a0   :  { %6730 = vmatprep.subr.bf16.mxu0 %v7652_v63 }
 0x1a3   :  { %6731 = vmatpush3.bf16.msra.mxu0 %v7654_v55 }
 0x1a4   :  { %871 = vmatmul.mubr.bf16.vlgmr.msra.gmra.mxu1 %v504_v16  ;;  %6732 = vmatprep.subr.bf16.mxu0 %v7655_v29 }
 0x1a5   :  { %730 = vmatmul.mubr.bf16.gmra.mxu0 %v506_v49  ;;  %880 = vmatprep.mubr.bf16.mxu1 %v10565_v58 }
 0x1a6   :  { %739 = vmatprep.mubr.bf16.mxu0 %v10565_v58  ;;  %6821 = vmatpush3.bf16.msra.mxu1 %v7653_v8 }
 0x1a7   :  { %6733 = vmatpush3.bf16.msra.mxu0 %v7656_v30  ;;  %6822 = vmatprep.subr.bf16.mxu1 %v7660_v38 }
 0x1a8   :  { %6734 = vmatprep.subr.bf16.mxu0 %v7657_v33 }
 0x1aa   :  { %6823 = vmatpush3.bf16.msra.mxu1 %v7662_v40 }
 0x1ab   :  { %6735 = vmatpush3.bf16.msra.mxu0 %v7658_v9  ;;  %6824 = vmatprep.subr.bf16.mxu1 %v7664_v43 }
 0x1ac   :  { %881 = vmatmul.mubr.bf16.gmra.mxu1 %v505_v6  ;;  %6736 = vmatprep.subr.bf16.mxu0 %v7659_v37 }
 0x1ad   :  { %740 = vmatmul.mubr.bf16.gmra.mxu0 %v507_v7  ;;  %890 = vmatprep.mubr.bf16.mxu1 %v10565_v58 }
 0x1ae   :  { %749 = vmatprep.mubr.bf16.mxu0 %v10565_v58  ;;  %6825 = vmatpush3.bf16.msra.mxu1 %v7666_v51 }
 0x1af   :  { %6737 = vmatpush3.bf16.msra.mxu0 %v7661_v22  ;;  %6826 = vmatprep.subr.bf16.mxu1 %v7668_v42  ;;  %v1052_v22 = vlaneseq  ;;  %v227_v42 = vld [vmem:[#allocation7] sm:$0xf] }
 0x1b0   :  { %6738 = vmatprep.subr.bf16.mxu0 %v7663_v35 }
 0x1b1   :  { %v1053_v43 = vshrl.u32 %v1052_v22, 7 }
 0x1b2   :  { %6827 = vmatpush3.bf16.msra.mxu1 %v7670_v5 }
 0x1b3   :  { %6739 = vmatpush3.bf16.msra.mxu0 %v7665_v50  ;;  %6828 = vmatprep.subr.bf16.mxu1 %v7671_v11 }
 0x1b4   :  { %891 = vmatmul.mubr.bf16.gmra.mxu1 %v506_v49  ;;  %6740 = vmatprep.subr.bf16.mxu0 %v7667_v12  ;;  %v8745_v12 = vsub.s32 0, %v1053_v43 }
 0x1b5   :  { %900 = vmatprep.mubr.bf16.mxu1 %v10565_v58 }
 0x1b6   :  { %6829 = vmatpush3.bf16.msra.mxu1 %v7672_v53  ;;  %v1055_v53 = vrot.slane %v227_v42, %v8745_v12 }
 0x1b7   :  { %6741 = vmatpush3.bf16.msra.mxu0 %v7669_v0  ;;  %6830 = vmatprep.subr.bf16.mxu1 %v7673_v13  ;;  %v8747_v0 = vsub.s32 1, %v1053_v43 }
 0x1b9   :  { %v1059_v13 = vrot.slane %v227_v42, %v8747_v0 }
 0x1ba   :  { %6831 = vmatpush3.bf16.msra.mxu1 %v7674_v34 }
 0x1bb   :  { %6832 = vmatprep.subr.bf16.mxu1 %v7675_v41 }
 0x1bc   :  { %901 = vmatmul.mubr.bf16.gmra.mxu1 %v507_v7 }
 0x1bd   :  { %910 = vmatprep.mubr.bf16.mxu1 %v10565_v58 }
 0x1be   :  { %6833 = vmatpush3.bf16.msra.mxu1 %v7676_v14  ;;  %v1072_v14 = vpack.c.bf16 %v1055_v53, %v1055_v53 }
 0x1bf   :  { %6834 = vmatprep.subr.bf16.mxu1 %v7677_v60 }
 0x1c2   :  { %6835 = vmatpush3.bf16.msra.mxu1 %v7678_v15 }
 0x1ed   :  { %v371_v59 = vpop.xlane.xlu0 %370 }
 0x1ee   :  { %v412_v48 = vmul.f32 0.0078125, %v371_v59  ;;  %v1073_v59 = vpack.c.bf16 %v1059_v13, %v1059_v13 }
 0x1f0   :  { %v437_v27 = vadd.f32 1e-05, %v412_v48 }
 0x1f1   :  { %v373_v16 = vpop.xlane.xlu1 %372 }
 0x1f2   :  { %v413_v3 = vmul.f32 0.0078125, %v373_v16  ;;  %7901 = vrsqrt.f32 %v437_v27  ;;  %v1077_v27 = vpack.i.b16 %v1072_v14, %v1072_v14 }
 0x1f4   :  { %v438_v21 = vadd.f32 1e-05, %v413_v3  ;;  %v1084_v3 = vpack.i.b16 %v1073_v59, %v1073_v59 }
 0x1f5   :  { %v375_v10 = vpop.xlane.xlu0 %374 }
 0x1f6   :  { %7903 = vrsqrt.f32 %v438_v21  ;;  %v414_v44 = vmul.f32 0.0078125, %v375_v10  ;;  %v8767_v10 = vsub.s32 2, %v1053_v43 }
 0x1f8   :  { %v439_v19 = vadd.f32 1e-05, %v414_v44 }
 0x1f9   :  { %v377_v6 = vpop.xlane.xlu1 %376 }
 0x1fa   :  { %v415_v20 = vmul.f32 0.0078125, %v377_v6  ;;  %7905 = vrsqrt.f32 %v439_v19  ;;  %v8771_v6 = vsub.s32 3, %v1053_v43 }
 0x1fc   :  { %v440_v23 = vadd.f32 1e-05, %v415_v20  ;;  %10586 = vst [vmem:[#allocation19_spill] sm:$0xff] %v8771_v6 }
 0x1fe   :  { %7907 = vrsqrt.f32 %v440_v23  ;;  %v379_v31 = vpop.xlane.xlu0 %378 }
 0x1ff   :  { %v416_v26 = vmul.f32 0.0078125, %v379_v31  ;;  %v7902_v49 = vpop.eup %7901  ;;  %v8776_v31 = vrot.slane %v1077_v27, %v8745_v12 }
 0x200   :  { %v487_v61 = vmul.f32 %v7902_v49, %v8613_v25  ;;  %v8779_v49 = vrot.slane %v1084_v3, %v8745_v12 }
 0x201   :  { %v441_v17 = vadd.f32 1e-05, %v416_v26  ;;  %v381_v52 = vpop.xlane.xlu1 %380 }
 0x202   :  { %v417_v1 = vmul.f32 0.0078125, %v381_v52 }
 0x203   :  { %v7904_v7 = vpop.eup %7903  ;;  %7909 = vrsqrt.f32 %v441_v17 }
 0x204   :  { %v442_v57 = vadd.f32 1e-05, %v417_v1  ;;  %v488_v2 = vmul.f32 %v7904_v7, %v8618_v36  ;;  %v1063_v1 = vrot.slane %v227_v42, %v8767_v10 }
 0x206   :  { %7911 = vrsqrt.f32 %v442_v57  ;;  %v508_v47 = vpack.c.bf16 %v488_v2, %v487_v61  ;;  %v1067_v61 = vrot.slane %v227_v42, %v8771_v6 }
 0x207   :  { %v7906_v63 = vpop.eup %7905 }
 0x208   :  { %750 = vmatmul.mubr.bf16.gmra.mxu0 %v508_v47  ;;  %911 = vmatmul.mubr.bf16.gmra.mxu1 %v508_v47  ;;  %v489_v28 = vmul.f32 %v7906_v63, %v8623_v45 }
 0x209   :  { %759 = vmatprep.mubr.bf16.mxu0 %v10565_v58  ;;  %920 = vmatprep.mubr.bf16.mxu1 %v10565_v58 }
 0x20b   :  { %v7908_v55 = vpop.eup %7907 }
 0x20c   :  { %v490_v8 = vmul.f32 %v7908_v55, %v8628_v54 }
 0x20e   :  { %v509_v29 = vpack.c.bf16 %v490_v8, %v489_v28  ;;  %v1074_v8 = vpack.c.bf16 %v1063_v1, %v1063_v1 }
 0x210   :  { %760 = vmatmul.mubr.bf16.gmra.mxu0 %v509_v29  ;;  %921 = vmatmul.mubr.bf16.gmra.mxu1 %v509_v29  ;;  %v7910_v25 = vpop.eup %7909  ;;  %v1091_v42 = vpack.i.b16 %v1074_v8, %v1074_v8 }
 0x211   :  { %769 = vmatprep.mubr.bf16.mxu0 %v10565_v58  ;;  %930 = vmatprep.mubr.bf16.mxu1 %v10565_v58  ;;  %v491_v30 = vmul.f32 %v7910_v25, %v8635_v4 }
 0x212   :  { %v8794_v3 = vrot.slane %v1091_v42, %v8745_v12 }
 0x213   :  { %v7912_v36 = vpop.eup %7911 }
 0x214   :  { %v492_v33 = vmul.f32 %v7912_v36, %v8643_v32  ;;  %v1075_v36 = vpack.c.bf16 %v1067_v61, %v1067_v61 }
 0x216   :  { %v510_v9 = vpack.c.bf16 %v492_v33, %v491_v30  ;;  %v1098_v14 = vpack.i.b16 %v1075_v36, %v1075_v36 }
 0x218   :  { %770 = vmatmul.mubr.bf16.gmra.mxu0 %v510_v9  ;;  %931 = vmatmul.mubr.bf16.gmra.mxu1 %v510_v9 }
 0x219   :  { %940 = vmatprep.mubr.bf16.mxu1 %v10565_v58 }
 0x220   :  { %941 = vmatmul.mubr.bf16.gmra.mxu1 %v8637_v18 }
 0x221   :  { %950 = vmatprep.mubr.bf16.mxu1 %v10565_v58 }
 0x228   :  { %951 = vmatmul.mubr.bf16.gmra.mxu1 %v8650_v46 }
 0x229   :  { %960 = vmatprep.mubr.bf16.mxu1 %v10565_v58 }
 0x230   :  { %961 = vmatmul.mubr.bf16.gmra.mxu1 %v8656_v24 }
 0x231   :  { %970 = vmatprep.mubr.bf16.mxu1 %v10565_v58 }
 0x234   :  { %v8710_v45 = vpop.f32.mrf.mxu1 }
 0x236   :  { %v8712_v54 = vpop.f32.mrf.mxu1 }
 0x238   :  { %v8714_v4 = vpop.f32.mrf.mxu1  ;;  %971 = vmatmul.mubr.bf16.gmra.mxu1 %v8662_v39 }
 0x239   :  { %v1027_v18 = vpack.c.bf16 %v8714_v4, %v8710_v45  ;;  %980 = vmatprep.mubr.bf16.mxu1 %v10565_v58 }
 0x23a   :  { %v8720_v32 = vpop.f32.mrf.mxu1 }
 0x23c   :  { %v8722_v46 = vpop.f32.mrf.mxu1 }
 0x23e   :  { %v8724_v24 = vpop.f32.mrf.mxu1 }
 0x240   :  { %v8726_v37 = vpop.f32.mrf.mxu1  ;;  %981 = vmatmul.mubr.bf16.gmra.mxu1 %v8670_v62 }
 0x241   :  { %v1031_v38 = vpack.c.bf16 %v8726_v37, %v8722_v46  ;;  %990 = vmatprep.mubr.bf16.mxu1 %v10565_v58 }
 0x242   :  { %v8732_v39 = vpop.f32.mrf.mxu1 }
 0x244   :  { %v8734_v40 = vpop.f32.mrf.mxu1 }
 0x246   :  { %v8736_v35 = vpop.f32.mrf.mxu1 }
 0x248   :  { %v8738_v50 = vpop.f32.mrf.mxu1  ;;  %991 = vmatmul.mubr.bf16.gmra.mxu1 %v8678_v56 }
 0x249   :  { %v1035_v62 = vpack.c.bf16 %v8738_v50, %v8734_v40 }
 0x24a   :  { %v8743_v51 = vpop.f32.mrf.mxu1 }
 0x24b   :  { %v1036_v45 = vpack.c.bf16 %v8743_v51, %v8736_v35 }
 0x24c   :  { %v8749_v5 = vpop.f32.mrf.mxu1 }
 0x24e   :  { %v8751_v11 = vpop.f32.mrf.mxu1 }
 0x250   :  { %v8755_v34 = vpop.f32.mrf.mxu1 }
 0x251   :  { %v1039_v56 = vpack.c.bf16 %v8755_v34, %v8749_v5 }
 0x252   :  { %v8759_v41 = vpop.f32.mrf.mxu1 }
 0x253   :  { %v1040_v46 = vpack.c.bf16 %v8759_v41, %v8751_v11 }
 0x254   :  { %v8761_v60 = vpop.f32.mrf.mxu1 }
 0x255   :  { %v711_v48 = vpop.f32.mrf.mxu0 }
 0x256   :  { %v8763_v15 = vpop.f32.mrf.mxu1 }
 0x257   :  { %v713_v16 = vpop.f32.mrf.mxu0 }
 0x258   :  { %v8765_v21 = vpop.f32.mrf.mxu1 }
 0x259   :  { %v715_v44 = vpop.f32.mrf.mxu0  ;;  %v1043_v19 = vpack.c.bf16 %v8765_v21, %v8761_v60 }
 0x25a   :  { %v999_v20 = vpack.c.bf16 %v715_v44, %v711_v48  ;;  %v8773_v23 = vpop.f32.mrf.mxu1 }
 0x25b   :  { %v717_v26 = vpop.f32.mrf.mxu0  ;;  %v1044_v40 = vpack.c.bf16 %v8773_v23, %v8763_v15 }
 0x25c   :  { %v1000_v17 = vpack.c.bf16 %v717_v26, %v713_v16  ;;  %v8781_v52 = vpop.f32.mrf.mxu1  ;;  %v1104_v7 = vadd.bf16 %v8776_v31, %v999_v20 }
 0x25d   :  { %v721_v57 = vpop.f32.mrf.mxu0 }
 0x25e   :  { %v1105_v2 = vadd.bf16 %v8779_v49, %v1000_v17  ;;  %v8787_v47 = vpop.f32.mrf.mxu1  ;;  %v1156_v29 = vmax.bf16 %v10565_v58, %v1104_v7  ;;  %v8798_v17 = vrot.slane %v1098_v14, %v8745_v12 }
 0x25f   :  { %v723_v63 = vpop.f32.mrf.mxu0  ;;  %v1048_v5 = vpack.c.bf16 %v8787_v47, %v8787_v47 }
 0x260   :  { %v835_v55 = vpop.f32.mrf.mxu1  ;;  %v1157_v28 = vmax.bf16 %v10565_v58, %v1105_v2 }
 0x261   :  { %v725_v25 = vpop.f32.mrf.mxu0 }
 0x262   :  { %v1003_v30 = vpack.c.bf16 %v725_v25, %v721_v57  ;;  %1432 = vmatprep.mubr.bf16.mxu0 %v1157_v28  ;;  %v836_v33 = vpop.f32.mrf.mxu1 }
 0x263   :  { %v727_v9 = vpop.f32.mrf.mxu0  ;;  %1433 = vmatmul.mubr.bf16.vlgmr.msra.gmra.mxu0 %v1156_v29 }
 0x264   :  { %v1004_v22 = vpack.c.bf16 %v727_v9, %v723_v63  ;;  %v872_v43 = vpop.f32.mrf.mxu1  ;;  %v1108_v53 = vadd.bf16 %v8776_v31, %v1003_v30 }
 0x265   :  { %v731_v13 = vpop.f32.mrf.mxu0 }
 0x266   :  { %v1109_v59 = vadd.bf16 %v8779_v49, %v1004_v22  ;;  %v874_v48 = vpop.f32.mrf.mxu1  ;;  %v1160_v1 = vmax.bf16 %v10565_v58, %v1108_v53 }
 0x267   :  { %v733_v27 = vpop.f32.mrf.mxu0 }
 0x268   :  { %v876_v16 = vpop.f32.mrf.mxu1  ;;  %v1161_v44 = vmax.bf16 %v10565_v58, %v1109_v59 }
 0x269   :  { %v735_v20 = vpop.f32.mrf.mxu0  ;;  %v1001_v26 = vpack.c.bf16 %v876_v16, %v872_v43 }
 0x26a   :  { %v1007_v7 = vpack.c.bf16 %v735_v20, %v731_v13  ;;  %1440 = vmatprep.mubr.bf16.mxu0 %v1161_v44  ;;  %v878_v57 = vpop.f32.mrf.mxu1 }
 0x26b   :  { %v737_v61 = vpop.f32.mrf.mxu0  ;;  %v1002_v2 = vpack.c.bf16 %v878_v57, %v874_v48  ;;  %1441 = vmatmul.mubr.bf16.gmra.mxu0 %v1160_v1  ;;  %v1106_v63 = vadd.bf16 %v8794_v3, %v1001_v26 }
 0x26c   :  { %v1008_v55 = vpack.c.bf16 %v737_v61, %v733_v27  ;;  %v882_v28 = vpop.f32.mrf.mxu1  ;;  %v1112_v8 = vadd.bf16 %v8776_v31, %v1007_v7 }
 0x26d   :  { %v1107_v29 = vadd.bf16 %v8798_v17, %v1002_v2  ;;  %v741_v25 = vpop.f32.mrf.mxu0  ;;  %v1158_v22 = vmax.bf16 %v10565_v58, %v1106_v63 }
 0x26e   :  { %v1113_v36 = vadd.bf16 %v8779_v49, %v1008_v55  ;;  %v884_v30 = vpop.f32.mrf.mxu1  ;;  %v1164_v14 = vmax.bf16 %v10565_v58, %v1112_v8 }
 0x26f   :  { %v743_v33 = vpop.f32.mrf.mxu0  ;;  %v1159_v9 = vmax.bf16 %v10565_v58, %v1107_v29 }
 0x270   :  { %v886_v43 = vpop.f32.mrf.mxu1  ;;  %v1165_v42 = vmax.bf16 %v10565_v58, %v1113_v36 }
 0x271   :  { %v745_v53 = vpop.f32.mrf.mxu0  ;;  %v1005_v13 = vpack.c.bf16 %v886_v43, %v882_v28  ;;  %1568 = vmatprep.mubr.bf16.mxu1 %v1159_v9 }
 0x272   :  { %v1011_v59 = vpack.c.bf16 %v745_v53, %v741_v25  ;;  %1448 = vmatprep.mubr.bf16.mxu0 %v1165_v42  ;;  %v888_v48 = vpop.f32.mrf.mxu1  ;;  %1569 = vmatmul.mubr.bf16.vlgmr.msra.gmra.mxu1 %v1158_v22 }
 0x273   :  { %v747_v27 = vpop.f32.mrf.mxu0  ;;  %v1006_v16 = vpack.c.bf16 %v888_v48, %v884_v30  ;;  %1449 = vmatmul.mubr.bf16.gmra.mxu0 %v1164_v14  ;;  %v1110_v44 = vadd.bf16 %v8794_v3, %v1005_v13 }
 0x274   :  { %v1012_v20 = vpack.c.bf16 %v747_v27, %v743_v33  ;;  %v892_v26 = vpop.f32.mrf.mxu1  ;;  %v1116_v1 = vadd.bf16 %v8776_v31, %v1011_v59 }
 0x275   :  { %v1111_v7 = vadd.bf16 %v8798_v17, %v1006_v16  ;;  %v1162_v28 = vmax.bf16 %v10565_v58, %v1110_v44 }
 0x276   :  { %v1117_v57 = vadd.bf16 %v8779_v49, %v1012_v20  ;;  %v894_v61 = vpop.f32.mrf.mxu1  ;;  %v1168_v29 = vmax.bf16 %v10565_v58, %v1116_v1 }
 0x277   :  { %v1163_v2 = vmax.bf16 %v10565_v58, %v1111_v7 }
 0x278   :  { %v896_v63 = vpop.f32.mrf.mxu1  ;;  %v1169_v55 = vmax.bf16 %v10565_v58, %v1117_v57 }
 0x279   :  { %v1009_v8 = vpack.c.bf16 %v896_v63, %v892_v26  ;;  %1576 = vmatprep.mubr.bf16.mxu1 %v1163_v2 }
 0x27a   :  { %1456 = vmatprep.mubr.bf16.mxu0 %v1169_v55  ;;  %v898_v25 = vpop.f32.mrf.mxu1  ;;  %1577 = vmatmul.mubr.bf16.gmra.mxu1 %v1162_v28 }
 0x27b   :  { %v1010_v36 = vpack.c.bf16 %v898_v25, %v894_v61  ;;  %1457 = vmatmul.mubr.bf16.gmra.mxu0 %v1168_v29  ;;  %v1114_v30 = vadd.bf16 %v8794_v3, %v1009_v8 }
 0x27c   :  { %v902_v33 = vpop.f32.mrf.mxu1 }
 0x27d   :  { %v1115_v9 = vadd.bf16 %v8798_v17, %v1010_v36  ;;  %v1166_v53 = vmax.bf16 %v10565_v58, %v1114_v30 }
 0x27e   :  { %v904_v22 = vpop.f32.mrf.mxu1 }
 0x27f   :  { %v1167_v43 = vmax.bf16 %v10565_v58, %v1115_v9 }
 0x280   :  { %v906_v42 = vpop.f32.mrf.mxu1 }
 0x281   :  { %v1013_v13 = vpack.c.bf16 %v906_v42, %v902_v33  ;;  %1584 = vmatprep.mubr.bf16.mxu1 %v1167_v43 }
 0x282   :  { %v908_v14 = vpop.f32.mrf.mxu1  ;;  %1585 = vmatmul.mubr.bf16.gmra.mxu1 %v1166_v53 }
 0x283   :  { %v1014_v59 = vpack.c.bf16 %v908_v14, %v904_v22  ;;  %v1118_v48 = vadd.bf16 %v8794_v3, %v1013_v13 }
 0x285   :  { %v1119_v27 = vadd.bf16 %v8798_v17, %v1014_v59  ;;  %v1170_v44 = vmax.bf16 %v10565_v58, %v1118_v48 }
 0x287   :  { %v1171_v16 = vmax.bf16 %v10565_v58, %v1119_v27 }
 0x289   :  { %1592 = vmatprep.mubr.bf16.mxu1 %v1171_v16 }
 0x28a   :  { %1593 = vmatmul.mubr.bf16.gmra.mxu1 %v1170_v44 }
 0x2c8   :  { %v751_v20 = vpop.f32.mrf.mxu0  ;;  %v912_v26 = vpop.f32.mrf.mxu1 }
 0x2ca   :  { %v753_v1 = vpop.f32.mrf.mxu0  ;;  %v914_v7 = vpop.f32.mrf.mxu1 }
 0x2cc   :  { %v755_v57 = vpop.f32.mrf.mxu0  ;;  %v916_v61 = vpop.f32.mrf.mxu1 }
 0x2cd   :  { %v1015_v2 = vpack.c.bf16 %v755_v57, %v751_v20  ;;  %v1017_v63 = vpack.c.bf16 %v916_v61, %v912_v26 }
 0x2ce   :  { %v757_v55 = vpop.f32.mrf.mxu0  ;;  %v918_v28 = vpop.f32.mrf.mxu1 }
 0x2cf   :  { %v1016_v8 = vpack.c.bf16 %v757_v55, %v753_v1  ;;  %v1018_v29 = vpack.c.bf16 %v918_v28, %v914_v7  ;;  %v1120_v25 = vadd.bf16 %v8776_v31, %v1015_v2  ;;  %v1122_v36 = vadd.bf16 %v8794_v3, %v1017_v63 }
 0x2d0   :  { %v761_v30 = vpop.f32.mrf.mxu0  ;;  %v922_v33 = vpop.f32.mrf.mxu1 }
 0x2d1   :  { %v1121_v9 = vadd.bf16 %v8779_v49, %v1016_v8  ;;  %v1123_v22 = vadd.bf16 %v8798_v17, %v1018_v29  ;;  %v1172_v48 = vmax.bf16 %v10565_v58, %v1120_v25  ;;  %v1174_v27 = vmax.bf16 %v10565_v58, %v1122_v36 }
 0x2d2   :  { %v763_v43 = vpop.f32.mrf.mxu0  ;;  %v924_v42 = vpop.f32.mrf.mxu1 }
 0x2d3   :  { %v1173_v53 = vmax.bf16 %v10565_v58, %v1121_v9  ;;  %v1175_v13 = vmax.bf16 %v10565_v58, %v1123_v22 }
 0x2d4   :  { %v765_v14 = vpop.f32.mrf.mxu0  ;;  %v926_v59 = vpop.f32.mrf.mxu1 }
 0x2d5   :  { %v1019_v16 = vpack.c.bf16 %v765_v14, %v761_v30  ;;  %v1021_v44 = vpack.c.bf16 %v926_v59, %v922_v33  ;;  %1464 = vmatprep.mubr.bf16.mxu0 %v1173_v53  ;;  %1600 = vmatprep.mubr.bf16.mxu1 %v1175_v13 }
 0x2d6   :  { %v767_v20 = vpop.f32.mrf.mxu0  ;;  %v928_v26 = vpop.f32.mrf.mxu1  ;;  %1465 = vmatmul.mubr.bf16.gmra.mxu0 %v1172_v48  ;;  %1601 = vmatmul.mubr.bf16.gmra.mxu1 %v1174_v27 }
 0x2d7   :  { %v1020_v1 = vpack.c.bf16 %v767_v20, %v763_v43  ;;  %v1022_v7 = vpack.c.bf16 %v928_v26, %v924_v42  ;;  %v1124_v57 = vadd.bf16 %v8776_v31, %v1019_v16  ;;  %v1126_v61 = vadd.bf16 %v8794_v3, %v1021_v44 }
 0x2d8   :  { %v771_v2 = vpop.f32.mrf.mxu0  ;;  %v932_v63 = vpop.f32.mrf.mxu1  ;;  %v1028_v43 = vpack.c.bf16 %v8720_v32, %v8712_v54 }
 0x2d9   :  { %v1125_v55 = vadd.bf16 %v8779_v49, %v1020_v1  ;;  %v1127_v28 = vadd.bf16 %v8798_v17, %v1022_v7  ;;  %v1176_v9 = vmax.bf16 %v10565_v58, %v1124_v57  ;;  %v1178_v22 = vmax.bf16 %v10565_v58, %v1126_v61 }
 0x2da   :  { %v773_v8 = vpop.f32.mrf.mxu0  ;;  %v934_v29 = vpop.f32.mrf.mxu1  ;;  %v1133_v20 = vadd.bf16 %v8779_v49, %v1028_v43 }
 0x2db   :  { %v1177_v25 = vmax.bf16 %v10565_v58, %v1125_v55  ;;  %v1179_v36 = vmax.bf16 %v10565_v58, %v1127_v28 }
 0x2dc   :  { %v775_v30 = vpop.f32.mrf.mxu0  ;;  %v936_v33 = vpop.f32.mrf.mxu1  ;;  %v1185_v28 = vmax.bf16 %v10565_v58, %v1133_v20 }
 0x2dd   :  { %v1023_v42 = vpack.c.bf16 %v775_v30, %v771_v2  ;;  %v1025_v53 = vpack.c.bf16 %v936_v33, %v932_v63  ;;  %1472 = vmatprep.mubr.bf16.mxu0 %v1177_v25  ;;  %1608 = vmatprep.mubr.bf16.mxu1 %v1179_v36  ;;  %v1032_v63 = vpack.c.bf16 %v8732_v39, %v8724_v24 }
 0x2de   :  { %v777_v13 = vpop.f32.mrf.mxu0  ;;  %v938_v14 = vpop.f32.mrf.mxu1  ;;  %1473 = vmatmul.mubr.bf16.gmra.mxu0 %v1176_v9  ;;  %1609 = vmatmul.mubr.bf16.gmra.mxu1 %v1178_v22  ;;  %v1132_v25 = vadd.bf16 %v8776_v31, %v1027_v18 }
 0x2df   :  { %v1024_v59 = vpack.c.bf16 %v777_v13, %v773_v8  ;;  %v1026_v48 = vpack.c.bf16 %v938_v14, %v934_v29  ;;  %v1128_v27 = vadd.bf16 %v8776_v31, %v1023_v42  ;;  %v1130_v16 = vadd.bf16 %v8794_v3, %v1025_v53 }
 0x2e0   :  { %v942_v44 = vpop.f32.mrf.mxu1  ;;  %v1137_v24 = vadd.bf16 %v8779_v49, %v1032_v63  ;;  %v1184_v43 = vmax.bf16 %v10565_v58, %v1132_v25  ;;  %v1136_v14 = vadd.bf16 %v8776_v31, %v1031_v38  ;;  %v1144_v25 = vadd.bf16 %v8776_v31, %v1039_v56 }
 0x2e1   :  { %v1129_v26 = vadd.bf16 %v8779_v49, %v1024_v59  ;;  %v1131_v54 = vadd.bf16 %v8798_v17, %v1026_v48  ;;  %v1180_v61 = vmax.bf16 %v10565_v58, %v1128_v27  ;;  %v1182_v2 = vmax.bf16 %v10565_v58, %v1130_v16 }
 0x2e2   :  { %v944_v32 = vpop.f32.mrf.mxu1  ;;  %v1189_v18 = vmax.bf16 %v10565_v58, %v1137_v24  ;;  %v1141_v27 = vadd.bf16 %v8779_v49, %v1036_v45  ;;  %v1188_v20 = vmax.bf16 %v10565_v58, %v1136_v14  ;;  %v1149_v24 = vadd.bf16 %v8779_v49, %v1044_v40 }
 0x2e3   :  { %v1181_v1 = vmax.bf16 %v10565_v58, %v1129_v26  ;;  %v1183_v7 = vmax.bf16 %v10565_v58, %v1131_v54  ;;  %v1148_v45 = vadd.bf16 %v8776_v31, %v1043_v19 }
 0x2e4   :  { %v946_v57 = vpop.f32.mrf.mxu1  ;;  %v1193_v38 = vmax.bf16 %v10565_v58, %v1141_v27  ;;  %v1201_v56 = vmax.bf16 %v10565_v58, %v1149_v24 }
 0x2e5   :  { %v1029_v55 = vpack.c.bf16 %v946_v57, %v942_v44  ;;  %1480 = vmatprep.mubr.bf16.mxu0 %v1181_v1  ;;  %1616 = vmatprep.mubr.bf16.mxu1 %v1183_v7  ;;  %v1140_v1 = vadd.bf16 %v8776_v31, %v1035_v62  ;;  %v1200_v21 = vmax.bf16 %v10565_v58, %v1148_v45 }
 0x2e6   :  { %v948_v8 = vpop.f32.mrf.mxu1  ;;  %1481 = vmatmul.mubr.bf16.gmra.mxu0 %v1180_v61  ;;  %1617 = vmatmul.mubr.bf16.gmra.mxu1 %v1182_v2  ;;  %v1145_v61 = vadd.bf16 %v8779_v49, %v1040_v46 }
 0x2e7   :  { %v1030_v29 = vpack.c.bf16 %v948_v8, %v944_v32  ;;  %1488 = vmatprep.mubr.bf16.mxu0 %v1185_v28  ;;  %v1134_v36 = vadd.bf16 %v8794_v3, %v1029_v55  ;;  %v1192_v28 = vmax.bf16 %v10565_v58, %v1140_v1 }
 0x2e8   :  { %v952_v30 = vpop.f32.mrf.mxu1  ;;  %v1197_v62 = vmax.bf16 %v10565_v58, %v1145_v61 }
 0x2e9   :  { %v1135_v39 = vadd.bf16 %v8798_v17, %v1030_v29  ;;  %v1186_v42 = vmax.bf16 %v10565_v58, %v1134_v36 }
 0x2ea   :  { %v954_v33 = vpop.f32.mrf.mxu1 }
 0x2eb   :  { %v1187_v9 = vmax.bf16 %v10565_v58, %v1135_v39 }
 0x2ec   :  { %v956_v22 = vpop.f32.mrf.mxu1 }
 0x2ed   :  { %v1033_v4 = vpack.c.bf16 %v956_v22, %v952_v30  ;;  %1624 = vmatprep.mubr.bf16.mxu1 %v1187_v9  ;;  %v1196_v22 = vmax.bf16 %v10565_v58, %v1144_v25 }
 0x2ee   :  { %v958_v53 = vpop.f32.mrf.mxu1  ;;  %1489 = vmatmul.mubr.bf16.gmra.mxu0 %v1184_v43  ;;  %1625 = vmatmul.mubr.bf16.gmra.mxu1 %v1186_v42 }
 0x2ef   :  { %v1034_v13 = vpack.c.bf16 %v958_v53, %v954_v33  ;;  %1496 = vmatprep.mubr.bf16.mxu0 %v1189_v18  ;;  %v1138_v59 = vadd.bf16 %v8794_v3, %v1033_v4  ;;  %v1153_v53 = vadd.bf16 %v8779_v49, %v1048_v5 }
 0x2f0   :  { %v962_v48 = vpop.f32.mrf.mxu1 }
 0x2f1   :  { %v1139_v35 = vadd.bf16 %v8798_v17, %v1034_v13  ;;  %v1190_v26 = vmax.bf16 %v10565_v58, %v1138_v59  ;;  %v1205_v49 = vmax.bf16 %v10565_v58, %v1153_v53 }
 0x2f2   :  { %v964_v51 = vpop.f32.mrf.mxu1 }
 0x2f3   :  { %v1191_v16 = vmax.bf16 %v10565_v58, %v1139_v35 }
 0x2f4   :  { %v966_v44 = vpop.f32.mrf.mxu1 }
 0x2f5   :  { %v1037_v37 = vpack.c.bf16 %v966_v44, %v962_v48  ;;  %1632 = vmatprep.mubr.bf16.mxu1 %v1191_v16  ;;  %v1047_v48 = vpack.c.bf16 %v8781_v52, %v8781_v52 }
 0x2f6   :  { %v968_v54 = vpop.f32.mrf.mxu1  ;;  %1497 = vmatmul.mubr.bf16.gmra.mxu0 %v1188_v20  ;;  %1633 = vmatmul.mubr.bf16.gmra.mxu1 %v1190_v26 }
 0x2f7   :  { %v1038_v32 = vpack.c.bf16 %v968_v54, %v964_v51  ;;  %1504 = vmatprep.mubr.bf16.mxu0 %v1193_v38  ;;  %v1142_v7 = vadd.bf16 %v8794_v3, %v1037_v37  ;;  %v1152_v44 = vadd.bf16 %v8776_v31, %v1047_v48  ;;  %v8116_v48 = vld [vmem:[#allocation2 + $0x18] sm:$0xff] }
 0x2f8   :  { %v972_v57 = vpop.f32.mrf.mxu1 }
 0x2f9   :  { %v1143_v11 = vadd.bf16 %v8798_v17, %v1038_v32  ;;  %v1194_v63 = vmax.bf16 %v10565_v58, %v1142_v7  ;;  %v1204_v26 = vmax.bf16 %v10565_v58, %v1152_v44  ;;  %v8117_v44 = vld [vmem:[#allocation2 + $0x20] sm:$0xff] }
 0x2fa   :  { %v974_v41 = vpop.f32.mrf.mxu1 }
 0x2fb   :  { %v1195_v2 = vmax.bf16 %v10565_v58, %v1143_v11 }
 0x2fc   :  { %v976_v55 = vpop.f32.mrf.mxu1 }
 0x2fd   :  { %v1041_v50 = vpack.c.bf16 %v976_v55, %v972_v57  ;;  %1640 = vmatprep.mubr.bf16.mxu1 %v1195_v2 }
 0x2fe   :  { %v978_v8 = vpop.f32.mrf.mxu1  ;;  %1505 = vmatmul.mubr.bf16.gmra.mxu0 %v1192_v28  ;;  %1641 = vmatmul.mubr.bf16.gmra.mxu1 %v1194_v63  ;;  %v8931_v28 = vld [vmem:[%s10558_s4] ss:$0 sm:$0xff] }
 0x2ff   :  { %v1042_v29 = vpack.c.bf16 %v978_v8, %v974_v41  ;;  %1512 = vmatprep.mubr.bf16.mxu0 %v1197_v62  ;;  %v1146_v36 = vadd.bf16 %v8794_v3, %v1041_v50  ;;  %v8113_v50 = vld [vmem:[#allocation2] sm:$0xff] }
 0x300   :  { %v982_v30 = vpop.f32.mrf.mxu1 }
 0x301   :  { %v1147_v15 = vadd.bf16 %v8798_v17, %v1042_v29  ;;  %v1198_v33 = vmax.bf16 %v10565_v58, %v1146_v36 }
 0x302   :  { %v984_v23 = vpop.f32.mrf.mxu1 }
 0x303   :  { %v1199_v39 = vmax.bf16 %v10565_v58, %v1147_v15 }
 0x304   :  { %v986_v9 = vpop.f32.mrf.mxu1 }
 0x305   :  { %v1045_v34 = vpack.c.bf16 %v986_v9, %v982_v30  ;;  %1648 = vmatprep.mubr.bf16.mxu1 %v1199_v39 }
 0x306   :  { %v988_v43 = vpop.f32.mrf.mxu1  ;;  %1513 = vmatmul.mubr.bf16.gmra.mxu0 %v1196_v22  ;;  %1649 = vmatmul.mubr.bf16.gmra.mxu1 %v1198_v33 }
 0x307   :  { %v1046_v42 = vpack.c.bf16 %v988_v43, %v984_v23  ;;  %1520 = vmatprep.mubr.bf16.mxu0 %v1201_v56  ;;  %v1150_v4 = vadd.bf16 %v8794_v3, %v1045_v34  ;;  %v8114_v23 = vld [vmem:[#allocation2 + $0x8] sm:$0xff] }
 0x308   :  { %v992_v18 = vpop.f32.mrf.mxu1 }
 0x309   :  { %v1151_v47 = vadd.bf16 %v8798_v17, %v1046_v42  ;;  %v1202_v27 = vmax.bf16 %v10565_v58, %v1150_v4  ;;  %v1049_v35 = vpack.c.bf16 %v992_v18, %v992_v18  ;;  %v8115_v42 = vld [vmem:[#allocation2 + $0x10] sm:$0xff] }
 0x30a   :  { %v994_v13 = vpop.f32.mrf.mxu1 }
 0x30b   :  { %v1050_v14 = vpack.c.bf16 %v994_v13, %v994_v13  ;;  %v1203_v59 = vmax.bf16 %v10565_v58, %v1151_v47  ;;  %v1154_v52 = vadd.bf16 %v8794_v3, %v1049_v35 }
 0x30c   :  { %v996_v60 = vpop.f32.mrf.mxu1 }
 0x30d   :  { %v1155_v19 = vadd.bf16 %v8798_v17, %v1050_v14  ;;  %1656 = vmatprep.mubr.bf16.mxu1 %v1203_v59  ;;  %v1206_v20 = vmax.bf16 %v10565_v58, %v1154_v52 }
 0x30e   :  { %v997_v51 = vpop.f32.mrf.mxu1  ;;  %1521 = vmatmul.mubr.bf16.gmra.mxu0 %v1200_v21  ;;  %1657 = vmatmul.mubr.bf16.gmra.mxu1 %v1202_v27 }
 0x30f   :  { %1528 = vmatprep.mubr.bf16.mxu0 %v1205_v49  ;;  %v1207_v16 = vmax.bf16 %v10565_v58, %v1155_v19 }
 0x311   :  { %1664 = vmatprep.mubr.bf16.mxu1 %v1207_v16 }
 0x316   :  { %1529 = vmatmul.mubr.bf16.gmra.mxu0 %v1204_v26  ;;  %1665 = vmatmul.mubr.bf16.gmra.mxu1 %v1206_v20 }
 0x317   :  { %2243 = vmatprep.mubr.bf16.mxu0 %v10565_v58  ;;  %2404 = vmatprep.mubr.bf16.mxu1 %v10565_v58 }
 0x323   :  { %v6742_v17 = vpop.f32.mrf.mxu0 }
 0x325   :  { %v6743_v46 = vpop.f32.mrf.mxu0 }
 0x326   :  { %v6744_v61 = vadd.f32 %v6743_v46, %v6742_v17 }
 0x327   :  { %v6745_v37 = vpop.f32.mrf.mxu0 }
 0x329   :  { %v6746_v38 = vpop.f32.mrf.mxu0 }
 0x32a   :  { %v6747_v40 = vadd.f32 %v6746_v38, %v6745_v37 }
 0x32b   :  { %v6748_v54 = vpop.f32.mrf.mxu0 }
 0x32d   :  { %v6749_v32 = vpop.f32.mrf.mxu0 }
 0x32e   :  { %v6750_v15 = vadd.f32 %v6749_v32, %v6748_v54  ;;  %v8118_v32 = vld [vmem:[#allocation2 + $0x28] sm:$0xff] }
 0x32f   :  { %v6751_v31 = vpop.f32.mrf.mxu0 }
 0x331   :  { %v6752_v1 = vpop.f32.mrf.mxu0 }
 0x332   :  { %v6836_v3 = vpop.f32.mrf.mxu1  ;;  %v6753_v43 = vadd.f32 %v6752_v1, %v6751_v31 }
 0x333   :  { %v6754_v7 = vpop.f32.mrf.mxu0 }
 0x334   :  { %v6837_v57 = vpop.f32.mrf.mxu1 }
 0x335   :  { %v6838_v11 = vadd.f32 %v6837_v57, %v6836_v3  ;;  %v6755_v41 = vpop.f32.mrf.mxu0 }
 0x336   :  { %v6839_v2 = vpop.f32.mrf.mxu1  ;;  %v6756_v59 = vadd.f32 %v6755_v41, %v6754_v7 }
 0x337   :  { %v1571_v63 = vadd.f32 %v6838_v11, %v6744_v61  ;;  %v6757_v29 = vpop.f32.mrf.mxu0 }
 0x338   :  { %v6840_v55 = vpop.f32.mrf.mxu1 }
 0x339   :  { %v1672_v62 = vadd.f32 %v8113_v50, %v1571_v63  ;;  %v6841_v8 = vadd.f32 %v6840_v55, %v6839_v2  ;;  %v6758_v9 = vpop.f32.mrf.mxu0  ;;  %v8119_v2 = vld [vmem:[#allocation2 + $0x30] sm:$0xff] }
 0x33a   :  { %v6842_v25 = vpop.f32.mrf.mxu1  ;;  %v6759_v16 = vadd.f32 %v6758_v9, %v6757_v29 }
 0x33b   :  { %v1574_v36 = vadd.f32 %v6841_v8, %v6747_v40  ;;  %v8934_v30 = vadd.f32 %v8931_v28, %v1672_v62  ;;  %v6760_v18 = vpop.f32.mrf.mxu0  ;;  %v8120_v62 = vld [vmem:[#allocation2 + $0x38] sm:$0xff] }
 0x33c   :  { %v6843_v24 = vpop.f32.mrf.mxu1 }
 0x33d   :  { %v1673_v39 = vadd.f32 %v8114_v23, %v1574_v36  ;;  %v6844_v33 = vadd.f32 %v6843_v24, %v6842_v25  ;;  %1763 = vadd.xlane.f32.xlu0 %v8934_v30  ;;  %v6761_v60 = vpop.f32.mrf.mxu0 }
 0x33e   :  { %v6845_v22 = vpop.f32.mrf.mxu1  ;;  %v6762_v54 = vadd.f32 %v6761_v60, %v6760_v18 }
 0x33f   :  { %v1579_v5 = vadd.f32 %v6844_v33, %v6750_v15  ;;  %v8938_v34 = vadd.f32 %v8931_v28, %v1673_v39  ;;  %v6763_v26 = vpop.f32.mrf.mxu0 }
 0x340   :  { %v6846_v56 = vpop.f32.mrf.mxu1 }
 0x341   :  { %v1674_v45 = vadd.f32 %v8115_v42, %v1579_v5  ;;  %v6847_v4 = vadd.f32 %v6846_v56, %v6845_v22  ;;  %1765 = vadd.xlane.f32.xlu1 %v8938_v34  ;;  %v6764_v3 = vpop.f32.mrf.mxu0 }
 0x342   :  { %v6848_v53 = vpop.f32.mrf.mxu1  ;;  %v6765_v41 = vadd.f32 %v6764_v3, %v6763_v26  ;;  %v8123_v26 = vld [vmem:[#allocation2 + $0x50] sm:$0xff] }
 0x343   :  { %v1582_v47 = vadd.f32 %v6847_v4, %v6753_v43  ;;  %v8942_v13 = vadd.f32 %v8931_v28, %v1674_v45  ;;  %v8121_v43 = vld [vmem:[#allocation2 + $0x40] sm:$0xff] }
 0x344   :  { %v6849_v14 = vpop.f32.mrf.mxu1 }
 0x345   :  { %v1675_v27 = vadd.f32 %v8116_v48, %v1582_v47  ;;  %v6850_v35 = vadd.f32 %v6849_v14, %v6848_v53  ;;  %1767 = vadd.xlane.f32.xlu0 %v8942_v13 }
 0x346   :  { %v6851_v21 = vpop.f32.mrf.mxu1 }
 0x347   :  { %v1587_v19 = vadd.f32 %v6850_v35, %v6756_v59  ;;  %v8946_v49 = vadd.f32 %v8931_v28, %v1675_v27  ;;  %v8122_v27 = vld [vmem:[#allocation2 + $0x48] sm:$0xff] }
 0x348   :  { %v6852_v51 = vpop.f32.mrf.mxu1 }
 0x349   :  { %v1676_v52 = vadd.f32 %v8117_v44, %v1587_v19  ;;  %v6853_v20 = vadd.f32 %v6852_v51, %v6851_v21  ;;  %1769 = vadd.xlane.f32.xlu1 %v8946_v49 }
 0x34a   :  { %v6854_v17 = vpop.f32.mrf.mxu1 }
 0x34b   :  { %v1590_v46 = vadd.f32 %v6853_v20, %v6759_v16  ;;  %v8950_v37 = vadd.f32 %v8931_v28, %v1676_v52 }
 0x34c   :  { %v6855_v38 = vpop.f32.mrf.mxu1 }
 0x34d   :  { %v1677_v31 = vadd.f32 %v8118_v32, %v1590_v46  ;;  %v6856_v1 = vadd.f32 %v6855_v38, %v6854_v17  ;;  %1771 = vadd.xlane.f32.xlu0 %v8950_v37 }
 0x34e   :  { %v6857_v7 = vpop.f32.mrf.mxu1 }
 0x34f   :  { %v1595_v57 = vadd.f32 %v6856_v1, %v6762_v54  ;;  %v8954_v61 = vadd.f32 %v8931_v28, %v1677_v31 }
 0x350   :  { %v6858_v11 = vpop.f32.mrf.mxu1 }
 0x351   :  { %v1678_v63 = vadd.f32 %v8119_v2, %v1595_v57  ;;  %v6859_v55 = vadd.f32 %v6858_v11, %v6857_v7  ;;  %1773 = vadd.xlane.f32.xlu1 %v8954_v61  ;;  %v8124_v57 = vld [vmem:[#allocation2 + $0x58] sm:$0xff] }
 0x353   :  { %v1598_v40 = vadd.f32 %v6859_v55, %v6765_v41  ;;  %v8958_v50 = vadd.f32 %v8931_v28, %v1678_v63 }
 0x355   :  { %v1679_v8 = vadd.f32 %v8120_v62, %v1598_v40  ;;  %1775 = vadd.xlane.f32.xlu0 %v8958_v50 }
 0x357   :  { %v8962_v29 = vadd.f32 %v8931_v28, %v1679_v8 }
 0x359   :  { %1777 = vadd.xlane.f32.xlu1 %v8962_v29 }
 0x396   :  { %v6766_v25 = vpop.f32.mrf.mxu0  ;;  %v6860_v36 = vpop.f32.mrf.mxu1 }
 0x398   :  { %v6767_v24 = vpop.f32.mrf.mxu0  ;;  %v6861_v15 = vpop.f32.mrf.mxu1 }
 0x399   :  { %v6768_v23 = vadd.f32 %v6767_v24, %v6766_v25  ;;  %v6862_v39 = vadd.f32 %v6861_v15, %v6860_v36  ;;  %v8125_v36 = vld [vmem:[#allocation2 + $0x60] sm:$0xff] }
 0x39a   :  { %v6769_v33 = vpop.f32.mrf.mxu0  ;;  %v6863_v9 = vpop.f32.mrf.mxu1 }
 0x39b   :  { %v1603_v22 = vadd.f32 %v6862_v39, %v6768_v23 }
 0x39c   :  { %v6770_v5 = vpop.f32.mrf.mxu0  ;;  %v6864_v56 = vpop.f32.mrf.mxu1 }
 0x39d   :  { %v1680_v42 = vadd.f32 %v8121_v43, %v1603_v22  ;;  %v6771_v45 = vadd.f32 %v6770_v5, %v6769_v33  ;;  %v6865_v4 = vadd.f32 %v6864_v56, %v6863_v9  ;;  %v8126_v43 = vld [vmem:[#allocation2 + $0x68] sm:$0xff] }
 0x39e   :  { %v6772_v18 = vpop.f32.mrf.mxu0  ;;  %v6866_v53 = vpop.f32.mrf.mxu1 }
 0x39f   :  { %v1606_v47 = vadd.f32 %v6865_v4, %v6771_v45  ;;  %v8966_v14 = vadd.f32 %v8931_v28, %v1680_v42 }
 0x3a0   :  { %v6773_v59 = vpop.f32.mrf.mxu0  ;;  %v6867_v48 = vpop.f32.mrf.mxu1 }
 0x3a1   :  { %v1681_v35 = vadd.f32 %v8122_v27, %v1606_v47  ;;  %v6774_v60 = vadd.f32 %v6773_v59, %v6772_v18  ;;  %v6868_v21 = vadd.f32 %v6867_v48, %v6866_v53  ;;  %1779 = vadd.xlane.f32.xlu0 %v8966_v14 }
 0x3a2   :  { %v6775_v19 = vpop.f32.mrf.mxu0  ;;  %v6869_v51 = vpop.f32.mrf.mxu1 }
 0x3a3   :  { %v1611_v16 = vadd.f32 %v6868_v21, %v6774_v60  ;;  %v8970_v44 = vadd.f32 %v8931_v28, %v1681_v35  ;;  %v8127_v35 = vld [vmem:[#allocation2 + $0x70] sm:$0xff] }
 0x3a4   :  { %v6776_v52 = vpop.f32.mrf.mxu0  ;;  %v6870_v20 = vpop.f32.mrf.mxu1 }
 0x3a5   :  { %v1682_v17 = vadd.f32 %v8123_v26, %v1611_v16  ;;  %v6777_v46 = vadd.f32 %v6776_v52, %v6775_v19  ;;  %v6871_v38 = vadd.f32 %v6870_v20, %v6869_v51  ;;  %1781 = vadd.xlane.f32.xlu1 %v8970_v44 }
 0x3a6   :  { %v6778_v54 = vpop.f32.mrf.mxu0  ;;  %v6872_v32 = vpop.f32.mrf.mxu1 }
 0x3a7   :  { %v1614_v31 = vadd.f32 %v6871_v38, %v6777_v46  ;;  %v8974_v1 = vadd.f32 %v8931_v28, %v1682_v17  ;;  %v8128_v46 = vld [vmem:[#allocation2 + $0x78] sm:$0xff] }
 0x3a8   :  { %v6779_v3 = vpop.f32.mrf.mxu0  ;;  %v6873_v7 = vpop.f32.mrf.mxu1 }
 0x3a9   :  { %v1683_v11 = vadd.f32 %v8124_v57, %v1614_v31  ;;  %v6780_v41 = vadd.f32 %v6779_v3, %v6778_v54  ;;  %v6874_v2 = vadd.f32 %v6873_v7, %v6872_v32  ;;  %1783 = vadd.xlane.f32.xlu0 %v8974_v1 }
 0x3aa   :  { %v6781_v63 = vpop.f32.mrf.mxu0  ;;  %v6875_v55 = vpop.f32.mrf.mxu1 }
 0x3ab   :  { %v1619_v40 = vadd.f32 %v6874_v2, %v6780_v41  ;;  %v8978_v62 = vadd.f32 %v8931_v28, %v1683_v11  ;;  %v8129_v2 = vld [vmem:[#allocation2 + $0x80] sm:$0xff] }
 0x3ac   :  { %v6782_v8 = vpop.f32.mrf.mxu0  ;;  %v6876_v25 = vpop.f32.mrf.mxu1 }
 0x3ad   :  { %v1684_v24 = vadd.f32 %v8125_v36, %v1619_v40  ;;  %v6783_v15 = vadd.f32 %v6782_v8, %v6781_v63  ;;  %v6877_v23 = vadd.f32 %v6876_v25, %v6875_v55  ;;  %1785 = vadd.xlane.f32.xlu1 %v8978_v62 }
 0x3ae   :  { %v6784_v39 = vpop.f32.mrf.mxu0  ;;  %v6878_v33 = vpop.f32.mrf.mxu1 }
 0x3af   :  { %v1622_v9 = vadd.f32 %v6877_v23, %v6783_v15  ;;  %v8982_v22 = vadd.f32 %v8931_v28, %v1684_v24 }
 0x3b0   :  { %v6785_v5 = vpop.f32.mrf.mxu0  ;;  %v6879_v56 = vpop.f32.mrf.mxu1 }
 0x3b1   :  { %v1685_v42 = vadd.f32 %v8126_v43, %v1622_v9  ;;  %v6786_v45 = vadd.f32 %v6785_v5, %v6784_v39  ;;  %v6880_v4 = vadd.f32 %v6879_v56, %v6878_v33  ;;  %1787 = vadd.xlane.f32.xlu0 %v8982_v22  ;;  %v8130_v39 = vld [vmem:[#allocation2 + $0x88] sm:$0xff] }
 0x3b2   :  { %v6787_v18 = vpop.f32.mrf.mxu0  ;;  %v6881_v53 = vpop.f32.mrf.mxu1 }
 0x3b3   :  { %v1627_v47 = vadd.f32 %v6880_v4, %v6786_v45  ;;  %v8986_v59 = vadd.f32 %v8931_v28, %v1685_v42 }
 0x3b4   :  { %v6788_v48 = vpop.f32.mrf.mxu0  ;;  %v6882_v27 = vpop.f32.mrf.mxu1 }
 0x3b5   :  { %v1686_v60 = vadd.f32 %v8127_v35, %v1627_v47  ;;  %v6789_v21 = vadd.f32 %v6788_v48, %v6787_v18  ;;  %v6883_v19 = vadd.f32 %v6882_v27, %v6881_v53  ;;  %1789 = vadd.xlane.f32.xlu1 %v8986_v59  ;;  %v8131_v53 = vld [vmem:[#allocation2 + $0x90] sm:$0xff] }
 0x3b6   :  { %v6790_v51 = vpop.f32.mrf.mxu0  ;;  %v6884_v16 = vpop.f32.mrf.mxu1 }
 0x3b7   :  { %v1630_v52 = vadd.f32 %v6883_v19, %v6789_v21  ;;  %v8990_v20 = vadd.f32 %v8931_v28, %v1686_v60 }
 0x3b8   :  { %v6791_v26 = vpop.f32.mrf.mxu0  ;;  %v6885_v17 = vpop.f32.mrf.mxu1 }
 0x3b9   :  { %v1687_v38 = vadd.f32 %v8128_v46, %v1630_v52  ;;  %v6792_v54 = vadd.f32 %v6791_v26, %v6790_v51  ;;  %v6886_v32 = vadd.f32 %v6885_v17, %v6884_v16  ;;  %1791 = vadd.xlane.f32.xlu0 %v8990_v20  ;;  %v7679_v52 = vld [vmem:[#allocation5 + $0x1e0] ss:$16 sps:$4 sm:$0xff]   ;;  %v7681_v26 = vld [vmem:[#allocation5 + $0x1e4] ss:$16 sps:$4 sm:$0xff]   ;;  %v7682_v46 = vld [vmem:[#allocation5 + $0x1e8] ss:$16 sps:$4 sm:$0xff]  }
 0x3ba   :  { %v6793_v31 = vpop.f32.mrf.mxu0  ;;  %v6887_v3 = vpop.f32.mrf.mxu1  ;;  %2211 = vmatprep.subr.bf16.mxu0 %v7681_v26 }
 0x3bb   :  { %v1635_v7 = vadd.f32 %v6886_v32, %v6792_v54  ;;  %v8994_v57 = vadd.f32 %v8931_v28, %v1687_v38  ;;  %v7684_v38 = vld [vmem:[#allocation5 + $0x1ec] ss:$16 sps:$4 sm:$0xff]   ;;  %v8132_v54 = vld [vmem:[#allocation2 + $0x98] sm:$0xff]  ;;  %2212 = vmatpush1.bf16.msra.mxu0 %v7679_v52 }
 0x3bc   :  { %v6794_v11 = vpop.f32.mrf.mxu0  ;;  %v6888_v41 = vpop.f32.mrf.mxu1  ;;  %2372 = vmatprep.subr.bf16.mxu1 %v7684_v38 }
 0x3bd   :  { %v1688_v63 = vadd.f32 %v8129_v2, %v1635_v7  ;;  %v6795_v55 = vadd.f32 %v6794_v11, %v6793_v31  ;;  %v6889_v40 = vadd.f32 %v6888_v41, %v6887_v3  ;;  %1793 = vadd.xlane.f32.xlu1 %v8994_v57  ;;  %2373 = vmatpush1.bf16.msra.mxu1 %v7682_v46 }
 0x3be   :  { %v6796_v8 = vpop.f32.mrf.mxu0  ;;  %v6890_v25 = vpop.f32.mrf.mxu1 }
 0x3bf   :  { %v1638_v36 = vadd.f32 %v6889_v40, %v6795_v55  ;;  %v8998_v24 = vadd.f32 %v8931_v28, %v1688_v63 }
 0x3c0   :  { %v6797_v15 = vpop.f32.mrf.mxu0  ;;  %v6891_v23 = vpop.f32.mrf.mxu1 }
 0x3c1   :  { %v1689_v33 = vadd.f32 %v8130_v39, %v1638_v36  ;;  %v6798_v9 = vadd.f32 %v6797_v15, %v6796_v8  ;;  %v6892_v5 = vadd.f32 %v6891_v23, %v6890_v25  ;;  %1795 = vadd.xlane.f32.xlu0 %v8998_v24 }
 0x3c2   :  { %v6799_v56 = vpop.f32.mrf.mxu0  ;;  %v6893_v43 = vpop.f32.mrf.mxu1 }
 0x3c3   :  { %v1643_v42 = vadd.f32 %v6892_v5, %v6798_v9  ;;  %v9002_v45 = vadd.f32 %v8931_v28, %v1689_v33  ;;  %v8133_v33 = vld [vmem:[#allocation2 + $0xa0] sm:$0xff] }
 0x3c4   :  { %v6800_v4 = vpop.f32.mrf.mxu0  ;;  %v6894_v18 = vpop.f32.mrf.mxu1 }
 0x3c5   :  { %v1690_v47 = vadd.f32 %v8131_v53, %v1643_v42  ;;  %v6801_v48 = vadd.f32 %v6800_v4, %v6799_v56  ;;  %v6895_v27 = vadd.f32 %v6894_v18, %v6893_v43  ;;  %1797 = vadd.xlane.f32.xlu1 %v9002_v45 }
 0x3c6   :  { %v6896_v35 = vpop.f32.mrf.mxu1  ;;  %v1764_v60 = vpop.xlane.xlu0 %1763 }
 0x3c7   :  { %v1646_v21 = vadd.f32 %v6895_v27, %v6801_v48  ;;  %v1813_v19 = vmul.f32 0.0078125, %v1764_v60  ;;  %v6802_v51 = vpop.f32.mrf.mxu0  ;;  %v9006_v16 = vadd.f32 %v8931_v28, %v1690_v47 }
 0x3c8   :  { %v6897_v17 = vpop.f32.mrf.mxu1 }
 0x3c9   :  { %v1691_v32 = vadd.f32 %v8132_v54, %v1646_v21  ;;  %v6803_v31 = vpop.f32.mrf.mxu0  ;;  %v6898_v3 = vadd.f32 %v6897_v17, %v6896_v35  ;;  %1799 = vadd.xlane.f32.xlu0 %v9006_v16  ;;  %v9010_v7 = vsub.f32 %v8934_v30, %v1813_v19  ;;  %v8134_v21 = vld [vmem:[#allocation2 + $0xa8] sm:$0xff] }
 0x3ca   :  { %v6804_v11 = vadd.f32 %v6803_v31, %v6802_v51  ;;  %v6899_v41 = vpop.f32.mrf.mxu1  ;;  %v1766_v2 = vpop.xlane.xlu1 %1765  ;;  %v7685_v54 = vld [vmem:[#allocation5 + $0x1c0] ss:$16 sps:$4 sm:$0xff]  }
 0x3cb   :  { %v1814_v63 = vmul.f32 0.0078125, %v1766_v2  ;;  %v6805_v55 = vpop.f32.mrf.mxu0  ;;  %v9013_v40 = vadd.f32 %v8931_v28, %v1691_v32  ;;  %v1863_v8 = vmul.f32 %v9010_v7, %v9010_v7  ;;  %v7687_v32 = vld [vmem:[#allocation5 + $0x1c4] ss:$16 sps:$4 sm:$0xff]   ;;  %v7690_v2 = vld [vmem:[#allocation5 + $0x1cc] ss:$16 sps:$4 sm:$0xff]  }
 0x3cc   :  { %v1651_v25 = vadd.f32 %v6898_v3, %v6804_v11  ;;  %v6900_v36 = vpop.f32.mrf.mxu1  ;;  %2213 = vmatprep.subr.bf16.mxu0 %v7687_v32  ;;  %2374 = vmatprep.subr.bf16.mxu1 %v7690_v2  ;;  %v7699_v2 = vld [vmem:[#allocation5 + $0x184] ss:$16 sps:$4 sm:$0xff]  }
 0x3cd   :  { %10587 = vst [vmem:[#allocation20_spill] sm:$0xff] %v9013_v40  ;;  %v6806_v15 = vpop.f32.mrf.mxu0  ;;  %v6901_v23 = vadd.f32 %v6900_v36, %v6899_v41  ;;  %1801 = vadd.xlane.f32.xlu1 %v9013_v40  ;;  %1888 = vadd.xlane.f32.xlu0 %v1863_v8  ;;  %v9019_v39 = vsub.f32 %v8938_v34, %v1814_v63  ;;  %v7688_v41 = vld [vmem:[#allocation5 + $0x1c8] ss:$16 sps:$4 sm:$0xff]  }
 0x3ce   :  { %v1692_v9 = vadd.f32 %v8133_v33, %v1651_v25  ;;  %v6807_v5 = vadd.f32 %v6806_v15, %v6805_v55  ;;  %v6902_v56 = vpop.f32.mrf.mxu1  ;;  %v1768_v43 = vpop.xlane.xlu0 %1767  ;;  %v8135_v25 = vld [vmem:[#allocation2 + $0xb0] sm:$0xff]  ;;  %2214 = vmatpush1.bf16.msra.mxu0 %v7685_v54  ;;  %2375 = vmatpush1.bf16.msra.mxu1 %v7688_v41 }
 0x3cf   :  { %v1815_v42 = vmul.f32 0.0078125, %v1768_v43  ;;  %v6808_v4 = vpop.f32.mrf.mxu0  ;;  %v1864_v18 = vmul.f32 %v9019_v39, %v9019_v39 }
 0x3d0   :  { %v1654_v53 = vadd.f32 %v6901_v23, %v6807_v5  ;;  %v6903_v47 = vpop.f32.mrf.mxu1  ;;  %v9024_v48 = vadd.f32 %v8931_v28, %v1692_v9 }
 0x3d1   :  { %v6809_v27 = vpop.f32.mrf.mxu0  ;;  %v6904_v35 = vadd.f32 %v6903_v47, %v6902_v56  ;;  %1890 = vadd.xlane.f32.xlu1 %v1864_v18  ;;  %v9027_v60 = vsub.f32 %v8942_v13, %v1815_v42  ;;  %v7693_v18 = vld [vmem:[#allocation5 + $0x1a4] ss:$16 sps:$4 sm:$0xff]  }
 0x3d2   :  { %10588 = vst [vmem:[#allocation21_spill] sm:$0xff] %v9024_v48  ;;  %v1693_v19 = vadd.f32 %v8134_v21, %v1654_v53  ;;  %v6810_v51 = vadd.f32 %v6809_v27, %v6808_v4  ;;  %1803 = vadd.xlane.f32.xlu0 %v9024_v48  ;;  %v6905_v52 = vpop.f32.mrf.mxu1  ;;  %v1770_v26 = vpop.xlane.xlu1 %1769  ;;  %v7696_v53 = vld [vmem:[#allocation5 + $0x1ac] ss:$16 sps:$4 sm:$0xff]   ;;  %v7691_v21 = vld [vmem:[#allocation5 + $0x1a0] ss:$16 sps:$4 sm:$0xff]   ;;  %2215 = vmatprep.subr.bf16.mxu0 %v7693_v18 }
 0x3d3   :  { %v1816_v17 = vmul.f32 0.0078125, %v1770_v26  ;;  %v6811_v46 = vpop.f32.mrf.mxu0  ;;  %v1865_v38 = vmul.f32 %v9027_v60, %v9027_v60  ;;  %2376 = vmatprep.subr.bf16.mxu1 %v7696_v53  ;;  %2216 = vmatpush1.bf16.msra.mxu0 %v7691_v21  ;;  %v7706_v18 = vld [vmem:[#allocation5 + $0x168] ss:$16 sps:$4 sm:$0xff]   ;;  %v7711_v21 = vld [vmem:[#allocation5 + $0x144] ss:$16 sps:$4 sm:$0xff]  }
 0x3d4   :  { %v1659_v31 = vadd.f32 %v6904_v35, %v6810_v51  ;;  %v6906_v3 = vpop.f32.mrf.mxu1  ;;  %v9033_v11 = vadd.f32 %v8931_v28, %v1693_v19  ;;  %v7694_v19 = vld [vmem:[#allocation5 + $0x1a8] ss:$16 sps:$4 sm:$0xff]   ;;  %v8136_v51 = vld [vmem:[#allocation2 + $0xb8] sm:$0xff]  ;;  %2217 = vmatprep.subr.bf16.mxu0 %v7699_v2  ;;  %v7726_v2 = vld [vmem:[#allocation5 + $0x10c] ss:$16 sps:$4 sm:$0xff]  }
 0x3d5   :  { %v6812_v63 = vpop.f32.mrf.mxu0  ;;  %v6907_v55 = vadd.f32 %v6906_v3, %v6905_v52  ;;  %v9036_v8 = vsub.f32 %v8946_v49, %v1816_v17  ;;  %2377 = vmatpush1.bf16.msra.mxu1 %v7694_v19  ;;  %v7714_v19 = vld [vmem:[#allocation5 + $0x14c] ss:$16 sps:$4 sm:$0xff]  }
 0x3d6   :  { %10589 = vst [vmem:[#allocation22_spill] sm:$0xff] %v9033_v11  ;;  %v1694_v36 = vadd.f32 %v8135_v25, %v1659_v31  ;;  %v6813_v15 = vadd.f32 %v6812_v63, %v6811_v46  ;;  %1805 = vadd.xlane.f32.xlu1 %v9033_v11  ;;  %1892 = vadd.xlane.f32.xlu0 %v1865_v38  ;;  %v6908_v23 = vpop.f32.mrf.mxu1  ;;  %v1772_v33 = vpop.xlane.xlu0 %1771  ;;  %v7702_v63 = vld [vmem:[#allocation5 + $0x18c] ss:$16 sps:$4 sm:$0xff]  }
 0x3d7   :  { %v1817_v9 = vmul.f32 0.0078125, %v1772_v33  ;;  %v6814_v5 = vpop.f32.mrf.mxu0  ;;  %v1866_v56 = vmul.f32 %v9036_v8, %v9036_v8  ;;  %2378 = vmatprep.subr.bf16.mxu1 %v7702_v63  ;;  %v7721_v63 = vld [vmem:[#allocation5 + $0x100] ss:$16 sps:$4 sm:$0xff]  }
 0x3d8   :  { %v1662_v43 = vadd.f32 %v6907_v55, %v6813_v15  ;;  %v6909_v42 = vpop.f32.mrf.mxu1  ;;  %v9042_v4 = vadd.f32 %v8931_v28, %v1694_v36  ;;  %v7697_v36 = vld [vmem:[#allocation5 + $0x180] ss:$16 sps:$4 sm:$0xff]   ;;  %v7700_v15 = vld [vmem:[#allocation5 + $0x188] ss:$16 sps:$4 sm:$0xff]  }
 0x3d9   :  { %v6815_v47 = vpop.f32.mrf.mxu0  ;;  %v6910_v27 = vadd.f32 %v6909_v42, %v6908_v23  ;;  %v9045_v35 = vsub.f32 %v8950_v37, %v1817_v9  ;;  %2218 = vmatpush1.bf16.msra.mxu0 %v7697_v36  ;;  %2379 = vmatpush1.bf16.msra.mxu1 %v7700_v15  ;;  %v7703_v42 = vld [vmem:[#allocation5 + $0x160] ss:$16 sps:$4 sm:$0xff]   ;;  %v8137_v36 = vld [vmem:[#allocation8 + $0x78] sm:$0xff]  }
 0x3da   :  { %10590 = vst [vmem:[#allocation23_spill] sm:$0xff] %v9042_v4  ;;  %v1695_v52 = vadd.f32 %v8136_v51, %v1662_v43  ;;  %v6816_v26 = vadd.f32 %v6815_v47, %v6814_v5  ;;  %1894 = vadd.xlane.f32.xlu1 %v1866_v56  ;;  %1807 = vadd.xlane.f32.xlu0 %v9042_v4  ;;  %v6911_v17 = vpop.f32.mrf.mxu1  ;;  %v1774_v46 = vpop.xlane.xlu1 %1773  ;;  %v7705_v5 = vld [vmem:[#allocation5 + $0x164] ss:$16 sps:$4 sm:$0xff]   ;;  %v7708_v56 = vld [vmem:[#allocation5 + $0x16c] ss:$16 sps:$4 sm:$0xff]  }
 0x3db   :  { %v1818_v38 = vmul.f32 0.0078125, %v1774_v46  ;;  %v6817_v54 = vpop.f32.mrf.mxu0  ;;  %v1867_v32 = vmul.f32 %v9045_v35, %v9045_v35  ;;  %2219 = vmatprep.subr.bf16.mxu0 %v7705_v5  ;;  %2380 = vmatprep.subr.bf16.mxu1 %v7708_v56  ;;  %v7717_v46 = vld [vmem:[#allocation5 + $0x124] ss:$16 sps:$4 sm:$0xff]   ;;  %v8138_v15 = vld [vmem:[#allocation8 + $0xf8] sm:$0xff]  }
 0x3dc   :  { %v9050_v31 = vadd.f32 %v6910_v27, %v6816_v26  ;;  %v6912_v3 = vpop.f32.mrf.mxu1  ;;  %v9053_v41 = vadd.f32 %v8931_v28, %v1695_v52  ;;  %v7709_v52 = vld [vmem:[#allocation5 + $0x140] ss:$16 sps:$4 sm:$0xff]   ;;  %v7712_v26 = vld [vmem:[#allocation5 + $0x148] ss:$16 sps:$4 sm:$0xff]  }
 0x3dd   :  { %v6818_v55 = vpop.f32.mrf.mxu0  ;;  %v9056_v25 = vsub.f32 %v8954_v61, %v1818_v38  ;;  %2220 = vmatpush1.bf16.msra.mxu0 %v7703_v42  ;;  %2381 = vmatpush1.bf16.msra.mxu1 %v7706_v18  ;;  %v7720_v38 = vld [vmem:[#allocation5 + $0x12c] ss:$16 sps:$4 sm:$0xff]   ;;  %v7715_v54 = vld [vmem:[#allocation5 + $0x120] ss:$16 sps:$4 sm:$0xff]   ;;  %v7723_v3 = vld [vmem:[#allocation5 + $0x104] ss:$16 sps:$4 sm:$0xff]  }
 0x3de   :  { %10591 = vst [vmem:[#allocation24_spill] sm:$0xff] %v9053_v41  ;;  %1809 = vadd.xlane.f32.xlu1 %v9053_v41  ;;  %1896 = vadd.xlane.f32.xlu0 %v1867_v32  ;;  %v1776_v23 = vpop.xlane.xlu0 %1775  ;;  %v7718_v32 = vld [vmem:[#allocation5 + $0x128] ss:$16 sps:$4 sm:$0xff]  }
 0x3df   :  { %v1819_v33 = vmul.f32 0.0078125, %v1776_v23  ;;  %v1868_v9 = vmul.f32 %v9056_v25, %v9056_v25  ;;  %2221 = vmatprep.subr.bf16.mxu0 %v7711_v21  ;;  %2382 = vmatprep.subr.bf16.mxu1 %v7714_v19  ;;  %v7724_v55 = vld [vmem:[#allocation5 + $0x108] ss:$16 sps:$4 sm:$0xff]  }
 0x3e1   :  { %v9062_v43 = vsub.f32 %v8958_v50, %v1819_v33  ;;  %2222 = vmatpush1.bf16.msra.mxu0 %v7709_v52  ;;  %2383 = vmatpush1.bf16.msra.mxu1 %v7712_v26  ;;  %v8139_v52 = vld [vmem:[#allocation2 + $0xc0] sm:$0xff] }
 0x3e2   :  { %1898 = vadd.xlane.f32.xlu1 %v1868_v9  ;;  %v1778_v53 = vpop.xlane.xlu1 %1777  ;;  %2223 = vmatprep.subr.bf16.mxu0 %v7717_v46  ;;  %v1696_v26 = vadd.f32 %v8139_v52, %v9050_v31 }
 0x3e3   :  { %v1820_v47 = vmul.f32 0.0078125, %v1778_v53  ;;  %v1869_v27 = vmul.f32 %v9062_v43, %v9062_v43  ;;  %2384 = vmatprep.subr.bf16.mxu1 %v7720_v38 }
 0x3e5   :  { %1900 = vadd.xlane.f32.xlu0 %v1869_v27  ;;  %v9067_v51 = vsub.f32 %v8962_v29, %v1820_v47  ;;  %2224 = vmatpush1.bf16.msra.mxu0 %v7715_v54 }
 0x3e6   :  { %2385 = vmatpush1.bf16.msra.mxu1 %v7718_v32  ;;  %2225 = vmatprep.subr.bf16.mxu0 %v7723_v3 }
 0x3e7   :  { %v1870_v17 = vmul.f32 %v9067_v51, %v9067_v51  ;;  %2386 = vmatprep.subr.bf16.mxu1 %v7726_v2  ;;  %v9093_v2 = vadd.f32 %v8931_v28, %v1696_v26 }
 0x3e9   :  { %1902 = vadd.xlane.f32.xlu1 %v1870_v17  ;;  %2226 = vmatpush1.bf16.msra.mxu0 %v7721_v63 }
 0x3ea   :  { %2387 = vmatpush1.bf16.msra.mxu1 %v7724_v55  ;;  %6914 = vmatprep.subr.bf16.mxu0 %v8137_v36 }
 0x3eb   :  { %7008 = vmatprep.subr.bf16.mxu1 %v8138_v15 }
 0x42a   :  { %v1780_v23 = vpop.xlane.xlu0 %1779 }
 0x42b   :  { %v1821_v33 = vmul.f32 0.0078125, %v1780_v23 }
 0x42d   :  { %v9072_v9 = vsub.f32 %v8966_v14, %v1821_v33 }
 0x42e   :  { %v1782_v5 = vpop.xlane.xlu1 %1781 }
 0x42f   :  { %v1822_v56 = vmul.f32 0.0078125, %v1782_v5  ;;  %v1871_v42 = vmul.f32 %v9072_v9, %v9072_v9 }
 0x431   :  { %1904 = vadd.xlane.f32.xlu0 %v1871_v42  ;;  %v9077_v18 = vsub.f32 %v8970_v44, %v1822_v56 }
 0x432   :  { %v1784_v53 = vpop.xlane.xlu0 %1783 }
 0x433   :  { %v1823_v47 = vmul.f32 0.0078125, %v1784_v53  ;;  %v1872_v27 = vmul.f32 %v9077_v18, %v9077_v18 }
 0x435   :  { %1906 = vadd.xlane.f32.xlu1 %v1872_v27  ;;  %v9082_v21 = vsub.f32 %v8974_v1, %v1823_v47 }
 0x436   :  { %v1786_v19 = vpop.xlane.xlu1 %1785 }
 0x437   :  { %v1824_v17 = vmul.f32 0.0078125, %v1786_v19  ;;  %v1873_v46 = vmul.f32 %v9082_v21, %v9082_v21 }
 0x439   :  { %1908 = vadd.xlane.f32.xlu0 %v1873_v46  ;;  %v9088_v38 = vsub.f32 %v8978_v62, %v1824_v17 }
 0x43a   :  { %v1788_v54 = vpop.xlane.xlu0 %1787 }
 0x43b   :  { %v1825_v32 = vmul.f32 0.0078125, %v1788_v54  ;;  %v1874_v3 = vmul.f32 %v9088_v38, %v9088_v38 }
 0x43d   :  { %1910 = vadd.xlane.f32.xlu1 %v1874_v3  ;;  %1811 = vadd.xlane.f32.xlu0 %v9093_v2  ;;  %v9097_v31 = vsub.f32 %v8982_v22, %v1825_v32 }
 0x43e   :  { %v1790_v63 = vpop.xlane.xlu1 %1789 }
 0x43f   :  { %v1826_v55 = vmul.f32 0.0078125, %v1790_v63  ;;  %v1875_v36 = vmul.f32 %v9097_v31, %v9097_v31 }
 0x441   :  { %1912 = vadd.xlane.f32.xlu1 %v1875_v36  ;;  %v9102_v15 = vsub.f32 %v8986_v59, %v1826_v55 }
 0x442   :  { %v1792_v23 = vpop.xlane.xlu0 %1791 }
 0x443   :  { %v1827_v33 = vmul.f32 0.0078125, %v1792_v23  ;;  %v1876_v28 = vmul.f32 %v9102_v15, %v9102_v15 }
 0x445   :  { %1914 = vadd.xlane.f32.xlu0 %v1876_v28  ;;  %v9107_v5 = vsub.f32 %v8990_v20, %v1827_v33 }
 0x446   :  { %v1794_v56 = vpop.xlane.xlu1 %1793 }
 0x447   :  { %v1828_v42 = vmul.f32 0.0078125, %v1794_v56  ;;  %v1877_v53 = vmul.f32 %v9107_v5, %v9107_v5 }
 0x449   :  { %1916 = vadd.xlane.f32.xlu1 %v1877_v53  ;;  %v9112_v47 = vsub.f32 %v8994_v57, %v1828_v42 }
 0x44a   :  { %v1796_v27 = vpop.xlane.xlu0 %1795 }
 0x44b   :  { %v1829_v19 = vmul.f32 0.0078125, %v1796_v27  ;;  %v1878_v52 = vmul.f32 %v9112_v47, %v9112_v47 }
 0x44d   :  { %1918 = vadd.xlane.f32.xlu0 %v1878_v52  ;;  %v9117_v26 = vsub.f32 %v8998_v24, %v1829_v19 }
 0x44e   :  { %v1798_v17 = vpop.xlane.xlu1 %1797 }
 0x44f   :  { %v1830_v46 = vmul.f32 0.0078125, %v1798_v17  ;;  %v1879_v54 = vmul.f32 %v9117_v26, %v9117_v26 }
 0x451   :  { %1920 = vadd.xlane.f32.xlu1 %v1879_v54  ;;  %v9122_v32 = vsub.f32 %v9002_v45, %v1830_v46 }
 0x452   :  { %v1800_v3 = vpop.xlane.xlu0 %1799 }
 0x453   :  { %v1831_v63 = vmul.f32 0.0078125, %v1800_v3  ;;  %v1880_v55 = vmul.f32 %v9122_v32, %v9122_v32 }
 0x455   :  { %1922 = vadd.xlane.f32.xlu0 %v1880_v55  ;;  %v9127_v36 = vsub.f32 %v9006_v16, %v1831_v63 }
 0x456   :  { %v1802_v23 = vpop.xlane.xlu1 %1801  ;;  %v1889_v33 = vpop.xlane.xlu0 %1888 }
 0x457   :  { %v1832_v28 = vmul.f32 0.0078125, %v1802_v23  ;;  %v1938_v56 = vmul.f32 0.0078125, %v1889_v33  ;;  %v1881_v42 = vmul.f32 %v9127_v36, %v9127_v36 }
 0x459   :  { %v1963_v53 = vadd.f32 1e-05, %v1938_v56  ;;  %1924 = vadd.xlane.f32.xlu1 %v1881_v42  ;;  %v9132_v27 = vsub.f32 %v9013_v40, %v1832_v28 }
 0x45a   :  { %v1891_v19 = vpop.xlane.xlu1 %1890 }
 0x45b   :  { %v1939_v52 = vmul.f32 0.0078125, %v1891_v19  ;;  %v1804_v17 = vpop.xlane.xlu0 %1803  ;;  %v1882_v46 = vmul.f32 %v9132_v27, %v9132_v27  ;;  %7913 = vrsqrt.f32 %v1963_v53 }
 0x45c   :  { %v1833_v54 = vmul.f32 0.0078125, %v1804_v17 }
 0x45d   :  { %v1964_v3 = vadd.f32 1e-05, %v1939_v52  ;;  %1926 = vadd.xlane.f32.xlu0 %v1882_v46 }
 0x45e   :  { %v9137_v63 = vsub.f32 %v9024_v48, %v1833_v54 }
 0x45f   :  { %7915 = vrsqrt.f32 %v1964_v3  ;;  %v1806_v55 = vpop.xlane.xlu1 %1805  ;;  %v1893_v23 = vpop.xlane.xlu0 %1892 }
 0x460   :  { %v1834_v33 = vmul.f32 0.0078125, %v1806_v55  ;;  %v1940_v56 = vmul.f32 0.0078125, %v1893_v23  ;;  %v1883_v28 = vmul.f32 %v9137_v63, %v9137_v63 }
 0x462   :  { %v1965_v42 = vadd.f32 1e-05, %v1940_v56  ;;  %1928 = vadd.xlane.f32.xlu1 %v1883_v28  ;;  %v9142_v19 = vsub.f32 %v9033_v11, %v1834_v33 }
 0x463   :  { %v1895_v17 = vpop.xlane.xlu1 %1894  ;;  %v1808_v53 = vpop.xlane.xlu0 %1807 }
 0x464   :  { %v1941_v52 = vmul.f32 0.0078125, %v1895_v17  ;;  %v1835_v46 = vmul.f32 0.0078125, %v1808_v53  ;;  %v1884_v54 = vmul.f32 %v9142_v19, %v9142_v19  ;;  %7917 = vrsqrt.f32 %v1965_v42 }
 0x466   :  { %v1966_v3 = vadd.f32 1e-05, %v1941_v52  ;;  %1930 = vadd.xlane.f32.xlu0 %v1884_v54  ;;  %v9147_v55 = vsub.f32 %v9042_v4, %v1835_v46 }
 0x467   :  { %v1810_v23 = vpop.xlane.xlu1 %1809  ;;  %v1897_v58 = vpop.xlane.xlu0 %1896 }
 0x468   :  { %7919 = vrsqrt.f32 %v1966_v3  ;;  %v1836_v56 = vmul.f32 0.0078125, %v1810_v23  ;;  %v1942_v28 = vmul.f32 0.0078125, %v1897_v58  ;;  %v1885_v33 = vmul.f32 %v9147_v55, %v9147_v55  ;;  %v7914_v11 = vpop.eup %7913 }
 0x469   :  { %v2013_v4 = vmul.f32 %v7914_v11, %v9010_v7  ;;  %v8140_v7 = vld [vmem:[#allocation8 + $0x38] sm:$0xff]   ;;  %v8142_v11 = vld [vmem:[#allocation8 + $0x70] sm:$0xff]  }
 0x46a   :  { %v9152_v17 = vsub.f32 %v9053_v41, %v1836_v56  ;;  %v1967_v53 = vadd.f32 1e-05, %v1942_v28  ;;  %1932 = vadd.xlane.f32.xlu1 %v1885_v33  ;;  %v10592_v33 = vmov 0  }
 0x46b   :  { %v1899_v42 = vpop.xlane.xlu1 %1898 }
 0x46c   :  { %v7916_v52 = vpop.eup %7915  ;;  %v1943_v54 = vmul.f32 0.0078125, %v1899_v42  ;;  %v1886_v46 = vmul.f32 %v9152_v17, %v9152_v17  ;;  %7921 = vrsqrt.f32 %v1967_v53  ;;  %v8143_v53 = vld [vmem:[#allocation8 + $0xf0] sm:$0xff]  }
 0x46d   :  { %v2014_v3 = vmul.f32 %v7916_v52, %v9019_v39  ;;  %v8141_v39 = vld [vmem:[#allocation8 + $0xb8] sm:$0xff]  }
 0x46e   :  { %v1968_v58 = vadd.f32 1e-05, %v1943_v54  ;;  %1934 = vadd.xlane.f32.xlu0 %v1886_v46  ;;  %v1901_v23 = vpop.xlane.xlu0 %1900  ;;  %v8144_v54 = vld [vmem:[#allocation8 + $0x30] sm:$0xff]  }
 0x46f   :  { %v1944_v48 = vmul.f32 0.0078125, %v1901_v23  ;;  %v2038_v40 = vpack.c.bf16 %v2014_v3, %v2013_v4  ;;  %v8145_v46 = vld [vmem:[#allocation8 + $0xb0] sm:$0xff]   ;;  %v8147_v23 = vld [vmem:[#allocation8 + $0xe8] sm:$0xff]  }
 0x470   :  { %7923 = vrsqrt.f32 %v1968_v58  ;;  %v8146_v58 = vld [vmem:[#allocation8 + $0x68] sm:$0xff]  }
 0x471   :  { %v1969_v56 = vadd.f32 1e-05, %v1944_v48  ;;  %2244 = vmatmul.mubr.bf16.vlgmr.msra.gmra.mxu0 %v2038_v40  ;;  %2405 = vmatmul.mubr.bf16.vlgmr.msra.gmra.mxu1 %v2038_v40  ;;  %v7918_v42 = vpop.eup %7917 }
 0x472   :  { %v1903_v28 = vpop.xlane.xlu1 %1902  ;;  %2253 = vmatprep.mubr.bf16.mxu0 %v10592_v33  ;;  %2414 = vmatprep.mubr.bf16.mxu1 %v10592_v33  ;;  %v2015_v40 = vmul.f32 %v7918_v42, %v9027_v60  ;;  %v8148_v60 = vld [vmem:[#allocation8 + $0x28] sm:$0xff]   ;;  %v8151_v42 = vld [vmem:[#allocation8 + $0xe0] sm:$0xff]  }
 0x473   :  { %v1945_v41 = vmul.f32 0.0078125, %v1903_v28  ;;  %6915 = vmatpush3.bf16.msra.mxu0 %v8140_v7  ;;  %7009 = vmatpush3.bf16.msra.mxu1 %v8141_v39  ;;  %7925 = vrsqrt.f32 %v1969_v56  ;;  %v8150_v56 = vld [vmem:[#allocation8 + $0x60] sm:$0xff]  }
 0x474   :  { %6916 = vmatprep.subr.bf16.mxu0 %v8142_v11  ;;  %7010 = vmatprep.subr.bf16.mxu1 %v8143_v53  ;;  %v8152_v53 = vld [vmem:[#allocation8 + $0x20] sm:$0xff]  }
 0x475   :  { %v7920_v4 = vpop.eup %7919  ;;  %v1970_v48 = vadd.f32 1e-05, %v1945_v41 }
 0x476   :  { %v2016_v52 = vmul.f32 %v7920_v4, %v9036_v8  ;;  %v8149_v8 = vld [vmem:[#allocation8 + $0xa8] sm:$0xff]   ;;  %v8153_v4 = vld [vmem:[#allocation8 + $0xa0] sm:$0xff]  }
 0x477   :  { %7927 = vrsqrt.f32 %v1970_v48  ;;  %6917 = vmatpush3.bf16.msra.mxu0 %v8144_v54  ;;  %7011 = vmatpush3.bf16.msra.mxu1 %v8145_v46  ;;  %v8154_v48 = vld [vmem:[#allocation8 + $0x58] sm:$0xff]  }
 0x478   :  { %v2039_v3 = vpack.c.bf16 %v2016_v52, %v2015_v40  ;;  %6918 = vmatprep.subr.bf16.mxu0 %v8146_v58  ;;  %7012 = vmatprep.subr.bf16.mxu1 %v8147_v23  ;;  %v8155_v40 = vld [vmem:[#allocation8 + $0xd8] sm:$0xff]   ;;  %v8158_v58 = vld [vmem:[#allocation8 + $0x50] sm:$0xff]  }
 0x479   :  { %v7922_v28 = vpop.eup %7921  ;;  %v8159_v23 = vld [vmem:[#allocation8 + $0xd0] sm:$0xff]  }
 0x47a   :  { %2254 = vmatmul.mubr.bf16.gmra.mxu0 %v2039_v3  ;;  %2415 = vmatmul.mubr.bf16.gmra.mxu1 %v2039_v3  ;;  %v2017_v7 = vmul.f32 %v7922_v28, %v9045_v35  ;;  %v8156_v35 = vld [vmem:[#allocation8 + $0x18] sm:$0xff]  }
 0x47b   :  { %2263 = vmatprep.mubr.bf16.mxu0 %v10592_v33  ;;  %2424 = vmatprep.mubr.bf16.mxu1 %v10592_v33 }
 0x47c   :  { %6919 = vmatpush3.bf16.msra.mxu0 %v8148_v60  ;;  %7013 = vmatpush3.bf16.msra.mxu1 %v8149_v8  ;;  %v8160_v60 = vld [vmem:[#allocation8 + $0x10] sm:$0xff]  }
 0x47d   :  { %v7924_v41 = vpop.eup %7923  ;;  %6920 = vmatprep.subr.bf16.mxu0 %v8150_v56  ;;  %7014 = vmatprep.subr.bf16.mxu1 %v8151_v42  ;;  %v8161_v8 = vld [vmem:[#allocation8 + $0x90] sm:$0xff]   ;;  %v8163_v56 = vld [vmem:[#allocation8 + $0xc8] sm:$0xff]   ;;  %v8166_v42 = vld [vmem:[#allocation8 + $0x40] sm:$0xff]  }
 0x47e   :  { %v2018_v39 = vmul.f32 %v7924_v41, %v9056_v25  ;;  %v8157_v25 = vld [vmem:[#allocation8 + $0x98] sm:$0xff]   ;;  %v8162_v41 = vld [vmem:[#allocation8 + $0x48] sm:$0xff]  }
 0x480   :  { %v2040_v11 = vpack.c.bf16 %v2018_v39, %v2017_v7  ;;  %6921 = vmatpush3.bf16.msra.mxu0 %v8152_v53  ;;  %7015 = vmatpush3.bf16.msra.mxu1 %v8153_v4  ;;  %v7926_v52 = vpop.eup %7925  ;;  %v8167_v7 = vld [vmem:[#allocation8 + $0xc0] sm:$0xff]  }
 0x481   :  { %6922 = vmatprep.subr.bf16.mxu0 %v8154_v48  ;;  %7016 = vmatprep.subr.bf16.mxu1 %v8155_v40  ;;  %v2019_v46 = vmul.f32 %v7926_v52, %v9062_v43  ;;  %v8164_v43 = vld [vmem:[#allocation8 + $0x8] sm:$0xff]   ;;  %v8168_v39 = vld [vmem:[#allocation8] sm:$0xff]  }
 0x482   :  { %2264 = vmatmul.mubr.bf16.gmra.mxu0 %v2040_v11  ;;  %2425 = vmatmul.mubr.bf16.gmra.mxu1 %v2040_v11  ;;  %v8169_v11 = vld [vmem:[#allocation8 + $0x80] sm:$0xff]  }
 0x483   :  { %2273 = vmatprep.mubr.bf16.mxu0 %v10592_v33  ;;  %2434 = vmatprep.mubr.bf16.mxu1 %v10592_v33 }
 0x484   :  { %v7928_v54 = vpop.eup %7927  ;;  %6923 = vmatpush3.bf16.msra.mxu0 %v8156_v35  ;;  %7017 = vmatpush3.bf16.msra.mxu1 %v8157_v25 }
 0x485   :  { %v2020_v3 = vmul.f32 %v7928_v54, %v9067_v51  ;;  %6924 = vmatprep.subr.bf16.mxu0 %v8158_v58  ;;  %7018 = vmatprep.subr.bf16.mxu1 %v8159_v23  ;;  %v8165_v51 = vld [vmem:[#allocation8 + $0x88] sm:$0xff]  }
 0x487   :  { %v2041_v28 = vpack.c.bf16 %v2020_v3, %v2019_v46 }
 0x488   :  { %6925 = vmatpush3.bf16.msra.mxu0 %v8160_v60  ;;  %7019 = vmatpush3.bf16.msra.mxu1 %v8161_v8 }
 0x489   :  { %6926 = vmatprep.subr.bf16.mxu0 %v8162_v41  ;;  %7020 = vmatprep.subr.bf16.mxu1 %v8163_v56 }
 0x48a   :  { %2274 = vmatmul.mubr.bf16.gmra.mxu0 %v2041_v28  ;;  %2435 = vmatmul.mubr.bf16.gmra.mxu1 %v2041_v28 }
 0x48b   :  { %2283 = vmatprep.mubr.bf16.mxu0 %v10592_v33  ;;  %2444 = vmatprep.mubr.bf16.mxu1 %v10592_v33 }
 0x48c   :  { %6927 = vmatpush3.bf16.msra.mxu0 %v8164_v43  ;;  %7021 = vmatpush3.bf16.msra.mxu1 %v8165_v51 }
 0x48d   :  { %6928 = vmatprep.subr.bf16.mxu0 %v8166_v42  ;;  %7022 = vmatprep.subr.bf16.mxu1 %v8167_v7 }
 0x490   :  { %6929 = vmatpush3.bf16.msra.mxu0 %v8168_v39  ;;  %7023 = vmatpush3.bf16.msra.mxu1 %v8169_v11 }
 0x4ba   :  { %v1905_v53 = vpop.xlane.xlu0 %1904 }
 0x4bb   :  { %v1946_v4 = vmul.f32 0.0078125, %v1905_v53 }
 0x4bd   :  { %v1971_v48 = vadd.f32 1e-05, %v1946_v4 }
 0x4be   :  { %v1907_v40 = vpop.xlane.xlu1 %1906 }
 0x4bf   :  { %v1947_v52 = vmul.f32 0.0078125, %v1907_v40  ;;  %7929 = vrsqrt.f32 %v1971_v48 }
 0x4c1   :  { %v1972_v54 = vadd.f32 1e-05, %v1947_v52 }
 0x4c2   :  { %v1909_v35 = vpop.xlane.xlu0 %1908 }
 0x4c3   :  { %7931 = vrsqrt.f32 %v1972_v54  ;;  %v1948_v25 = vmul.f32 0.0078125, %v1909_v35 }
 0x4c5   :  { %v1973_v46 = vadd.f32 1e-05, %v1948_v25 }
 0x4c6   :  { %v1911_v3 = vpop.xlane.xlu1 %1910  ;;  %v1812_v58 = vpop.xlane.xlu0 %1811 }
 0x4c7   :  { %v1949_v23 = vmul.f32 0.0078125, %v1911_v3  ;;  %v1837_v28 = vmul.f32 0.0078125, %v1812_v58  ;;  %7933 = vrsqrt.f32 %v1973_v46 }
 0x4c9   :  { %v1974_v60 = vadd.f32 1e-05, %v1949_v23  ;;  %v9173_v8 = vsub.f32 %v9093_v2, %v1837_v28 }
 0x4ca   :  { %v1913_v41 = vpop.xlane.xlu1 %1912 }
 0x4cb   :  { %7935 = vrsqrt.f32 %v1974_v60  ;;  %v1950_v56 = vmul.f32 0.0078125, %v1913_v41  ;;  %v1887_v43 = vmul.f32 %v9173_v8, %v9173_v8 }
 0x4cc   :  { %v7930_v42 = vpop.eup %7929 }
 0x4cd   :  { %v1975_v51 = vadd.f32 1e-05, %v1950_v56  ;;  %1936 = vadd.xlane.f32.xlu1 %v1887_v43  ;;  %v2021_v4 = vmul.f32 %v7930_v42, %v9072_v9 }
 0x4ce   :  { %v1915_v7 = vpop.xlane.xlu0 %1914 }
 0x4cf   :  { %v1951_v39 = vmul.f32 0.0078125, %v1915_v7  ;;  %7937 = vrsqrt.f32 %v1975_v51 }
 0x4d0   :  { %v7932_v11 = vpop.eup %7931 }
 0x4d1   :  { %v1976_v53 = vadd.f32 1e-05, %v1951_v39  ;;  %v2022_v48 = vmul.f32 %v7932_v11, %v9077_v18 }
 0x4d2   :  { %v1917_v40 = vpop.xlane.xlu1 %1916 }
 0x4d3   :  { %7939 = vrsqrt.f32 %v1976_v53  ;;  %v1952_v52 = vmul.f32 0.0078125, %v1917_v40  ;;  %v2042_v54 = vpack.c.bf16 %v2022_v48, %v2021_v4 }
 0x4d4   :  { %v7934_v25 = vpop.eup %7933 }
 0x4d5   :  { %v1977_v35 = vadd.f32 1e-05, %v1952_v52  ;;  %2284 = vmatmul.mubr.bf16.gmra.mxu0 %v2042_v54  ;;  %2445 = vmatmul.mubr.bf16.gmra.mxu1 %v2042_v54  ;;  %v2023_v9 = vmul.f32 %v7934_v25, %v9082_v21 }
 0x4d6   :  { %v1919_v46 = vpop.xlane.xlu0 %1918  ;;  %2293 = vmatprep.mubr.bf16.mxu0 %v10592_v33  ;;  %2454 = vmatprep.mubr.bf16.mxu1 %v10592_v33 }
 0x4d7   :  { %v1953_v3 = vmul.f32 0.0078125, %v1919_v46  ;;  %7941 = vrsqrt.f32 %v1977_v35 }
 0x4d8   :  { %v7936_v58 = vpop.eup %7935 }
 0x4d9   :  { %v1978_v23 = vadd.f32 1e-05, %v1953_v3  ;;  %v2024_v18 = vmul.f32 %v7936_v58, %v9088_v38 }
 0x4da   :  { %v1921_v28 = vpop.xlane.xlu1 %1920 }
 0x4db   :  { %7943 = vrsqrt.f32 %v1978_v23  ;;  %v1954_v60 = vmul.f32 0.0078125, %v1921_v28  ;;  %v2043_v41 = vpack.c.bf16 %v2024_v18, %v2023_v9 }
 0x4dc   :  { %v7938_v43 = vpop.eup %7937 }
 0x4dd   :  { %v1979_v56 = vadd.f32 1e-05, %v1954_v60  ;;  %2294 = vmatmul.mubr.bf16.gmra.mxu0 %v2043_v41  ;;  %2455 = vmatmul.mubr.bf16.gmra.mxu1 %v2043_v41  ;;  %v2025_v21 = vmul.f32 %v7938_v43, %v9097_v31 }
 0x4de   :  { %v1923_v51 = vpop.xlane.xlu0 %1922  ;;  %2303 = vmatprep.mubr.bf16.mxu0 %v10592_v33  ;;  %2464 = vmatprep.mubr.bf16.mxu1 %v10592_v33 }
 0x4df   :  { %v1955_v42 = vmul.f32 0.0078125, %v1923_v51  ;;  %7945 = vrsqrt.f32 %v1979_v56 }
 0x4e0   :  { %v7940_v7 = vpop.eup %7939 }
 0x4e1   :  { %v1980_v39 = vadd.f32 1e-05, %v1955_v42  ;;  %v2026_v38 = vmul.f32 %v7940_v7, %v9102_v15 }
 0x4e2   :  { %v1925_v11 = vpop.xlane.xlu1 %1924 }
 0x4e3   :  { %7947 = vrsqrt.f32 %v1980_v39  ;;  %v1956_v53 = vmul.f32 0.0078125, %v1925_v11  ;;  %v2044_v4 = vpack.c.bf16 %v2026_v38, %v2025_v21 }
 0x4e4   :  { %v7942_v40 = vpop.eup %7941 }
 0x4e5   :  { %v1981_v48 = vadd.f32 1e-05, %v1956_v53  ;;  %2304 = vmatmul.mubr.bf16.gmra.mxu0 %v2044_v4  ;;  %2465 = vmatmul.mubr.bf16.gmra.mxu1 %v2044_v4  ;;  %v2027_v31 = vmul.f32 %v7942_v40, %v9107_v5 }
 0x4e6   :  { %v1927_v52 = vpop.xlane.xlu0 %1926  ;;  %2313 = vmatprep.mubr.bf16.mxu0 %v10592_v33  ;;  %2474 = vmatprep.mubr.bf16.mxu1 %v10592_v33 }
 0x4e7   :  { %v1957_v54 = vmul.f32 0.0078125, %v1927_v52  ;;  %7949 = vrsqrt.f32 %v1981_v48 }
 0x4e8   :  { %v7944_v35 = vpop.eup %7943 }
 0x4e9   :  { %v1982_v25 = vadd.f32 1e-05, %v1957_v54  ;;  %v2028_v15 = vmul.f32 %v7944_v35, %v9112_v47 }
 0x4eb   :  { %7951 = vrsqrt.f32 %v1982_v25  ;;  %v1929_v46 = vpop.xlane.xlu1 %1928  ;;  %v2045_v3 = vpack.c.bf16 %v2028_v15, %v2027_v31 }
 0x4ec   :  { %v1958_v58 = vmul.f32 0.0078125, %v1929_v46  ;;  %v7946_v23 = vpop.eup %7945 }
 0x4ed   :  { %2314 = vmatmul.mubr.bf16.gmra.mxu0 %v2045_v3  ;;  %2475 = vmatmul.mubr.bf16.gmra.mxu1 %v2045_v3  ;;  %v2029_v41 = vmul.f32 %v7946_v23, %v9117_v26 }
 0x4ee   :  { %v1983_v9 = vadd.f32 1e-05, %v1958_v58  ;;  %2323 = vmatprep.mubr.bf16.mxu0 %v10592_v33  ;;  %2484 = vmatprep.mubr.bf16.mxu1 %v10592_v33 }
 0x4ef   :  { %v1931_v18 = vpop.xlane.xlu0 %1930 }
 0x4f0   :  { %v7948_v28 = vpop.eup %7947  ;;  %v1959_v60 = vmul.f32 0.0078125, %v1931_v18  ;;  %7953 = vrsqrt.f32 %v1983_v9 }
 0x4f1   :  { %v2030_v5 = vmul.f32 %v7948_v28, %v9122_v32 }
 0x4f2   :  { %v1984_v47 = vadd.f32 1e-05, %v1959_v60 }
 0x4f3   :  { %v1933_v56 = vpop.xlane.xlu1 %1932  ;;  %v2046_v43 = vpack.c.bf16 %v2030_v5, %v2029_v41 }
 0x4f4   :  { %7955 = vrsqrt.f32 %v1984_v47  ;;  %v1960_v51 = vmul.f32 0.0078125, %v1933_v56  ;;  %v7950_v42 = vpop.eup %7949  ;;  %v1762_v47 = vld [vmem:[#allocation7 + $0x4] sm:$0xf] }
 0x4f5   :  { %2324 = vmatmul.mubr.bf16.gmra.mxu0 %v2046_v43  ;;  %2485 = vmatmul.mubr.bf16.gmra.mxu1 %v2046_v43  ;;  %v2031_v26 = vmul.f32 %v7950_v42, %v9127_v36  ;;  %v2593_v43 = vrot.slane %v1762_v47, %v8747_v0 }
 0x4f6   :  { %v1985_v7 = vadd.f32 1e-05, %v1960_v51  ;;  %2333 = vmatprep.mubr.bf16.mxu0 %v10592_v33  ;;  %2494 = vmatprep.mubr.bf16.mxu1 %v10592_v33  ;;  %v2601_v51 = vrot.slane %v1762_v47, %v8771_v6 }
 0x4f7   :  { %v1935_v39 = vpop.xlane.xlu0 %1934 }
 0x4f8   :  { %v7952_v21 = vpop.eup %7951  ;;  %v1961_v38 = vmul.f32 0.0078125, %v1935_v39  ;;  %7957 = vrsqrt.f32 %v1985_v7 }
 0x4f9   :  { %v2032_v32 = vmul.f32 %v7952_v21, %v9132_v27  ;;  %v2607_v21 = vpack.c.bf16 %v2593_v43, %v2593_v43 }
 0x4fa   :  { %v1986_v11 = vadd.f32 1e-05, %v1961_v38  ;;  %v2609_v38 = vpack.c.bf16 %v2601_v51, %v2601_v51 }
 0x4fb   :  { %v2047_v53 = vpack.c.bf16 %v2032_v32, %v2031_v26 }
 0x4fc   :  { %7959 = vrsqrt.f32 %v1986_v11  ;;  %v2589_v11 = vrot.slane %v1762_v47, %v8745_v12 }
 0x4fd   :  { %2334 = vmatmul.mubr.bf16.gmra.mxu0 %v2047_v53  ;;  %2495 = vmatmul.mubr.bf16.gmra.mxu1 %v2047_v53  ;;  %v7954_v4 = vpop.eup %7953  ;;  %v2597_v53 = vrot.slane %v1762_v47, %v8767_v10 }
 0x4fe   :  { %2343 = vmatprep.mubr.bf16.mxu0 %v10592_v33  ;;  %2504 = vmatprep.mubr.bf16.mxu1 %v10592_v33  ;;  %v2033_v40 = vmul.f32 %v7954_v4, %v9137_v63  ;;  %v2618_v4 = vpack.i.b16 %v2607_v21, %v2607_v21 }
 0x501   :  { %v7956_v48 = vpop.eup %7955 }
 0x502   :  { %v2034_v52 = vmul.f32 %v7956_v48, %v9142_v19  ;;  %v2632_v48 = vpack.i.b16 %v2609_v38, %v2609_v38 }
 0x504   :  { %v2048_v54 = vpack.c.bf16 %v2034_v52, %v2033_v40 }
 0x505   :  { %v7958_v36 = vpop.eup %7957 }
 0x506   :  { %2344 = vmatmul.mubr.bf16.gmra.mxu0 %v2048_v54  ;;  %2505 = vmatmul.mubr.bf16.gmra.mxu1 %v2048_v54  ;;  %v2035_v35 = vmul.f32 %v7958_v36, %v9147_v55  ;;  %v2606_v54 = vpack.c.bf16 %v2589_v11, %v2589_v11  ;;  %v2608_v36 = vpack.c.bf16 %v2597_v53, %v2597_v53 }
 0x507   :  { %2353 = vmatprep.mubr.bf16.mxu0 %v10592_v33  ;;  %2514 = vmatprep.mubr.bf16.mxu1 %v10592_v33 }
 0x508   :  { %v2611_v43 = vpack.i.b16 %v2606_v54, %v2606_v54  ;;  %v2625_v47 = vpack.i.b16 %v2608_v36, %v2608_v36 }
 0x509   :  { %v7960_v27 = vpop.eup %7959 }
 0x50a   :  { %v2036_v25 = vmul.f32 %v7960_v27, %v9152_v17  ;;  %v9248_v53 = vrot.slane %v2625_v47, %v8745_v12 }
 0x50c   :  { %v2049_v31 = vpack.c.bf16 %v2036_v25, %v2035_v35  ;;  %v9230_v35 = vrot.slane %v2618_v4, %v8745_v12 }
 0x50e   :  { %2354 = vmatmul.mubr.bf16.gmra.mxu0 %v2049_v31  ;;  %2515 = vmatmul.mubr.bf16.gmra.mxu1 %v2049_v31  ;;  %v9233_v31 = vrot.slane %v2632_v48, %v8745_v12 }
 0x50f   :  { %2363 = vmatprep.mubr.bf16.mxu0 %v10592_v33  ;;  %2524 = vmatprep.mubr.bf16.mxu1 %v10592_v33 }
 0x531   :  { %v9209_v63 = vpop.f32.mrf.mxu0  ;;  %v9211_v19 = vpop.f32.mrf.mxu1 }
 0x533   :  { %v2247_v15 = vpop.f32.mrf.mxu0  ;;  %v2408_v46 = vpop.f32.mrf.mxu1 }
 0x535   :  { %v2249_v3 = vpop.f32.mrf.mxu0  ;;  %v2410_v58 = vpop.f32.mrf.mxu1 }
 0x536   :  { %v2535_v11 = vpack.c.bf16 %v2410_v58, %v9211_v19 }
 0x537   :  { %v2251_v23 = vpop.f32.mrf.mxu0  ;;  %v2412_v9 = vpop.f32.mrf.mxu1 }
 0x538   :  { %v2534_v27 = vpack.c.bf16 %v2251_v23, %v2247_v15  ;;  %v2536_v25 = vpack.c.bf16 %v2412_v9, %v2408_v46  ;;  %v9243_v46 = vrot.slane %v2611_v43, %v8745_v12  ;;  %v2533_v9 = vpack.c.bf16 %v2249_v3, %v9209_v63 }
 0x539   :  { %v2640_v63 = vadd.bf16 %v9248_v53, %v2535_v11 }
 0x53a   :  { %v9213_v55 = vpop.f32.mrf.mxu0  ;;  %v9215_v17 = vpop.f32.mrf.mxu1  ;;  %v2641_v21 = vadd.bf16 %v9233_v31, %v2536_v25 }
 0x53c   :  { %v2257_v18 = vpop.f32.mrf.mxu0  ;;  %v2418_v28 = vpop.f32.mrf.mxu1 }
 0x53e   :  { %v9217_v60 = vpop.f32.mrf.mxu0  ;;  %v9219_v41 = vpop.f32.mrf.mxu1 }
 0x53f   :  { %v2539_v43 = vpack.c.bf16 %v9219_v41, %v9215_v17 }
 0x540   :  { %v2261_v42 = vpop.f32.mrf.mxu0  ;;  %v2422_v7 = vpop.f32.mrf.mxu1 }
 0x541   :  { %v2538_v48 = vpack.c.bf16 %v2261_v42, %v2257_v18  ;;  %v2540_v54 = vpack.c.bf16 %v2422_v7, %v2418_v28  ;;  %v2692_v42 = vmax.bf16 %v10592_v33, %v2640_v63  ;;  %v2537_v7 = vpack.c.bf16 %v9217_v60, %v9213_v55 }
 0x542   :  { %v9223_v26 = vpop.f32.mrf.mxu0  ;;  %v9225_v32 = vpop.f32.mrf.mxu1 }
 0x543   :  { %v2643_v19 = vadd.bf16 %v9230_v35, %v2538_v48  ;;  %v2645_v3 = vadd.bf16 %v9233_v31, %v2540_v54  ;;  %v2642_v11 = vadd.bf16 %v9243_v46, %v2537_v7 }
 0x544   :  { %v2267_v40 = vpop.f32.mrf.mxu0  ;;  %v2428_v52 = vpop.f32.mrf.mxu1 }
 0x556   :  { %v1937_v5 = vpop.xlane.xlu1 %1936 }
 0x557   :  { %v1962_v56 = vmul.f32 0.0078125, %v1937_v5  ;;  %v9235_v5 = vpop.f32.mrf.mxu0 }
 0x559   :  { %v1987_v39 = vadd.f32 1e-05, %v1962_v56  ;;  %v9237_v56 = vpop.f32.mrf.mxu1  ;;  %v2271_v38 = vpop.f32.mrf.mxu0 }
 0x55a   :  { %v2542_v47 = vpack.c.bf16 %v2271_v38, %v2267_v40  ;;  %v2694_v40 = vmax.bf16 %v10592_v33, %v2642_v11  ;;  %v2541_v38 = vpack.c.bf16 %v9235_v5, %v9223_v26 }
 0x55b   :  { %7961 = vrsqrt.f32 %v1987_v39  ;;  %v2639_v39 = vadd.bf16 %v9230_v35, %v2534_v27  ;;  %v2432_v15 = vpop.f32.mrf.mxu1  ;;  %v2693_v27 = vmax.bf16 %v10592_v33, %v2641_v21  ;;  %v2275_v25 = vpop.f32.mrf.mxu0  ;;  %v2697_v21 = vmax.bf16 %v10592_v33, %v2645_v3 }
 0x55c   :  { %v2647_v55 = vadd.bf16 %v9230_v35, %v2542_v47 }
 0x55d   :  { %v2691_v36 = vmax.bf16 %v10592_v33, %v2639_v39  ;;  %v2436_v6 = vpop.f32.mrf.mxu1  ;;  %v2277_v58 = vpop.f32.mrf.mxu0  ;;  %v2695_v39 = vmax.bf16 %v10592_v33, %v2643_v19 }
 0x55f   :  { %v2438_v18 = vpop.f32.mrf.mxu1 }
 0x568   :  { %v7962_v51 = vpop.eup %7961 }
 0x569   :  { %v2037_v23 = vmul.f32 %v7962_v51, %v9173_v8  ;;  %v2638_v8 = vadd.bf16 %v9243_v46, %v2533_v9  ;;  %v2544_v51 = vpack.c.bf16 %v2432_v15, %v2428_v52  ;;  %v2440_v9 = vpop.f32.mrf.mxu1  ;;  %v2543_v15 = vpack.c.bf16 %v9237_v56, %v9225_v32 }
 0x56a   :  { %v2547_v3 = vpack.c.bf16 %v2440_v9, %v2436_v6 }
 0x56b   :  { %v2050_v4 = vpack.c.bf16 %v2037_v23, %v2037_v23  ;;  %v2690_v28 = vmax.bf16 %v10592_v33, %v2638_v8  ;;  %v2279_v23 = vpop.f32.mrf.mxu0  ;;  %v2649_v17 = vadd.bf16 %v9233_v31, %v2544_v51  ;;  %v2442_v41 = vpop.f32.mrf.mxu1  ;;  %v2646_v8 = vadd.bf16 %v9243_v46, %v2541_v38 }
 0x56c   :  { %v2548_v54 = vpack.c.bf16 %v2442_v41, %v2438_v18  ;;  %v2648_v63 = vadd.bf16 %v9248_v53, %v2543_v15  ;;  %v2545_v56 = vpack.c.bf16 %v2279_v23, %v2275_v25 }
 0x56d   :  { %2364 = vmatmul.mubr.bf16.gmra.mxu0 %v2050_v4  ;;  %2525 = vmatmul.mubr.bf16.gmra.mxu1 %v2050_v4  ;;  %v2644_v4 = vadd.bf16 %v9248_v53, %v2539_v43  ;;  %v2281_v60 = vpop.f32.mrf.mxu0  ;;  %v2698_v32 = vmax.bf16 %v10592_v33, %v2646_v8 }
 0x56e   :  { %2774 = vmatprep.mubr.bf16.mxu0 %v2691_v36  ;;  %2910 = vmatprep.mubr.bf16.mxu1 %v2693_v27  ;;  %v2546_v48 = vpack.c.bf16 %v2281_v60, %v2277_v58  ;;  %v2699_v36 = vmax.bf16 %v10592_v33, %v2647_v55  ;;  %v2701_v27 = vmax.bf16 %v10592_v33, %v2649_v17 }
 0x56f   :  { %v2696_v52 = vmax.bf16 %v10592_v33, %v2644_v4  ;;  %v2653_v26 = vadd.bf16 %v9233_v31, %v2548_v54  ;;  %v2700_v5 = vmax.bf16 %v10592_v33, %v2648_v63 }
 0x570   :  { %v2651_v19 = vadd.bf16 %v9230_v35, %v2546_v48 }
 0x571   :  { %v2705_v18 = vmax.bf16 %v10592_v33, %v2653_v26 }
 0x572   :  { %v2703_v58 = vmax.bf16 %v10592_v33, %v2651_v19 }
 0x575   :  { %2775 = vmatmul.mubr.bf16.vlgmr.msra.gmra.mxu0 %v2690_v28  ;;  %2911 = vmatmul.mubr.bf16.vlgmr.msra.gmra.mxu1 %v2692_v42  ;;  %v2650_v28 = vadd.bf16 %v9243_v46, %v2545_v56  ;;  %v2652_v42 = vadd.bf16 %v9248_v53, %v2547_v3 }
 0x576   :  { %2782 = vmatprep.mubr.bf16.mxu0 %v2695_v39  ;;  %2918 = vmatprep.mubr.bf16.mxu1 %v2697_v21 }
 0x577   :  { %v2702_v7 = vmax.bf16 %v10592_v33, %v2650_v28  ;;  %v2704_v43 = vmax.bf16 %v10592_v33, %v2652_v42 }
 0x57d   :  { %2783 = vmatmul.mubr.bf16.gmra.mxu0 %v2694_v40  ;;  %2919 = vmatmul.mubr.bf16.gmra.mxu1 %v2696_v52 }
 0x57e   :  { %2790 = vmatprep.mubr.bf16.mxu0 %v2699_v36  ;;  %2926 = vmatprep.mubr.bf16.mxu1 %v2701_v27 }
 0x585   :  { %2791 = vmatmul.mubr.bf16.gmra.mxu0 %v2698_v32  ;;  %2927 = vmatmul.mubr.bf16.gmra.mxu1 %v2700_v5 }
 0x586   :  { %2798 = vmatprep.mubr.bf16.mxu0 %v2703_v58  ;;  %2934 = vmatprep.mubr.bf16.mxu1 %v2705_v18 }
 0x58d   :  { %2799 = vmatmul.mubr.bf16.gmra.mxu0 %v2702_v7  ;;  %2935 = vmatmul.mubr.bf16.gmra.mxu1 %v2704_v43 }
 0x595   :  { %v2285_v25 = vpop.f32.mrf.mxu0  ;;  %v2446_v6 = vpop.f32.mrf.mxu1 }
 0x597   :  { %v2287_v47 = vpop.f32.mrf.mxu0  ;;  %v2448_v51 = vpop.f32.mrf.mxu1 }
 0x599   :  { %v2289_v39 = vpop.f32.mrf.mxu0  ;;  %v2450_v21 = vpop.f32.mrf.mxu1 }
 0x59a   :  { %v2549_v23 = vpack.c.bf16 %v2289_v39, %v2285_v25  ;;  %v2551_v9 = vpack.c.bf16 %v2450_v21, %v2446_v6 }
 0x59b   :  { %v2291_v11 = vpop.f32.mrf.mxu0  ;;  %v2452_v4 = vpop.f32.mrf.mxu1 }
 0x59c   :  { %v2550_v55 = vpack.c.bf16 %v2291_v11, %v2287_v47  ;;  %v2552_v17 = vpack.c.bf16 %v2452_v4, %v2448_v51  ;;  %v2654_v60 = vadd.bf16 %v9243_v46, %v2549_v23  ;;  %v2656_v41 = vadd.bf16 %v9248_v53, %v2551_v9 }
 0x59d   :  { %v2295_v40 = vpop.f32.mrf.mxu0  ;;  %v2456_v52 = vpop.f32.mrf.mxu1 }
 0x59e   :  { %v2655_v38 = vadd.bf16 %v9230_v35, %v2550_v55  ;;  %v2657_v15 = vadd.bf16 %v9233_v31, %v2552_v17  ;;  %v2706_v8 = vmax.bf16 %v10592_v33, %v2654_v60  ;;  %v2708_v63 = vmax.bf16 %v10592_v33, %v2656_v41 }
 0x59f   :  { %v2297_v48 = vpop.f32.mrf.mxu0  ;;  %v2458_v54 = vpop.f32.mrf.mxu1 }
 0x5a0   :  { %v2707_v36 = vmax.bf16 %v10592_v33, %v2655_v38  ;;  %v2709_v27 = vmax.bf16 %v10592_v33, %v2657_v15 }
 0x5a1   :  { %v2299_v19 = vpop.f32.mrf.mxu0  ;;  %v2460_v26 = vpop.f32.mrf.mxu1 }
 0x5a2   :  { %v2553_v32 = vpack.c.bf16 %v2299_v19, %v2295_v40  ;;  %v2555_v5 = vpack.c.bf16 %v2460_v26, %v2456_v52  ;;  %2806 = vmatprep.mubr.bf16.mxu0 %v2707_v36  ;;  %2942 = vmatprep.mubr.bf16.mxu1 %v2709_v27 }
 0x5a3   :  { %v2301_v56 = vpop.f32.mrf.mxu0  ;;  %v2462_v3 = vpop.f32.mrf.mxu1  ;;  %2807 = vmatmul.mubr.bf16.gmra.mxu0 %v2706_v8  ;;  %2943 = vmatmul.mubr.bf16.gmra.mxu1 %v2708_v63 }
 0x5a4   :  { %v2554_v58 = vpack.c.bf16 %v2301_v56, %v2297_v48  ;;  %v2556_v18 = vpack.c.bf16 %v2462_v3, %v2458_v54  ;;  %v2658_v28 = vadd.bf16 %v9243_v46, %v2553_v32  ;;  %v2660_v42 = vadd.bf16 %v9248_v53, %v2555_v5 }
 0x5a5   :  { %v2305_v7 = vpop.f32.mrf.mxu0  ;;  %v2466_v43 = vpop.f32.mrf.mxu1 }
 0x5a6   :  { %v2659_v25 = vadd.bf16 %v9230_v35, %v2554_v58  ;;  %v2661_v6 = vadd.bf16 %v9233_v31, %v2556_v18  ;;  %v2710_v23 = vmax.bf16 %v10592_v33, %v2658_v28  ;;  %v2712_v9 = vmax.bf16 %v10592_v33, %v2660_v42 }
 0x5a7   :  { %v2307_v47 = vpop.f32.mrf.mxu0  ;;  %v2468_v51 = vpop.f32.mrf.mxu1 }
 0x5a8   :  { %v2711_v39 = vmax.bf16 %v10592_v33, %v2659_v25  ;;  %v2713_v21 = vmax.bf16 %v10592_v33, %v2661_v6 }
 0x5a9   :  { %v2309_v11 = vpop.f32.mrf.mxu0  ;;  %v2470_v4 = vpop.f32.mrf.mxu1 }
 0x5aa   :  { %v2557_v55 = vpack.c.bf16 %v2309_v11, %v2305_v7  ;;  %v2559_v17 = vpack.c.bf16 %v2470_v4, %v2466_v43  ;;  %2814 = vmatprep.mubr.bf16.mxu0 %v2711_v39  ;;  %2950 = vmatprep.mubr.bf16.mxu1 %v2713_v21 }
 0x5ab   :  { %v2311_v60 = vpop.f32.mrf.mxu0  ;;  %v2472_v41 = vpop.f32.mrf.mxu1  ;;  %2815 = vmatmul.mubr.bf16.gmra.mxu0 %v2710_v23  ;;  %2951 = vmatmul.mubr.bf16.gmra.mxu1 %v2712_v9 }
 0x5ac   :  { %v2558_v40 = vpack.c.bf16 %v2311_v60, %v2307_v47  ;;  %v2560_v52 = vpack.c.bf16 %v2472_v41, %v2468_v51  ;;  %v2662_v38 = vadd.bf16 %v9243_v46, %v2557_v55  ;;  %v2664_v15 = vadd.bf16 %v9248_v53, %v2559_v17 }
 0x5ad   :  { %v2315_v48 = vpop.f32.mrf.mxu0  ;;  %v2476_v54 = vpop.f32.mrf.mxu1 }
 0x5ae   :  { %v2663_v36 = vadd.bf16 %v9230_v35, %v2558_v40  ;;  %v2665_v27 = vadd.bf16 %v9233_v31, %v2560_v52  ;;  %v2714_v32 = vmax.bf16 %v10592_v33, %v2662_v38  ;;  %v2716_v5 = vmax.bf16 %v10592_v33, %v2664_v15 }
 0x5af   :  { %v2317_v8 = vpop.f32.mrf.mxu0  ;;  %v2478_v63 = vpop.f32.mrf.mxu1 }
 0x5b0   :  { %v2715_v19 = vmax.bf16 %v10592_v33, %v2663_v36  ;;  %v2717_v26 = vmax.bf16 %v10592_v33, %v2665_v27 }
 0x5b1   :  { %v2319_v56 = vpop.f32.mrf.mxu0  ;;  %v2480_v3 = vpop.f32.mrf.mxu1 }
 0x5b2   :  { %v2561_v58 = vpack.c.bf16 %v2319_v56, %v2315_v48  ;;  %v2563_v18 = vpack.c.bf16 %v2480_v3, %v2476_v54  ;;  %2822 = vmatprep.mubr.bf16.mxu0 %v2715_v19  ;;  %2958 = vmatprep.mubr.bf16.mxu1 %v2717_v26 }
 0x5b3   :  { %v2321_v28 = vpop.f32.mrf.mxu0  ;;  %v2482_v42 = vpop.f32.mrf.mxu1  ;;  %2823 = vmatmul.mubr.bf16.gmra.mxu0 %v2714_v32  ;;  %2959 = vmatmul.mubr.bf16.gmra.mxu1 %v2716_v5 }
 0x5b4   :  { %v2562_v7 = vpack.c.bf16 %v2321_v28, %v2317_v8  ;;  %v2564_v43 = vpack.c.bf16 %v2482_v42, %v2478_v63  ;;  %v2666_v25 = vadd.bf16 %v9243_v46, %v2561_v58  ;;  %v2668_v6 = vadd.bf16 %v9248_v53, %v2563_v18 }
 0x5b5   :  { %v2325_v47 = vpop.f32.mrf.mxu0  ;;  %v2486_v51 = vpop.f32.mrf.mxu1 }
 0x5b6   :  { %v2667_v39 = vadd.bf16 %v9230_v35, %v2562_v7  ;;  %v2669_v21 = vadd.bf16 %v9233_v31, %v2564_v43  ;;  %v2718_v55 = vmax.bf16 %v10592_v33, %v2666_v25  ;;  %v2720_v17 = vmax.bf16 %v10592_v33, %v2668_v6 }
 0x5b7   :  { %v2327_v23 = vpop.f32.mrf.mxu0  ;;  %v2488_v9 = vpop.f32.mrf.mxu1 }
 0x5b8   :  { %v2719_v11 = vmax.bf16 %v10592_v33, %v2667_v39  ;;  %v2721_v4 = vmax.bf16 %v10592_v33, %v2669_v21 }
 0x5b9   :  { %v2329_v60 = vpop.f32.mrf.mxu0  ;;  %v2490_v41 = vpop.f32.mrf.mxu1 }
 0x5ba   :  { %v2565_v40 = vpack.c.bf16 %v2329_v60, %v2325_v47  ;;  %v2567_v52 = vpack.c.bf16 %v2490_v41, %v2486_v51  ;;  %2830 = vmatprep.mubr.bf16.mxu0 %v2719_v11  ;;  %2966 = vmatprep.mubr.bf16.mxu1 %v2721_v4 }
 0x5bb   :  { %v2331_v38 = vpop.f32.mrf.mxu0  ;;  %v2492_v15 = vpop.f32.mrf.mxu1  ;;  %2831 = vmatmul.mubr.bf16.gmra.mxu0 %v2718_v55  ;;  %2967 = vmatmul.mubr.bf16.gmra.mxu1 %v2720_v17 }
 0x5bc   :  { %v2566_v48 = vpack.c.bf16 %v2331_v38, %v2327_v23  ;;  %v2568_v54 = vpack.c.bf16 %v2492_v15, %v2488_v9  ;;  %v2670_v36 = vadd.bf16 %v9243_v46, %v2565_v40  ;;  %v2672_v27 = vadd.bf16 %v9248_v53, %v2567_v52 }
 0x5bd   :  { %v2335_v8 = vpop.f32.mrf.mxu0  ;;  %v2496_v63 = vpop.f32.mrf.mxu1 }
 0x5be   :  { %v2671_v19 = vadd.bf16 %v9230_v35, %v2566_v48  ;;  %v2673_v26 = vadd.bf16 %v9233_v31, %v2568_v54  ;;  %v2722_v58 = vmax.bf16 %v10592_v33, %v2670_v36  ;;  %v2724_v18 = vmax.bf16 %v10592_v33, %v2672_v27 }
 0x5bf   :  { %v2337_v32 = vpop.f32.mrf.mxu0  ;;  %v2498_v5 = vpop.f32.mrf.mxu1 }
 0x5c0   :  { %v2723_v56 = vmax.bf16 %v10592_v33, %v2671_v19  ;;  %v2725_v3 = vmax.bf16 %v10592_v33, %v2673_v26 }
 0x5c1   :  { %v2339_v28 = vpop.f32.mrf.mxu0  ;;  %v2500_v42 = vpop.f32.mrf.mxu1 }
 0x5c2   :  { %v2569_v7 = vpack.c.bf16 %v2339_v28, %v2335_v8  ;;  %v2571_v43 = vpack.c.bf16 %v2500_v42, %v2496_v63  ;;  %2838 = vmatprep.mubr.bf16.mxu0 %v2723_v56  ;;  %2974 = vmatprep.mubr.bf16.mxu1 %v2725_v3 }
 0x5c3   :  { %v2341_v25 = vpop.f32.mrf.mxu0  ;;  %v2502_v6 = vpop.f32.mrf.mxu1  ;;  %2839 = vmatmul.mubr.bf16.gmra.mxu0 %v2722_v58  ;;  %2975 = vmatmul.mubr.bf16.gmra.mxu1 %v2724_v18 }
 0x5c4   :  { %v2570_v47 = vpack.c.bf16 %v2341_v25, %v2337_v32  ;;  %v2572_v51 = vpack.c.bf16 %v2502_v6, %v2498_v5  ;;  %v2674_v39 = vadd.bf16 %v9243_v46, %v2569_v7  ;;  %v2676_v21 = vadd.bf16 %v9248_v53, %v2571_v43 }
 0x5c6   :  { %v2675_v23 = vadd.bf16 %v9230_v35, %v2570_v47  ;;  %v2677_v9 = vadd.bf16 %v9233_v31, %v2572_v51  ;;  %v2345_v11 = vpop.f32.mrf.mxu0  ;;  %v2506_v4 = vpop.f32.mrf.mxu1  ;;  %v2726_v40 = vmax.bf16 %v10592_v33, %v2674_v39  ;;  %v2728_v52 = vmax.bf16 %v10592_v33, %v2676_v21 }
 0x5c8   :  { %v2347_v55 = vpop.f32.mrf.mxu0  ;;  %v2508_v17 = vpop.f32.mrf.mxu1  ;;  %v2727_v60 = vmax.bf16 %v10592_v33, %v2675_v23  ;;  %v2729_v41 = vmax.bf16 %v10592_v33, %v2677_v9 }
 0x5ca   :  { %v2349_v38 = vpop.f32.mrf.mxu0  ;;  %v2510_v15 = vpop.f32.mrf.mxu1  ;;  %2846 = vmatprep.mubr.bf16.mxu0 %v2727_v60  ;;  %2982 = vmatprep.mubr.bf16.mxu1 %v2729_v41 }
 0x5cb   :  { %v2573_v48 = vpack.c.bf16 %v2349_v38, %v2345_v11  ;;  %v2575_v54 = vpack.c.bf16 %v2510_v15, %v2506_v4  ;;  %2847 = vmatmul.mubr.bf16.gmra.mxu0 %v2726_v40  ;;  %2983 = vmatmul.mubr.bf16.gmra.mxu1 %v2728_v52 }
 0x5cc   :  { %v2351_v36 = vpop.f32.mrf.mxu0  ;;  %v2512_v27 = vpop.f32.mrf.mxu1 }
 0x5cd   :  { %v2574_v8 = vpack.c.bf16 %v2351_v36, %v2347_v55  ;;  %v2576_v63 = vpack.c.bf16 %v2512_v27, %v2508_v17  ;;  %v2678_v19 = vadd.bf16 %v9243_v46, %v2573_v48  ;;  %v2680_v26 = vadd.bf16 %v9248_v53, %v2575_v54 }
 0x5ce   :  { %v2355_v32 = vpop.f32.mrf.mxu0  ;;  %v2516_v5 = vpop.f32.mrf.mxu1 }
 0x5cf   :  { %v2679_v56 = vadd.bf16 %v9230_v35, %v2574_v8  ;;  %v2681_v3 = vadd.bf16 %v9233_v31, %v2576_v63  ;;  %v2730_v7 = vmax.bf16 %v10592_v33, %v2678_v19  ;;  %v2732_v43 = vmax.bf16 %v10592_v33, %v2680_v26 }
 0x5d0   :  { %v2357_v58 = vpop.f32.mrf.mxu0  ;;  %v2518_v18 = vpop.f32.mrf.mxu1 }
 0x5d1   :  { %v2731_v28 = vmax.bf16 %v10592_v33, %v2679_v56  ;;  %v2733_v42 = vmax.bf16 %v10592_v33, %v2681_v3 }
 0x5d2   :  { %v2359_v25 = vpop.f32.mrf.mxu0  ;;  %v2520_v6 = vpop.f32.mrf.mxu1 }
 0x5d3   :  { %v2577_v47 = vpack.c.bf16 %v2359_v25, %v2355_v32  ;;  %v2579_v51 = vpack.c.bf16 %v2520_v6, %v2516_v5  ;;  %2854 = vmatprep.mubr.bf16.mxu0 %v2731_v28  ;;  %2990 = vmatprep.mubr.bf16.mxu1 %v2733_v42 }
 0x5d4   :  { %v2361_v39 = vpop.f32.mrf.mxu0  ;;  %v2522_v21 = vpop.f32.mrf.mxu1  ;;  %2855 = vmatmul.mubr.bf16.gmra.mxu0 %v2730_v7  ;;  %2991 = vmatmul.mubr.bf16.gmra.mxu1 %v2732_v43 }
 0x5d5   :  { %v2578_v23 = vpack.c.bf16 %v2361_v39, %v2357_v58  ;;  %v2580_v9 = vpack.c.bf16 %v2522_v21, %v2518_v18  ;;  %v2682_v11 = vadd.bf16 %v9243_v46, %v2577_v47  ;;  %v2684_v4 = vadd.bf16 %v9248_v53, %v2579_v51 }
 0x5d7   :  { %v2683_v55 = vadd.bf16 %v9230_v35, %v2578_v23  ;;  %v2685_v17 = vadd.bf16 %v9233_v31, %v2580_v9  ;;  %v2734_v40 = vmax.bf16 %v10592_v33, %v2682_v11  ;;  %v2736_v52 = vmax.bf16 %v10592_v33, %v2684_v4 }
 0x5d9   :  { %v2735_v60 = vmax.bf16 %v10592_v33, %v2683_v55  ;;  %v2737_v41 = vmax.bf16 %v10592_v33, %v2685_v17 }
 0x5db   :  { %2862 = vmatprep.mubr.bf16.mxu0 %v2735_v60  ;;  %2998 = vmatprep.mubr.bf16.mxu1 %v2737_v41  ;;  %v9366_v41 = vld [vmem:[%s10558_s4] ss:$0 sm:$0xff] }
 0x5dc   :  { %2863 = vmatmul.mubr.bf16.gmra.mxu0 %v2734_v40  ;;  %2999 = vmatmul.mubr.bf16.gmra.mxu1 %v2736_v52 }
 0x62d   :  { %v2365_v38 = vpop.f32.mrf.mxu0  ;;  %v2526_v15 = vpop.f32.mrf.mxu1 }
 0x62e   :  { %v2581_v48 = vpack.c.bf16 %v2365_v38, %v2365_v38  ;;  %v2583_v54 = vpack.c.bf16 %v2526_v15, %v2526_v15 }
 0x62f   :  { %v2367_v36 = vpop.f32.mrf.mxu0  ;;  %v2528_v27 = vpop.f32.mrf.mxu1 }
 0x630   :  { %v2582_v8 = vpack.c.bf16 %v2367_v36, %v2367_v36  ;;  %v2584_v63 = vpack.c.bf16 %v2528_v27, %v2528_v27  ;;  %v2686_v19 = vadd.bf16 %v9243_v46, %v2581_v48  ;;  %v2688_v26 = vadd.bf16 %v9248_v53, %v2583_v54 }
 0x631   :  { %v2369_v32 = vpop.f32.mrf.mxu0  ;;  %v2530_v5 = vpop.f32.mrf.mxu1 }
 0x632   :  { %v2687_v56 = vadd.bf16 %v9230_v35, %v2582_v8  ;;  %v2689_v3 = vadd.bf16 %v9233_v31, %v2584_v63  ;;  %v2738_v7 = vmax.bf16 %v10592_v33, %v2686_v19  ;;  %v2740_v43 = vmax.bf16 %v10592_v33, %v2688_v26 }
 0x633   :  { %v2370_v58 = vpop.f32.mrf.mxu0  ;;  %v2531_v18 = vpop.f32.mrf.mxu1 }
 0x634   :  { %v2739_v28 = vmax.bf16 %v10592_v33, %v2687_v56  ;;  %v2741_v42 = vmax.bf16 %v10592_v33, %v2689_v3 }
 0x635   :  { %v6930_v25 = vpop.f32.mrf.mxu0  ;;  %v7024_v46 = vpop.f32.mrf.mxu1 }
 0x636   :  { %2870 = vmatprep.mubr.bf16.mxu0 %v2739_v28  ;;  %3006 = vmatprep.mubr.bf16.mxu1 %v2741_v42 }
 0x637   :  { %v6931_v53 = vpop.f32.mrf.mxu0  ;;  %2871 = vmatmul.mubr.bf16.gmra.mxu0 %v2738_v7  ;;  %v7025_v6 = vpop.f32.mrf.mxu1  ;;  %3007 = vmatmul.mubr.bf16.gmra.mxu1 %v2740_v43 }
 0x638   :  { %v6932_v35 = vadd.f32 %v6931_v53, %v6930_v25  ;;  %v7026_v31 = vadd.f32 %v7025_v6, %v7024_v46  ;;  %3646 = vmatprep.mubr.bf16.mxu0 %v10592_v33  ;;  %3807 = vmatprep.mubr.bf16.mxu1 %v10592_v33 }
 0x639   :  { %v6933_v47 = vpop.f32.mrf.mxu0  ;;  %v7027_v51 = vpop.f32.mrf.mxu1 }
 0x63a   :  { %v2913_v39 = vadd.f32 %v7026_v31, %v6932_v35 }
 0x63b   :  { %v6934_v21 = vpop.f32.mrf.mxu0  ;;  %v7028_v23 = vpop.f32.mrf.mxu1 }
 0x63c   :  { %v3014_v9 = vadd.f32 %v2913_v39, %v8934_v30  ;;  %v6935_v11 = vadd.f32 %v6934_v21, %v6933_v47  ;;  %v7029_v4 = vadd.f32 %v7028_v23, %v7027_v51 }
 0x63d   :  { %v6936_v55 = vpop.f32.mrf.mxu0  ;;  %v7030_v17 = vpop.f32.mrf.mxu1 }
 0x63e   :  { %v2916_v60 = vadd.f32 %v7029_v4, %v6935_v11  ;;  %v9369_v40 = vadd.f32 %v9366_v41, %v3014_v9 }
 0x63f   :  { %v6937_v52 = vpop.f32.mrf.mxu0  ;;  %v7031_v38 = vpop.f32.mrf.mxu1 }
 0x640   :  { %v3015_v15 = vadd.f32 %v2916_v60, %v8938_v34  ;;  %v6938_v48 = vadd.f32 %v6937_v52, %v6936_v55  ;;  %v7032_v54 = vadd.f32 %v7031_v38, %v7030_v17  ;;  %3166 = vadd.xlane.f32.xlu0 %v9369_v40 }
 0x641   :  { %v6939_v30 = vpop.f32.mrf.mxu0  ;;  %v7033_v36 = vpop.f32.mrf.mxu1 }
 0x642   :  { %v2921_v27 = vadd.f32 %v7032_v54, %v6938_v48  ;;  %v9374_v8 = vadd.f32 %v9366_v41, %v3015_v15 }
 0x643   :  { %v6940_v63 = vpop.f32.mrf.mxu0  ;;  %v7034_v19 = vpop.f32.mrf.mxu1 }
 0x644   :  { %v3016_v26 = vadd.f32 %v2921_v27, %v8942_v13  ;;  %v6941_v32 = vadd.f32 %v6940_v63, %v6939_v30  ;;  %v7035_v5 = vadd.f32 %v7034_v19, %v7033_v36  ;;  %3168 = vadd.xlane.f32.xlu1 %v9374_v8 }
 0x645   :  { %v6942_v56 = vpop.f32.mrf.mxu0  ;;  %v7036_v34 = vpop.f32.mrf.mxu1 }
 0x646   :  { %v2924_v3 = vadd.f32 %v7035_v5, %v6941_v32  ;;  %v9379_v58 = vadd.f32 %v9366_v41, %v3016_v26 }
 0x647   :  { %v6943_v18 = vpop.f32.mrf.mxu0  ;;  %v7037_v28 = vpop.f32.mrf.mxu1 }
 0x648   :  { %v3017_v42 = vadd.f32 %v2924_v3, %v8946_v49  ;;  %v6944_v7 = vadd.f32 %v6943_v18, %v6942_v56  ;;  %v7038_v43 = vadd.f32 %v7037_v28, %v7036_v34  ;;  %3170 = vadd.xlane.f32.xlu0 %v9379_v58 }
 0x649   :  { %v6945_v25 = vpop.f32.mrf.mxu0  ;;  %v7039_v13 = vpop.f32.mrf.mxu1 }
 0x64a   :  { %v2929_v46 = vadd.f32 %v7038_v43, %v6944_v7  ;;  %v9384_v53 = vadd.f32 %v9366_v41, %v3017_v42 }
 0x64b   :  { %v6946_v6 = vpop.f32.mrf.mxu0  ;;  %v7040_v35 = vpop.f32.mrf.mxu1 }
 0x64c   :  { %v3018_v31 = vadd.f32 %v2929_v46, %v8950_v37  ;;  %v6947_v47 = vadd.f32 %v6946_v6, %v6945_v25  ;;  %v7041_v51 = vadd.f32 %v7040_v35, %v7039_v13  ;;  %3172 = vadd.xlane.f32.xlu1 %v9384_v53 }
 0x64d   :  { %v6948_v39 = vpop.f32.mrf.mxu0  ;;  %v7042_v49 = vpop.f32.mrf.mxu1 }
 0x64e   :  { %v2932_v21 = vadd.f32 %v7041_v51, %v6947_v47  ;;  %v9389_v23 = vadd.f32 %v9366_v41, %v3018_v31 }
 0x64f   :  { %v6949_v9 = vpop.f32.mrf.mxu0  ;;  %v7043_v11 = vpop.f32.mrf.mxu1 }
 0x650   :  { %v3019_v4 = vadd.f32 %v2932_v21, %v8954_v61  ;;  %v6950_v55 = vadd.f32 %v6949_v9, %v6948_v39  ;;  %v7044_v17 = vadd.f32 %v7043_v11, %v7042_v49  ;;  %3174 = vadd.xlane.f32.xlu0 %v9389_v23 }
 0x651   :  { %v6951_v60 = vpop.f32.mrf.mxu0  ;;  %v7045_v37 = vpop.f32.mrf.mxu1 }
 0x652   :  { %v2937_v52 = vadd.f32 %v7044_v17, %v6950_v55  ;;  %v9394_v38 = vadd.f32 %v9366_v41, %v3019_v4 }
 0x653   :  { %v6952_v15 = vpop.f32.mrf.mxu0  ;;  %v7046_v48 = vpop.f32.mrf.mxu1 }
 0x654   :  { %v3020_v54 = vadd.f32 %v2937_v52, %v8958_v50  ;;  %v6953_v30 = vadd.f32 %v6952_v15, %v6951_v60  ;;  %v7047_v36 = vadd.f32 %v7046_v48, %v7045_v37  ;;  %3176 = vadd.xlane.f32.xlu1 %v9394_v38 }
 0x656   :  { %v2940_v27 = vadd.f32 %v7047_v36, %v6953_v30  ;;  %v9399_v61 = vadd.f32 %v9366_v41, %v3020_v54 }
 0x658   :  { %v3021_v63 = vadd.f32 %v2940_v27, %v8962_v29  ;;  %3178 = vadd.xlane.f32.xlu0 %v9399_v61 }
 0x65a   :  { %v9404_v19 = vadd.f32 %v9366_v41, %v3021_v63 }
 0x65c   :  { %3180 = vadd.xlane.f32.xlu1 %v9404_v19 }
 0x663   :  { %v6954_v26 = vpop.f32.mrf.mxu0  ;;  %v7048_v32 = vpop.f32.mrf.mxu1 }
 0x665   :  { %v6955_v50 = vpop.f32.mrf.mxu0  ;;  %v7049_v5 = vpop.f32.mrf.mxu1 }
 0x666   :  { %v6956_v56 = vadd.f32 %v6955_v50, %v6954_v26  ;;  %v7050_v34 = vadd.f32 %v7049_v5, %v7048_v32 }
 0x667   :  { %v6957_v3 = vpop.f32.mrf.mxu0  ;;  %v7051_v18 = vpop.f32.mrf.mxu1 }
 0x668   :  { %v2945_v28 = vadd.f32 %v7050_v34, %v6956_v56 }
 0x669   :  { %v6958_v42 = vpop.f32.mrf.mxu0  ;;  %v7052_v7 = vpop.f32.mrf.mxu1 }
 0x66a   :  { %v3022_v29 = vadd.f32 %v2945_v28, %v8966_v14  ;;  %v6959_v43 = vadd.f32 %v6958_v42, %v6957_v3  ;;  %v7053_v25 = vadd.f32 %v7052_v7, %v7051_v18 }
 0x66b   :  { %v6960_v13 = vpop.f32.mrf.mxu0  ;;  %v7054_v46 = vpop.f32.mrf.mxu1 }
 0x66c   :  { %v2948_v6 = vadd.f32 %v7053_v25, %v6959_v43  ;;  %v9409_v35 = vadd.f32 %v9366_v41, %v3022_v29 }
 0x66d   :  { %v6961_v31 = vpop.f32.mrf.mxu0  ;;  %v7055_v47 = vpop.f32.mrf.mxu1 }
 0x66e   :  { %v3023_v51 = vadd.f32 %v2948_v6, %v8970_v44  ;;  %v6962_v39 = vadd.f32 %v6961_v31, %v6960_v13  ;;  %v7056_v49 = vadd.f32 %v7055_v47, %v7054_v46  ;;  %3182 = vadd.xlane.f32.xlu0 %v9409_v35 }
 0x66f   :  { %v6963_v21 = vpop.f32.mrf.mxu0  ;;  %v7057_v9 = vpop.f32.mrf.mxu1 }
 0x670   :  { %v2953_v11 = vadd.f32 %v7056_v49, %v6962_v39  ;;  %v9414_v14 = vadd.f32 %v9366_v41, %v3023_v51 }
 0x671   :  { %v6964_v4 = vpop.f32.mrf.mxu0  ;;  %v7058_v55 = vpop.f32.mrf.mxu1 }
 0x672   :  { %v3024_v17 = vadd.f32 %v2953_v11, %v8974_v1  ;;  %v6965_v60 = vadd.f32 %v6964_v4, %v6963_v21  ;;  %v7059_v37 = vadd.f32 %v7058_v55, %v7057_v9  ;;  %3184 = vadd.xlane.f32.xlu1 %v9414_v14 }
 0x673   :  { %v6966_v52 = vpop.f32.mrf.mxu0  ;;  %v7060_v44 = vpop.f32.mrf.mxu1 }
 0x674   :  { %v2956_v15 = vadd.f32 %v7059_v37, %v6965_v60  ;;  %v9419_v48 = vadd.f32 %v9366_v41, %v3024_v17 }
 0x675   :  { %v6967_v54 = vpop.f32.mrf.mxu0  ;;  %v7061_v30 = vpop.f32.mrf.mxu1 }
 0x676   :  { %v3025_v36 = vadd.f32 %v2956_v15, %v8978_v62  ;;  %v6968_v27 = vadd.f32 %v6967_v54, %v6966_v52  ;;  %v7062_v63 = vadd.f32 %v7061_v30, %v7060_v44  ;;  %3186 = vadd.xlane.f32.xlu0 %v9419_v48 }
 0x677   :  { %v6969_v26 = vpop.f32.mrf.mxu0  ;;  %v7063_v1 = vpop.f32.mrf.mxu1 }
 0x678   :  { %v2961_v32 = vadd.f32 %v7062_v63, %v6968_v27  ;;  %v9424_v50 = vadd.f32 %v9366_v41, %v3025_v36 }
 0x679   :  { %v6970_v5 = vpop.f32.mrf.mxu0  ;;  %v7064_v56 = vpop.f32.mrf.mxu1 }
 0x67a   :  { %v3026_v34 = vadd.f32 %v2961_v32, %v8982_v22  ;;  %v6971_v3 = vadd.f32 %v6970_v5, %v6969_v26  ;;  %v7065_v18 = vadd.f32 %v7064_v56, %v7063_v1  ;;  %3188 = vadd.xlane.f32.xlu1 %v9424_v50 }
 0x67b   :  { %v6972_v28 = vpop.f32.mrf.mxu0  ;;  %v7066_v62 = vpop.f32.mrf.mxu1 }
 0x67c   :  { %v2964_v42 = vadd.f32 %v7065_v18, %v6971_v3  ;;  %v9429_v7 = vadd.f32 %v9366_v41, %v3026_v34 }
 0x67d   :  { %v6973_v29 = vpop.f32.mrf.mxu0  ;;  %v7067_v43 = vpop.f32.mrf.mxu1 }
 0x67e   :  { %v3027_v25 = vadd.f32 %v2964_v42, %v8986_v59  ;;  %v6974_v13 = vadd.f32 %v6973_v29, %v6972_v28  ;;  %v7068_v46 = vadd.f32 %v7067_v43, %v7066_v62  ;;  %3190 = vadd.xlane.f32.xlu0 %v9429_v7 }
 0x67f   :  { %v6975_v6 = vpop.f32.mrf.mxu0  ;;  %v7069_v22 = vpop.f32.mrf.mxu1 }
 0x680   :  { %v2969_v31 = vadd.f32 %v7068_v46, %v6974_v13  ;;  %v9434_v47 = vadd.f32 %v9366_v41, %v3027_v25 }
 0x681   :  { %v6976_v51 = vpop.f32.mrf.mxu0  ;;  %v7070_v39 = vpop.f32.mrf.mxu1 }
 0x682   :  { %v3028_v49 = vadd.f32 %v2969_v31, %v8990_v20  ;;  %v6977_v21 = vadd.f32 %v6976_v51, %v6975_v6  ;;  %v7071_v9 = vadd.f32 %v7070_v39, %v7069_v22  ;;  %3192 = vadd.xlane.f32.xlu1 %v9434_v47  ;;  %v10595_v51 = vld [vmem:[#allocation20_spill] sm:$0xff] }
 0x683   :  { %v6978_v11 = vpop.f32.mrf.mxu0  ;;  %v7072_v59 = vpop.f32.mrf.mxu1 }
 0x684   :  { %v2972_v4 = vadd.f32 %v7071_v9, %v6977_v21  ;;  %v9439_v55 = vadd.f32 %v9366_v41, %v3028_v49  ;;  %v7727_v49 = vld [vmem:[#allocation5 + $0x2e0] ss:$16 sps:$4 sm:$0xff]   ;;  %v7729_v21 = vld [vmem:[#allocation5 + $0x2e4] ss:$16 sps:$4 sm:$0xff]   ;;  %v7730_v9 = vld [vmem:[#allocation5 + $0x2e8] ss:$16 sps:$4 sm:$0xff]  }
 0x685   :  { %v6979_v17 = vpop.f32.mrf.mxu0  ;;  %v7073_v60 = vpop.f32.mrf.mxu1  ;;  %3614 = vmatprep.subr.bf16.mxu0 %v7729_v21 }
 0x686   :  { %v3029_v37 = vadd.f32 %v2972_v4, %v8994_v57  ;;  %v6980_v52 = vadd.f32 %v6979_v17, %v6978_v11  ;;  %v7074_v44 = vadd.f32 %v7073_v60, %v7072_v59  ;;  %3194 = vadd.xlane.f32.xlu0 %v9439_v55  ;;  %v7732_v11 = vld [vmem:[#allocation5 + $0x2ec] ss:$16 sps:$4 sm:$0xff]   ;;  %3615 = vmatpush1.bf16.msra.mxu0 %v7727_v49  ;;  %v7735_v4 = vld [vmem:[#allocation5 + $0x2c4] ss:$16 sps:$4 sm:$0xff]   ;;  %v7736_v17 = vld [vmem:[#allocation5 + $0x2c8] ss:$16 sps:$4 sm:$0xff]  }
 0x687   :  { %v6981_v15 = vpop.f32.mrf.mxu0  ;;  %v7075_v20 = vpop.f32.mrf.mxu1  ;;  %3775 = vmatprep.subr.bf16.mxu1 %v7732_v11  ;;  %v7738_v60 = vld [vmem:[#allocation5 + $0x2cc] ss:$16 sps:$4 sm:$0xff]   ;;  %3616 = vmatprep.subr.bf16.mxu0 %v7735_v4 }
 0x688   :  { %v2977_v54 = vadd.f32 %v7074_v44, %v6980_v52  ;;  %v9444_v30 = vadd.f32 %v9366_v41, %v3029_v37  ;;  %3776 = vmatpush1.bf16.msra.mxu1 %v7730_v9  ;;  %v7739_v37 = vld [vmem:[#allocation5 + $0x2a0] ss:$16 sps:$4 sm:$0xff]   ;;  %v7741_v52 = vld [vmem:[#allocation5 + $0x2a4] ss:$16 sps:$4 sm:$0xff]   ;;  %v7742_v44 = vld [vmem:[#allocation5 + $0x2a8] ss:$16 sps:$4 sm:$0xff]  }
 0x689   :  { %v6982_v36 = vpop.f32.mrf.mxu0  ;;  %v7076_v27 = vpop.f32.mrf.mxu1  ;;  %3777 = vmatprep.subr.bf16.mxu1 %v7738_v60 }
 0x68a   :  { %v3030_v63 = vadd.f32 %v2977_v54, %v8998_v24  ;;  %v6983_v26 = vadd.f32 %v6982_v36, %v6981_v15  ;;  %v7077_v1 = vadd.f32 %v7076_v27, %v7075_v20  ;;  %3196 = vadd.xlane.f32.xlu1 %v9444_v30  ;;  %v7744_v15 = vld [vmem:[#allocation5 + $0x2ac] ss:$16 sps:$4 sm:$0xff]   ;;  %v7747_v20 = vld [vmem:[#allocation5 + $0x284] ss:$16 sps:$4 sm:$0xff]   ;;  %v7745_v36 = vld [vmem:[#allocation5 + $0x280] ss:$16 sps:$4 sm:$0xff]  }
 0x68b   :  { %v6984_v32 = vpop.f32.mrf.mxu0  ;;  %v7078_v57 = vpop.f32.mrf.mxu1  ;;  %v7750_v54 = vld [vmem:[#allocation5 + $0x28c] ss:$16 sps:$4 sm:$0xff]   ;;  %v7748_v27 = vld [vmem:[#allocation5 + $0x288] ss:$16 sps:$4 sm:$0xff]  }
 0x68c   :  { %v2980_v5 = vadd.f32 %v7077_v1, %v6983_v26  ;;  %v9449_v56 = vadd.f32 %v9366_v41, %v3030_v63  ;;  %3778 = vmatpush1.bf16.msra.mxu1 %v7736_v17  ;;  %v7753_v63 = vld [vmem:[#allocation5 + $0x264] ss:$16 sps:$4 sm:$0xff]   ;;  %v7756_v26 = vld [vmem:[#allocation5 + $0x26c] ss:$16 sps:$4 sm:$0xff]   ;;  %v7751_v1 = vld [vmem:[#allocation5 + $0x260] ss:$16 sps:$4 sm:$0xff]  }
 0x68d   :  { %v6985_v34 = vpop.f32.mrf.mxu0  ;;  %v7079_v3 = vpop.f32.mrf.mxu1  ;;  %3779 = vmatprep.subr.bf16.mxu1 %v7744_v15 }
 0x68e   :  { %v3031_v18 = vadd.f32 %v2980_v5, %v9002_v45  ;;  %v6986_v28 = vadd.f32 %v6985_v34, %v6984_v32  ;;  %v7080_v62 = vadd.f32 %v7079_v3, %v7078_v57  ;;  %3198 = vadd.xlane.f32.xlu0 %v9449_v56  ;;  %v7754_v32 = vld [vmem:[#allocation5 + $0x268] ss:$16 sps:$4 sm:$0xff]   ;;  %v7759_v57 = vld [vmem:[#allocation5 + $0x244] ss:$16 sps:$4 sm:$0xff]   ;;  %v7762_v3 = vld [vmem:[#allocation5 + $0x24c] ss:$16 sps:$4 sm:$0xff]  }
 0x68f   :  { %v6987_v42 = vpop.f32.mrf.mxu0  ;;  %v7081_v24 = vpop.f32.mrf.mxu1 }
 0x690   :  { %v2985_v29 = vadd.f32 %v7080_v62, %v6986_v28  ;;  %v9454_v43 = vadd.f32 %v9366_v41, %v3031_v18  ;;  %3780 = vmatpush1.bf16.msra.mxu1 %v7742_v44  ;;  %v7757_v18 = vld [vmem:[#allocation5 + $0x240] ss:$16 sps:$4 sm:$0xff]   ;;  %v7760_v28 = vld [vmem:[#allocation5 + $0x248] ss:$16 sps:$4 sm:$0xff]  }
 0x691   :  { %v6988_v25 = vpop.f32.mrf.mxu0  ;;  %v7082_v13 = vpop.f32.mrf.mxu1  ;;  %3781 = vmatprep.subr.bf16.mxu1 %v7750_v54 }
 0x692   :  { %10593 = vst [vmem:[#allocation25_spill] sm:$0xff] %v9454_v43  ;;  %v3032_v46 = vadd.f32 %v2985_v29, %v9006_v16  ;;  %v6989_v6 = vadd.f32 %v6988_v25, %v6987_v42  ;;  %v7083_v22 = vadd.f32 %v7082_v13, %v7081_v24  ;;  %3200 = vadd.xlane.f32.xlu1 %v9454_v43  ;;  %v7733_v16 = vld [vmem:[#allocation5 + $0x2c0] ss:$16 sps:$4 sm:$0xff]  }
 0x693   :  { %3617 = vmatpush1.bf16.msra.mxu0 %v7733_v16 }
 0x694   :  { %v2988_v31 = vadd.f32 %v7083_v22, %v6989_v6  ;;  %v9459_v45 = vadd.f32 %v9366_v41, %v3032_v46  ;;  %3618 = vmatprep.subr.bf16.mxu0 %v7741_v52  ;;  %3782 = vmatpush1.bf16.msra.mxu1 %v7748_v27  ;;  %v6990_v5 = vpop.f32.mrf.mxu0  ;;  %v7084_v34 = vpop.f32.mrf.mxu1 }
 0x695   :  { %3783 = vmatprep.subr.bf16.mxu1 %v7756_v26 }
 0x696   :  { %10594 = vst [vmem:[#allocation26_spill] sm:$0xff] %v9459_v45  ;;  %v3033_v39 = vadd.f32 %v2988_v31, %v10595_v51  ;;  %3202 = vadd.xlane.f32.xlu0 %v9459_v45  ;;  %v6991_v62 = vpop.f32.mrf.mxu0  ;;  %v7085_v42 = vpop.f32.mrf.mxu1 }
 0x697   :  { %3619 = vmatpush1.bf16.msra.mxu0 %v7739_v37  ;;  %v6992_v22 = vadd.f32 %v6991_v62, %v6990_v5  ;;  %v7086_v31 = vadd.f32 %v7085_v42, %v7084_v34  ;;  %v10597_v37 = vld [vmem:[#allocation21_spill] sm:$0xff] }
 0x698   :  { %v9464_v59 = vadd.f32 %v9366_v41, %v3033_v39  ;;  %3620 = vmatprep.subr.bf16.mxu0 %v7747_v20  ;;  %3784 = vmatpush1.bf16.msra.mxu1 %v7754_v32  ;;  %v6993_v24 = vpop.f32.mrf.mxu0  ;;  %v7087_v29 = vpop.f32.mrf.mxu1  ;;  %v10598_v32 = vld [vmem:[#allocation22_spill] sm:$0xff] }
 0x699   :  { %3785 = vmatprep.subr.bf16.mxu1 %v7762_v3  ;;  %v2993_v49 = vadd.f32 %v7086_v31, %v6992_v22 }
 0x69a   :  { %10596 = vst [vmem:[#allocation20_spill] sm:$0xff] %v9464_v59  ;;  %3204 = vadd.xlane.f32.xlu1 %v9464_v59  ;;  %v6994_v25 = vpop.f32.mrf.mxu0  ;;  %v7088_v13 = vpop.f32.mrf.mxu1 }
 0x69b   :  { %3621 = vmatpush1.bf16.msra.mxu0 %v7745_v36  ;;  %v6995_v21 = vadd.f32 %v6994_v25, %v6993_v24  ;;  %v7089_v9 = vadd.f32 %v7088_v13, %v7087_v29  ;;  %v3034_v52 = vadd.f32 %v2993_v49, %v10597_v37  ;;  %v10601_v13 = vld [vmem:[#allocation23_spill] sm:$0xff]  ;;  %v10602_v49 = vld [vmem:[#allocation24_spill] sm:$0xff] }
 0x69c   :  { %3622 = vmatprep.subr.bf16.mxu0 %v7753_v63  ;;  %3786 = vmatpush1.bf16.msra.mxu1 %v7760_v28  ;;  %v6996_v46 = vpop.f32.mrf.mxu0  ;;  %v7090_v6 = vpop.f32.mrf.mxu1 }
 0x69d   :  { %v2996_v44 = vadd.f32 %v7089_v9, %v6995_v21  ;;  %v9478_v3 = vadd.f32 %v9366_v41, %v3034_v52 }
 0x69e   :  { %v6997_v51 = vpop.f32.mrf.mxu0  ;;  %v7091_v39 = vpop.f32.mrf.mxu1 }
 0x69f   :  { %3623 = vmatpush1.bf16.msra.mxu0 %v7751_v1  ;;  %v6998_v15 = vadd.f32 %v6997_v51, %v6996_v46  ;;  %v7092_v20 = vadd.f32 %v7091_v39, %v7090_v6  ;;  %10599 = vst [vmem:[#allocation21_spill] sm:$0xff] %v9478_v3 }
 0x6a0   :  { %3624 = vmatprep.subr.bf16.mxu0 %v7759_v57  ;;  %v6999_v4 = vpop.f32.mrf.mxu0  ;;  %v7093_v17 = vpop.f32.mrf.mxu1  ;;  %v3035_v57 = vadd.f32 %v2996_v44, %v10598_v32 }
 0x6a1   :  { %v3001_v5 = vadd.f32 %v7092_v20, %v6998_v15 }
 0x6a2   :  { %v7000_v63 = vpop.f32.mrf.mxu0  ;;  %v7094_v26 = vpop.f32.mrf.mxu1  ;;  %v9487_v25 = vadd.f32 %v9366_v41, %v3035_v57 }
 0x6a3   :  { %3625 = vmatpush1.bf16.msra.mxu0 %v7757_v18  ;;  %v7001_v18 = vadd.f32 %v7000_v63, %v6999_v4  ;;  %v7095_v28 = vadd.f32 %v7094_v26, %v7093_v17  ;;  %v3036_v46 = vadd.f32 %v3001_v5, %v10601_v13  ;;  %v7769_v13 = vld [vmem:[#allocation5 + $0x200] ss:$16 sps:$4 sm:$0xff]  }
 0x6a4   :  { %10600 = vst [vmem:[#allocation22_spill] sm:$0xff] %v9487_v25 }
 0x6a5   :  { %v3004_v6 = vadd.f32 %v7095_v28, %v7001_v18  ;;  %v7768_v18 = vld [vmem:[#allocation5 + $0x22c] ss:$16 sps:$4 sm:$0xff]   ;;  %v7763_v28 = vld [vmem:[#allocation5 + $0x220] ss:$16 sps:$4 sm:$0xff]  }
 0x6a6   :  { %3787 = vmatprep.subr.bf16.mxu1 %v7768_v18 }
 0x6a7   :  { %v3037_v21 = vadd.f32 %v3004_v6, %v10602_v49 }
 0x6a9   :  { %v9507_v52 = vadd.f32 %v9366_v41, %v3037_v21 }
 0x6ab   :  { %10604 = vst [vmem:[#allocation24_spill] sm:$0xff] %v9507_v52 }
 0x6c9   :  { %v3167_v11 = vpop.xlane.xlu0 %3166 }
 0x6ca   :  { %v3216_v16 = vmul.f32 0.0078125, %v3167_v11 }
 0x6cc   :  { %v9468_v60 = vsub.f32 %v9369_v40, %v3216_v16  ;;  %v9500_v16 = vadd.f32 %v9366_v41, %v3036_v46  ;;  %v7772_v46 = vld [vmem:[#allocation5 + $0x208] ss:$16 sps:$4 sm:$0xff]  }
 0x6cd   :  { %v3169_v54 = vpop.xlane.xlu1 %3168 }
 0x6ce   :  { %v3217_v36 = vmul.f32 0.0078125, %v3169_v54  ;;  %v3266_v27 = vmul.f32 %v9468_v60, %v9468_v60  ;;  %10603 = vst [vmem:[#allocation23_spill] sm:$0xff] %v9500_v16 }
 0x6d0   :  { %v9474_v1 = vsub.f32 %v9374_v8, %v3217_v36  ;;  %3291 = vadd.xlane.f32.xlu0 %v3266_v27 }
 0x6d1   :  { %v3171_v34 = vpop.xlane.xlu0 %3170 }
 0x6d2   :  { %v3218_v62 = vmul.f32 0.0078125, %v3171_v34  ;;  %v3267_v42 = vmul.f32 %v9474_v1, %v9474_v1  ;;  %v7765_v34 = vld [vmem:[#allocation5 + $0x224] ss:$16 sps:$4 sm:$0xff]  }
 0x6d3   :  { %3626 = vmatprep.subr.bf16.mxu0 %v7765_v34 }
 0x6d4   :  { %v9483_v24 = vsub.f32 %v9379_v58, %v3218_v62  ;;  %3293 = vadd.xlane.f32.xlu1 %v3267_v42  ;;  %3206 = vadd.xlane.f32.xlu0 %v9478_v3  ;;  %v7766_v62 = vld [vmem:[#allocation5 + $0x228] ss:$16 sps:$4 sm:$0xff]   ;;  %v7771_v42 = vld [vmem:[#allocation5 + $0x204] ss:$16 sps:$4 sm:$0xff]  }
 0x6d5   :  { %v3173_v29 = vpop.xlane.xlu1 %3172  ;;  %3627 = vmatpush1.bf16.msra.mxu0 %v7763_v28  ;;  %3788 = vmatpush1.bf16.msra.mxu1 %v7766_v62 }
 0x6d6   :  { %v3219_v22 = vmul.f32 0.0078125, %v3173_v29  ;;  %v3268_v31 = vmul.f32 %v9483_v24, %v9483_v24  ;;  %v7774_v29 = vld [vmem:[#allocation5 + $0x20c] ss:$16 sps:$4 sm:$0xff]   ;;  %3628 = vmatprep.subr.bf16.mxu0 %v7771_v42 }
 0x6d7   :  { %3789 = vmatprep.subr.bf16.mxu1 %v7774_v29 }
 0x6d8   :  { %v9493_v51 = vsub.f32 %v9384_v53, %v3219_v22  ;;  %3208 = vadd.xlane.f32.xlu1 %v9487_v25  ;;  %3295 = vadd.xlane.f32.xlu0 %v3268_v31 }
 0x6d9   :  { %v3175_v39 = vpop.xlane.xlu0 %3174  ;;  %3629 = vmatpush1.bf16.msra.mxu0 %v7769_v13  ;;  %3790 = vmatpush1.bf16.msra.mxu1 %v7772_v46 }
 0x6da   :  { %v3220_v9 = vmul.f32 0.0078125, %v3175_v39  ;;  %v3269_v11 = vmul.f32 %v9493_v51, %v9493_v51 }
 0x6dc   :  { %v9503_v4 = vsub.f32 %v9389_v23, %v3220_v9  ;;  %3297 = vadd.xlane.f32.xlu1 %v3269_v11  ;;  %3210 = vadd.xlane.f32.xlu0 %v9500_v16 }
 0x6dd   :  { %v3177_v17 = vpop.xlane.xlu1 %3176 }
 0x6de   :  { %v3221_v37 = vmul.f32 0.0078125, %v3177_v17  ;;  %v3270_v44 = vmul.f32 %v9503_v4, %v9503_v4 }
 0x6e0   :  { %v9512_v15 = vsub.f32 %v9394_v38, %v3221_v37  ;;  %3212 = vadd.xlane.f32.xlu1 %v9507_v52  ;;  %3299 = vadd.xlane.f32.xlu0 %v3270_v44 }
 0x6e1   :  { %v3179_v20 = vpop.xlane.xlu0 %3178 }
 0x6e2   :  { %v3222_v54 = vmul.f32 0.0078125, %v3179_v20  ;;  %v3271_v36 = vmul.f32 %v9512_v15, %v9512_v15 }
 0x6e4   :  { %v9518_v27 = vsub.f32 %v9399_v61, %v3222_v54  ;;  %3301 = vadd.xlane.f32.xlu1 %v3271_v36 }
 0x6e5   :  { %v3181_v63 = vpop.xlane.xlu1 %3180 }
 0x6e6   :  { %v3223_v26 = vmul.f32 0.0078125, %v3181_v63  ;;  %v3272_v32 = vmul.f32 %v9518_v27, %v9518_v27 }
 0x6e8   :  { %v9523_v57 = vsub.f32 %v9404_v19, %v3223_v26  ;;  %3303 = vadd.xlane.f32.xlu0 %v3272_v32 }
 0x6ea   :  { %v3273_v5 = vmul.f32 %v9523_v57, %v9523_v57 }
 0x6ec   :  { %3305 = vadd.xlane.f32.xlu1 %v3273_v5 }
 0x6f7   :  { %v7002_v6 = vpop.f32.mrf.mxu0  ;;  %v7096_v22 = vpop.f32.mrf.mxu1 }
 0x6f8   :  { %v3183_v31 = vpop.xlane.xlu0 %3182 }
 0x6f9   :  { %v3224_v39 = vmul.f32 0.0078125, %v3183_v31  ;;  %v7003_v49 = vpop.f32.mrf.mxu0  ;;  %v7097_v21 = vpop.f32.mrf.mxu1 }
 0x6fa   :  { %v7004_v9 = vadd.f32 %v7003_v49, %v7002_v6  ;;  %v7098_v11 = vadd.f32 %v7097_v21, %v7096_v22 }
 0x6fb   :  { %v9528_v17 = vsub.f32 %v9409_v35, %v3224_v39  ;;  %v7005_v37 = vpop.f32.mrf.mxu0  ;;  %v7099_v44 = vpop.f32.mrf.mxu1 }
 0x6fc   :  { %v3009_v20 = vadd.f32 %v7098_v11, %v7004_v9  ;;  %v3185_v54 = vpop.xlane.xlu1 %3184 }
 0x6fd   :  { %v3225_v36 = vmul.f32 0.0078125, %v3185_v54  ;;  %v7006_v63 = vpop.f32.mrf.mxu0  ;;  %v7100_v26 = vpop.f32.mrf.mxu1  ;;  %v3274_v32 = vmul.f32 %v9528_v17, %v9528_v17 }
 0x6fe   :  { %v3038_v5 = vadd.f32 %v3009_v20, %v9093_v2 }
 0x6ff   :  { %v9534_v34 = vsub.f32 %v9414_v14, %v3225_v36  ;;  %3307 = vadd.xlane.f32.xlu0 %v3274_v32  ;;  %v3187_v18 = vpop.xlane.xlu0 %3186 }
 0x700   :  { %v3226_v28 = vmul.f32 0.0078125, %v3187_v18  ;;  %v9537_v62 = vadd.f32 %v9366_v41, %v3038_v5 }
 0x701   :  { %v3275_v42 = vmul.f32 %v9534_v34, %v9534_v34 }
 0x702   :  { %v9542_v29 = vsub.f32 %v9419_v48, %v3226_v28 }
 0x703   :  { %3309 = vadd.xlane.f32.xlu1 %v3275_v42  ;;  %3214 = vadd.xlane.f32.xlu0 %v9537_v62  ;;  %v3189_v13 = vpop.xlane.xlu1 %3188 }
 0x704   :  { %v3227_v2 = vmul.f32 0.0078125, %v3189_v13  ;;  %v3276_v46 = vmul.f32 %v9542_v29, %v9542_v29 }
 0x706   :  { %v9548_v6 = vsub.f32 %v9424_v50, %v3227_v2 }
 0x707   :  { %3311 = vadd.xlane.f32.xlu1 %v3276_v46  ;;  %v3191_v41 = vpop.xlane.xlu0 %3190 }
 0x708   :  { %v3228_v22 = vmul.f32 0.0078125, %v3191_v41  ;;  %v3277_v31 = vmul.f32 %v9548_v6, %v9548_v6 }
 0x70a   :  { %v9553_v39 = vsub.f32 %v9429_v7, %v3228_v22  ;;  %3313 = vadd.xlane.f32.xlu0 %v3277_v31 }
 0x70b   :  { %v3193_v49 = vpop.xlane.xlu1 %3192 }
 0x70c   :  { %v3229_v21 = vmul.f32 0.0078125, %v3193_v49  ;;  %v3278_v9 = vmul.f32 %v9553_v39, %v9553_v39 }
 0x70e   :  { %v9558_v11 = vsub.f32 %v9434_v47, %v3229_v21  ;;  %3315 = vadd.xlane.f32.xlu1 %v3278_v9 }
 0x70f   :  { %v3195_v37 = vpop.xlane.xlu0 %3194 }
 0x710   :  { %v3230_v44 = vmul.f32 0.0078125, %v3195_v37  ;;  %v3279_v20 = vmul.f32 %v9558_v11, %v9558_v11 }
 0x712   :  { %v9563_v54 = vsub.f32 %v9439_v55, %v3230_v44  ;;  %3317 = vadd.xlane.f32.xlu0 %v3279_v20 }
 0x713   :  { %v3197_v36 = vpop.xlane.xlu1 %3196 }
 0x714   :  { %v3231_v63 = vmul.f32 0.0078125, %v3197_v36  ;;  %v3280_v26 = vmul.f32 %v9563_v54, %v9563_v54 }
 0x716   :  { %v9568_v32 = vsub.f32 %v9444_v30, %v3231_v63  ;;  %3319 = vadd.xlane.f32.xlu1 %v3280_v26  ;;  %v7775_v63 = vld [vmem:[#allocation8 + $0x178] sm:$0xff]  }
 0x717   :  { %v3199_v5 = vpop.xlane.xlu0 %3198  ;;  %v7776_v26 = vld [vmem:[#allocation8 + $0x1f8] sm:$0xff]   ;;  %7102 = vmatprep.subr.bf16.mxu0 %v7775_v63 }
 0x718   :  { %v3232_v18 = vmul.f32 0.0078125, %v3199_v5  ;;  %v3281_v28 = vmul.f32 %v9568_v32, %v9568_v32  ;;  %7196 = vmatprep.subr.bf16.mxu1 %v7776_v26 }
 0x71a   :  { %v9573_v42 = vsub.f32 %v9449_v56, %v3232_v18  ;;  %3321 = vadd.xlane.f32.xlu0 %v3281_v28 }
 0x71b   :  { %v3201_v13 = vpop.xlane.xlu1 %3200 }
 0x71c   :  { %v3233_v2 = vmul.f32 0.0078125, %v3201_v13  ;;  %v3282_v46 = vmul.f32 %v9573_v42, %v9573_v42 }
 0x71e   :  { %v9578_v41 = vsub.f32 %v9454_v43, %v3233_v2  ;;  %3323 = vadd.xlane.f32.xlu1 %v3282_v46 }
 0x71f   :  { %v3203_v22 = vpop.xlane.xlu0 %3202 }
 0x720   :  { %v3234_v31 = vmul.f32 0.0078125, %v3203_v22  ;;  %v3283_v49 = vmul.f32 %v9578_v41, %v9578_v41 }
 0x722   :  { %v9583_v21 = vsub.f32 %v9459_v45, %v3234_v31  ;;  %3325 = vadd.xlane.f32.xlu0 %v3283_v49 }
 0x723   :  { %v3205_v9 = vpop.xlane.xlu1 %3204 }
 0x724   :  { %v3235_v37 = vmul.f32 0.0078125, %v3205_v9  ;;  %v3284_v44 = vmul.f32 %v9583_v21, %v9583_v21 }
 0x726   :  { %v9588_v20 = vsub.f32 %v9464_v59, %v3235_v37  ;;  %3327 = vadd.xlane.f32.xlu1 %v3284_v44  ;;  %v7780_v59 = vld [vmem:[#allocation8 + $0x1f0] sm:$0xff]  }
 0x728   :  { %v3285_v36 = vmul.f32 %v9588_v20, %v9588_v20 }
 0x72a   :  { %3329 = vadd.xlane.f32.xlu0 %v3285_v36 }
 0x759   :  { %v3292_v5 = vpop.xlane.xlu0 %3291 }
 0x75a   :  { %v3341_v18 = vmul.f32 0.0078125, %v3292_v5 }
 0x75c   :  { %v3366_v28 = vadd.f32 1e-05, %v3341_v18 }
 0x75d   :  { %v3294_v13 = vpop.xlane.xlu1 %3293  ;;  %v3207_v2 = vpop.xlane.xlu0 %3206 }
 0x75e   :  { %v3342_v46 = vmul.f32 0.0078125, %v3294_v13  ;;  %v3236_v22 = vmul.f32 0.0078125, %v3207_v2  ;;  %7963 = vrsqrt.f32 %v3366_v28 }
 0x760   :  { %v3367_v31 = vadd.f32 1e-05, %v3342_v46  ;;  %v9593_v49 = vsub.f32 %v9478_v3, %v3236_v22  ;;  %v7779_v3 = vld [vmem:[#allocation8 + $0x170] sm:$0xff]  }
 0x761   :  { %v3209_v9 = vpop.xlane.xlu1 %3208  ;;  %v3296_v37 = vpop.xlane.xlu0 %3295 }
 0x762   :  { %7965 = vrsqrt.f32 %v3367_v31  ;;  %v3237_v44 = vmul.f32 0.0078125, %v3209_v9  ;;  %v3343_v36 = vmul.f32 0.0078125, %v3296_v37  ;;  %v3286_v63 = vmul.f32 %v9593_v49, %v9593_v49 }
 0x764   :  { %v9598_v26 = vsub.f32 %v9487_v25, %v3237_v44  ;;  %v3368_v5 = vadd.f32 1e-05, %v3343_v36  ;;  %3331 = vadd.xlane.f32.xlu1 %v3286_v63 }
 0x765   :  { %v3298_v18 = vpop.xlane.xlu1 %3297  ;;  %v3211_v13 = vpop.xlane.xlu0 %3210 }
 0x766   :  { %v3344_v28 = vmul.f32 0.0078125, %v3298_v18  ;;  %v3238_v2 = vmul.f32 0.0078125, %v3211_v13  ;;  %v3287_v46 = vmul.f32 %v9598_v26, %v9598_v26  ;;  %7967 = vrsqrt.f32 %v3368_v5 }
 0x768   :  { %v3369_v22 = vadd.f32 1e-05, %v3344_v28  ;;  %v9603_v31 = vsub.f32 %v9500_v16, %v3238_v2  ;;  %3333 = vadd.xlane.f32.xlu0 %v3287_v46 }
 0x769   :  { %v3213_v9 = vpop.xlane.xlu1 %3212  ;;  %v3300_v37 = vpop.xlane.xlu0 %3299 }
 0x76a   :  { %7969 = vrsqrt.f32 %v3369_v22  ;;  %v3239_v44 = vmul.f32 0.0078125, %v3213_v9  ;;  %v3345_v25 = vmul.f32 0.0078125, %v3300_v37  ;;  %v3288_v36 = vmul.f32 %v9603_v31, %v9603_v31 }
 0x76b   :  { %v7964_v13 = vpop.eup %7963 }
 0x76c   :  { %v9608_v63 = vsub.f32 %v9507_v52, %v3239_v44  ;;  %v3370_v18 = vadd.f32 1e-05, %v3345_v25  ;;  %3335 = vadd.xlane.f32.xlu1 %v3288_v36  ;;  %v3416_v16 = vmul.f32 %v7964_v13, %v9468_v60  ;;  %v7777_v25 = vld [vmem:[#allocation8 + $0x138] sm:$0xff]  }
 0x76d   :  { %v3302_v5 = vpop.xlane.xlu1 %3301  ;;  %v7778_v36 = vld [vmem:[#allocation8 + $0x1b8] sm:$0xff]  }
 0x76e   :  { %v3346_v28 = vmul.f32 0.0078125, %v3302_v5  ;;  %v3289_v2 = vmul.f32 %v9608_v63, %v9608_v63  ;;  %7971 = vrsqrt.f32 %v3370_v18  ;;  %v7782_v18 = vld [vmem:[#allocation8 + $0x1b0] sm:$0xff]  }
 0x76f   :  { %v7966_v46 = vpop.eup %7965 }
 0x770   :  { %v3417_v22 = vmul.f32 %v7966_v46, %v9474_v1  ;;  %v3371_v9 = vadd.f32 1e-05, %v3346_v28  ;;  %3337 = vadd.xlane.f32.xlu0 %v3289_v2  ;;  %v7781_v1 = vld [vmem:[#allocation8 + $0x130] sm:$0xff]   ;;  %v7783_v46 = vld [vmem:[#allocation8 + $0x168] sm:$0xff]  }
 0x771   :  { %v3304_v37 = vpop.xlane.xlu0 %3303 }
 0x772   :  { %7973 = vrsqrt.f32 %v3371_v9  ;;  %v3347_v44 = vmul.f32 0.0078125, %v3304_v37  ;;  %v3441_v52 = vpack.c.bf16 %v3417_v22, %v3416_v16  ;;  %v7786_v9 = vld [vmem:[#allocation8 + $0x1a8] sm:$0xff]  }
 0x773   :  { %v7968_v45 = vpop.eup %7967 }
 0x774   :  { %v3372_v5 = vadd.f32 1e-05, %v3347_v44  ;;  %3647 = vmatmul.mubr.bf16.vlgmr.msra.gmra.mxu0 %v3441_v52  ;;  %3808 = vmatmul.mubr.bf16.vlgmr.msra.gmra.mxu1 %v3441_v52  ;;  %v3418_v28 = vmul.f32 %v7968_v45, %v9483_v24 }
 0x775   :  { %v3306_v43 = vpop.xlane.xlu1 %3305  ;;  %3656 = vmatprep.mubr.bf16.mxu0 %v10592_v33  ;;  %3817 = vmatprep.mubr.bf16.mxu1 %v10592_v33 }
 0x776   :  { %v3348_v60 = vmul.f32 0.0078125, %v3306_v43  ;;  %7103 = vmatpush3.bf16.msra.mxu0 %v7777_v25  ;;  %7197 = vmatpush3.bf16.msra.mxu1 %v7778_v36  ;;  %7975 = vrsqrt.f32 %v3372_v5  ;;  %v7787_v5 = vld [vmem:[#allocation8 + $0x160] sm:$0xff]  }
 0x777   :  { %v7970_v13 = vpop.eup %7969  ;;  %7104 = vmatprep.subr.bf16.mxu0 %v7779_v3  ;;  %7198 = vmatprep.subr.bf16.mxu1 %v7780_v59  ;;  %v7784_v3 = vld [vmem:[#allocation8 + $0x1e8] sm:$0xff]  }
 0x778   :  { %v3373_v16 = vadd.f32 1e-05, %v3348_v60  ;;  %v3419_v52 = vmul.f32 %v7970_v13, %v9493_v51  ;;  %v7785_v59 = vld [vmem:[#allocation8 + $0x128] sm:$0xff]   ;;  %v7789_v60 = vld [vmem:[#allocation8 + $0x120] sm:$0xff]  }
 0x77a   :  { %7977 = vrsqrt.f32 %v3373_v16  ;;  %v3442_v2 = vpack.c.bf16 %v3419_v52, %v3418_v28  ;;  %7105 = vmatpush3.bf16.msra.mxu0 %v7781_v1  ;;  %7199 = vmatpush3.bf16.msra.mxu1 %v7782_v18  ;;  %v7790_v18 = vld [vmem:[#allocation8 + $0x1a0] sm:$0xff]  }
 0x77b   :  { %v7972_v43 = vpop.eup %7971  ;;  %7106 = vmatprep.subr.bf16.mxu0 %v7783_v46  ;;  %7200 = vmatprep.subr.bf16.mxu1 %v7784_v3  ;;  %v7791_v3 = vld [vmem:[#allocation8 + $0x158] sm:$0xff]  }
 0x77c   :  { %3657 = vmatmul.mubr.bf16.gmra.mxu0 %v3442_v2  ;;  %3818 = vmatmul.mubr.bf16.gmra.mxu1 %v3442_v2  ;;  %v3420_v45 = vmul.f32 %v7972_v43, %v9503_v4 }
 0x77d   :  { %3666 = vmatprep.mubr.bf16.mxu0 %v10592_v33  ;;  %3827 = vmatprep.mubr.bf16.mxu1 %v10592_v33 }
 0x77e   :  { %7107 = vmatpush3.bf16.msra.mxu0 %v7785_v59  ;;  %7201 = vmatpush3.bf16.msra.mxu1 %v7786_v9  ;;  %v7792_v59 = vld [vmem:[#allocation8 + $0x1d8] sm:$0xff]  }
 0x77f   :  { %v7974_v22 = vpop.eup %7973  ;;  %7108 = vmatprep.subr.bf16.mxu0 %v7787_v5 }
 0x780   :  { %v3421_v24 = vmul.f32 %v7974_v22, %v9512_v15  ;;  %v7788_v15 = vld [vmem:[#allocation8 + $0x1e0] sm:$0xff]   ;;  %v7793_v22 = vld [vmem:[#allocation8 + $0x118] sm:$0xff]  }
 0x781   :  { %7202 = vmatprep.subr.bf16.mxu1 %v7788_v15 }
 0x782   :  { %v3443_v51 = vpack.c.bf16 %v3421_v24, %v3420_v45  ;;  %7109 = vmatpush3.bf16.msra.mxu0 %v7789_v60  ;;  %7203 = vmatpush3.bf16.msra.mxu1 %v7790_v18  ;;  %v7794_v24 = vld [vmem:[#allocation8 + $0x198] sm:$0xff]  }
 0x783   :  { %v7976_v37 = vpop.eup %7975  ;;  %7110 = vmatprep.subr.bf16.mxu0 %v7791_v3  ;;  %7204 = vmatprep.subr.bf16.mxu1 %v7792_v59  ;;  %v7797_v59 = vld [vmem:[#allocation8 + $0x110] sm:$0xff]  }
 0x784   :  { %3667 = vmatmul.mubr.bf16.gmra.mxu0 %v3443_v51  ;;  %3828 = vmatmul.mubr.bf16.gmra.mxu1 %v3443_v51  ;;  %v3422_v36 = vmul.f32 %v7976_v37, %v9518_v27 }
 0x785   :  { %3676 = vmatprep.mubr.bf16.mxu0 %v10592_v33  ;;  %3837 = vmatprep.mubr.bf16.mxu1 %v10592_v33 }
 0x786   :  { %7111 = vmatpush3.bf16.msra.mxu0 %v7793_v22  ;;  %7205 = vmatpush3.bf16.msra.mxu1 %v7794_v24  ;;  %v7798_v22 = vld [vmem:[#allocation8 + $0x190] sm:$0xff]   ;;  %v7799_v24 = vld [vmem:[#allocation8 + $0x148] sm:$0xff]  }
 0x787   :  { %v7978_v44 = vpop.eup %7977 }
 0x788   :  { %v3308_v25 = vpop.xlane.xlu0 %3307  ;;  %v3423_v4 = vmul.f32 %v7978_v44, %v9523_v57 }
 0x789   :  { %v3349_v1 = vmul.f32 0.0078125, %v3308_v25 }
 0x78a   :  { %v3444_v13 = vpack.c.bf16 %v3423_v4, %v3422_v36 }
 0x78b   :  { %v3374_v16 = vadd.f32 1e-05, %v3349_v1 }
 0x78c   :  { %v3310_v28 = vpop.xlane.xlu1 %3309  ;;  %v3215_v52 = vpop.xlane.xlu0 %3214  ;;  %3677 = vmatmul.mubr.bf16.gmra.mxu0 %v3444_v13  ;;  %3838 = vmatmul.mubr.bf16.gmra.mxu1 %v3444_v13 }
 0x78d   :  { %v3350_v2 = vmul.f32 0.0078125, %v3310_v28  ;;  %v3240_v43 = vmul.f32 0.0078125, %v3215_v52  ;;  %3686 = vmatprep.mubr.bf16.mxu0 %v10592_v33  ;;  %3847 = vmatprep.mubr.bf16.mxu1 %v10592_v33  ;;  %7979 = vrsqrt.f32 %v3374_v16 }
 0x78f   :  { %v3375_v27 = vadd.f32 1e-05, %v3350_v2  ;;  %v9629_v57 = vsub.f32 %v9537_v62, %v3240_v43 }
 0x790   :  { %v3312_v46 = vpop.xlane.xlu1 %3311 }
 0x791   :  { %7981 = vrsqrt.f32 %v3375_v27  ;;  %v3351_v9 = vmul.f32 0.0078125, %v3312_v46  ;;  %v3290_v45 = vmul.f32 %v9629_v57, %v9629_v57  ;;  %v7795_v27 = vld [vmem:[#allocation8 + $0x150] sm:$0xff]  }
 0x792   :  { %v7796_v46 = vld [vmem:[#allocation8 + $0x1d0] sm:$0xff]   ;;  %7112 = vmatprep.subr.bf16.mxu0 %v7795_v27 }
 0x793   :  { %v3376_v51 = vadd.f32 1e-05, %v3351_v9  ;;  %3339 = vadd.xlane.f32.xlu1 %v3290_v45  ;;  %v3314_v37 = vpop.xlane.xlu0 %3313  ;;  %7206 = vmatprep.subr.bf16.mxu1 %v7796_v46 }
 0x794   :  { %v3352_v44 = vmul.f32 0.0078125, %v3314_v37  ;;  %7113 = vmatpush3.bf16.msra.mxu0 %v7797_v59  ;;  %7207 = vmatpush3.bf16.msra.mxu1 %v7798_v22  ;;  %v7802_v59 = vld [vmem:[#allocation8 + $0x188] sm:$0xff]  }
 0x795   :  { %7983 = vrsqrt.f32 %v3376_v51  ;;  %v7800_v51 = vld [vmem:[#allocation8 + $0x1c8] sm:$0xff]   ;;  %7114 = vmatprep.subr.bf16.mxu0 %v7799_v24 }
 0x796   :  { %v3377_v25 = vadd.f32 1e-05, %v3352_v44  ;;  %7208 = vmatprep.subr.bf16.mxu1 %v7800_v51 }
 0x797   :  { %v3316_v36 = vpop.xlane.xlu1 %3315 }
 0x798   :  { %7985 = vrsqrt.f32 %v3377_v25  ;;  %v3353_v4 = vmul.f32 0.0078125, %v3316_v36  ;;  %7209 = vmatpush3.bf16.msra.mxu1 %v7802_v59 }
 0x79a   :  { %v3378_v5 = vadd.f32 1e-05, %v3353_v4  ;;  %v7980_v60 = vpop.eup %7979 }
 0x79b   :  { %v3318_v15 = vpop.xlane.xlu0 %3317  ;;  %v3424_v28 = vmul.f32 %v7980_v60, %v9528_v17 }
 0x79c   :  { %v3354_v1 = vmul.f32 0.0078125, %v3318_v15  ;;  %7987 = vrsqrt.f32 %v3378_v5 }
 0x79e   :  { %v7982_v18 = vpop.eup %7981  ;;  %v3379_v13 = vadd.f32 1e-05, %v3354_v1 }
 0x79f   :  { %v3320_v16 = vpop.xlane.xlu1 %3319  ;;  %v3425_v52 = vmul.f32 %v7982_v18, %v9534_v34 }
 0x7a0   :  { %7989 = vrsqrt.f32 %v3379_v13  ;;  %v3355_v2 = vmul.f32 0.0078125, %v3320_v16 }
 0x7a1   :  { %v3445_v43 = vpack.c.bf16 %v3425_v52, %v3424_v28 }
 0x7a2   :  { %v3380_v3 = vadd.f32 1e-05, %v3355_v2  ;;  %v7984_v9 = vpop.eup %7983 }
 0x7a3   :  { %3687 = vmatmul.mubr.bf16.gmra.mxu0 %v3445_v43  ;;  %3848 = vmatmul.mubr.bf16.gmra.mxu1 %v3445_v43  ;;  %v3322_v45 = vpop.xlane.xlu0 %3321  ;;  %v3426_v44 = vmul.f32 %v7984_v9, %v9542_v29 }
 0x7a4   :  { %v3356_v37 = vmul.f32 0.0078125, %v3322_v45  ;;  %3696 = vmatprep.mubr.bf16.mxu0 %v10592_v33  ;;  %3857 = vmatprep.mubr.bf16.mxu1 %v10592_v33  ;;  %7991 = vrsqrt.f32 %v3380_v3  ;;  %v7801_v3 = vld [vmem:[#allocation8 + $0x108] sm:$0xff]  }
 0x7a5   :  { %v7986_v17 = vpop.eup %7985  ;;  %7115 = vmatpush3.bf16.msra.mxu0 %v7801_v3 }
 0x7a6   :  { %v3381_v34 = vadd.f32 1e-05, %v3356_v37  ;;  %v3427_v25 = vmul.f32 %v7986_v17, %v9548_v6  ;;  %v7803_v17 = vld [vmem:[#allocation8 + $0x140] sm:$0xff]  }
 0x7a7   :  { %v3324_v36 = vpop.xlane.xlu1 %3323  ;;  %7116 = vmatprep.subr.bf16.mxu0 %v7803_v17 }
 0x7a8   :  { %7993 = vrsqrt.f32 %v3381_v34  ;;  %v3357_v4 = vmul.f32 0.0078125, %v3324_v36  ;;  %v3446_v5 = vpack.c.bf16 %v3427_v25, %v3426_v44  ;;  %v7804_v34 = vld [vmem:[#allocation8 + $0x1c0] sm:$0xff]  }
 0x7a9   :  { %v7988_v60 = vpop.eup %7987  ;;  %v7805_v36 = vld [vmem:[#allocation8 + $0x100] sm:$0xff]   ;;  %7210 = vmatprep.subr.bf16.mxu1 %v7804_v34  ;;  %v10605_v34 = vld [vmem:[#allocation19_spill] sm:$0xff] }
 0x7aa   :  { %v3382_v15 = vadd.f32 1e-05, %v3357_v4  ;;  %v3428_v13 = vmul.f32 %v7988_v60, %v9553_v39  ;;  %7117 = vmatpush3.bf16.msra.mxu0 %v7805_v36 }
 0x7ab   :  { %3697 = vmatmul.mubr.bf16.gmra.mxu0 %v3446_v5  ;;  %3858 = vmatmul.mubr.bf16.gmra.mxu1 %v3446_v5  ;;  %v3326_v1 = vpop.xlane.xlu0 %3325 }
 0x7ac   :  { %v3358_v18 = vmul.f32 0.0078125, %v3326_v1  ;;  %3706 = vmatprep.mubr.bf16.mxu0 %v10592_v33  ;;  %3867 = vmatprep.mubr.bf16.mxu1 %v10592_v33  ;;  %7995 = vrsqrt.f32 %v3382_v15 }
 0x7ad   :  { %v7990_v29 = vpop.eup %7989 }
 0x7ae   :  { %v3383_v6 = vadd.f32 1e-05, %v3358_v18  ;;  %v3429_v16 = vmul.f32 %v7990_v29, %v9558_v11 }
 0x7af   :  { %v3328_v28 = vpop.xlane.xlu1 %3327 }
 0x7b0   :  { %7997 = vrsqrt.f32 %v3383_v6  ;;  %v3359_v52 = vmul.f32 0.0078125, %v3328_v28  ;;  %v3447_v2 = vpack.c.bf16 %v3429_v16, %v3428_v13 }
 0x7b1   :  { %v7992_v27 = vpop.eup %7991 }
 0x7b2   :  { %v3384_v43 = vadd.f32 1e-05, %v3359_v52  ;;  %v3430_v11 = vmul.f32 %v7992_v27, %v9563_v54  ;;  %v7806_v54 = vld [vmem:[#allocation8 + $0x180] sm:$0xff]  }
 0x7b3   :  { %3707 = vmatmul.mubr.bf16.gmra.mxu0 %v3447_v2  ;;  %3868 = vmatmul.mubr.bf16.gmra.mxu1 %v3447_v2  ;;  %v3330_v46 = vpop.xlane.xlu0 %3329 }
 0x7b4   :  { %v3360_v22 = vmul.f32 0.0078125, %v3330_v46  ;;  %3716 = vmatprep.mubr.bf16.mxu0 %v10592_v33  ;;  %3877 = vmatprep.mubr.bf16.mxu1 %v10592_v33  ;;  %7999 = vrsqrt.f32 %v3384_v43 }
 0x7b5   :  { %v7994_v9 = vpop.eup %7993  ;;  %7211 = vmatpush3.bf16.msra.mxu1 %v7806_v54 }
 0x7b6   :  { %v3385_v39 = vadd.f32 1e-05, %v3360_v22  ;;  %v3431_v45 = vmul.f32 %v7994_v9, %v9568_v32 }
 0x7b8   :  { %8001 = vrsqrt.f32 %v3385_v39  ;;  %v3448_v24 = vpack.c.bf16 %v3431_v45, %v3430_v11 }
 0x7b9   :  { %v7996_v51 = vpop.eup %7995 }
 0x7ba   :  { %v3432_v44 = vmul.f32 %v7996_v51, %v9573_v42  ;;  %v3165_v51 = vld [vmem:[#allocation7 + $0x8] sm:$0xf] }
 0x7bb   :  { %3717 = vmatmul.mubr.bf16.gmra.mxu0 %v3448_v24  ;;  %3878 = vmatmul.mubr.bf16.gmra.mxu1 %v3448_v24  ;;  %v4000_v17 = vrot.slane %v3165_v51, %v8767_v10 }
 0x7bc   :  { %3726 = vmatprep.mubr.bf16.mxu0 %v10592_v33  ;;  %3887 = vmatprep.mubr.bf16.mxu1 %v10592_v33 }
 0x7bd   :  { %v7998_v37 = vpop.eup %7997  ;;  %v4011_v54 = vpack.c.bf16 %v4000_v17, %v4000_v17 }
 0x7be   :  { %v3433_v25 = vmul.f32 %v7998_v37, %v9578_v41  ;;  %v3992_v37 = vrot.slane %v3165_v51, %v8745_v12 }
 0x7c0   :  { %v3449_v32 = vpack.c.bf16 %v3433_v25, %v3432_v44  ;;  %v4009_v36 = vpack.c.bf16 %v3992_v37, %v3992_v37 }
 0x7c1   :  { %v8000_v4 = vpop.eup %7999 }
 0x7c2   :  { %v3434_v15 = vmul.f32 %v8000_v4, %v9583_v21 }
 0x7c3   :  { %3727 = vmatmul.mubr.bf16.gmra.mxu0 %v3449_v32  ;;  %3888 = vmatmul.mubr.bf16.gmra.mxu1 %v3449_v32 }
 0x7c4   :  { %3736 = vmatprep.mubr.bf16.mxu0 %v10592_v33  ;;  %3897 = vmatprep.mubr.bf16.mxu1 %v10592_v33 }
 0x7c5   :  { %v8002_v5 = vpop.eup %8001 }
 0x7c6   :  { %v3435_v42 = vmul.f32 %v8002_v5, %v9588_v20 }
 0x7c8   :  { %v3450_v41 = vpack.c.bf16 %v3435_v42, %v3434_v15 }
 0x7cb   :  { %3737 = vmatmul.mubr.bf16.gmra.mxu0 %v3450_v41  ;;  %3898 = vmatmul.mubr.bf16.gmra.mxu1 %v3450_v41  ;;  %v4014_v41 = vpack.i.b16 %v4009_v36, %v4009_v36 }
 0x7cc   :  { %3746 = vmatprep.mubr.bf16.mxu0 %v10592_v33  ;;  %3907 = vmatprep.mubr.bf16.mxu1 %v10592_v33 }
 0x7ed   :  { %v3332_v60 = vpop.xlane.xlu1 %3331 }
 0x7ee   :  { %v3361_v1 = vmul.f32 0.0078125, %v3332_v60  ;;  %v4028_v60 = vpack.i.b16 %v4011_v54, %v4011_v54 }
 0x7f0   :  { %v3386_v18 = vadd.f32 1e-05, %v3361_v1 }
 0x7f1   :  { %v3334_v29 = vpop.xlane.xlu0 %3333 }
 0x7f2   :  { %v3362_v6 = vmul.f32 0.0078125, %v3334_v29  ;;  %8003 = vrsqrt.f32 %v3386_v18 }
 0x7f4   :  { %v3387_v13 = vadd.f32 1e-05, %v3362_v6 }
 0x7f5   :  { %v3336_v16 = vpop.xlane.xlu1 %3335 }
 0x7f6   :  { %8005 = vrsqrt.f32 %v3387_v13  ;;  %v3363_v28 = vmul.f32 0.0078125, %v3336_v16  ;;  %v9671_v16 = vrot.slane %v4014_v41, %v8745_v12 }
 0x7f8   :  { %v3388_v21 = vadd.f32 1e-05, %v3363_v28  ;;  %v9674_v28 = vrot.slane %v4028_v60, %v8745_v12 }
 0x7f9   :  { %v3338_v52 = vpop.xlane.xlu0 %3337 }
 0x7fa   :  { %v3364_v20 = vmul.f32 0.0078125, %v3338_v52  ;;  %8007 = vrsqrt.f32 %v3388_v21 }
 0x7fc   :  { %v3389_v2 = vadd.f32 1e-05, %v3364_v20 }
 0x7fe   :  { %8009 = vrsqrt.f32 %v3389_v2 }
 0x7ff   :  { %v8004_v43 = vpop.eup %8003 }
 0x800   :  { %v3436_v46 = vmul.f32 %v8004_v43, %v9593_v49 }
 0x803   :  { %v8006_v27 = vpop.eup %8005 }
 0x804   :  { %v3437_v3 = vmul.f32 %v8006_v27, %v9598_v26 }
 0x806   :  { %v3451_v59 = vpack.c.bf16 %v3437_v3, %v3436_v46 }
 0x807   :  { %v8008_v22 = vpop.eup %8007 }
 0x808   :  { %3747 = vmatmul.mubr.bf16.gmra.mxu0 %v3451_v59  ;;  %3908 = vmatmul.mubr.bf16.gmra.mxu1 %v3451_v59  ;;  %v3438_v39 = vmul.f32 %v8008_v22, %v9603_v31  ;;  %v3996_v31 = vrot.slane %v3165_v51, %v8747_v0 }
 0x809   :  { %3756 = vmatprep.mubr.bf16.mxu0 %v10592_v33  ;;  %3917 = vmatprep.mubr.bf16.mxu1 %v10592_v33 }
 0x80a   :  { %v4010_v4 = vpack.c.bf16 %v3996_v31, %v3996_v31 }
 0x80b   :  { %v8010_v9 = vpop.eup %8009 }
 0x80c   :  { %v3439_v11 = vmul.f32 %v8010_v9, %v9608_v63  ;;  %v4004_v63 = vrot.slane %v3165_v51, %v10605_v34  ;;  %v4021_v1 = vpack.i.b16 %v4010_v4, %v4010_v4 }
 0x80e   :  { %v3452_v45 = vpack.c.bf16 %v3439_v11, %v3438_v39  ;;  %v4012_v5 = vpack.c.bf16 %v4004_v63, %v4004_v63  ;;  %v9677_v20 = vrot.slane %v4021_v1, %v8745_v12 }
 0x810   :  { %3757 = vmatmul.mubr.bf16.gmra.mxu0 %v3452_v45  ;;  %3918 = vmatmul.mubr.bf16.gmra.mxu1 %v3452_v45  ;;  %v4035_v18 = vpack.i.b16 %v4012_v5, %v4012_v5 }
 0x811   :  { %3766 = vmatprep.mubr.bf16.mxu0 %v10592_v33  ;;  %3927 = vmatprep.mubr.bf16.mxu1 %v10592_v33 }
 0x812   :  { %v9680_v2 = vrot.slane %v4035_v18, %v8745_v12 }
 0x81c   :  { %v3340_v49 = vpop.xlane.xlu1 %3339 }
 0x81d   :  { %v3365_v26 = vmul.f32 0.0078125, %v3340_v49 }
 0x81f   :  { %v3390_v24 = vadd.f32 1e-05, %v3365_v26 }
 0x821   :  { %8011 = vrsqrt.f32 %v3390_v24 }
 0x82e   :  { %v8012_v44 = vpop.eup %8011 }
 0x82f   :  { %v3440_v25 = vmul.f32 %v8012_v44, %v9629_v57 }
 0x831   :  { %v3453_v32 = vpack.c.bf16 %v3440_v25, %v3440_v25 }
 0x833   :  { %3767 = vmatmul.mubr.bf16.gmra.mxu0 %v3453_v32  ;;  %3928 = vmatmul.mubr.bf16.gmra.mxu1 %v3453_v32 }
 0x834   :  { %v3648_v15 = vpop.f32.mrf.mxu0  ;;  %v3809_v42 = vpop.f32.mrf.mxu1 }
 0x836   :  { %v3650_v29 = vpop.f32.mrf.mxu0  ;;  %v3811_v6 = vpop.f32.mrf.mxu1 }
 0x838   :  { %v3652_v13 = vpop.f32.mrf.mxu0  ;;  %v3813_v57 = vpop.f32.mrf.mxu1 }
 0x839   :  { %v3936_v21 = vpack.c.bf16 %v3652_v13, %v3648_v15  ;;  %v3938_v52 = vpack.c.bf16 %v3813_v57, %v3809_v42 }
 0x83a   :  { %v3654_v43 = vpop.f32.mrf.mxu0  ;;  %v3815_v27 = vpop.f32.mrf.mxu1 }
 0x83b   :  { %v3937_v46 = vpack.c.bf16 %v3654_v43, %v3650_v29  ;;  %v3939_v3 = vpack.c.bf16 %v3815_v27, %v3811_v6  ;;  %v4041_v59 = vadd.bf16 %v9671_v16, %v3936_v21  ;;  %v4043_v22 = vadd.bf16 %v9674_v28, %v3938_v52 }
 0x83c   :  { %v3658_v9 = vpop.f32.mrf.mxu0  ;;  %v3819_v39 = vpop.f32.mrf.mxu1 }
 0x83d   :  { %v4042_v11 = vadd.bf16 %v9677_v20, %v3937_v46  ;;  %v4044_v45 = vadd.bf16 %v9680_v2, %v3939_v3  ;;  %v4093_v37 = vmax.bf16 %v10592_v33, %v4041_v59  ;;  %v4095_v17 = vmax.bf16 %v10592_v33, %v4043_v22 }
 0x83e   :  { %v3660_v49 = vpop.f32.mrf.mxu0  ;;  %v3821_v26 = vpop.f32.mrf.mxu1 }
 0x83f   :  { %v4094_v24 = vmax.bf16 %v10592_v33, %v4042_v11  ;;  %v4096_v51 = vmax.bf16 %v10592_v33, %v4044_v45 }
 0x840   :  { %v3662_v31 = vpop.f32.mrf.mxu0  ;;  %v3823_v63 = vpop.f32.mrf.mxu1 }
 0x841   :  { %v3940_v44 = vpack.c.bf16 %v3662_v31, %v3658_v9  ;;  %v3942_v25 = vpack.c.bf16 %v3823_v63, %v3819_v39  ;;  %4369 = vmatprep.mubr.bf16.mxu0 %v4094_v24  ;;  %4505 = vmatprep.mubr.bf16.mxu1 %v4096_v51 }
 0x842   :  { %v3664_v36 = vpop.f32.mrf.mxu0  ;;  %v3825_v54 = vpop.f32.mrf.mxu1  ;;  %4370 = vmatmul.mubr.bf16.vlgmr.msra.gmra.mxu0 %v4093_v37  ;;  %4506 = vmatmul.mubr.bf16.vlgmr.msra.gmra.mxu1 %v4095_v17 }
 0x843   :  { %v3941_v32 = vpack.c.bf16 %v3664_v36, %v3660_v49  ;;  %v3943_v4 = vpack.c.bf16 %v3825_v54, %v3821_v26  ;;  %v4045_v5 = vadd.bf16 %v9671_v16, %v3940_v44  ;;  %v4047_v15 = vadd.bf16 %v9674_v28, %v3942_v25 }
 0x844   :  { %v3668_v42 = vpop.f32.mrf.mxu0  ;;  %v3829_v41 = vpop.f32.mrf.mxu1 }
 0x845   :  { %v4046_v60 = vadd.bf16 %v9677_v20, %v3941_v32  ;;  %v4048_v1 = vadd.bf16 %v9680_v2, %v3943_v4  ;;  %v4097_v57 = vmax.bf16 %v10592_v33, %v4045_v5  ;;  %v4099_v21 = vmax.bf16 %v10592_v33, %v4047_v15 }
 0x846   :  { %v3670_v18 = vpop.f32.mrf.mxu0  ;;  %v3831_v29 = vpop.f32.mrf.mxu1 }
 0x847   :  { %v4098_v6 = vmax.bf16 %v10592_v33, %v4046_v60  ;;  %v4100_v13 = vmax.bf16 %v10592_v33, %v4048_v1 }
 0x848   :  { %v3672_v52 = vpop.f32.mrf.mxu0  ;;  %v3833_v43 = vpop.f32.mrf.mxu1 }
 0x849   :  { %v3944_v27 = vpack.c.bf16 %v3672_v52, %v3668_v42  ;;  %v3946_v46 = vpack.c.bf16 %v3833_v43, %v3829_v41  ;;  %4377 = vmatprep.mubr.bf16.mxu0 %v4098_v6  ;;  %4513 = vmatprep.mubr.bf16.mxu1 %v4100_v13 }
 0x84a   :  { %v3674_v3 = vpop.f32.mrf.mxu0  ;;  %v3835_v59 = vpop.f32.mrf.mxu1  ;;  %4378 = vmatmul.mubr.bf16.gmra.mxu0 %v4097_v57  ;;  %4514 = vmatmul.mubr.bf16.gmra.mxu1 %v4099_v21 }
 0x84b   :  { %v3945_v22 = vpack.c.bf16 %v3674_v3, %v3670_v18  ;;  %v3947_v9 = vpack.c.bf16 %v3835_v59, %v3831_v29  ;;  %v4049_v39 = vadd.bf16 %v9671_v16, %v3944_v27  ;;  %v4051_v11 = vadd.bf16 %v9674_v28, %v3946_v46 }
 0x84c   :  { %v3678_v45 = vpop.f32.mrf.mxu0  ;;  %v3839_v49 = vpop.f32.mrf.mxu1 }
 0x84d   :  { %v4050_v26 = vadd.bf16 %v9677_v20, %v3945_v22  ;;  %v4052_v24 = vadd.bf16 %v9680_v2, %v3947_v9  ;;  %v4101_v63 = vmax.bf16 %v10592_v33, %v4049_v39  ;;  %v4103_v44 = vmax.bf16 %v10592_v33, %v4051_v11 }
 0x84e   :  { %v3680_v51 = vpop.f32.mrf.mxu0  ;;  %v3841_v37 = vpop.f32.mrf.mxu1 }
 0x84f   :  { %v4102_v17 = vmax.bf16 %v10592_v33, %v4050_v26  ;;  %v4104_v31 = vmax.bf16 %v10592_v33, %v4052_v24 }
 0x850   :  { %v3682_v25 = vpop.f32.mrf.mxu0  ;;  %v3843_v36 = vpop.f32.mrf.mxu1 }
 0x851   :  { %v3948_v54 = vpack.c.bf16 %v3682_v25, %v3678_v45  ;;  %v3950_v32 = vpack.c.bf16 %v3843_v36, %v3839_v49  ;;  %4385 = vmatprep.mubr.bf16.mxu0 %v4102_v17  ;;  %4521 = vmatprep.mubr.bf16.mxu1 %v4104_v31 }
 0x852   :  { %v3684_v4 = vpop.f32.mrf.mxu0  ;;  %v3845_v5 = vpop.f32.mrf.mxu1  ;;  %4386 = vmatmul.mubr.bf16.gmra.mxu0 %v4101_v63  ;;  %4522 = vmatmul.mubr.bf16.gmra.mxu1 %v4103_v44 }
 0x853   :  { %v3949_v15 = vpack.c.bf16 %v3684_v4, %v3680_v51  ;;  %v3951_v42 = vpack.c.bf16 %v3845_v5, %v3841_v37  ;;  %v4053_v41 = vadd.bf16 %v9671_v16, %v3948_v54  ;;  %v4055_v60 = vadd.bf16 %v9674_v28, %v3950_v32 }
 0x855   :  { %v4054_v1 = vadd.bf16 %v9677_v20, %v3949_v15  ;;  %v4056_v18 = vadd.bf16 %v9680_v2, %v3951_v42  ;;  %v4105_v13 = vmax.bf16 %v10592_v33, %v4053_v41  ;;  %v4107_v57 = vmax.bf16 %v10592_v33, %v4055_v60 }
 0x857   :  { %v4106_v29 = vmax.bf16 %v10592_v33, %v4054_v1  ;;  %v4108_v6 = vmax.bf16 %v10592_v33, %v4056_v18 }
 0x859   :  { %4393 = vmatprep.mubr.bf16.mxu0 %v4106_v29  ;;  %4529 = vmatprep.mubr.bf16.mxu1 %v4108_v6 }
 0x85a   :  { %4394 = vmatmul.mubr.bf16.gmra.mxu0 %v4105_v13  ;;  %4530 = vmatmul.mubr.bf16.gmra.mxu1 %v4107_v57 }
 0x863   :  { %v3688_v21 = vpop.f32.mrf.mxu0  ;;  %v3849_v52 = vpop.f32.mrf.mxu1 }
 0x865   :  { %v3690_v43 = vpop.f32.mrf.mxu0  ;;  %v3851_v27 = vpop.f32.mrf.mxu1 }
 0x867   :  { %v3692_v46 = vpop.f32.mrf.mxu0  ;;  %v3853_v3 = vpop.f32.mrf.mxu1 }
 0x868   :  { %v3952_v59 = vpack.c.bf16 %v3692_v46, %v3688_v21  ;;  %v3954_v22 = vpack.c.bf16 %v3853_v3, %v3849_v52 }
 0x869   :  { %v3694_v9 = vpop.f32.mrf.mxu0  ;;  %v3855_v39 = vpop.f32.mrf.mxu1 }
 0x86a   :  { %v3953_v11 = vpack.c.bf16 %v3694_v9, %v3690_v43  ;;  %v3955_v45 = vpack.c.bf16 %v3855_v39, %v3851_v27  ;;  %v4057_v49 = vadd.bf16 %v9671_v16, %v3952_v59  ;;  %v4059_v26 = vadd.bf16 %v9674_v28, %v3954_v22 }
 0x86b   :  { %v3698_v24 = vpop.f32.mrf.mxu0  ;;  %v3859_v51 = vpop.f32.mrf.mxu1 }
 0x86c   :  { %v4058_v37 = vadd.bf16 %v9677_v20, %v3953_v11  ;;  %v4060_v17 = vadd.bf16 %v9680_v2, %v3955_v45  ;;  %v4109_v36 = vmax.bf16 %v10592_v33, %v4057_v49  ;;  %v4111_v54 = vmax.bf16 %v10592_v33, %v4059_v26 }
 0x86d   :  { %v3700_v31 = vpop.f32.mrf.mxu0  ;;  %v3861_v63 = vpop.f32.mrf.mxu1 }
 0x86e   :  { %v4110_v44 = vmax.bf16 %v10592_v33, %v4058_v37  ;;  %v4112_v25 = vmax.bf16 %v10592_v33, %v4060_v17 }
 0x86f   :  { %v3702_v32 = vpop.f32.mrf.mxu0  ;;  %v3863_v4 = vpop.f32.mrf.mxu1 }
 0x870   :  { %v3956_v5 = vpack.c.bf16 %v3702_v32, %v3698_v24  ;;  %v3958_v15 = vpack.c.bf16 %v3863_v4, %v3859_v51  ;;  %4401 = vmatprep.mubr.bf16.mxu0 %v4110_v44  ;;  %4537 = vmatprep.mubr.bf16.mxu1 %v4112_v25 }
 0x871   :  { %v3704_v42 = vpop.f32.mrf.mxu0  ;;  %v3865_v41 = vpop.f32.mrf.mxu1  ;;  %4402 = vmatmul.mubr.bf16.gmra.mxu0 %v4109_v36  ;;  %4538 = vmatmul.mubr.bf16.gmra.mxu1 %v4111_v54 }
 0x872   :  { %v3957_v60 = vpack.c.bf16 %v3704_v42, %v3700_v31  ;;  %v3959_v1 = vpack.c.bf16 %v3865_v41, %v3861_v63  ;;  %v4061_v18 = vadd.bf16 %v9671_v16, %v3956_v5  ;;  %v4063_v29 = vadd.bf16 %v9674_v28, %v3958_v15 }
 0x873   :  { %v3708_v6 = vpop.f32.mrf.mxu0  ;;  %v3869_v13 = vpop.f32.mrf.mxu1 }
 0x874   :  { %v4062_v57 = vadd.bf16 %v9677_v20, %v3957_v60  ;;  %v4064_v21 = vadd.bf16 %v9680_v2, %v3959_v1  ;;  %v4113_v3 = vmax.bf16 %v10592_v33, %v4061_v18  ;;  %v4115_v59 = vmax.bf16 %v10592_v33, %v4063_v29 }
 0x875   :  { %v3710_v52 = vpop.f32.mrf.mxu0  ;;  %v3871_v43 = vpop.f32.mrf.mxu1 }
 0x876   :  { %v4114_v27 = vmax.bf16 %v10592_v33, %v4062_v57  ;;  %v4116_v46 = vmax.bf16 %v10592_v33, %v4064_v21 }
 0x877   :  { %v3712_v22 = vpop.f32.mrf.mxu0  ;;  %v3873_v9 = vpop.f32.mrf.mxu1 }
 0x878   :  { %v3960_v39 = vpack.c.bf16 %v3712_v22, %v3708_v6  ;;  %v3962_v11 = vpack.c.bf16 %v3873_v9, %v3869_v13  ;;  %4409 = vmatprep.mubr.bf16.mxu0 %v4114_v27  ;;  %4545 = vmatprep.mubr.bf16.mxu1 %v4116_v46 }
 0x879   :  { %v3714_v45 = vpop.f32.mrf.mxu0  ;;  %v3875_v49 = vpop.f32.mrf.mxu1  ;;  %4410 = vmatmul.mubr.bf16.gmra.mxu0 %v4113_v3  ;;  %4546 = vmatmul.mubr.bf16.gmra.mxu1 %v4115_v59 }
 0x87a   :  { %v3961_v26 = vpack.c.bf16 %v3714_v45, %v3710_v52  ;;  %v3963_v24 = vpack.c.bf16 %v3875_v49, %v3871_v43  ;;  %v4065_v51 = vadd.bf16 %v9671_v16, %v3960_v39  ;;  %v4067_v37 = vadd.bf16 %v9674_v28, %v3962_v11 }
 0x87b   :  { %v3718_v17 = vpop.f32.mrf.mxu0  ;;  %v3879_v31 = vpop.f32.mrf.mxu1 }
 0x87c   :  { %v4066_v63 = vadd.bf16 %v9677_v20, %v3961_v26  ;;  %v4068_v44 = vadd.bf16 %v9680_v2, %v3963_v24  ;;  %v4117_v4 = vmax.bf16 %v10592_v33, %v4065_v51  ;;  %v4119_v5 = vmax.bf16 %v10592_v33, %v4067_v37 }
 0x87d   :  { %v3720_v25 = vpop.f32.mrf.mxu0  ;;  %v3881_v36 = vpop.f32.mrf.mxu1 }
 0x87e   :  { %v4118_v54 = vmax.bf16 %v10592_v33, %v4066_v63  ;;  %v4120_v32 = vmax.bf16 %v10592_v33, %v4068_v44 }
 0x87f   :  { %v3722_v15 = vpop.f32.mrf.mxu0  ;;  %v3883_v42 = vpop.f32.mrf.mxu1 }
 0x880   :  { %v3964_v41 = vpack.c.bf16 %v3722_v15, %v3718_v17  ;;  %v3966_v60 = vpack.c.bf16 %v3883_v42, %v3879_v31  ;;  %4417 = vmatprep.mubr.bf16.mxu0 %v4118_v54  ;;  %4553 = vmatprep.mubr.bf16.mxu1 %v4120_v32 }
 0x881   :  { %v3724_v1 = vpop.f32.mrf.mxu0  ;;  %v3885_v18 = vpop.f32.mrf.mxu1  ;;  %4418 = vmatmul.mubr.bf16.gmra.mxu0 %v4117_v4  ;;  %4554 = vmatmul.mubr.bf16.gmra.mxu1 %v4119_v5 }
 0x882   :  { %v3965_v29 = vpack.c.bf16 %v3724_v1, %v3720_v25  ;;  %v3967_v6 = vpack.c.bf16 %v3885_v18, %v3881_v36  ;;  %v4069_v13 = vadd.bf16 %v9671_v16, %v3964_v41  ;;  %v4071_v57 = vadd.bf16 %v9674_v28, %v3966_v60 }
 0x883   :  { %v3728_v21 = vpop.f32.mrf.mxu0  ;;  %v3889_v52 = vpop.f32.mrf.mxu1 }
 0x884   :  { %v4070_v43 = vadd.bf16 %v9677_v20, %v3965_v29  ;;  %v4072_v27 = vadd.bf16 %v9680_v2, %v3967_v6  ;;  %v4121_v9 = vmax.bf16 %v10592_v33, %v4069_v13  ;;  %v4123_v39 = vmax.bf16 %v10592_v33, %v4071_v57 }
 0x885   :  { %v3730_v46 = vpop.f32.mrf.mxu0  ;;  %v3891_v3 = vpop.f32.mrf.mxu1 }
 0x886   :  { %v4122_v59 = vmax.bf16 %v10592_v33, %v4070_v43  ;;  %v4124_v22 = vmax.bf16 %v10592_v33, %v4072_v27 }
 0x887   :  { %v3732_v11 = vpop.f32.mrf.mxu0  ;;  %v3893_v45 = vpop.f32.mrf.mxu1 }
 0x888   :  { %v3968_v49 = vpack.c.bf16 %v3732_v11, %v3728_v21  ;;  %v3970_v26 = vpack.c.bf16 %v3893_v45, %v3889_v52  ;;  %4425 = vmatprep.mubr.bf16.mxu0 %v4122_v59  ;;  %4561 = vmatprep.mubr.bf16.mxu1 %v4124_v22 }
 0x889   :  { %v3734_v24 = vpop.f32.mrf.mxu0  ;;  %v3895_v51 = vpop.f32.mrf.mxu1  ;;  %4426 = vmatmul.mubr.bf16.gmra.mxu0 %v4121_v9  ;;  %4562 = vmatmul.mubr.bf16.gmra.mxu1 %v4123_v39 }
 0x88a   :  { %v3969_v37 = vpack.c.bf16 %v3734_v24, %v3730_v46  ;;  %v3971_v17 = vpack.c.bf16 %v3895_v51, %v3891_v3  ;;  %v4073_v31 = vadd.bf16 %v9671_v16, %v3968_v49  ;;  %v4075_v63 = vadd.bf16 %v9674_v28, %v3970_v26 }
 0x88b   :  { %v3738_v44 = vpop.f32.mrf.mxu0  ;;  %v3899_v25 = vpop.f32.mrf.mxu1 }
 0x88c   :  { %v4074_v36 = vadd.bf16 %v9677_v20, %v3969_v37  ;;  %v4076_v54 = vadd.bf16 %v9680_v2, %v3971_v17  ;;  %v4125_v42 = vmax.bf16 %v10592_v33, %v4073_v31  ;;  %v4127_v41 = vmax.bf16 %v10592_v33, %v4075_v63 }
 0x88d   :  { %v3740_v32 = vpop.f32.mrf.mxu0  ;;  %v3901_v4 = vpop.f32.mrf.mxu1 }
 0x88e   :  { %v4126_v5 = vmax.bf16 %v10592_v33, %v4074_v36  ;;  %v4128_v15 = vmax.bf16 %v10592_v33, %v4076_v54 }
 0x88f   :  { %v3742_v60 = vpop.f32.mrf.mxu0  ;;  %v3903_v1 = vpop.f32.mrf.mxu1 }
 0x890   :  { %v3972_v18 = vpack.c.bf16 %v3742_v60, %v3738_v44  ;;  %v3974_v29 = vpack.c.bf16 %v3903_v1, %v3899_v25  ;;  %4433 = vmatprep.mubr.bf16.mxu0 %v4126_v5  ;;  %4569 = vmatprep.mubr.bf16.mxu1 %v4128_v15 }
 0x891   :  { %v3744_v6 = vpop.f32.mrf.mxu0  ;;  %v3905_v13 = vpop.f32.mrf.mxu1  ;;  %4434 = vmatmul.mubr.bf16.gmra.mxu0 %v4125_v42  ;;  %4570 = vmatmul.mubr.bf16.gmra.mxu1 %v4127_v41 }
 0x892   :  { %v3973_v57 = vpack.c.bf16 %v3744_v6, %v3740_v32  ;;  %v3975_v21 = vpack.c.bf16 %v3905_v13, %v3901_v4  ;;  %v4077_v52 = vadd.bf16 %v9671_v16, %v3972_v18  ;;  %v4079_v43 = vadd.bf16 %v9674_v28, %v3974_v29 }
 0x894   :  { %v4078_v27 = vadd.bf16 %v9677_v20, %v3973_v57  ;;  %v4080_v46 = vadd.bf16 %v9680_v2, %v3975_v21  ;;  %v4129_v22 = vmax.bf16 %v10592_v33, %v4077_v52  ;;  %v4131_v9 = vmax.bf16 %v10592_v33, %v4079_v43 }
 0x896   :  { %v4130_v3 = vmax.bf16 %v10592_v33, %v4078_v27  ;;  %v4132_v59 = vmax.bf16 %v10592_v33, %v4080_v46 }
 0x898   :  { %4441 = vmatprep.mubr.bf16.mxu0 %v4130_v3  ;;  %4577 = vmatprep.mubr.bf16.mxu1 %v4132_v59 }
 0x899   :  { %4442 = vmatmul.mubr.bf16.gmra.mxu0 %v4129_v22  ;;  %4578 = vmatmul.mubr.bf16.gmra.mxu1 %v4131_v9 }
 0x8c8   :  { %v3748_v39 = vpop.f32.mrf.mxu0  ;;  %v3909_v11 = vpop.f32.mrf.mxu1 }
 0x8ca   :  { %v3750_v45 = vpop.f32.mrf.mxu0  ;;  %v3911_v49 = vpop.f32.mrf.mxu1 }
 0x8cc   :  { %v3752_v26 = vpop.f32.mrf.mxu0  ;;  %v3913_v24 = vpop.f32.mrf.mxu1 }
 0x8cd   :  { %v3976_v51 = vpack.c.bf16 %v3752_v26, %v3748_v39  ;;  %v3978_v37 = vpack.c.bf16 %v3913_v24, %v3909_v11 }
 0x8ce   :  { %v3754_v17 = vpop.f32.mrf.mxu0  ;;  %v3915_v31 = vpop.f32.mrf.mxu1 }
 0x8cf   :  { %v3977_v63 = vpack.c.bf16 %v3754_v17, %v3750_v45  ;;  %v3979_v44 = vpack.c.bf16 %v3915_v31, %v3911_v49  ;;  %v4081_v25 = vadd.bf16 %v9671_v16, %v3976_v51  ;;  %v4083_v36 = vadd.bf16 %v9674_v28, %v3978_v37 }
 0x8d0   :  { %v3758_v54 = vpop.f32.mrf.mxu0  ;;  %v3919_v32 = vpop.f32.mrf.mxu1 }
 0x8d1   :  { %v4082_v4 = vadd.bf16 %v9677_v20, %v3977_v63  ;;  %v4084_v5 = vadd.bf16 %v9680_v2, %v3979_v44  ;;  %v4133_v1 = vmax.bf16 %v10592_v33, %v4081_v25  ;;  %v4135_v18 = vmax.bf16 %v10592_v33, %v4083_v36 }
 0x8d2   :  { %v3760_v15 = vpop.f32.mrf.mxu0  ;;  %v3921_v42 = vpop.f32.mrf.mxu1 }
 0x8d3   :  { %v4134_v41 = vmax.bf16 %v10592_v33, %v4082_v4  ;;  %v4136_v60 = vmax.bf16 %v10592_v33, %v4084_v5 }
 0x8d4   :  { %v3762_v29 = vpop.f32.mrf.mxu0  ;;  %v3923_v6 = vpop.f32.mrf.mxu1 }
 0x8d5   :  { %v3980_v13 = vpack.c.bf16 %v3762_v29, %v3758_v54  ;;  %v3982_v57 = vpack.c.bf16 %v3923_v6, %v3919_v32  ;;  %4449 = vmatprep.mubr.bf16.mxu0 %v4134_v41  ;;  %4585 = vmatprep.mubr.bf16.mxu1 %v4136_v60 }
 0x8d6   :  { %v3764_v21 = vpop.f32.mrf.mxu0  ;;  %v3925_v52 = vpop.f32.mrf.mxu1  ;;  %4450 = vmatmul.mubr.bf16.gmra.mxu0 %v4133_v1  ;;  %4586 = vmatmul.mubr.bf16.gmra.mxu1 %v4135_v18 }
 0x8d7   :  { %v3981_v43 = vpack.c.bf16 %v3764_v21, %v3760_v15  ;;  %v3983_v27 = vpack.c.bf16 %v3925_v52, %v3921_v42  ;;  %v4085_v46 = vadd.bf16 %v9671_v16, %v3980_v13  ;;  %v4087_v3 = vadd.bf16 %v9674_v28, %v3982_v57 }
 0x8d9   :  { %v4086_v59 = vadd.bf16 %v9677_v20, %v3981_v43  ;;  %v4088_v22 = vadd.bf16 %v9680_v2, %v3983_v27  ;;  %v4137_v11 = vmax.bf16 %v10592_v33, %v4085_v46  ;;  %v4139_v45 = vmax.bf16 %v10592_v33, %v4087_v3  ;;  %v9791_v43 = vld [vmem:[%s10558_s4 + $0x1] ss:$0 sm:$0xff] }
 0x8db   :  { %v4138_v9 = vmax.bf16 %v10592_v33, %v4086_v59  ;;  %v4140_v39 = vmax.bf16 %v10592_v33, %v4088_v22 }
 0x8dd   :  { %4457 = vmatprep.mubr.bf16.mxu0 %v4138_v9  ;;  %4593 = vmatprep.mubr.bf16.mxu1 %v4140_v39 }
 0x8de   :  { %4458 = vmatmul.mubr.bf16.gmra.mxu0 %v4137_v11  ;;  %4594 = vmatmul.mubr.bf16.gmra.mxu1 %v4139_v45 }
 0x8f3   :  { %v3768_v49 = vpop.f32.mrf.mxu0  ;;  %v3929_v26 = vpop.f32.mrf.mxu1 }
 0x8f4   :  { %v3984_v24 = vpack.c.bf16 %v3768_v49, %v3768_v49  ;;  %v3986_v51 = vpack.c.bf16 %v3929_v26, %v3929_v26 }
 0x8f5   :  { %v3770_v37 = vpop.f32.mrf.mxu0  ;;  %v3931_v17 = vpop.f32.mrf.mxu1 }
 0x8f6   :  { %v3985_v31 = vpack.c.bf16 %v3770_v37, %v3770_v37  ;;  %v3987_v63 = vpack.c.bf16 %v3931_v17, %v3931_v17  ;;  %v4089_v44 = vadd.bf16 %v9671_v16, %v3984_v24  ;;  %v4091_v25 = vadd.bf16 %v9674_v28, %v3986_v51 }
 0x8f7   :  { %v3772_v36 = vpop.f32.mrf.mxu0  ;;  %v3933_v54 = vpop.f32.mrf.mxu1 }
 0x8f8   :  { %v4090_v32 = vadd.bf16 %v9677_v20, %v3985_v31  ;;  %v4092_v4 = vadd.bf16 %v9680_v2, %v3987_v63  ;;  %v4141_v60 = vmax.bf16 %v10592_v33, %v4089_v44  ;;  %v4143_v1 = vmax.bf16 %v10592_v33, %v4091_v25 }
 0x8f9   :  { %v3773_v5 = vpop.f32.mrf.mxu0  ;;  %v3934_v15 = vpop.f32.mrf.mxu1 }
 0x8fa   :  { %v4142_v42 = vmax.bf16 %v10592_v33, %v4090_v32  ;;  %v4144_v41 = vmax.bf16 %v10592_v33, %v4092_v4 }
 0x8fc   :  { %4465 = vmatprep.mubr.bf16.mxu0 %v4142_v42  ;;  %4601 = vmatprep.mubr.bf16.mxu1 %v4144_v41 }
 0x8fd   :  { %4466 = vmatmul.mubr.bf16.gmra.mxu0 %v4141_v60  ;;  %4602 = vmatmul.mubr.bf16.gmra.mxu1 %v4143_v1 }
 0x8fe   :  { %5180 = vmatprep.mubr.bf16.mxu0 %v10592_v33  ;;  %5341 = vmatprep.mubr.bf16.mxu1 %v10592_v33 }
 0x902   :  { %v7118_v16 = vpop.f32.mrf.mxu0  ;;  %v7212_v28 = vpop.f32.mrf.mxu1 }
 0x904   :  { %v7119_v20 = vpop.f32.mrf.mxu0  ;;  %v7213_v2 = vpop.f32.mrf.mxu1 }
 0x905   :  { %v7120_v18 = vadd.f32 %v7119_v20, %v7118_v16  ;;  %v7214_v29 = vadd.f32 %v7213_v2, %v7212_v28 }
 0x906   :  { %v7121_v6 = vpop.f32.mrf.mxu0  ;;  %v7215_v13 = vpop.f32.mrf.mxu1 }
 0x907   :  { %v4508_v57 = vadd.f32 %v7214_v29, %v7120_v18 }
 0x908   :  { %v7122_v21 = vpop.f32.mrf.mxu0  ;;  %v7216_v52 = vpop.f32.mrf.mxu1 }
 0x909   :  { %v4609_v27 = vadd.f32 %v4508_v57, %v9369_v40  ;;  %v7123_v46 = vadd.f32 %v7122_v21, %v7121_v6  ;;  %v7217_v3 = vadd.f32 %v7216_v52, %v7215_v13 }
 0x90a   :  { %v7124_v59 = vpop.f32.mrf.mxu0  ;;  %v7218_v22 = vpop.f32.mrf.mxu1 }
 0x90b   :  { %v4511_v9 = vadd.f32 %v7217_v3, %v7123_v46  ;;  %v9795_v39 = vadd.f32 %v9791_v43, %v4609_v27 }
 0x90c   :  { %v7125_v11 = vpop.f32.mrf.mxu0  ;;  %v7219_v45 = vpop.f32.mrf.mxu1 }
 0x90d   :  { %v4610_v49 = vadd.f32 %v4511_v9, %v9374_v8  ;;  %v7126_v26 = vadd.f32 %v7125_v11, %v7124_v59  ;;  %v7220_v24 = vadd.f32 %v7219_v45, %v7218_v22  ;;  %4700 = vadd.xlane.f32.xlu0 %v9795_v39 }
 0x90e   :  { %v7127_v51 = vpop.f32.mrf.mxu0  ;;  %v7221_v37 = vpop.f32.mrf.mxu1 }
 0x90f   :  { %v4516_v17 = vadd.f32 %v7220_v24, %v7126_v26  ;;  %v9800_v40 = vadd.f32 %v9791_v43, %v4610_v49 }
 0x910   :  { %v7128_v31 = vpop.f32.mrf.mxu0  ;;  %v7222_v63 = vpop.f32.mrf.mxu1 }
 0x911   :  { %v4611_v44 = vadd.f32 %v4516_v17, %v9379_v58  ;;  %v7129_v25 = vadd.f32 %v7128_v31, %v7127_v51  ;;  %v7223_v36 = vadd.f32 %v7222_v63, %v7221_v37  ;;  %4702 = vadd.xlane.f32.xlu1 %v9800_v40 }
 0x912   :  { %v7130_v54 = vpop.f32.mrf.mxu0  ;;  %v7224_v8 = vpop.f32.mrf.mxu1 }
 0x913   :  { %v4519_v32 = vadd.f32 %v7223_v36, %v7129_v25  ;;  %v9805_v4 = vadd.f32 %v9791_v43, %v4611_v44 }
 0x914   :  { %v7131_v5 = vpop.f32.mrf.mxu0  ;;  %v7225_v15 = vpop.f32.mrf.mxu1 }
 0x915   :  { %v4612_v42 = vadd.f32 %v4519_v32, %v9384_v53  ;;  %v7132_v41 = vadd.f32 %v7131_v5, %v7130_v54  ;;  %v7226_v60 = vadd.f32 %v7225_v15, %v7224_v8  ;;  %4704 = vadd.xlane.f32.xlu0 %v9805_v4 }
 0x916   :  { %v7133_v1 = vpop.f32.mrf.mxu0  ;;  %v7227_v58 = vpop.f32.mrf.mxu1 }
 0x917   :  { %v4524_v16 = vadd.f32 %v7226_v60, %v7132_v41  ;;  %v9810_v28 = vadd.f32 %v9791_v43, %v4612_v42 }
 0x918   :  { %v7134_v20 = vpop.f32.mrf.mxu0  ;;  %v7228_v2 = vpop.f32.mrf.mxu1 }
 0x919   :  { %v4613_v18 = vadd.f32 %v4524_v16, %v9389_v23  ;;  %v7135_v29 = vadd.f32 %v7134_v20, %v7133_v1  ;;  %v7229_v6 = vadd.f32 %v7228_v2, %v7227_v58  ;;  %4706 = vadd.xlane.f32.xlu1 %v9810_v28 }
 0x91a   :  { %v7136_v13 = vpop.f32.mrf.mxu0  ;;  %v7230_v53 = vpop.f32.mrf.mxu1 }
 0x91b   :  { %v4527_v57 = vadd.f32 %v7229_v6, %v7135_v29  ;;  %v9815_v21 = vadd.f32 %v9791_v43, %v4613_v18 }
 0x91c   :  { %v7137_v52 = vpop.f32.mrf.mxu0  ;;  %v7231_v27 = vpop.f32.mrf.mxu1 }
 0x91d   :  { %v4614_v46 = vadd.f32 %v4527_v57, %v9394_v38  ;;  %v7138_v3 = vadd.f32 %v7137_v52, %v7136_v13  ;;  %v7232_v59 = vadd.f32 %v7231_v27, %v7230_v53  ;;  %4708 = vadd.xlane.f32.xlu0 %v9815_v21 }
 0x91e   :  { %v7139_v22 = vpop.f32.mrf.mxu0  ;;  %v7233_v23 = vpop.f32.mrf.mxu1 }
 0x91f   :  { %v4532_v9 = vadd.f32 %v7232_v59, %v7138_v3  ;;  %v9820_v11 = vadd.f32 %v9791_v43, %v4614_v46 }
 0x920   :  { %v7140_v45 = vpop.f32.mrf.mxu0  ;;  %v7234_v49 = vpop.f32.mrf.mxu1 }
 0x921   :  { %v4615_v26 = vadd.f32 %v4532_v9, %v9399_v61  ;;  %v7141_v24 = vadd.f32 %v7140_v45, %v7139_v22  ;;  %v7235_v51 = vadd.f32 %v7234_v49, %v7233_v23  ;;  %4710 = vadd.xlane.f32.xlu1 %v9820_v11 }
 0x923   :  { %v4535_v37 = vadd.f32 %v7235_v51, %v7141_v24  ;;  %v9825_v38 = vadd.f32 %v9791_v43, %v4615_v26 }
 0x925   :  { %v4616_v17 = vadd.f32 %v4535_v37, %v9404_v19  ;;  %4712 = vadd.xlane.f32.xlu0 %v9825_v38 }
 0x927   :  { %v9830_v31 = vadd.f32 %v9791_v43, %v4616_v17 }
 0x929   :  { %4714 = vadd.xlane.f32.xlu1 %v9830_v31 }
 0x931   :  { %v7142_v63 = vpop.f32.mrf.mxu0  ;;  %v7236_v44 = vpop.f32.mrf.mxu1 }
 0x933   :  { %v7143_v61 = vpop.f32.mrf.mxu0  ;;  %v7237_v25 = vpop.f32.mrf.mxu1 }
 0x934   :  { %v7144_v36 = vadd.f32 %v7143_v61, %v7142_v63  ;;  %v7238_v54 = vadd.f32 %v7237_v25, %v7236_v44 }
 0x935   :  { %v7145_v8 = vpop.f32.mrf.mxu0  ;;  %v7239_v32 = vpop.f32.mrf.mxu1 }
 0x936   :  { %v4540_v5 = vadd.f32 %v7238_v54, %v7144_v36 }
 0x937   :  { %v7146_v15 = vpop.f32.mrf.mxu0  ;;  %v7240_v42 = vpop.f32.mrf.mxu1 }
 0x938   :  { %v4617_v19 = vadd.f32 %v4540_v5, %v9409_v35  ;;  %v7147_v41 = vadd.f32 %v7146_v15, %v7145_v8  ;;  %v7241_v60 = vadd.f32 %v7240_v42, %v7239_v32 }
 0x939   :  { %v7148_v1 = vpop.f32.mrf.mxu0  ;;  %v7242_v58 = vpop.f32.mrf.mxu1 }
 0x93a   :  { %v4543_v16 = vadd.f32 %v7241_v60, %v7147_v41  ;;  %v9835_v20 = vadd.f32 %v9791_v43, %v4617_v19 }
 0x93b   :  { %v7149_v2 = vpop.f32.mrf.mxu0  ;;  %v7243_v18 = vpop.f32.mrf.mxu1 }
 0x93c   :  { %v4618_v29 = vadd.f32 %v4543_v16, %v9414_v14  ;;  %v7150_v6 = vadd.f32 %v7149_v2, %v7148_v1  ;;  %v7244_v13 = vadd.f32 %v7243_v18, %v7242_v58  ;;  %4716 = vadd.xlane.f32.xlu0 %v9835_v20 }
 0x93d   :  { %v7151_v53 = vpop.f32.mrf.mxu0  ;;  %v7245_v57 = vpop.f32.mrf.mxu1 }
 0x93e   :  { %v4548_v52 = vadd.f32 %v7244_v13, %v7150_v6  ;;  %v9840_v35 = vadd.f32 %v9791_v43, %v4618_v29 }
 0x93f   :  { %v7152_v27 = vpop.f32.mrf.mxu0  ;;  %v7246_v46 = vpop.f32.mrf.mxu1 }
 0x940   :  { %v4619_v3 = vadd.f32 %v4548_v52, %v9419_v48  ;;  %v7153_v59 = vadd.f32 %v7152_v27, %v7151_v53  ;;  %v7247_v22 = vadd.f32 %v7246_v46, %v7245_v57  ;;  %4718 = vadd.xlane.f32.xlu1 %v9840_v35 }
 0x941   :  { %v7154_v23 = vpop.f32.mrf.mxu0  ;;  %v7248_v14 = vpop.f32.mrf.mxu1 }
 0x942   :  { %v4551_v9 = vadd.f32 %v7247_v22, %v7153_v59  ;;  %v9845_v45 = vadd.f32 %v9791_v43, %v4619_v3 }
 0x943   :  { %v7155_v49 = vpop.f32.mrf.mxu0  ;;  %v7249_v26 = vpop.f32.mrf.mxu1 }
 0x944   :  { %v4620_v24 = vadd.f32 %v4551_v9, %v9424_v50  ;;  %v7156_v51 = vadd.f32 %v7155_v49, %v7154_v23  ;;  %v7250_v37 = vadd.f32 %v7249_v26, %v7248_v14  ;;  %4720 = vadd.xlane.f32.xlu0 %v9845_v45 }
 0x945   :  { %v7157_v17 = vpop.f32.mrf.mxu0  ;;  %v7251_v48 = vpop.f32.mrf.mxu1 }
 0x946   :  { %v4556_v63 = vadd.f32 %v7250_v37, %v7156_v51  ;;  %v9850_v44 = vadd.f32 %v9791_v43, %v4620_v24 }
 0x947   :  { %v7158_v61 = vpop.f32.mrf.mxu0  ;;  %v7252_v25 = vpop.f32.mrf.mxu1 }
 0x948   :  { %v4621_v36 = vadd.f32 %v4556_v63, %v9429_v7  ;;  %v7159_v54 = vadd.f32 %v7158_v61, %v7157_v17  ;;  %v7253_v8 = vadd.f32 %v7252_v25, %v7251_v48  ;;  %4722 = vadd.xlane.f32.xlu1 %v9850_v44 }
 0x949   :  { %v7160_v32 = vpop.f32.mrf.mxu0  ;;  %v7254_v50 = vpop.f32.mrf.mxu1 }
 0x94a   :  { %v4559_v5 = vadd.f32 %v7253_v8, %v7159_v54  ;;  %v9855_v15 = vadd.f32 %v9791_v43, %v4621_v36  ;;  %v10606_v54 = vld [vmem:[#allocation25_spill] sm:$0xff] }
 0x94b   :  { %v7161_v42 = vpop.f32.mrf.mxu0  ;;  %v7255_v19 = vpop.f32.mrf.mxu1 }
 0x94c   :  { %v4622_v41 = vadd.f32 %v4559_v5, %v9434_v47  ;;  %v7162_v60 = vadd.f32 %v7161_v42, %v7160_v32  ;;  %v7256_v1 = vadd.f32 %v7255_v19, %v7254_v50  ;;  %4724 = vadd.xlane.f32.xlu0 %v9855_v15 }
 0x94d   :  { %v7163_v58 = vpop.f32.mrf.mxu0  ;;  %v7257_v7 = vpop.f32.mrf.mxu1 }
 0x94e   :  { %v4564_v16 = vadd.f32 %v7256_v1, %v7162_v60  ;;  %v9860_v2 = vadd.f32 %v9791_v43, %v4622_v41  ;;  %v10607_v1 = vld [vmem:[#allocation26_spill] sm:$0xff] }
 0x94f   :  { %v7164_v18 = vpop.f32.mrf.mxu0  ;;  %v7258_v29 = vpop.f32.mrf.mxu1 }
 0x950   :  { %v4623_v6 = vadd.f32 %v4564_v16, %v9439_v55  ;;  %v7165_v13 = vadd.f32 %v7164_v18, %v7163_v58  ;;  %v7259_v53 = vadd.f32 %v7258_v29, %v7257_v7  ;;  %4726 = vadd.xlane.f32.xlu1 %v9860_v2 }
 0x951   :  { %v7166_v57 = vpop.f32.mrf.mxu0  ;;  %v7260_v47 = vpop.f32.mrf.mxu1 }
 0x952   :  { %v4567_v52 = vadd.f32 %v7259_v53, %v7165_v13  ;;  %v9865_v27 = vadd.f32 %v9791_v43, %v4623_v6  ;;  %v10608_v6 = vld [vmem:[#allocation20_spill] sm:$0xff] }
 0x953   :  { %v7167_v46 = vpop.f32.mrf.mxu0  ;;  %v7261_v3 = vpop.f32.mrf.mxu1 }
 0x954   :  { %v4624_v59 = vadd.f32 %v4567_v52, %v9444_v30  ;;  %v7168_v22 = vadd.f32 %v7167_v46, %v7166_v57  ;;  %v7262_v23 = vadd.f32 %v7261_v3, %v7260_v47  ;;  %4728 = vadd.xlane.f32.xlu0 %v9865_v27  ;;  %v7807_v57 = vld [vmem:[#allocation5 + $0x3e0] ss:$16 sps:$4 sm:$0xff]   ;;  %v7809_v47 = vld [vmem:[#allocation5 + $0x3e4] ss:$16 sps:$4 sm:$0xff]   ;;  %v7810_v52 = vld [vmem:[#allocation5 + $0x3e8] ss:$16 sps:$4 sm:$0xff]  }
 0x955   :  { %v7169_v14 = vpop.f32.mrf.mxu0  ;;  %v7263_v55 = vpop.f32.mrf.mxu1  ;;  %v7812_v46 = vld [vmem:[#allocation5 + $0x3ec] ss:$16 sps:$4 sm:$0xff]   ;;  %v7815_v3 = vld [vmem:[#allocation5 + $0x3c4] ss:$16 sps:$4 sm:$0xff]   ;;  %5148 = vmatprep.subr.bf16.mxu0 %v7809_v47 }
 0x956   :  { %v4572_v9 = vadd.f32 %v7262_v23, %v7168_v22  ;;  %v9870_v49 = vadd.f32 %v9791_v43, %v4624_v59  ;;  %v7818_v59 = vld [vmem:[#allocation5 + $0x3cc] ss:$16 sps:$4 sm:$0xff]   ;;  %5309 = vmatprep.subr.bf16.mxu1 %v7812_v46  ;;  %5149 = vmatpush1.bf16.msra.mxu0 %v7807_v57  ;;  %v7813_v22 = vld [vmem:[#allocation5 + $0x3c0] ss:$16 sps:$4 sm:$0xff]   ;;  %v7816_v23 = vld [vmem:[#allocation5 + $0x3c8] ss:$16 sps:$4 sm:$0xff]  }
 0x957   :  { %v7170_v26 = vpop.f32.mrf.mxu0  ;;  %v7264_v24 = vpop.f32.mrf.mxu1  ;;  %5310 = vmatpush1.bf16.msra.mxu1 %v7810_v52  ;;  %5150 = vmatprep.subr.bf16.mxu0 %v7815_v3  ;;  %v10612_v52 = vld [vmem:[#allocation22_spill] sm:$0xff] }
 0x958   :  { %v4625_v51 = vadd.f32 %v4572_v9, %v9449_v56  ;;  %v7171_v37 = vadd.f32 %v7170_v26, %v7169_v14  ;;  %v7265_v17 = vadd.f32 %v7264_v24, %v7263_v55  ;;  %4730 = vadd.xlane.f32.xlu1 %v9870_v49  ;;  %5311 = vmatprep.subr.bf16.mxu1 %v7818_v59 }
 0x959   :  { %v7172_v48 = vpop.f32.mrf.mxu0  ;;  %v7266_v30 = vpop.f32.mrf.mxu1 }
 0x95a   :  { %v4575_v63 = vadd.f32 %v7265_v17, %v7171_v37  ;;  %v9875_v61 = vadd.f32 %v9791_v43, %v4625_v51  ;;  %5151 = vmatpush1.bf16.msra.mxu0 %v7813_v22 }
 0x95b   :  { %v7173_v25 = vpop.f32.mrf.mxu0  ;;  %v7267_v36 = vpop.f32.mrf.mxu1  ;;  %5312 = vmatpush1.bf16.msra.mxu1 %v7816_v23 }
 0x95c   :  { %v4626_v8 = vadd.f32 %v4575_v63, %v10606_v54  ;;  %v7174_v32 = vadd.f32 %v7173_v25, %v7172_v48  ;;  %v7268_v50 = vadd.f32 %v7267_v36, %v7266_v30  ;;  %4732 = vadd.xlane.f32.xlu0 %v9875_v61 }
 0x95d   :  { %v7175_v5 = vpop.f32.mrf.mxu0  ;;  %v7269_v56 = vpop.f32.mrf.mxu1 }
 0x95e   :  { %v4580_v42 = vadd.f32 %v7268_v50, %v7174_v32  ;;  %v9880_v19 = vadd.f32 %v9791_v43, %v4626_v8 }
 0x95f   :  { %v7176_v41 = vpop.f32.mrf.mxu0  ;;  %v7270_v60 = vpop.f32.mrf.mxu1 }
 0x960   :  { %v4627_v58 = vadd.f32 %v4580_v42, %v10607_v1  ;;  %v7177_v7 = vadd.f32 %v7176_v41, %v7175_v5  ;;  %v7271_v16 = vadd.f32 %v7270_v60, %v7269_v56  ;;  %4734 = vadd.xlane.f32.xlu1 %v9880_v19  ;;  %v10610_v5 = vld [vmem:[#allocation21_spill] sm:$0xff] }
 0x962   :  { %v4583_v18 = vadd.f32 %v7271_v16, %v7177_v7  ;;  %v9885_v29 = vadd.f32 %v9791_v43, %v4627_v58 }
 0x964   :  { %v4628_v13 = vadd.f32 %v4583_v18, %v10608_v6  ;;  %4736 = vadd.xlane.f32.xlu0 %v9885_v29 }
 0x966   :  { %v9890_v53 = vadd.f32 %v9791_v43, %v4628_v13 }
 0x968   :  { %10609 = vst [vmem:[#allocation19_spill] sm:$0xff] %v9890_v53  ;;  %4738 = vadd.xlane.f32.xlu1 %v9890_v53 }
 0x996   :  { %v7178_v14 = vpop.f32.mrf.mxu0  ;;  %v7272_v55 = vpop.f32.mrf.mxu1 }
 0x997   :  { %v4701_v9 = vpop.xlane.xlu0 %4700 }
 0x998   :  { %v4750_v26 = vmul.f32 0.0078125, %v4701_v9  ;;  %v7179_v24 = vpop.f32.mrf.mxu0  ;;  %v7273_v51 = vpop.f32.mrf.mxu1 }
 0x999   :  { %v7180_v37 = vadd.f32 %v7179_v24, %v7178_v14  ;;  %v7274_v17 = vadd.f32 %v7273_v51, %v7272_v55 }
 0x99a   :  { %v9894_v48 = vsub.f32 %v9795_v39, %v4750_v26  ;;  %v7181_v30 = vpop.f32.mrf.mxu0  ;;  %v7275_v63 = vpop.f32.mrf.mxu1 }
 0x99b   :  { %v4588_v25 = vadd.f32 %v7274_v17, %v7180_v37  ;;  %v4703_v36 = vpop.xlane.xlu1 %4702 }
 0x99c   :  { %v4751_v54 = vmul.f32 0.0078125, %v4703_v36  ;;  %v7182_v8 = vpop.f32.mrf.mxu0  ;;  %v7276_v32 = vpop.f32.mrf.mxu1  ;;  %v4800_v50 = vmul.f32 %v9894_v48, %v9894_v48 }
 0x99d   :  { %v4629_v56 = vadd.f32 %v4588_v25, %v10610_v5  ;;  %v7183_v42 = vadd.f32 %v7182_v8, %v7181_v30  ;;  %v7277_v41 = vadd.f32 %v7276_v32, %v7275_v63  ;;  %v10614_v30 = vld [vmem:[#allocation23_spill] sm:$0xff] }
 0x99e   :  { %v9900_v60 = vsub.f32 %v9800_v40, %v4751_v54  ;;  %4825 = vadd.xlane.f32.xlu0 %v4800_v50  ;;  %v7184_v1 = vpop.f32.mrf.mxu0  ;;  %v7278_v58 = vpop.f32.mrf.mxu1 }
 0x99f   :  { %v4591_v7 = vadd.f32 %v7277_v41, %v7183_v42  ;;  %v4705_v16 = vpop.xlane.xlu0 %4704  ;;  %v9903_v18 = vadd.f32 %v9791_v43, %v4629_v56  ;;  %v7821_v42 = vld [vmem:[#allocation5 + $0x3a4] ss:$16 sps:$4 sm:$0xff]   ;;  %v7824_v41 = vld [vmem:[#allocation5 + $0x3ac] ss:$16 sps:$4 sm:$0xff]  }
 0x9a0   :  { %v4752_v6 = vmul.f32 0.0078125, %v4705_v16  ;;  %v7185_v13 = vpop.f32.mrf.mxu0  ;;  %v7279_v57 = vpop.f32.mrf.mxu1  ;;  %v4801_v47 = vmul.f32 %v9900_v60, %v9900_v60  ;;  %v7819_v16 = vld [vmem:[#allocation5 + $0x3a0] ss:$16 sps:$4 sm:$0xff]   ;;  %5152 = vmatprep.subr.bf16.mxu0 %v7821_v42  ;;  %5313 = vmatprep.subr.bf16.mxu1 %v7824_v41  ;;  %v7840_v41 = vld [vmem:[#allocation5 + $0x348] ss:$16 sps:$4 sm:$0xff]  }
 0x9a1   :  { %10611 = vst [vmem:[#allocation25_spill] sm:$0xff] %v9903_v18  ;;  %v4630_v46 = vadd.f32 %v4591_v7, %v10612_v52  ;;  %v7186_v3 = vadd.f32 %v7185_v13, %v7184_v1  ;;  %v7280_v59 = vadd.f32 %v7279_v57, %v7278_v58  ;;  %v10616_v1 = vld [vmem:[#allocation24_spill] sm:$0xff]  ;;  %5153 = vmatpush1.bf16.msra.mxu0 %v7819_v16  ;;  %v7837_v42 = vld [vmem:[#allocation5 + $0x340] ss:$16 sps:$4 sm:$0xff]  }
 0x9a2   :  { %v9909_v22 = vsub.f32 %v9805_v4, %v4752_v6  ;;  %4827 = vadd.xlane.f32.xlu1 %v4801_v47  ;;  %4740 = vadd.xlane.f32.xlu0 %v9903_v18  ;;  %v7187_v23 = vpop.f32.mrf.mxu0  ;;  %v7281_v14 = vpop.f32.mrf.mxu1  ;;  %v7822_v6 = vld [vmem:[#allocation5 + $0x3a8] ss:$16 sps:$4 sm:$0xff]   ;;  %v7848_v16 = vld [vmem:[#allocation5 + $0x32c] ss:$16 sps:$4 sm:$0xff]  }
 0x9a3   :  { %v4596_v55 = vadd.f32 %v7280_v59, %v7186_v3  ;;  %v4707_v9 = vpop.xlane.xlu1 %4706  ;;  %v9913_v26 = vadd.f32 %v9791_v43, %v4630_v46  ;;  %5314 = vmatpush1.bf16.msra.mxu1 %v7822_v6  ;;  %v7827_v46 = vld [vmem:[#allocation5 + $0x384] ss:$16 sps:$4 sm:$0xff]   ;;  %v7830_v3 = vld [vmem:[#allocation5 + $0x38c] ss:$16 sps:$4 sm:$0xff]   ;;  %v7843_v6 = vld [vmem:[#allocation5 + $0x320] ss:$16 sps:$4 sm:$0xff]  }
 0x9a4   :  { %v4753_v24 = vmul.f32 0.0078125, %v4707_v9  ;;  %v7188_v51 = vpop.f32.mrf.mxu0  ;;  %v7282_v37 = vpop.f32.mrf.mxu1  ;;  %v4802_v17 = vmul.f32 %v9909_v22, %v9909_v22  ;;  %5154 = vmatprep.subr.bf16.mxu0 %v7827_v46  ;;  %5315 = vmatprep.subr.bf16.mxu1 %v7830_v3 }
 0x9a5   :  { %10613 = vst [vmem:[#allocation26_spill] sm:$0xff] %v9913_v26  ;;  %v4631_v63 = vadd.f32 %v4596_v55, %v10614_v30  ;;  %v7189_v25 = vadd.f32 %v7188_v51, %v7187_v23  ;;  %v7283_v36 = vadd.f32 %v7282_v37, %v7281_v14  ;;  %v7825_v23 = vld [vmem:[#allocation5 + $0x380] ss:$16 sps:$4 sm:$0xff]   ;;  %v7828_v14 = vld [vmem:[#allocation5 + $0x388] ss:$16 sps:$4 sm:$0xff]  }
 0x9a6   :  { %v9919_v54 = vsub.f32 %v9810_v28, %v4753_v24  ;;  %4742 = vadd.xlane.f32.xlu1 %v9913_v26  ;;  %4829 = vadd.xlane.f32.xlu0 %v4802_v17  ;;  %v4709_v8 = vpop.xlane.xlu0 %4708  ;;  %v7833_v51 = vld [vmem:[#allocation5 + $0x364] ss:$16 sps:$4 sm:$0xff]   ;;  %v7836_v37 = vld [vmem:[#allocation5 + $0x36c] ss:$16 sps:$4 sm:$0xff]   ;;  %v7831_v30 = vld [vmem:[#allocation5 + $0x360] ss:$16 sps:$4 sm:$0xff]  }
 0x9a7   :  { %v4599_v32 = vadd.f32 %v7283_v36, %v7189_v25  ;;  %v4754_v50 = vmul.f32 0.0078125, %v4709_v8  ;;  %v9923_v5 = vadd.f32 %v9791_v43, %v4631_v63  ;;  %5155 = vmatpush1.bf16.msra.mxu0 %v7825_v23  ;;  %5316 = vmatpush1.bf16.msra.mxu1 %v7828_v14  ;;  %v7834_v63 = vld [vmem:[#allocation5 + $0x368] ss:$16 sps:$4 sm:$0xff]   ;;  %v7849_v23 = vld [vmem:[#allocation5 + $0x300] ss:$16 sps:$4 sm:$0xff]  }
 0x9a8   :  { %v4803_v56 = vmul.f32 %v9919_v54, %v9919_v54  ;;  %5156 = vmatprep.subr.bf16.mxu0 %v7833_v51  ;;  %5317 = vmatprep.subr.bf16.mxu1 %v7836_v37  ;;  %v7852_v14 = vld [vmem:[#allocation5 + $0x308] ss:$16 sps:$4 sm:$0xff]  }
 0x9a9   :  { %10615 = vst [vmem:[#allocation20_spill] sm:$0xff] %v9923_v5  ;;  %v4632_v58 = vadd.f32 %v4599_v32, %v10616_v1  ;;  %v9929_v7 = vsub.f32 %v9815_v21, %v4754_v50  ;;  %v7839_v32 = vld [vmem:[#allocation5 + $0x344] ss:$16 sps:$4 sm:$0xff]   ;;  %v7842_v50 = vld [vmem:[#allocation5 + $0x34c] ss:$16 sps:$4 sm:$0xff]  }
 0x9aa   :  { %4831 = vadd.xlane.f32.xlu1 %v4803_v56  ;;  %4744 = vadd.xlane.f32.xlu0 %v9923_v5  ;;  %v4711_v13 = vpop.xlane.xlu1 %4710 }
 0x9ab   :  { %v4755_v57 = vmul.f32 0.0078125, %v4711_v13  ;;  %v9933_v47 = vadd.f32 %v9791_v43, %v4632_v58  ;;  %v4804_v52 = vmul.f32 %v9929_v7, %v9929_v7  ;;  %5157 = vmatpush1.bf16.msra.mxu0 %v7831_v30  ;;  %5318 = vmatpush1.bf16.msra.mxu1 %v7834_v63  ;;  %v7845_v58 = vld [vmem:[#allocation5 + $0x324] ss:$16 sps:$4 sm:$0xff]   ;;  %v7846_v13 = vld [vmem:[#allocation5 + $0x328] ss:$16 sps:$4 sm:$0xff]  }
 0x9ac   :  { %5158 = vmatprep.subr.bf16.mxu0 %v7839_v32  ;;  %5319 = vmatprep.subr.bf16.mxu1 %v7842_v50  ;;  %v8171_v63 = vld [vmem:[#allocation8 + $0x178] sm:$0xff]  }
 0x9ad   :  { %10617 = vst [vmem:[#allocation21_spill] sm:$0xff] %v9933_v47  ;;  %v9938_v59 = vsub.f32 %v9820_v11, %v4755_v57  ;;  %v7851_v57 = vld [vmem:[#allocation5 + $0x304] ss:$16 sps:$4 sm:$0xff]  }
 0x9ae   :  { %4746 = vadd.xlane.f32.xlu1 %v9933_v47  ;;  %4833 = vadd.xlane.f32.xlu0 %v4804_v52  ;;  %v4713_v55 = vpop.xlane.xlu0 %4712  ;;  %v7854_v52 = vld [vmem:[#allocation5 + $0x30c] ss:$16 sps:$4 sm:$0xff]  }
 0x9af   :  { %v4756_v9 = vmul.f32 0.0078125, %v4713_v55  ;;  %v4805_v24 = vmul.f32 %v9938_v59, %v9938_v59  ;;  %5159 = vmatpush1.bf16.msra.mxu0 %v7837_v42  ;;  %5320 = vmatpush1.bf16.msra.mxu1 %v7840_v41 }
 0x9b0   :  { %5160 = vmatprep.subr.bf16.mxu0 %v7845_v58  ;;  %5321 = vmatprep.subr.bf16.mxu1 %v7848_v16 }
 0x9b1   :  { %v9944_v17 = vsub.f32 %v9825_v38, %v4756_v9 }
 0x9b2   :  { %4835 = vadd.xlane.f32.xlu1 %v4805_v24  ;;  %v4715_v25 = vpop.xlane.xlu1 %4714 }
 0x9b3   :  { %v4757_v36 = vmul.f32 0.0078125, %v4715_v25  ;;  %v4806_v8 = vmul.f32 %v9944_v17, %v9944_v17  ;;  %5161 = vmatpush1.bf16.msra.mxu0 %v7843_v6  ;;  %5322 = vmatpush1.bf16.msra.mxu1 %v7846_v13  ;;  %v8172_v25 = vld [vmem:[#allocation8 + $0x1f8] sm:$0xff]  }
 0x9b4   :  { %5162 = vmatprep.subr.bf16.mxu0 %v7851_v57  ;;  %5323 = vmatprep.subr.bf16.mxu1 %v7854_v52 }
 0x9b5   :  { %v9949_v56 = vsub.f32 %v9830_v31, %v4757_v36  ;;  %4837 = vadd.xlane.f32.xlu0 %v4806_v8 }
 0x9b7   :  { %v4807_v1 = vmul.f32 %v9949_v56, %v9949_v56  ;;  %5163 = vmatpush1.bf16.msra.mxu0 %v7849_v23  ;;  %5324 = vmatpush1.bf16.msra.mxu1 %v7852_v14 }
 0x9b8   :  { %7290 = vmatprep.subr.bf16.mxu0 %v8171_v63  ;;  %7384 = vmatprep.subr.bf16.mxu1 %v8172_v25 }
 0x9b9   :  { %4839 = vadd.xlane.f32.xlu1 %v4807_v1 }
 0x9bd   :  { %v7190_v46 = vpop.f32.mrf.mxu0  ;;  %v7284_v3 = vpop.f32.mrf.mxu1 }
 0x9bf   :  { %v7191_v55 = vpop.f32.mrf.mxu0  ;;  %v7285_v9 = vpop.f32.mrf.mxu1 }
 0x9c0   :  { %v7192_v24 = vadd.f32 %v7191_v55, %v7190_v46  ;;  %v7286_v51 = vadd.f32 %v7285_v9, %v7284_v3 }
 0x9c1   :  { %v7193_v37 = vpop.f32.mrf.mxu0  ;;  %v7287_v30 = vpop.f32.mrf.mxu1 }
 0x9c2   :  { %v4604_v36 = vadd.f32 %v7286_v51, %v7192_v24 }
 0x9c3   :  { %v7194_v8 = vpop.f32.mrf.mxu0  ;;  %v7288_v32 = vpop.f32.mrf.mxu1 }
 0x9c4   :  { %v4633_v50 = vadd.f32 %v4604_v36, %v9537_v62 }
 0x9c5   :  { %v4717_v42 = vpop.xlane.xlu0 %4716 }
 0x9c6   :  { %v4758_v41 = vmul.f32 0.0078125, %v4717_v42  ;;  %v9955_v1 = vadd.f32 %v9791_v43, %v4633_v50 }
 0x9c8   :  { %v9958_v58 = vsub.f32 %v9835_v20, %v4758_v41  ;;  %4748 = vadd.xlane.f32.xlu0 %v9955_v1 }
 0x9c9   :  { %v4719_v16 = vpop.xlane.xlu1 %4718 }
 0x9ca   :  { %v4759_v6 = vmul.f32 0.0078125, %v4719_v16  ;;  %v4808_v13 = vmul.f32 %v9958_v58, %v9958_v58 }
 0x9cc   :  { %v9964_v57 = vsub.f32 %v9840_v35, %v4759_v6  ;;  %4841 = vadd.xlane.f32.xlu1 %v4808_v13 }
 0x9cd   :  { %v4721_v62 = vpop.xlane.xlu0 %4720 }
 0x9ce   :  { %v4760_v52 = vmul.f32 0.0078125, %v4721_v62  ;;  %v4809_v43 = vmul.f32 %v9964_v57, %v9964_v57 }
 0x9d0   :  { %v9969_v46 = vsub.f32 %v9845_v45, %v4760_v52  ;;  %4843 = vadd.xlane.f32.xlu0 %v4809_v43 }
 0x9d1   :  { %v4723_v3 = vpop.xlane.xlu1 %4722 }
 0x9d2   :  { %v4761_v23 = vmul.f32 0.0078125, %v4723_v3  ;;  %v4810_v14 = vmul.f32 %v9969_v46, %v9969_v46 }
 0x9d4   :  { %v9974_v55 = vsub.f32 %v9850_v44, %v4761_v23  ;;  %4845 = vadd.xlane.f32.xlu1 %v4810_v14 }
 0x9d5   :  { %v4725_v9 = vpop.xlane.xlu0 %4724 }
 0x9d6   :  { %v4762_v24 = vmul.f32 0.0078125, %v4725_v9  ;;  %v4811_v51 = vmul.f32 %v9974_v55, %v9974_v55 }
 0x9d8   :  { %v9979_v37 = vsub.f32 %v9855_v15, %v4762_v24  ;;  %4847 = vadd.xlane.f32.xlu0 %v4811_v51 }
 0x9d9   :  { %v4727_v30 = vpop.xlane.xlu1 %4726 }
 0x9da   :  { %v4763_v63 = vmul.f32 0.0078125, %v4727_v30  ;;  %v4812_v25 = vmul.f32 %v9979_v37, %v9979_v37 }
 0x9dc   :  { %v9984_v36 = vsub.f32 %v9860_v2, %v4763_v63  ;;  %4849 = vadd.xlane.f32.xlu1 %v4812_v25 }
 0x9dd   :  { %v4729_v8 = vpop.xlane.xlu0 %4728 }
 0x9de   :  { %v4764_v32 = vmul.f32 0.0078125, %v4729_v8  ;;  %v4813_v50 = vmul.f32 %v9984_v36, %v9984_v36 }
 0x9e0   :  { %v9989_v42 = vsub.f32 %v9865_v27, %v4764_v32  ;;  %4851 = vadd.xlane.f32.xlu0 %v4813_v50 }
 0x9e1   :  { %v4731_v41 = vpop.xlane.xlu1 %4730 }
 0x9e2   :  { %v4765_v16 = vmul.f32 0.0078125, %v4731_v41  ;;  %v4814_v6 = vmul.f32 %v9989_v42, %v9989_v42 }
 0x9e4   :  { %v9994_v13 = vsub.f32 %v9870_v49, %v4765_v16  ;;  %4853 = vadd.xlane.f32.xlu1 %v4814_v6 }
 0x9e5   :  { %v4733_v62 = vpop.xlane.xlu0 %4732 }
 0x9e6   :  { %v4766_v52 = vmul.f32 0.0078125, %v4733_v62  ;;  %v4815_v43 = vmul.f32 %v9994_v13, %v9994_v13 }
 0x9e8   :  { %v9999_v3 = vsub.f32 %v9875_v61, %v4766_v52  ;;  %4855 = vadd.xlane.f32.xlu0 %v4815_v43 }
 0x9e9   :  { %v4735_v23 = vpop.xlane.xlu1 %4734 }
 0x9ea   :  { %v4767_v14 = vmul.f32 0.0078125, %v4735_v23  ;;  %v4816_v9 = vmul.f32 %v9999_v3, %v9999_v3 }
 0x9ec   :  { %v10004_v24 = vsub.f32 %v9880_v19, %v4767_v14  ;;  %4857 = vadd.xlane.f32.xlu1 %v4816_v9 }
 0x9ed   :  { %v4737_v51 = vpop.xlane.xlu0 %4736 }
 0x9ee   :  { %v4768_v30 = vmul.f32 0.0078125, %v4737_v51  ;;  %v4817_v63 = vmul.f32 %v10004_v24, %v10004_v24 }
 0x9f0   :  { %v10009_v25 = vsub.f32 %v9885_v29, %v4768_v30  ;;  %4859 = vadd.xlane.f32.xlu0 %v4817_v63 }
 0x9f1   :  { %v4739_v8 = vpop.xlane.xlu1 %4738 }
 0x9f2   :  { %v4769_v32 = vmul.f32 0.0078125, %v4739_v8  ;;  %v4818_v50 = vmul.f32 %v10009_v25, %v10009_v25 }
 0x9f4   :  { %v10014_v41 = vsub.f32 %v9890_v53, %v4769_v32  ;;  %4861 = vadd.xlane.f32.xlu1 %v4818_v50 }
 0x9f6   :  { %v4819_v16 = vmul.f32 %v10014_v41, %v10014_v41 }
 0x9f8   :  { %4863 = vadd.xlane.f32.xlu0 %v4819_v16 }
 0xa27   :  { %v4826_v6 = vpop.xlane.xlu0 %4825 }
 0xa28   :  { %v4875_v62 = vmul.f32 0.0078125, %v4826_v6 }
 0xa2a   :  { %v4900_v52 = vadd.f32 1e-05, %v4875_v62 }
 0xa2b   :  { %v4828_v43 = vpop.xlane.xlu1 %4827  ;;  %v4741_v23 = vpop.xlane.xlu0 %4740 }
 0xa2c   :  { %v4876_v14 = vmul.f32 0.0078125, %v4828_v43  ;;  %v4770_v9 = vmul.f32 0.0078125, %v4741_v23  ;;  %8013 = vrsqrt.f32 %v4900_v52 }
 0xa2e   :  { %v4901_v51 = vadd.f32 1e-05, %v4876_v14  ;;  %v10019_v30 = vsub.f32 %v9903_v18, %v4770_v9 }
 0xa2f   :  { %v4743_v63 = vpop.xlane.xlu1 %4742  ;;  %v4830_v8 = vpop.xlane.xlu0 %4829 }
 0xa30   :  { %8015 = vrsqrt.f32 %v4901_v51  ;;  %v4771_v32 = vmul.f32 0.0078125, %v4743_v63  ;;  %v4877_v50 = vmul.f32 0.0078125, %v4830_v8  ;;  %v4820_v16 = vmul.f32 %v10019_v30, %v10019_v30 }
 0xa32   :  { %v10024_v6 = vsub.f32 %v9913_v26, %v4771_v32  ;;  %v4902_v62 = vadd.f32 1e-05, %v4877_v50  ;;  %4865 = vadd.xlane.f32.xlu1 %v4820_v16 }
 0xa33   :  { %v4832_v43 = vpop.xlane.xlu1 %4831  ;;  %v4745_v23 = vpop.xlane.xlu0 %4744 }
 0xa34   :  { %v4878_v52 = vmul.f32 0.0078125, %v4832_v43  ;;  %v4772_v14 = vmul.f32 0.0078125, %v4745_v23  ;;  %v4821_v9 = vmul.f32 %v10024_v6, %v10024_v6  ;;  %8017 = vrsqrt.f32 %v4902_v62 }
 0xa36   :  { %v4903_v18 = vadd.f32 1e-05, %v4878_v52  ;;  %v10029_v51 = vsub.f32 %v9923_v5, %v4772_v14  ;;  %4867 = vadd.xlane.f32.xlu0 %v4821_v9 }
 0xa37   :  { %v4747_v63 = vpop.xlane.xlu1 %4746  ;;  %v4834_v8 = vpop.xlane.xlu0 %4833 }
 0xa38   :  { %8019 = vrsqrt.f32 %v4903_v18  ;;  %v4773_v32 = vmul.f32 0.0078125, %v4747_v63  ;;  %v4879_v26 = vmul.f32 0.0078125, %v4834_v8  ;;  %v4822_v50 = vmul.f32 %v10029_v51, %v10029_v51 }
 0xa39   :  { %v8014_v23 = vpop.eup %8013 }
 0xa3a   :  { %v10034_v16 = vsub.f32 %v9933_v47, %v4773_v32  ;;  %v4904_v43 = vadd.f32 1e-05, %v4879_v26  ;;  %4869 = vadd.xlane.f32.xlu1 %v4822_v50  ;;  %v4950_v5 = vmul.f32 %v8014_v23, %v9894_v48  ;;  %v8173_v48 = vld [vmem:[#allocation8 + $0x138] sm:$0xff]  }
 0xa3b   :  { %v4836_v62 = vpop.xlane.xlu1 %4835 }
 0xa3c   :  { %v4880_v52 = vmul.f32 0.0078125, %v4836_v62  ;;  %v4823_v14 = vmul.f32 %v10034_v16, %v10034_v16  ;;  %8021 = vrsqrt.f32 %v4904_v43 }
 0xa3d   :  { %v8016_v9 = vpop.eup %8015 }
 0xa3e   :  { %v4951_v18 = vmul.f32 %v8016_v9, %v9900_v60  ;;  %v4905_v63 = vadd.f32 1e-05, %v4880_v52  ;;  %4871 = vadd.xlane.f32.xlu0 %v4823_v14  ;;  %v4838_v8 = vpop.xlane.xlu0 %4837  ;;  %v8174_v60 = vld [vmem:[#allocation8 + $0x1b8] sm:$0xff]   ;;  %v8175_v52 = vld [vmem:[#allocation8 + $0x170] sm:$0xff]  }
 0xa3f   :  { %v4881_v53 = vmul.f32 0.0078125, %v4838_v8  ;;  %v8179_v8 = vld [vmem:[#allocation8 + $0x168] sm:$0xff]  }
 0xa40   :  { %8023 = vrsqrt.f32 %v4905_v63  ;;  %v4975_v32 = vpack.c.bf16 %v4951_v18, %v4950_v5  ;;  %v8176_v5 = vld [vmem:[#allocation8 + $0x1f0] sm:$0xff]  }
 0xa41   :  { %v4906_v26 = vadd.f32 1e-05, %v4881_v53  ;;  %v8018_v62 = vpop.eup %8017  ;;  %v8177_v18 = vld [vmem:[#allocation8 + $0x130] sm:$0xff]  }
 0xa42   :  { %5181 = vmatmul.mubr.bf16.vlgmr.msra.gmra.mxu0 %v4975_v32  ;;  %5342 = vmatmul.mubr.bf16.vlgmr.msra.gmra.mxu1 %v4975_v32  ;;  %v4840_v50 = vpop.xlane.xlu1 %4839  ;;  %v4952_v53 = vmul.f32 %v8018_v62, %v9909_v22  ;;  %v8178_v63 = vld [vmem:[#allocation8 + $0x1b0] sm:$0xff]   ;;  %v8180_v32 = vld [vmem:[#allocation8 + $0x1e8] sm:$0xff]   ;;  %v8184_v62 = vld [vmem:[#allocation8 + $0x1e0] sm:$0xff]  }
 0xa43   :  { %v4882_v47 = vmul.f32 0.0078125, %v4840_v50  ;;  %5190 = vmatprep.mubr.bf16.mxu0 %v10592_v33  ;;  %5351 = vmatprep.mubr.bf16.mxu1 %v10592_v33  ;;  %8025 = vrsqrt.f32 %v4906_v26  ;;  %v8181_v22 = vld [vmem:[#allocation8 + $0x128] sm:$0xff]   ;;  %v8183_v50 = vld [vmem:[#allocation8 + $0x160] sm:$0xff]  }
 0xa44   :  { %7291 = vmatpush3.bf16.msra.mxu0 %v8173_v48  ;;  %7385 = vmatpush3.bf16.msra.mxu1 %v8174_v60 }
 0xa45   :  { %v8020_v43 = vpop.eup %8019  ;;  %v4907_v23 = vadd.f32 1e-05, %v4882_v47  ;;  %7292 = vmatprep.subr.bf16.mxu0 %v8175_v52  ;;  %7386 = vmatprep.subr.bf16.mxu1 %v8176_v5  ;;  %v8186_v52 = vld [vmem:[#allocation8 + $0x1a0] sm:$0xff]  }
 0xa46   :  { %v4953_v14 = vmul.f32 %v8020_v43, %v9919_v54  ;;  %v8182_v54 = vld [vmem:[#allocation8 + $0x1a8] sm:$0xff]  }
 0xa47   :  { %8027 = vrsqrt.f32 %v4907_v23  ;;  %v8185_v23 = vld [vmem:[#allocation8 + $0x120] sm:$0xff]  }
 0xa48   :  { %v4976_v9 = vpack.c.bf16 %v4953_v14, %v4952_v53  ;;  %7293 = vmatpush3.bf16.msra.mxu0 %v8177_v18  ;;  %7387 = vmatpush3.bf16.msra.mxu1 %v8178_v63  ;;  %v8187_v53 = vld [vmem:[#allocation8 + $0x158] sm:$0xff]  }
 0xa49   :  { %7294 = vmatprep.subr.bf16.mxu0 %v8179_v8  ;;  %7388 = vmatprep.subr.bf16.mxu1 %v8180_v32  ;;  %v8022_v47 = vpop.eup %8021  ;;  %v8188_v14 = vld [vmem:[#allocation8 + $0x1d8] sm:$0xff]  }
 0xa4a   :  { %5191 = vmatmul.mubr.bf16.gmra.mxu0 %v4976_v9  ;;  %5352 = vmatmul.mubr.bf16.gmra.mxu1 %v4976_v9  ;;  %v4954_v48 = vmul.f32 %v8022_v47, %v9929_v7  ;;  %v8189_v63 = vld [vmem:[#allocation8 + $0x118] sm:$0xff]  }
 0xa4b   :  { %5200 = vmatprep.mubr.bf16.mxu0 %v10592_v33  ;;  %5361 = vmatprep.mubr.bf16.mxu1 %v10592_v33  ;;  %v8190_v8 = vld [vmem:[#allocation8 + $0x198] sm:$0xff]  }
 0xa4c   :  { %7295 = vmatpush3.bf16.msra.mxu0 %v8181_v22  ;;  %7389 = vmatpush3.bf16.msra.mxu1 %v8182_v54  ;;  %v8191_v54 = vld [vmem:[#allocation8 + $0x150] sm:$0xff]  }
 0xa4d   :  { %v8024_v26 = vpop.eup %8023  ;;  %7296 = vmatprep.subr.bf16.mxu0 %v8183_v50  ;;  %7390 = vmatprep.subr.bf16.mxu1 %v8184_v62 }
 0xa4e   :  { %v4955_v60 = vmul.f32 %v8024_v26, %v9938_v59  ;;  %v8192_v26 = vld [vmem:[#allocation8 + $0x1d0] sm:$0xff]  }
 0xa50   :  { %v4977_v43 = vpack.c.bf16 %v4955_v60, %v4954_v48  ;;  %7297 = vmatpush3.bf16.msra.mxu0 %v8185_v23  ;;  %7391 = vmatpush3.bf16.msra.mxu1 %v8186_v52  ;;  %v8026_v9 = vpop.eup %8025  ;;  %v8194_v52 = vld [vmem:[#allocation8 + $0x190] sm:$0xff]  }
 0xa51   :  { %v4749_v5 = vpop.xlane.xlu0 %4748  ;;  %7298 = vmatprep.subr.bf16.mxu0 %v8187_v53  ;;  %7392 = vmatprep.subr.bf16.mxu1 %v8188_v14  ;;  %v4956_v47 = vmul.f32 %v8026_v9, %v9944_v17  ;;  %v8196_v53 = vld [vmem:[#allocation8 + $0x1c8] sm:$0xff]  }
 0xa52   :  { %v4774_v18 = vmul.f32 0.0078125, %v4749_v5  ;;  %5201 = vmatmul.mubr.bf16.gmra.mxu0 %v4977_v43  ;;  %5362 = vmatmul.mubr.bf16.gmra.mxu1 %v4977_v43  ;;  %v8193_v43 = vld [vmem:[#allocation8 + $0x110] sm:$0xff]   ;;  %v8195_v5 = vld [vmem:[#allocation8 + $0x148] sm:$0xff]  }
 0xa53   :  { %5210 = vmatprep.mubr.bf16.mxu0 %v10592_v33  ;;  %5371 = vmatprep.mubr.bf16.mxu1 %v10592_v33  ;;  %v8197_v14 = vld [vmem:[#allocation8 + $0x108] sm:$0xff]  }
 0xa54   :  { %v8028_v7 = vpop.eup %8027  ;;  %v10051_v59 = vsub.f32 %v9955_v1, %v4774_v18  ;;  %7299 = vmatpush3.bf16.msra.mxu0 %v8189_v63  ;;  %7393 = vmatpush3.bf16.msra.mxu1 %v8190_v8  ;;  %v8198_v18 = vld [vmem:[#allocation8 + $0x188] sm:$0xff]   ;;  %v8200_v8 = vld [vmem:[#allocation8 + $0x1c0] sm:$0xff]  }
 0xa55   :  { %v4842_v32 = vpop.xlane.xlu1 %4841  ;;  %v4957_v22 = vmul.f32 %v8028_v7, %v9949_v56  ;;  %7300 = vmatprep.subr.bf16.mxu0 %v8191_v54  ;;  %7394 = vmatprep.subr.bf16.mxu1 %v8192_v26  ;;  %v8199_v7 = vld [vmem:[#allocation8 + $0x140] sm:$0xff]  }
 0xa56   :  { %v4883_v50 = vmul.f32 0.0078125, %v4842_v32  ;;  %v4824_v62 = vmul.f32 %v10051_v59, %v10051_v59  ;;  %v8202_v54 = vld [vmem:[#allocation8 + $0x180] sm:$0xff]  }
 0xa57   :  { %v4978_v48 = vpack.c.bf16 %v4957_v22, %v4956_v47  ;;  %v8201_v47 = vld [vmem:[#allocation8 + $0x100] sm:$0xff]  }
 0xa58   :  { %v4908_v60 = vadd.f32 1e-05, %v4883_v50  ;;  %4873 = vadd.xlane.f32.xlu1 %v4824_v62  ;;  %7301 = vmatpush3.bf16.msra.mxu0 %v8193_v43 }
 0xa59   :  { %v4844_v23 = vpop.xlane.xlu0 %4843  ;;  %7395 = vmatpush3.bf16.msra.mxu1 %v8194_v52  ;;  %7302 = vmatprep.subr.bf16.mxu0 %v8195_v5 }
 0xa5a   :  { %v4884_v17 = vmul.f32 0.0078125, %v4844_v23  ;;  %5211 = vmatmul.mubr.bf16.gmra.mxu0 %v4978_v48  ;;  %5372 = vmatmul.mubr.bf16.gmra.mxu1 %v4978_v48  ;;  %8029 = vrsqrt.f32 %v4908_v60 }
 0xa5b   :  { %5220 = vmatprep.mubr.bf16.mxu0 %v10592_v33  ;;  %5381 = vmatprep.mubr.bf16.mxu1 %v10592_v33 }
 0xa5c   :  { %v4909_v56 = vadd.f32 1e-05, %v4884_v17  ;;  %7396 = vmatprep.subr.bf16.mxu1 %v8196_v53  ;;  %7303 = vmatpush3.bf16.msra.mxu0 %v8197_v14 }
 0xa5d   :  { %v4846_v9 = vpop.xlane.xlu1 %4845  ;;  %7397 = vmatpush3.bf16.msra.mxu1 %v8198_v18  ;;  %7304 = vmatprep.subr.bf16.mxu0 %v8199_v7 }
 0xa5e   :  { %8031 = vrsqrt.f32 %v4909_v56  ;;  %v4885_v63 = vmul.f32 0.0078125, %v4846_v9  ;;  %7398 = vmatprep.subr.bf16.mxu1 %v8200_v8 }
 0xa60   :  { %v4910_v32 = vadd.f32 1e-05, %v4885_v63  ;;  %7305 = vmatpush3.bf16.msra.mxu0 %v8201_v47 }
 0xa61   :  { %v4848_v22 = vpop.xlane.xlu0 %4847  ;;  %7399 = vmatpush3.bf16.msra.mxu1 %v8202_v54 }
 0xa62   :  { %v4886_v26 = vmul.f32 0.0078125, %v4848_v22  ;;  %8033 = vrsqrt.f32 %v4910_v32 }
 0xa64   :  { %v4911_v50 = vadd.f32 1e-05, %v4886_v26 }
 0xa65   :  { %v4850_v62 = vpop.xlane.xlu1 %4849 }
 0xa66   :  { %8035 = vrsqrt.f32 %v4911_v50  ;;  %v4887_v48 = vmul.f32 0.0078125, %v4850_v62 }
 0xa67   :  { %v8030_v43 = vpop.eup %8029 }
 0xa68   :  { %v4912_v60 = vadd.f32 1e-05, %v4887_v48  ;;  %v4958_v56 = vmul.f32 %v8030_v43, %v9958_v58 }
 0xa69   :  { %v4852_v23 = vpop.xlane.xlu0 %4851 }
 0xa6a   :  { %v4888_v52 = vmul.f32 0.0078125, %v4852_v23  ;;  %8037 = vrsqrt.f32 %v4912_v60 }
 0xa6b   :  { %v8032_v5 = vpop.eup %8031 }
 0xa6c   :  { %v4913_v17 = vadd.f32 1e-05, %v4888_v52  ;;  %v4959_v53 = vmul.f32 %v8032_v5, %v9964_v57 }
 0xa6d   :  { %v4854_v14 = vpop.xlane.xlu1 %4853 }
 0xa6e   :  { %8039 = vrsqrt.f32 %v4913_v17  ;;  %v4889_v9 = vmul.f32 0.0078125, %v4854_v14  ;;  %v4979_v18 = vpack.c.bf16 %v4959_v53, %v4958_v56 }
 0xa6f   :  { %v8034_v63 = vpop.eup %8033 }
 0xa70   :  { %v4914_v7 = vadd.f32 1e-05, %v4889_v9  ;;  %5221 = vmatmul.mubr.bf16.gmra.mxu0 %v4979_v18  ;;  %5382 = vmatmul.mubr.bf16.gmra.mxu1 %v4979_v18  ;;  %v4960_v58 = vmul.f32 %v8034_v63, %v9969_v46 }
 0xa71   :  { %v4856_v8 = vpop.xlane.xlu0 %4855  ;;  %5230 = vmatprep.mubr.bf16.mxu0 %v10592_v33  ;;  %5391 = vmatprep.mubr.bf16.mxu1 %v10592_v33 }
 0xa72   :  { %v4890_v32 = vmul.f32 0.0078125, %v4856_v8  ;;  %8041 = vrsqrt.f32 %v4914_v7 }
 0xa73   :  { %v8036_v47 = vpop.eup %8035 }
 0xa74   :  { %v4915_v22 = vadd.f32 1e-05, %v4890_v32  ;;  %v4961_v57 = vmul.f32 %v8036_v47, %v9974_v55 }
 0xa75   :  { %v4858_v54 = vpop.xlane.xlu1 %4857 }
 0xa76   :  { %8043 = vrsqrt.f32 %v4915_v22  ;;  %v4891_v26 = vmul.f32 0.0078125, %v4858_v54  ;;  %v4980_v50 = vpack.c.bf16 %v4961_v57, %v4960_v58 }
 0xa77   :  { %v8038_v48 = vpop.eup %8037 }
 0xa78   :  { %v4916_v62 = vadd.f32 1e-05, %v4891_v26  ;;  %5231 = vmatmul.mubr.bf16.gmra.mxu0 %v4980_v50  ;;  %5392 = vmatmul.mubr.bf16.gmra.mxu1 %v4980_v50  ;;  %v4962_v46 = vmul.f32 %v8038_v48, %v9979_v37 }
 0xa79   :  { %v4860_v60 = vpop.xlane.xlu0 %4859  ;;  %5240 = vmatprep.mubr.bf16.mxu0 %v10592_v33  ;;  %5401 = vmatprep.mubr.bf16.mxu1 %v10592_v33 }
 0xa7a   :  { %v4892_v43 = vmul.f32 0.0078125, %v4860_v60  ;;  %8045 = vrsqrt.f32 %v4916_v62 }
 0xa7b   :  { %v8040_v23 = vpop.eup %8039 }
 0xa7c   :  { %v4917_v52 = vadd.f32 1e-05, %v4892_v43  ;;  %v4963_v55 = vmul.f32 %v8040_v23, %v9984_v36 }
 0xa7d   :  { %v4862_v5 = vpop.xlane.xlu1 %4861 }
 0xa7e   :  { %8047 = vrsqrt.f32 %v4917_v52  ;;  %v4893_v17 = vmul.f32 0.0078125, %v4862_v5  ;;  %v4981_v56 = vpack.c.bf16 %v4963_v55, %v4962_v46 }
 0xa7f   :  { %v8042_v14 = vpop.eup %8041 }
 0xa80   :  { %v4918_v53 = vadd.f32 1e-05, %v4893_v17  ;;  %5241 = vmatmul.mubr.bf16.gmra.mxu0 %v4981_v56  ;;  %5402 = vmatmul.mubr.bf16.gmra.mxu1 %v4981_v56  ;;  %v4964_v37 = vmul.f32 %v8042_v14, %v9989_v42 }
 0xa81   :  { %v4864_v9 = vpop.xlane.xlu0 %4863  ;;  %5250 = vmatprep.mubr.bf16.mxu0 %v10592_v33  ;;  %5411 = vmatprep.mubr.bf16.mxu1 %v10592_v33 }
 0xa82   :  { %v4894_v18 = vmul.f32 0.0078125, %v4864_v9  ;;  %8049 = vrsqrt.f32 %v4918_v53 }
 0xa83   :  { %v8044_v7 = vpop.eup %8043 }
 0xa84   :  { %v4919_v63 = vadd.f32 1e-05, %v4894_v18  ;;  %v4965_v36 = vmul.f32 %v8044_v7, %v9994_v13 }
 0xa86   :  { %8051 = vrsqrt.f32 %v4919_v63  ;;  %v4982_v8 = vpack.c.bf16 %v4965_v36, %v4964_v37 }
 0xa87   :  { %v8046_v32 = vpop.eup %8045 }
 0xa88   :  { %5251 = vmatmul.mubr.bf16.gmra.mxu0 %v4982_v8  ;;  %5412 = vmatmul.mubr.bf16.gmra.mxu1 %v4982_v8  ;;  %v4966_v22 = vmul.f32 %v8046_v32, %v9999_v3 }
 0xa89   :  { %5260 = vmatprep.mubr.bf16.mxu0 %v10592_v33  ;;  %5421 = vmatprep.mubr.bf16.mxu1 %v10592_v33 }
 0xa8b   :  { %v8048_v47 = vpop.eup %8047 }
 0xa8c   :  { %v4967_v58 = vmul.f32 %v8048_v47, %v10004_v24 }
 0xa8e   :  { %v4983_v57 = vpack.c.bf16 %v4967_v58, %v4966_v22  ;;  %v4699_v22 = vld [vmem:[#allocation7 + $0xc] sm:$0xf] }
 0xa8f   :  { %v8050_v42 = vpop.eup %8049  ;;  %v5530_v58 = vrot.slane %v4699_v22, %v8747_v0 }
 0xa90   :  { %5261 = vmatmul.mubr.bf16.gmra.mxu0 %v4983_v57  ;;  %5422 = vmatmul.mubr.bf16.gmra.mxu1 %v4983_v57  ;;  %v4968_v54 = vmul.f32 %v8050_v42, %v10009_v25  ;;  %v5538_v57 = vrot.slane %v4699_v22, %v10605_v34 }
 0xa91   :  { %5270 = vmatprep.mubr.bf16.mxu0 %v10592_v33  ;;  %5431 = vmatprep.mubr.bf16.mxu1 %v10592_v33 }
 0xa93   :  { %v8052_v13 = vpop.eup %8051 }
 0xa94   :  { %v4969_v26 = vmul.f32 %v8052_v13, %v10014_v41 }
 0xa96   :  { %v4984_v50 = vpack.c.bf16 %v4969_v26, %v4968_v54  ;;  %v5544_v54 = vpack.c.bf16 %v5530_v58, %v5530_v58  ;;  %v5546_v26 = vpack.c.bf16 %v5538_v57, %v5538_v57 }
 0xa98   :  { %5271 = vmatmul.mubr.bf16.gmra.mxu0 %v4984_v50  ;;  %5432 = vmatmul.mubr.bf16.gmra.mxu1 %v4984_v50 }
 0xa99   :  { %5280 = vmatprep.mubr.bf16.mxu0 %v10592_v33  ;;  %5441 = vmatprep.mubr.bf16.mxu1 %v10592_v33 }
 0xabb   :  { %v4866_v3 = vpop.xlane.xlu1 %4865 }
 0xabc   :  { %v4895_v24 = vmul.f32 0.0078125, %v4866_v3 }
 0xabe   :  { %v4920_v62 = vadd.f32 1e-05, %v4895_v24 }
 0xabf   :  { %v4868_v48 = vpop.xlane.xlu0 %4867 }
 0xac0   :  { %v4896_v60 = vmul.f32 0.0078125, %v4868_v48  ;;  %8053 = vrsqrt.f32 %v4920_v62  ;;  %v5555_v62 = vpack.i.b16 %v5544_v54, %v5544_v54  ;;  %v5569_v48 = vpack.i.b16 %v5546_v26, %v5546_v26 }
 0xac2   :  { %v4921_v43 = vadd.f32 1e-05, %v4896_v60 }
 0xac3   :  { %v4870_v23 = vpop.xlane.xlu1 %4869 }
 0xac4   :  { %8055 = vrsqrt.f32 %v4921_v43  ;;  %v4897_v52 = vmul.f32 0.0078125, %v4870_v23 }
 0xac6   :  { %v4922_v25 = vadd.f32 1e-05, %v4897_v52 }
 0xac7   :  { %v4872_v46 = vpop.xlane.xlu0 %4871 }
 0xac8   :  { %v4898_v41 = vmul.f32 0.0078125, %v4872_v46  ;;  %8057 = vrsqrt.f32 %v4922_v25  ;;  %v10103_v46 = vrot.slane %v5555_v62, %v8745_v12 }
 0xaca   :  { %v4923_v55 = vadd.f32 1e-05, %v4898_v41  ;;  %v10106_v41 = vrot.slane %v5569_v48, %v8745_v12 }
 0xacc   :  { %8059 = vrsqrt.f32 %v4923_v55 }
 0xacd   :  { %v8054_v5 = vpop.eup %8053 }
 0xace   :  { %v4970_v56 = vmul.f32 %v8054_v5, %v10019_v30 }
 0xad1   :  { %v8056_v17 = vpop.eup %8055 }
 0xad2   :  { %v4971_v53 = vmul.f32 %v8056_v17, %v10024_v6 }
 0xad4   :  { %v4985_v14 = vpack.c.bf16 %v4971_v53, %v4970_v56 }
 0xad5   :  { %v8058_v9 = vpop.eup %8057 }
 0xad6   :  { %5281 = vmatmul.mubr.bf16.gmra.mxu0 %v4985_v14  ;;  %5442 = vmatmul.mubr.bf16.gmra.mxu1 %v4985_v14  ;;  %v4972_v7 = vmul.f32 %v8058_v9, %v10029_v51  ;;  %v5526_v51 = vrot.slane %v4699_v22, %v8745_v12 }
 0xad7   :  { %5290 = vmatprep.mubr.bf16.mxu0 %v10592_v33  ;;  %5451 = vmatprep.mubr.bf16.mxu1 %v10592_v33 }
 0xad8   :  { %v5543_v42 = vpack.c.bf16 %v5526_v51, %v5526_v51 }
 0xad9   :  { %v8060_v18 = vpop.eup %8059 }
 0xada   :  { %v4973_v63 = vmul.f32 %v8060_v18, %v10034_v16  ;;  %v5534_v16 = vrot.slane %v4699_v22, %v8767_v10  ;;  %v5548_v24 = vpack.i.b16 %v5543_v42, %v5543_v42 }
 0xadc   :  { %v4986_v37 = vpack.c.bf16 %v4973_v63, %v4972_v7  ;;  %v5545_v13 = vpack.c.bf16 %v5534_v16, %v5534_v16  ;;  %v10097_v52 = vrot.slane %v5548_v24, %v8745_v12 }
 0xade   :  { %5291 = vmatmul.mubr.bf16.gmra.mxu0 %v4986_v37  ;;  %5452 = vmatmul.mubr.bf16.gmra.mxu1 %v4986_v37 }
 0xadf   :  { %5300 = vmatprep.mubr.bf16.mxu0 %v10592_v33  ;;  %5461 = vmatprep.mubr.bf16.mxu1 %v10592_v33 }
 0xae1   :  { %v4874_v30 = vpop.xlane.xlu1 %4873 }
 0xae2   :  { %v4899_v6 = vmul.f32 0.0078125, %v4874_v30 }
 0xae4   :  { %v4924_v36 = vadd.f32 1e-05, %v4899_v6 }
 0xae6   :  { %8061 = vrsqrt.f32 %v4924_v36 }
 0xaf3   :  { %v8062_v8 = vpop.eup %8061 }
 0xaf4   :  { %v4974_v32 = vmul.f32 %v8062_v8, %v10051_v59  ;;  %v5562_v59 = vpack.i.b16 %v5545_v13, %v5545_v13 }
 0xaf6   :  { %v4987_v47 = vpack.c.bf16 %v4974_v32, %v4974_v32  ;;  %v10100_v0 = vrot.slane %v5562_v59, %v8745_v12 }
 0xaf8   :  { %5301 = vmatmul.mubr.bf16.gmra.mxu0 %v4987_v47  ;;  %5462 = vmatmul.mubr.bf16.gmra.mxu1 %v4987_v47 }
 0xb02   :  { %v5182_v50 = vpop.f32.mrf.mxu0  ;;  %v5343_v3 = vpop.f32.mrf.mxu1 }
 0xb04   :  { %v5184_v60 = vpop.f32.mrf.mxu0  ;;  %v5345_v43 = vpop.f32.mrf.mxu1 }
 0xb06   :  { %v5186_v23 = vpop.f32.mrf.mxu0  ;;  %v5347_v10 = vpop.f32.mrf.mxu1 }
 0xb07   :  { %v5470_v34 = vpack.c.bf16 %v5186_v23, %v5182_v50  ;;  %v5472_v25 = vpack.c.bf16 %v5347_v10, %v5343_v3 }
 0xb08   :  { %v5188_v55 = vpop.f32.mrf.mxu0  ;;  %v5349_v5 = vpop.f32.mrf.mxu1 }
 0xb09   :  { %v5471_v17 = vpack.c.bf16 %v5188_v55, %v5184_v60  ;;  %v5473_v56 = vpack.c.bf16 %v5349_v5, %v5345_v43  ;;  %v5575_v53 = vadd.bf16 %v10097_v52, %v5470_v34  ;;  %v5577_v14 = vadd.bf16 %v10100_v0, %v5472_v25 }
 0xb0a   :  { %v5192_v9 = vpop.f32.mrf.mxu0  ;;  %v5353_v18 = vpop.f32.mrf.mxu1 }
 0xb0b   :  { %v5576_v7 = vadd.bf16 %v10103_v46, %v5471_v17  ;;  %v5578_v63 = vadd.bf16 %v10106_v41, %v5473_v56  ;;  %v5627_v36 = vmax.bf16 %v10592_v33, %v5575_v53  ;;  %v5629_v8 = vmax.bf16 %v10592_v33, %v5577_v14 }
 0xb0c   :  { %v5194_v37 = vpop.f32.mrf.mxu0  ;;  %v5355_v30 = vpop.f32.mrf.mxu1 }
 0xb0d   :  { %v5628_v6 = vmax.bf16 %v10592_v33, %v5576_v7  ;;  %v5630_v12 = vmax.bf16 %v10592_v33, %v5578_v63 }
 0xb0e   :  { %v5196_v32 = vpop.f32.mrf.mxu0  ;;  %v5357_v47 = vpop.f32.mrf.mxu1 }
 0xb0f   :  { %v5474_v22 = vpack.c.bf16 %v5196_v32, %v5192_v9  ;;  %v5476_v51 = vpack.c.bf16 %v5357_v47, %v5353_v18  ;;  %5711 = vmatprep.mubr.bf16.mxu0 %v5628_v6  ;;  %5847 = vmatprep.mubr.bf16.mxu1 %v5630_v12 }
 0xb10   :  { %v5198_v16 = vpop.f32.mrf.mxu0  ;;  %v5359_v58 = vpop.f32.mrf.mxu1  ;;  %5712 = vmatmul.mubr.bf16.vlgmr.msra.gmra.mxu0 %v5627_v36  ;;  %5848 = vmatmul.mubr.bf16.vlgmr.msra.gmra.mxu1 %v5629_v8 }
 0xb11   :  { %v5475_v57 = vpack.c.bf16 %v5198_v16, %v5194_v37  ;;  %v5477_v42 = vpack.c.bf16 %v5359_v58, %v5355_v30  ;;  %v5579_v13 = vadd.bf16 %v10097_v52, %v5474_v22  ;;  %v5581_v54 = vadd.bf16 %v10100_v0, %v5476_v51 }
 0xb12   :  { %v5202_v26 = vpop.f32.mrf.mxu0  ;;  %v5363_v50 = vpop.f32.mrf.mxu1 }
 0xb13   :  { %v5580_v3 = vadd.bf16 %v10103_v46, %v5475_v57  ;;  %v5582_v24 = vadd.bf16 %v10106_v41, %v5477_v42  ;;  %v5631_v43 = vmax.bf16 %v10592_v33, %v5579_v13  ;;  %v5633_v23 = vmax.bf16 %v10592_v33, %v5581_v54 }
 0xb14   :  { %v5204_v59 = vpop.f32.mrf.mxu0  ;;  %v5365_v62 = vpop.f32.mrf.mxu1 }
 0xb15   :  { %v5632_v48 = vmax.bf16 %v10592_v33, %v5580_v3  ;;  %v5634_v60 = vmax.bf16 %v10592_v33, %v5582_v24 }
 0xb16   :  { %v5206_v10 = vpop.f32.mrf.mxu0  ;;  %v5367_v34 = vpop.f32.mrf.mxu1 }
 0xb17   :  { %v5478_v25 = vpack.c.bf16 %v5206_v10, %v5202_v26  ;;  %v5480_v55 = vpack.c.bf16 %v5367_v34, %v5363_v50  ;;  %5719 = vmatprep.mubr.bf16.mxu0 %v5632_v48  ;;  %5855 = vmatprep.mubr.bf16.mxu1 %v5634_v60 }
 0xb18   :  { %v5208_v5 = vpop.f32.mrf.mxu0  ;;  %v5369_v17 = vpop.f32.mrf.mxu1  ;;  %5720 = vmatmul.mubr.bf16.gmra.mxu0 %v5631_v43  ;;  %5856 = vmatmul.mubr.bf16.gmra.mxu1 %v5633_v23 }
 0xb19   :  { %v5479_v56 = vpack.c.bf16 %v5208_v5, %v5204_v59  ;;  %v5481_v53 = vpack.c.bf16 %v5369_v17, %v5365_v62  ;;  %v5583_v14 = vadd.bf16 %v10097_v52, %v5478_v25  ;;  %v5585_v9 = vadd.bf16 %v10100_v0, %v5480_v55 }
 0xb1a   :  { %v5212_v18 = vpop.f32.mrf.mxu0  ;;  %v5373_v7 = vpop.f32.mrf.mxu1 }
 0xb1b   :  { %v5584_v63 = vadd.bf16 %v10103_v46, %v5479_v56  ;;  %v5586_v37 = vadd.bf16 %v10106_v41, %v5481_v53  ;;  %v5635_v8 = vmax.bf16 %v10592_v33, %v5583_v14  ;;  %v5637_v32 = vmax.bf16 %v10592_v33, %v5585_v9 }
 0xb1c   :  { %v5214_v30 = vpop.f32.mrf.mxu0  ;;  %v5375_v6 = vpop.f32.mrf.mxu1 }
 0xb1d   :  { %v5636_v12 = vmax.bf16 %v10592_v33, %v5584_v63  ;;  %v5638_v36 = vmax.bf16 %v10592_v33, %v5586_v37 }
 0xb1e   :  { %v5216_v47 = vpop.f32.mrf.mxu0  ;;  %v5377_v22 = vpop.f32.mrf.mxu1 }
 0xb1f   :  { %v5482_v51 = vpack.c.bf16 %v5216_v47, %v5212_v18  ;;  %v5484_v16 = vpack.c.bf16 %v5377_v22, %v5373_v7  ;;  %5727 = vmatprep.mubr.bf16.mxu0 %v5636_v12  ;;  %5863 = vmatprep.mubr.bf16.mxu1 %v5638_v36 }
 0xb20   :  { %v5218_v58 = vpop.f32.mrf.mxu0  ;;  %v5379_v57 = vpop.f32.mrf.mxu1  ;;  %5728 = vmatmul.mubr.bf16.gmra.mxu0 %v5635_v8  ;;  %5864 = vmatmul.mubr.bf16.gmra.mxu1 %v5637_v32 }
 0xb21   :  { %v5483_v42 = vpack.c.bf16 %v5218_v58, %v5214_v30  ;;  %v5485_v13 = vpack.c.bf16 %v5379_v57, %v5375_v6  ;;  %v5587_v54 = vadd.bf16 %v10097_v52, %v5482_v51  ;;  %v5589_v26 = vadd.bf16 %v10100_v0, %v5484_v16 }
 0xb23   :  { %v5588_v50 = vadd.bf16 %v10103_v46, %v5483_v42  ;;  %v5590_v3 = vadd.bf16 %v10106_v41, %v5485_v13  ;;  %v5639_v62 = vmax.bf16 %v10592_v33, %v5587_v54  ;;  %v5641_v48 = vmax.bf16 %v10592_v33, %v5589_v26 }
 0xb25   :  { %v5640_v24 = vmax.bf16 %v10592_v33, %v5588_v50  ;;  %v5642_v59 = vmax.bf16 %v10592_v33, %v5590_v3 }
 0xb27   :  { %5735 = vmatprep.mubr.bf16.mxu0 %v5640_v24  ;;  %5871 = vmatprep.mubr.bf16.mxu1 %v5642_v59 }
 0xb28   :  { %5736 = vmatmul.mubr.bf16.gmra.mxu0 %v5639_v62  ;;  %5872 = vmatmul.mubr.bf16.gmra.mxu1 %v5641_v48 }
 0xb30   :  { %v5222_v60 = vpop.f32.mrf.mxu0  ;;  %v5383_v43 = vpop.f32.mrf.mxu1 }
 0xb32   :  { %v5224_v23 = vpop.f32.mrf.mxu0  ;;  %v5385_v10 = vpop.f32.mrf.mxu1 }
 0xb34   :  { %v5226_v34 = vpop.f32.mrf.mxu0  ;;  %v5387_v25 = vpop.f32.mrf.mxu1 }
 0xb35   :  { %v5486_v55 = vpack.c.bf16 %v5226_v34, %v5222_v60  ;;  %v5488_v5 = vpack.c.bf16 %v5387_v25, %v5383_v43  ;;  %v7855_v43 = vld [vmem:[#allocation10 + $0x38] sm:$0xff]   ;;  %v8366_v34 = vmov 0.0  }
 0xb36   :  { %v5228_v17 = vpop.f32.mrf.mxu0  ;;  %v5389_v56 = vpop.f32.mrf.mxu1  ;;  %7499 = vmatprep.subr.bf16.mxu0 %v8366_v34 }
 0xb37   :  { %v5487_v53 = vpack.c.bf16 %v5228_v17, %v5224_v23  ;;  %v5489_v14 = vpack.c.bf16 %v5389_v56, %v5385_v10  ;;  %v5591_v9 = vadd.bf16 %v10097_v52, %v5486_v55  ;;  %v5593_v18 = vadd.bf16 %v10100_v0, %v5488_v5  ;;  %7500 = vmatpush3.bf16.msra.mxu0 %v7855_v43  ;;  %v7856_v56 = vld [vmem:[#allocation10 + $0x30] sm:$0xff]  }
 0xb38   :  { %v5232_v7 = vpop.f32.mrf.mxu0  ;;  %v5393_v63 = vpop.f32.mrf.mxu1  ;;  %7501 = vmatprep.subr.bf16.mxu0 %v8366_v34 }
 0xb39   :  { %v5592_v37 = vadd.bf16 %v10103_v46, %v5487_v53  ;;  %v5594_v30 = vadd.bf16 %v10106_v41, %v5489_v14  ;;  %v5643_v32 = vmax.bf16 %v10592_v33, %v5591_v9  ;;  %v5645_v47 = vmax.bf16 %v10592_v33, %v5593_v18 }
 0xb3a   :  { %v5234_v6 = vpop.f32.mrf.mxu0  ;;  %v5395_v12 = vpop.f32.mrf.mxu1 }
 0xb3b   :  { %v5644_v36 = vmax.bf16 %v10592_v33, %v5592_v37  ;;  %v5646_v8 = vmax.bf16 %v10592_v33, %v5594_v30  ;;  %7502 = vmatpush3.bf16.msra.mxu0 %v7856_v56 }
 0xb3c   :  { %v5236_v22 = vpop.f32.mrf.mxu0  ;;  %v5397_v51 = vpop.f32.mrf.mxu1  ;;  %7503 = vmatprep.subr.bf16.mxu0 %v8366_v34 }
 0xb3d   :  { %v5490_v16 = vpack.c.bf16 %v5236_v22, %v5232_v7  ;;  %v5492_v58 = vpack.c.bf16 %v5397_v51, %v5393_v63  ;;  %5743 = vmatprep.mubr.bf16.mxu0 %v5644_v36  ;;  %5879 = vmatprep.mubr.bf16.mxu1 %v5646_v8  ;;  %v7857_v36 = vld [vmem:[#allocation10 + $0x28] sm:$0xff]  }
 0xb3e   :  { %v5238_v57 = vpop.f32.mrf.mxu0  ;;  %v5399_v42 = vpop.f32.mrf.mxu1  ;;  %5744 = vmatmul.mubr.bf16.gmra.mxu0 %v5643_v32  ;;  %5880 = vmatmul.mubr.bf16.gmra.mxu1 %v5645_v47 }
 0xb3f   :  { %v5491_v13 = vpack.c.bf16 %v5238_v57, %v5234_v6  ;;  %v5493_v54 = vpack.c.bf16 %v5399_v42, %v5395_v12  ;;  %v5595_v26 = vadd.bf16 %v10097_v52, %v5490_v16  ;;  %v5597_v50 = vadd.bf16 %v10100_v0, %v5492_v58  ;;  %7504 = vmatpush3.bf16.msra.mxu0 %v7857_v36 }
 0xb40   :  { %v5242_v3 = vpop.f32.mrf.mxu0  ;;  %v5403_v24 = vpop.f32.mrf.mxu1  ;;  %7505 = vmatprep.subr.bf16.mxu0 %v8366_v34 }
 0xb41   :  { %v5596_v59 = vadd.bf16 %v10103_v46, %v5491_v13  ;;  %v5598_v62 = vadd.bf16 %v10106_v41, %v5493_v54  ;;  %v5647_v25 = vmax.bf16 %v10592_v33, %v5595_v26  ;;  %v5649_v55 = vmax.bf16 %v10592_v33, %v5597_v50 }
 0xb42   :  { %v5244_v48 = vpop.f32.mrf.mxu0  ;;  %v5405_v60 = vpop.f32.mrf.mxu1 }
 0xb43   :  { %v5648_v23 = vmax.bf16 %v10592_v33, %v5596_v59  ;;  %v5650_v10 = vmax.bf16 %v10592_v33, %v5598_v62 }
 0xb44   :  { %v5246_v5 = vpop.f32.mrf.mxu0  ;;  %v5407_v17 = vpop.f32.mrf.mxu1 }
 0xb45   :  { %v5494_v53 = vpack.c.bf16 %v5246_v5, %v5242_v3  ;;  %v5496_v14 = vpack.c.bf16 %v5407_v17, %v5403_v24  ;;  %5751 = vmatprep.mubr.bf16.mxu0 %v5648_v23  ;;  %5887 = vmatprep.mubr.bf16.mxu1 %v5650_v10  ;;  %v7858_v23 = vld [vmem:[#allocation10 + $0x20] sm:$0xff]  }
 0xb46   :  { %v5248_v9 = vpop.f32.mrf.mxu0  ;;  %v5409_v18 = vpop.f32.mrf.mxu1  ;;  %5752 = vmatmul.mubr.bf16.gmra.mxu0 %v5647_v25  ;;  %5888 = vmatmul.mubr.bf16.gmra.mxu1 %v5649_v55 }
 0xb47   :  { %v5495_v7 = vpack.c.bf16 %v5248_v9, %v5244_v48  ;;  %v5497_v63 = vpack.c.bf16 %v5409_v18, %v5405_v60  ;;  %v5599_v37 = vadd.bf16 %v10097_v52, %v5494_v53  ;;  %v5601_v30 = vadd.bf16 %v10100_v0, %v5496_v14  ;;  %7506 = vmatpush3.bf16.msra.mxu0 %v7858_v23 }
 0xb48   :  { %v5252_v6 = vpop.f32.mrf.mxu0  ;;  %v5413_v12 = vpop.f32.mrf.mxu1  ;;  %7507 = vmatprep.subr.bf16.mxu0 %v8366_v34 }
 0xb49   :  { %v5600_v8 = vadd.bf16 %v10103_v46, %v5495_v7  ;;  %v5602_v32 = vadd.bf16 %v10106_v41, %v5497_v63  ;;  %v5651_v58 = vmax.bf16 %v10592_v33, %v5599_v37  ;;  %v5653_v57 = vmax.bf16 %v10592_v33, %v5601_v30  ;;  %v7859_v7 = vld [vmem:[#allocation10 + $0x18] sm:$0xff]  }
 0xb4a   :  { %v5254_v47 = vpop.f32.mrf.mxu0  ;;  %v5415_v22 = vpop.f32.mrf.mxu1 }
 0xb4b   :  { %v5652_v51 = vmax.bf16 %v10592_v33, %v5600_v8  ;;  %v5654_v16 = vmax.bf16 %v10592_v33, %v5602_v32  ;;  %7508 = vmatpush3.bf16.msra.mxu0 %v7859_v7 }
 0xb4c   :  { %v5256_v42 = vpop.f32.mrf.mxu0  ;;  %v5417_v13 = vpop.f32.mrf.mxu1  ;;  %7509 = vmatprep.subr.bf16.mxu0 %v8366_v34 }
 0xb4d   :  { %v5498_v54 = vpack.c.bf16 %v5256_v42, %v5252_v6  ;;  %v5500_v26 = vpack.c.bf16 %v5417_v13, %v5413_v12  ;;  %5759 = vmatprep.mubr.bf16.mxu0 %v5652_v51  ;;  %5895 = vmatprep.mubr.bf16.mxu1 %v5654_v16  ;;  %v7860_v51 = vld [vmem:[#allocation10 + $0x10] sm:$0xff]  }
 0xb4e   :  { %v5258_v50 = vpop.f32.mrf.mxu0  ;;  %v5419_v3 = vpop.f32.mrf.mxu1  ;;  %5760 = vmatmul.mubr.bf16.gmra.mxu0 %v5651_v58  ;;  %5896 = vmatmul.mubr.bf16.gmra.mxu1 %v5653_v57 }
 0xb4f   :  { %v5499_v24 = vpack.c.bf16 %v5258_v50, %v5254_v47  ;;  %v5501_v59 = vpack.c.bf16 %v5419_v3, %v5415_v22  ;;  %v5603_v62 = vadd.bf16 %v10097_v52, %v5498_v54  ;;  %v5605_v48 = vadd.bf16 %v10100_v0, %v5500_v26  ;;  %7510 = vmatpush3.bf16.msra.mxu0 %v7860_v51 }
 0xb50   :  { %v5262_v60 = vpop.f32.mrf.mxu0  ;;  %v5423_v43 = vpop.f32.mrf.mxu1  ;;  %7511 = vmatprep.subr.bf16.mxu0 %v8366_v34 }
 0xb51   :  { %v5604_v10 = vadd.bf16 %v10103_v46, %v5499_v24  ;;  %v5606_v25 = vadd.bf16 %v10106_v41, %v5501_v59  ;;  %v5655_v53 = vmax.bf16 %v10592_v33, %v5603_v62  ;;  %v5657_v14 = vmax.bf16 %v10592_v33, %v5605_v48  ;;  %v7861_v59 = vld [vmem:[#allocation10 + $0x8] sm:$0xff]  }
 0xb52   :  { %v5264_v55 = vpop.f32.mrf.mxu0  ;;  %v5425_v5 = vpop.f32.mrf.mxu1 }
 0xb53   :  { %v5656_v17 = vmax.bf16 %v10592_v33, %v5604_v10  ;;  %v5658_v56 = vmax.bf16 %v10592_v33, %v5606_v25  ;;  %7512 = vmatpush3.bf16.msra.mxu0 %v7861_v59 }
 0xb54   :  { %v5266_v9 = vpop.f32.mrf.mxu0  ;;  %v5427_v18 = vpop.f32.mrf.mxu1  ;;  %7513 = vmatprep.subr.bf16.mxu0 %v8366_v34 }
 0xb55   :  { %v5502_v63 = vpack.c.bf16 %v5266_v9, %v5262_v60  ;;  %v5504_v37 = vpack.c.bf16 %v5427_v18, %v5423_v43  ;;  %5767 = vmatprep.mubr.bf16.mxu0 %v5656_v17  ;;  %5903 = vmatprep.mubr.bf16.mxu1 %v5658_v56  ;;  %v7862_v56 = vld [vmem:[#allocation10] sm:$0xff]  }
 0xb56   :  { %v5268_v30 = vpop.f32.mrf.mxu0  ;;  %v5429_v6 = vpop.f32.mrf.mxu1  ;;  %5768 = vmatmul.mubr.bf16.gmra.mxu0 %v5655_v53  ;;  %5904 = vmatmul.mubr.bf16.gmra.mxu1 %v5657_v14 }
 0xb57   :  { %v5503_v12 = vpack.c.bf16 %v5268_v30, %v5264_v55  ;;  %v5505_v36 = vpack.c.bf16 %v5429_v6, %v5425_v5  ;;  %v5607_v8 = vadd.bf16 %v10097_v52, %v5502_v63  ;;  %v5609_v32 = vadd.bf16 %v10100_v0, %v5504_v37  ;;  %7514 = vmatpush3.bf16.msra.mxu0 %v7862_v56 }
 0xb58   :  { %v5272_v47 = vpop.f32.mrf.mxu0  ;;  %v5433_v22 = vpop.f32.mrf.mxu1 }
 0xb59   :  { %v5608_v16 = vadd.bf16 %v10103_v46, %v5503_v12  ;;  %v5610_v58 = vadd.bf16 %v10106_v41, %v5505_v36  ;;  %v5659_v26 = vmax.bf16 %v10592_v33, %v5607_v8  ;;  %v5661_v50 = vmax.bf16 %v10592_v33, %v5609_v32 }
 0xb5a   :  { %v5274_v57 = vpop.f32.mrf.mxu0  ;;  %v5435_v42 = vpop.f32.mrf.mxu1 }
 0xb5b   :  { %v5660_v13 = vmax.bf16 %v10592_v33, %v5608_v16  ;;  %v5662_v54 = vmax.bf16 %v10592_v33, %v5610_v58 }
 0xb5c   :  { %v5276_v3 = vpop.f32.mrf.mxu0  ;;  %v5437_v24 = vpop.f32.mrf.mxu1 }
 0xb5d   :  { %v5506_v62 = vpack.c.bf16 %v5276_v3, %v5272_v47  ;;  %v5508_v48 = vpack.c.bf16 %v5437_v24, %v5433_v22  ;;  %5775 = vmatprep.mubr.bf16.mxu0 %v5660_v13  ;;  %5911 = vmatprep.mubr.bf16.mxu1 %v5662_v54 }
 0xb5e   :  { %v5278_v60 = vpop.f32.mrf.mxu0  ;;  %v5439_v43 = vpop.f32.mrf.mxu1  ;;  %5776 = vmatmul.mubr.bf16.gmra.mxu0 %v5659_v26  ;;  %5912 = vmatmul.mubr.bf16.gmra.mxu1 %v5661_v50 }
 0xb5f   :  { %v5507_v23 = vpack.c.bf16 %v5278_v60, %v5274_v57  ;;  %v5509_v10 = vpack.c.bf16 %v5439_v43, %v5435_v42  ;;  %v5611_v25 = vadd.bf16 %v10097_v52, %v5506_v62  ;;  %v5613_v55 = vadd.bf16 %v10100_v0, %v5508_v48 }
 0xb61   :  { %v5612_v5 = vadd.bf16 %v10103_v46, %v5507_v23  ;;  %v5614_v17 = vadd.bf16 %v10106_v41, %v5509_v10  ;;  %v5663_v9 = vmax.bf16 %v10592_v33, %v5611_v25  ;;  %v5665_v18 = vmax.bf16 %v10592_v33, %v5613_v55 }
 0xb63   :  { %v5664_v53 = vmax.bf16 %v10592_v33, %v5612_v5  ;;  %v5666_v14 = vmax.bf16 %v10592_v33, %v5614_v17 }
 0xb65   :  { %5783 = vmatprep.mubr.bf16.mxu0 %v5664_v53  ;;  %5919 = vmatprep.mubr.bf16.mxu1 %v5666_v14 }
 0xb66   :  { %5784 = vmatmul.mubr.bf16.gmra.mxu0 %v5663_v9  ;;  %5920 = vmatmul.mubr.bf16.gmra.mxu1 %v5665_v18 }
 0xb96   :  { %v5282_v7 = vpop.f32.mrf.mxu0  ;;  %v5443_v63 = vpop.f32.mrf.mxu1 }
 0xb98   :  { %v5284_v37 = vpop.f32.mrf.mxu0  ;;  %v5445_v30 = vpop.f32.mrf.mxu1 }
 0xb9a   :  { %v5286_v6 = vpop.f32.mrf.mxu0  ;;  %v5447_v12 = vpop.f32.mrf.mxu1 }
 0xb9b   :  { %v5510_v36 = vpack.c.bf16 %v5286_v6, %v5282_v7  ;;  %v5512_v8 = vpack.c.bf16 %v5447_v12, %v5443_v63 }
 0xb9c   :  { %v5288_v32 = vpop.f32.mrf.mxu0  ;;  %v5449_v47 = vpop.f32.mrf.mxu1 }
 0xb9d   :  { %v5511_v22 = vpack.c.bf16 %v5288_v32, %v5284_v37  ;;  %v5513_v51 = vpack.c.bf16 %v5449_v47, %v5445_v30  ;;  %v5615_v16 = vadd.bf16 %v10097_v52, %v5510_v36  ;;  %v5617_v58 = vadd.bf16 %v10100_v0, %v5512_v8 }
 0xb9e   :  { %v5292_v57 = vpop.f32.mrf.mxu0  ;;  %v5453_v42 = vpop.f32.mrf.mxu1 }
 0xb9f   :  { %v5616_v13 = vadd.bf16 %v10103_v46, %v5511_v22  ;;  %v5618_v54 = vadd.bf16 %v10106_v41, %v5513_v51  ;;  %v5667_v59 = vmax.bf16 %v10592_v33, %v5615_v16  ;;  %v5669_v62 = vmax.bf16 %v10592_v33, %v5617_v58 }
 0xba0   :  { %v5294_v26 = vpop.f32.mrf.mxu0  ;;  %v5455_v50 = vpop.f32.mrf.mxu1 }
 0xba1   :  { %v5668_v3 = vmax.bf16 %v10592_v33, %v5616_v13  ;;  %v5670_v24 = vmax.bf16 %v10592_v33, %v5618_v54 }
 0xba2   :  { %v5296_v48 = vpop.f32.mrf.mxu0  ;;  %v5457_v60 = vpop.f32.mrf.mxu1 }
 0xba3   :  { %v5514_v43 = vpack.c.bf16 %v5296_v48, %v5292_v57  ;;  %v5516_v23 = vpack.c.bf16 %v5457_v60, %v5453_v42  ;;  %5791 = vmatprep.mubr.bf16.mxu0 %v5668_v3  ;;  %5927 = vmatprep.mubr.bf16.mxu1 %v5670_v24 }
 0xba4   :  { %v5298_v10 = vpop.f32.mrf.mxu0  ;;  %v5459_v25 = vpop.f32.mrf.mxu1  ;;  %5792 = vmatmul.mubr.bf16.gmra.mxu0 %v5667_v59  ;;  %5928 = vmatmul.mubr.bf16.gmra.mxu1 %v5669_v62 }
 0xba5   :  { %v5515_v55 = vpack.c.bf16 %v5298_v10, %v5294_v26  ;;  %v5517_v5 = vpack.c.bf16 %v5459_v25, %v5455_v50  ;;  %v5619_v17 = vadd.bf16 %v10097_v52, %v5514_v43  ;;  %v5621_v56 = vadd.bf16 %v10100_v0, %v5516_v23 }
 0xba7   :  { %v5620_v53 = vadd.bf16 %v10103_v46, %v5515_v55  ;;  %v5622_v14 = vadd.bf16 %v10106_v41, %v5517_v5  ;;  %v5671_v7 = vmax.bf16 %v10592_v33, %v5619_v17  ;;  %v5673_v63 = vmax.bf16 %v10592_v33, %v5621_v56  ;;  %v10226_v5 = vld [vmem:[%s10559_s5] ss:$0 sm:$0xff] }
 0xba9   :  { %v5672_v9 = vmax.bf16 %v10592_v33, %v5620_v53  ;;  %v5674_v18 = vmax.bf16 %v10592_v33, %v5622_v14  ;;  %v10231_v53 = vld [vmem:[%s10558_s4 + $0x1] ss:$0 sm:$0xff] }
 0xbab   :  { %5799 = vmatprep.mubr.bf16.mxu0 %v5672_v9  ;;  %5935 = vmatprep.mubr.bf16.mxu1 %v5674_v18 }
 0xbac   :  { %5800 = vmatmul.mubr.bf16.gmra.mxu0 %v5671_v7  ;;  %5936 = vmatmul.mubr.bf16.gmra.mxu1 %v5673_v63 }
 0xbb8   :  { %v5302_v37 = vpop.f32.mrf.mxu0  ;;  %v5463_v30 = vpop.f32.mrf.mxu1 }
 0xbb9   :  { %v5518_v6 = vpack.c.bf16 %v5302_v37, %v5302_v37  ;;  %v5520_v12 = vpack.c.bf16 %v5463_v30, %v5463_v30 }
 0xbba   :  { %v5304_v36 = vpop.f32.mrf.mxu0  ;;  %v5465_v8 = vpop.f32.mrf.mxu1 }
 0xbbb   :  { %v5519_v32 = vpack.c.bf16 %v5304_v36, %v5304_v36  ;;  %v5521_v47 = vpack.c.bf16 %v5465_v8, %v5465_v8  ;;  %v5623_v22 = vadd.bf16 %v10097_v52, %v5518_v6  ;;  %v5625_v51 = vadd.bf16 %v10100_v0, %v5520_v12 }
 0xbbc   :  { %v5306_v16 = vpop.f32.mrf.mxu0  ;;  %v5467_v58 = vpop.f32.mrf.mxu1 }
 0xbbd   :  { %v5624_v57 = vadd.bf16 %v10103_v46, %v5519_v32  ;;  %v5626_v42 = vadd.bf16 %v10106_v41, %v5521_v47  ;;  %v5675_v3 = vmax.bf16 %v10592_v33, %v5623_v22  ;;  %v5677_v24 = vmax.bf16 %v10592_v33, %v5625_v51 }
 0xbbe   :  { %v5307_v13 = vpop.f32.mrf.mxu0  ;;  %v5468_v54 = vpop.f32.mrf.mxu1 }
 0xbbf   :  { %v5676_v26 = vmax.bf16 %v10592_v33, %v5624_v57  ;;  %v5678_v50 = vmax.bf16 %v10592_v33, %v5626_v42 }
 0xbc1   :  { %5807 = vmatprep.mubr.bf16.mxu0 %v5676_v26  ;;  %5943 = vmatprep.mubr.bf16.mxu1 %v5678_v50 }
 0xbc2   :  { %5808 = vmatmul.mubr.bf16.gmra.mxu0 %v5675_v3  ;;  %5944 = vmatmul.mubr.bf16.gmra.mxu1 %v5677_v24 }
 0xbc3   :  { %7515 = vmatprep.mubr.msk.bf16.mxu0 %vm8367_vm0, %v8366_v34 }
 0xbd0   :  { %v7306_v52 = vpop.f32.mrf.mxu0  ;;  %v7400_v0 = vpop.f32.mrf.mxu1 }
 0xbd2   :  { %v7307_v46 = vpop.f32.mrf.mxu0  ;;  %v7401_v41 = vpop.f32.mrf.mxu1 }
 0xbd3   :  { %v7308_v59 = vadd.f32 %v7307_v46, %v7306_v52  ;;  %v7402_v62 = vadd.f32 %v7401_v41, %v7400_v0 }
 0xbd4   :  { %v7309_v48 = vpop.f32.mrf.mxu0  ;;  %v7403_v60 = vpop.f32.mrf.mxu1 }
 0xbd5   :  { %v5850_v43 = vadd.f32 %v7402_v62, %v7308_v59 }
 0xbd6   :  { %v7310_v23 = vpop.f32.mrf.mxu0  ;;  %v7404_v10 = vpop.f32.mrf.mxu1 }
 0xbd7   :  { %v5951_v33 = vadd.f32 %v5850_v43, %v9795_v39  ;;  %v7311_v25 = vadd.f32 %v7310_v23, %v7309_v48  ;;  %v7405_v55 = vadd.f32 %v7404_v10, %v7403_v60  ;;  %v10237_v39 = vld [vmem:[%s10560_s6] ss:$0 sm:$0xff]  ;;  %s8368_s6 = smov [#allocation12]  }
 0xbd8   :  { %v7312_v17 = vpop.f32.mrf.mxu0  ;;  %v7406_v56 = vpop.f32.mrf.mxu1 }
 0xbd9   :  { %v5976_v14 = vadd.f32 %v10231_v53, %v5951_v33  ;;  %v5853_v9 = vadd.f32 %v7405_v55, %v7311_v25 }
 0xbda   :  { %v7313_v18 = vpop.f32.mrf.mxu0  ;;  %v7407_v7 = vpop.f32.mrf.mxu1 }
 0xbdb   :  { %v6008_v63 = vmul.f32 %v10226_v5, %v5976_v14  ;;  %v5952_v37 = vadd.f32 %v5853_v9, %v9800_v40  ;;  %v7314_v30 = vadd.f32 %v7313_v18, %v7312_v17  ;;  %v7408_v6 = vadd.f32 %v7407_v7, %v7406_v56 }
 0xbdc   :  { %v7315_v12 = vpop.f32.mrf.mxu0  ;;  %v7409_v36 = vpop.f32.mrf.mxu1 }
 0xbdd   :  { %v5977_v8 = vadd.f32 %v10231_v53, %v5952_v37  ;;  %v5858_v32 = vadd.f32 %v7408_v6, %v7314_v30  ;;  %v10243_v47 = vadd.f32 %v10237_v39, %v6008_v63 }
 0xbde   :  { %v7316_v22 = vpop.f32.mrf.mxu0  ;;  %v7410_v51 = vpop.f32.mrf.mxu1 }
 0xbdf   :  { %v6009_v16 = vmul.f32 %v10226_v5, %v5977_v8  ;;  %v5953_v58 = vadd.f32 %v5858_v32, %v9805_v4  ;;  %v7317_v57 = vadd.f32 %v7316_v22, %v7315_v12  ;;  %v7411_v42 = vadd.f32 %v7410_v51, %v7409_v36 }
 0xbe0   :  { %v7318_v13 = vpop.f32.mrf.mxu0  ;;  %v7412_v40 = vpop.f32.mrf.mxu1  ;;  %v6285_v54 = vmul.f32 %v10243_v47, %v10243_v47 }
 0xbe1   :  { %v5978_v26 = vadd.f32 %v10231_v53, %v5953_v58  ;;  %v5861_v50 = vadd.f32 %v7411_v42, %v7317_v57  ;;  %v10251_v3 = vadd.f32 %v10237_v39, %v6009_v16 }
 0xbe2   :  { %6310 = vadd.xlane.f32.xlu0 %v6285_v54  ;;  %v7319_v24 = vpop.f32.mrf.mxu0  ;;  %v7413_v52 = vpop.f32.mrf.mxu1 }
 0xbe3   :  { %v6010_v0 = vmul.f32 %v10226_v5, %v5978_v26  ;;  %v5954_v4 = vadd.f32 %v5861_v50, %v9810_v28  ;;  %v7320_v46 = vadd.f32 %v7319_v24, %v7318_v13  ;;  %v7414_v41 = vadd.f32 %v7413_v52, %v7412_v40 }
 0xbe4   :  { %v7321_v59 = vpop.f32.mrf.mxu0  ;;  %v7415_v62 = vpop.f32.mrf.mxu1  ;;  %v6286_v48 = vmul.f32 %v10251_v3, %v10251_v3  ;;  %v6065_v60 = vpack.c.bf16 %v10251_v3, %v10243_v47 }
 0xbe5   :  { %v5979_v43 = vadd.f32 %v10231_v53, %v5954_v4  ;;  %v5866_v23 = vadd.f32 %v7414_v41, %v7320_v46  ;;  %v10261_v10 = vadd.f32 %v10237_v39, %v6010_v0 }
 0xbe6   :  { %6312 = vadd.xlane.f32.xlu1 %v6286_v48  ;;  %7516 = vmatmul.mubr.bf16.vlgmr.msra.gmra.mxu0 %v6065_v60  ;;  %v7322_v33 = vpop.f32.mrf.mxu0  ;;  %v7416_v28 = vpop.f32.mrf.mxu1 }
 0xbe7   :  { %v6011_v25 = vmul.f32 %v10226_v5, %v5979_v43  ;;  %v5955_v55 = vadd.f32 %v5866_v23, %v9815_v21  ;;  %v7323_v17 = vadd.f32 %v7322_v33, %v7321_v59  ;;  %v7417_v56 = vadd.f32 %v7416_v28, %v7415_v62  ;;  %7519 = vmatprep.mubr.msk.bf16.mxu0 %vm8367_vm0, %v8366_v34 }
 0xbe8   :  { %v7324_v14 = vpop.f32.mrf.mxu0  ;;  %v7418_v9 = vpop.f32.mrf.mxu1  ;;  %v6287_v18 = vmul.f32 %v10261_v10, %v10261_v10 }
 0xbe9   :  { %v5980_v7 = vadd.f32 %v10231_v53, %v5955_v55  ;;  %v5869_v63 = vadd.f32 %v7417_v56, %v7323_v17  ;;  %v10271_v37 = vadd.f32 %v10237_v39, %v6011_v25 }
 0xbea   :  { %6314 = vadd.xlane.f32.xlu0 %v6287_v18  ;;  %v7325_v30 = vpop.f32.mrf.mxu0  ;;  %v7419_v6 = vpop.f32.mrf.mxu1 }
 0xbeb   :  { %v6012_v21 = vmul.f32 %v10226_v5, %v5980_v7  ;;  %v5956_v12 = vadd.f32 %v5869_v63, %v9820_v11  ;;  %v7326_v36 = vadd.f32 %v7325_v30, %v7324_v14  ;;  %v7420_v8 = vadd.f32 %v7419_v6, %v7418_v9 }
 0xbec   :  { %v7327_v32 = vpop.f32.mrf.mxu0  ;;  %v7421_v22 = vpop.f32.mrf.mxu1  ;;  %v6288_v51 = vmul.f32 %v10271_v37, %v10271_v37  ;;  %v6066_v16 = vpack.c.bf16 %v10271_v37, %v10261_v10 }
 0xbed   :  { %v5981_v58 = vadd.f32 %v10231_v53, %v5956_v12  ;;  %v5874_v57 = vadd.f32 %v7420_v8, %v7326_v36  ;;  %v10281_v42 = vadd.f32 %v10237_v39, %v6012_v21 }
 0xbee   :  { %6316 = vadd.xlane.f32.xlu1 %v6288_v51  ;;  %7520 = vmatmul.mubr.bf16.gmra.mxu0 %v6066_v16  ;;  %v7328_v13 = vpop.f32.mrf.mxu0  ;;  %v7422_v11 = vpop.f32.mrf.mxu1 }
 0xbef   :  { %v6013_v40 = vmul.f32 %v10226_v5, %v5981_v58  ;;  %v5957_v54 = vadd.f32 %v5874_v57, %v9825_v38  ;;  %v7329_v26 = vadd.f32 %v7328_v13, %v7327_v32  ;;  %v7423_v50 = vadd.f32 %v7422_v11, %v7421_v22  ;;  %7523 = vmatprep.mubr.msk.bf16.mxu0 %vm8367_vm0, %v8366_v34 }
 0xbf0   :  { %v6289_v24 = vmul.f32 %v10281_v42, %v10281_v42 }
 0xbf1   :  { %v5982_v52 = vadd.f32 %v10231_v53, %v5957_v54  ;;  %v5877_v0 = vadd.f32 %v7423_v50, %v7329_v26  ;;  %v10291_v4 = vadd.f32 %v10237_v39, %v6013_v40 }
 0xbf2   :  { %6318 = vadd.xlane.f32.xlu0 %v6289_v24 }
 0xbf3   :  { %v6014_v46 = vmul.f32 %v10226_v5, %v5982_v52  ;;  %v5958_v41 = vadd.f32 %v5877_v0, %v9830_v31  ;;  %v6290_v38 = vmul.f32 %v10291_v4, %v10291_v4  ;;  %v6067_v59 = vpack.c.bf16 %v10291_v4, %v10281_v42 }
 0xbf5   :  { %v5983_v62 = vadd.f32 %v10231_v53, %v5958_v41  ;;  %6320 = vadd.xlane.f32.xlu1 %v6290_v38  ;;  %v10301_v48 = vadd.f32 %v10237_v39, %v6014_v46 }
 0xbf6   :  { %7524 = vmatmul.mubr.bf16.gmra.mxu0 %v6067_v59 }
 0xbf7   :  { %v6015_v60 = vmul.f32 %v10226_v5, %v5983_v62  ;;  %v6291_v43 = vmul.f32 %v10301_v48, %v10301_v48  ;;  %7527 = vmatprep.mubr.msk.bf16.mxu0 %vm8367_vm0, %v8366_v34 }
 0xbf9   :  { %6322 = vadd.xlane.f32.xlu0 %v6291_v43  ;;  %v10309_v31 = vadd.f32 %v10237_v39, %v6015_v60 }
 0xbfb   :  { %v6292_v23 = vmul.f32 %v10309_v31, %v10309_v31  ;;  %v6068_v33 = vpack.c.bf16 %v10309_v31, %v10301_v48 }
 0xbfd   :  { %6324 = vadd.xlane.f32.xlu1 %v6292_v23 }
 0xbfe   :  { %7528 = vmatmul.mubr.bf16.gmra.mxu0 %v6068_v33  ;;  %v7330_v28 = vpop.f32.mrf.mxu0  ;;  %v7424_v25 = vpop.f32.mrf.mxu1 }
 0xbff   :  { %7531 = vmatprep.mubr.msk.bf16.mxu0 %vm8367_vm0, %v8366_v34 }
 0xc00   :  { %v7331_v55 = vpop.f32.mrf.mxu0  ;;  %v7425_v17 = vpop.f32.mrf.mxu1 }
 0xc01   :  { %v7332_v56 = vadd.f32 %v7331_v55, %v7330_v28  ;;  %v7426_v14 = vadd.f32 %v7425_v17, %v7424_v25 }
 0xc02   :  { %v7333_v9 = vpop.f32.mrf.mxu0  ;;  %v7427_v18 = vpop.f32.mrf.mxu1 }
 0xc03   :  { %v5882_v7 = vadd.f32 %v7426_v14, %v7332_v56 }
 0xc04   :  { %v7334_v63 = vpop.f32.mrf.mxu0  ;;  %v7428_v30 = vpop.f32.mrf.mxu1 }
 0xc05   :  { %v5959_v6 = vadd.f32 %v5882_v7, %v9835_v20  ;;  %v7335_v21 = vadd.f32 %v7334_v63, %v7333_v9  ;;  %v7429_v12 = vadd.f32 %v7428_v30, %v7427_v18 }
 0xc06   :  { %v7336_v36 = vpop.f32.mrf.mxu0  ;;  %v7430_v8 = vpop.f32.mrf.mxu1 }
 0xc07   :  { %v5984_v32 = vadd.f32 %v10231_v53, %v5959_v6  ;;  %v5885_v22 = vadd.f32 %v7429_v12, %v7335_v21 }
 0xc08   :  { %v7337_v51 = vpop.f32.mrf.mxu0  ;;  %v7431_v16 = vpop.f32.mrf.mxu1 }
 0xc09   :  { %v6016_v58 = vmul.f32 %v10226_v5, %v5984_v32  ;;  %v5960_v57 = vadd.f32 %v5885_v22, %v9840_v35  ;;  %v7338_v13 = vadd.f32 %v7337_v51, %v7336_v36  ;;  %v7432_v11 = vadd.f32 %v7431_v16, %v7430_v8 }
 0xc0a   :  { %v7339_v40 = vpop.f32.mrf.mxu0  ;;  %v7433_v54 = vpop.f32.mrf.mxu1 }
 0xc0b   :  { %v5985_v26 = vadd.f32 %v10231_v53, %v5960_v57  ;;  %v5890_v20 = vadd.f32 %v7432_v11, %v7338_v13  ;;  %v10323_v50 = vadd.f32 %v10237_v39, %v6016_v58 }
 0xc0c   :  { %v7340_v24 = vpop.f32.mrf.mxu0  ;;  %v7434_v52 = vpop.f32.mrf.mxu1 }
 0xc0d   :  { %v6017_v0 = vmul.f32 %v10226_v5, %v5985_v26  ;;  %v5961_v46 = vadd.f32 %v5890_v20, %v9845_v45  ;;  %v7341_v41 = vadd.f32 %v7340_v24, %v7339_v40  ;;  %v7435_v38 = vadd.f32 %v7434_v52, %v7433_v54 }
 0xc0e   :  { %v7342_v59 = vpop.f32.mrf.mxu0  ;;  %v7436_v35 = vpop.f32.mrf.mxu1  ;;  %v6293_v62 = vmul.f32 %v10323_v50, %v10323_v50 }
 0xc0f   :  { %v5986_v60 = vadd.f32 %v10231_v53, %v5961_v46  ;;  %v5893_v43 = vadd.f32 %v7435_v38, %v7341_v41  ;;  %v10331_v23 = vadd.f32 %v10237_v39, %v6017_v0 }
 0xc10   :  { %6326 = vadd.xlane.f32.xlu0 %v6293_v62  ;;  %v7343_v33 = vpop.f32.mrf.mxu0  ;;  %v7437_v28 = vpop.f32.mrf.mxu1 }
 0xc11   :  { %v6018_v25 = vmul.f32 %v10226_v5, %v5986_v60  ;;  %v5962_v45 = vadd.f32 %v5893_v43, %v9850_v44  ;;  %v7344_v55 = vadd.f32 %v7343_v33, %v7342_v59  ;;  %v7438_v17 = vadd.f32 %v7437_v28, %v7436_v35 }
 0xc12   :  { %v7345_v56 = vpop.f32.mrf.mxu0  ;;  %v7439_v14 = vpop.f32.mrf.mxu1  ;;  %v6294_v9 = vmul.f32 %v10331_v23, %v10331_v23  ;;  %v6069_v18 = vpack.c.bf16 %v10331_v23, %v10323_v50 }
 0xc13   :  { %v5987_v7 = vadd.f32 %v10231_v53, %v5962_v45  ;;  %v5898_v63 = vadd.f32 %v7438_v17, %v7344_v55  ;;  %v10341_v30 = vadd.f32 %v10237_v39, %v6018_v25 }
 0xc14   :  { %6328 = vadd.xlane.f32.xlu1 %v6294_v9  ;;  %7532 = vmatmul.mubr.bf16.gmra.mxu0 %v6069_v18  ;;  %v7346_v6 = vpop.f32.mrf.mxu0  ;;  %v7440_v44 = vpop.f32.mrf.mxu1 }
 0xc15   :  { %v6019_v21 = vmul.f32 %v10226_v5, %v5987_v7  ;;  %v5963_v12 = vadd.f32 %v5898_v63, %v9855_v15  ;;  %v7347_v36 = vadd.f32 %v7346_v6, %v7345_v56  ;;  %v7441_v8 = vadd.f32 %v7440_v44, %v7439_v14  ;;  %7535 = vmatprep.mubr.msk.bf16.mxu0 %vm8367_vm0, %v8366_v34 }
 0xc16   :  { %v7348_v32 = vpop.f32.mrf.mxu0  ;;  %v7442_v22 = vpop.f32.mrf.mxu1  ;;  %v6295_v51 = vmul.f32 %v10341_v30, %v10341_v30 }
 0xc17   :  { %v5988_v16 = vadd.f32 %v10231_v53, %v5963_v12  ;;  %v5901_v58 = vadd.f32 %v7441_v8, %v7347_v36  ;;  %v10351_v57 = vadd.f32 %v10237_v39, %v6019_v21 }
 0xc18   :  { %6330 = vadd.xlane.f32.xlu0 %v6295_v51  ;;  %v7349_v13 = vpop.f32.mrf.mxu0  ;;  %v7443_v11 = vpop.f32.mrf.mxu1 }
 0xc19   :  { %v6020_v15 = vmul.f32 %v10226_v5, %v5988_v16  ;;  %v5964_v40 = vadd.f32 %v5901_v58, %v9860_v2  ;;  %v7350_v54 = vadd.f32 %v7349_v13, %v7348_v32  ;;  %v7444_v26 = vadd.f32 %v7443_v11, %v7442_v22 }
 0xc1a   :  { %v7351_v20 = vpop.f32.mrf.mxu0  ;;  %v7445_v24 = vpop.f32.mrf.mxu1  ;;  %v6296_v52 = vmul.f32 %v10351_v57, %v10351_v57  ;;  %v6070_v0 = vpack.c.bf16 %v10351_v57, %v10341_v30 }
 0xc1b   :  { %v5989_v46 = vadd.f32 %v10231_v53, %v5964_v40  ;;  %v5906_v41 = vadd.f32 %v7444_v26, %v7350_v54  ;;  %v10361_v38 = vadd.f32 %v10237_v39, %v6020_v15 }
 0xc1c   :  { %6332 = vadd.xlane.f32.xlu1 %v6296_v52  ;;  %7536 = vmatmul.mubr.bf16.gmra.mxu0 %v6070_v0  ;;  %v7352_v59 = vpop.f32.mrf.mxu0  ;;  %v7446_v2 = vpop.f32.mrf.mxu1 }
 0xc1d   :  { %v6021_v35 = vmul.f32 %v10226_v5, %v5989_v46  ;;  %v5965_v62 = vadd.f32 %v5906_v41, %v9865_v27  ;;  %v7353_v60 = vadd.f32 %v7352_v59, %v7351_v20  ;;  %v7447_v43 = vadd.f32 %v7446_v2, %v7445_v24  ;;  %7539 = vmatprep.mubr.msk.bf16.mxu0 %vm8367_vm0, %v8366_v34 }
 0xc1e   :  { %v7354_v33 = vpop.f32.mrf.mxu0  ;;  %v7448_v28 = vpop.f32.mrf.mxu1  ;;  %v6297_v25 = vmul.f32 %v10361_v38, %v10361_v38 }
 0xc1f   :  { %v5990_v45 = vadd.f32 %v10231_v53, %v5965_v62  ;;  %v5909_v55 = vadd.f32 %v7447_v43, %v7353_v60  ;;  %v10371_v17 = vadd.f32 %v10237_v39, %v6021_v35 }
 0xc20   :  { %6334 = vadd.xlane.f32.xlu0 %v6297_v25  ;;  %v7355_v56 = vpop.f32.mrf.mxu0  ;;  %v7449_v14 = vpop.f32.mrf.mxu1 }
 0xc21   :  { %v6022_v27 = vmul.f32 %v10226_v5, %v5990_v45  ;;  %v5966_v9 = vadd.f32 %v5909_v55, %v9870_v49  ;;  %v7356_v18 = vadd.f32 %v7355_v56, %v7354_v33  ;;  %v7450_v7 = vadd.f32 %v7449_v14, %v7448_v28 }
 0xc22   :  { %v7357_v63 = vpop.f32.mrf.mxu0  ;;  %v7451_v6 = vpop.f32.mrf.mxu1  ;;  %v6298_v44 = vmul.f32 %v10371_v17, %v10371_v17  ;;  %v6071_v21 = vpack.c.bf16 %v10371_v17, %v10361_v38 }
 0xc23   :  { %v5991_v12 = vadd.f32 %v10231_v53, %v5966_v9  ;;  %v5914_v36 = vadd.f32 %v7450_v7, %v7356_v18  ;;  %v10381_v8 = vadd.f32 %v10237_v39, %v6022_v27  ;;  %v10618_v7 = vld [vmem:[#allocation19_spill] sm:$0xff] }
 0xc24   :  { %6336 = vadd.xlane.f32.xlu1 %v6298_v44  ;;  %7540 = vmatmul.mubr.bf16.gmra.mxu0 %v6071_v21  ;;  %v7358_v32 = vpop.f32.mrf.mxu0  ;;  %v7452_v49 = vpop.f32.mrf.mxu1 }
 0xc25   :  { %v6023_v22 = vmul.f32 %v10226_v5, %v5991_v12  ;;  %v5967_v51 = vadd.f32 %v5914_v36, %v9875_v61  ;;  %v7359_v16 = vadd.f32 %v7358_v32, %v7357_v63  ;;  %v7453_v58 = vadd.f32 %v7452_v49, %v7451_v6  ;;  %7543 = vmatprep.mubr.msk.bf16.mxu0 %vm8367_vm0, %v8366_v34 }
 0xc26   :  { %v7360_v13 = vpop.f32.mrf.mxu0  ;;  %v7454_v11 = vpop.f32.mrf.mxu1  ;;  %v6299_v15 = vmul.f32 %v10381_v8, %v10381_v8 }
 0xc27   :  { %v5992_v40 = vadd.f32 %v10231_v53, %v5967_v51  ;;  %v5917_v54 = vadd.f32 %v7453_v58, %v7359_v16  ;;  %v10391_v26 = vadd.f32 %v10237_v39, %v6023_v22 }
 0xc28   :  { %6338 = vadd.xlane.f32.xlu0 %v6299_v15  ;;  %v7361_v20 = vpop.f32.mrf.mxu0  ;;  %v7455_v24 = vpop.f32.mrf.mxu1 }
 0xc29   :  { %v6024_v61 = vmul.f32 %v10226_v5, %v5992_v40  ;;  %v5968_v52 = vadd.f32 %v5917_v54, %v9880_v19  ;;  %v7362_v0 = vadd.f32 %v7361_v20, %v7360_v13  ;;  %v7456_v46 = vadd.f32 %v7455_v24, %v7454_v11 }
 0xc2a   :  { %v7363_v41 = vpop.f32.mrf.mxu0  ;;  %v7457_v59 = vpop.f32.mrf.mxu1  ;;  %v6300_v2 = vmul.f32 %v10391_v26, %v10391_v26  ;;  %v6072_v35 = vpack.c.bf16 %v10391_v26, %v10381_v8 }
 0xc2b   :  { %v5993_v62 = vadd.f32 %v10231_v53, %v5968_v52  ;;  %v5922_v60 = vadd.f32 %v7456_v46, %v7362_v0  ;;  %v10401_v43 = vadd.f32 %v10237_v39, %v6024_v61  ;;  %v10619_v52 = vld [vmem:[#allocation25_spill] sm:$0xff] }
 0xc2c   :  { %6340 = vadd.xlane.f32.xlu1 %v6300_v2  ;;  %7544 = vmatmul.mubr.bf16.gmra.mxu0 %v6072_v35  ;;  %v7364_v33 = vpop.f32.mrf.mxu0  ;;  %v7458_v19 = vpop.f32.mrf.mxu1 }
 0xc2d   :  { %v6025_v28 = vmul.f32 %v10226_v5, %v5993_v62  ;;  %v5969_v25 = vadd.f32 %v5922_v60, %v9885_v29  ;;  %v7365_v45 = vadd.f32 %v7364_v33, %v7363_v41  ;;  %v7459_v55 = vadd.f32 %v7458_v19, %v7457_v59  ;;  %7547 = vmatprep.mubr.msk.bf16.mxu0 %vm8367_vm0, %v8366_v34 }
 0xc2e   :  { %v6301_v56 = vmul.f32 %v10401_v43, %v10401_v43 }
 0xc2f   :  { %v5994_v14 = vadd.f32 %v10231_v53, %v5969_v25  ;;  %v5925_v27 = vadd.f32 %v7459_v55, %v7365_v45  ;;  %v10411_v9 = vadd.f32 %v10237_v39, %v6025_v28  ;;  %v10620_v45 = vld [vmem:[#allocation26_spill] sm:$0xff] }
 0xc30   :  { %6342 = vadd.xlane.f32.xlu0 %v6301_v56 }
 0xc31   :  { %v6026_v18 = vmul.f32 %v10226_v5, %v5994_v14  ;;  %v5970_v63 = vadd.f32 %v5925_v27, %v10618_v7  ;;  %v6302_v29 = vmul.f32 %v10411_v9, %v10411_v9  ;;  %v6073_v6 = vpack.c.bf16 %v10411_v9, %v10401_v43 }
 0xc33   :  { %v5995_v44 = vadd.f32 %v10231_v53, %v5970_v63  ;;  %6344 = vadd.xlane.f32.xlu1 %v6302_v29  ;;  %v10421_v21 = vadd.f32 %v10237_v39, %v6026_v18 }
 0xc34   :  { %7548 = vmatmul.mubr.bf16.gmra.mxu0 %v6073_v6 }
 0xc35   :  { %v6027_v12 = vmul.f32 %v10226_v5, %v5995_v44  ;;  %v6303_v36 = vmul.f32 %v10421_v21, %v10421_v21  ;;  %7551 = vmatprep.mubr.msk.bf16.mxu0 %vm8367_vm0, %v8366_v34 }
 0xc37   :  { %6346 = vadd.xlane.f32.xlu0 %v6303_v36  ;;  %v10429_v32 = vadd.f32 %v10237_v39, %v6027_v12 }
 0xc39   :  { %v6304_v49 = vmul.f32 %v10429_v32, %v10429_v32  ;;  %v6074_v22 = vpack.c.bf16 %v10429_v32, %v10421_v21 }
 0xc3b   :  { %6348 = vadd.xlane.f32.xlu1 %v6304_v49 }
 0xc3c   :  { %7552 = vmatmul.mubr.bf16.gmra.mxu0 %v6074_v22  ;;  %v10621_v22 = vld [vmem:[#allocation20_spill] sm:$0xff] }
 0xc3d   :  { %7555 = vmatprep.mubr.msk.bf16.mxu0 %vm8367_vm0, %v8366_v34 }
 0xc64   :  { %v7366_v51 = vpop.f32.mrf.mxu0  ;;  %v7460_v16 = vpop.f32.mrf.mxu1 }
 0xc66   :  { %v7367_v58 = vpop.f32.mrf.mxu0  ;;  %v7461_v13 = vpop.f32.mrf.mxu1 }
 0xc67   :  { %v7368_v11 = vadd.f32 %v7367_v58, %v7366_v51  ;;  %v7462_v15 = vadd.f32 %v7461_v13, %v7460_v16 }
 0xc68   :  { %v7369_v40 = vpop.f32.mrf.mxu0  ;;  %v7463_v54 = vpop.f32.mrf.mxu1 }
 0xc69   :  { %v5930_v20 = vadd.f32 %v7462_v15, %v7368_v11 }
 0xc6a   :  { %v7370_v24 = vpop.f32.mrf.mxu0  ;;  %v7464_v61 = vpop.f32.mrf.mxu1 }
 0xc6b   :  { %v5971_v0 = vadd.f32 %v5930_v20, %v10619_v52  ;;  %v7371_v46 = vadd.f32 %v7370_v24, %v7369_v40  ;;  %v7465_v41 = vadd.f32 %v7464_v61, %v7463_v54  ;;  %v6311_v59 = vpop.xlane.xlu0 %6310  ;;  %v10622_v61 = vld [vmem:[#allocation21_spill] sm:$0xff] }
 0xc6c   :  { %v6360_v2 = vmax.f32 %v6311_v59, 1e-24  ;;  %v7372_v35 = vpop.f32.mrf.mxu0  ;;  %v7466_v62 = vpop.f32.mrf.mxu1 }
 0xc6d   :  { %v5996_v60 = vadd.f32 %v10231_v53, %v5971_v0  ;;  %v5933_v33 = vadd.f32 %v7465_v41, %v7371_v46 }
 0xc6e   :  { %8063 = vrsqrt.f32 %v6360_v2  ;;  %v7373_v19 = vpop.f32.mrf.mxu0  ;;  %v7467_v28 = vpop.f32.mrf.mxu1 }
 0xc6f   :  { %v6028_v25 = vmul.f32 %v10226_v5, %v5996_v60  ;;  %v5972_v55 = vadd.f32 %v5933_v33, %v10620_v45  ;;  %v7374_v56 = vadd.f32 %v7373_v19, %v7372_v35  ;;  %v7468_v14 = vadd.f32 %v7467_v28, %v7466_v62  ;;  %v6313_v27 = vpop.xlane.xlu1 %6312 }
 0xc70   :  { %v6361_v18 = vmax.f32 %v6313_v27, 1e-24  ;;  %v7375_v7 = vpop.f32.mrf.mxu0  ;;  %v7469_v63 = vpop.f32.mrf.mxu1 }
 0xc71   :  { %v5997_v29 = vadd.f32 %v10231_v53, %v5972_v55  ;;  %v5938_v6 = vadd.f32 %v7468_v14, %v7374_v56  ;;  %v10443_v44 = vadd.f32 %v10237_v39, %v6028_v25 }
 0xc72   :  { %8065 = vrsqrt.f32 %v6361_v18  ;;  %v7376_v12 = vpop.f32.mrf.mxu0  ;;  %v7470_v36 = vpop.f32.mrf.mxu1 }
 0xc73   :  { %v6029_v49 = vmul.f32 %v10226_v5, %v5997_v29  ;;  %v5973_v51 = vadd.f32 %v5938_v6, %v10621_v22  ;;  %v7377_v16 = vadd.f32 %v7376_v12, %v7375_v7  ;;  %v7471_v58 = vadd.f32 %v7470_v36, %v7469_v63  ;;  %v6315_v13 = vpop.xlane.xlu0 %6314 }
 0xc74   :  { %v6362_v11 = vmax.f32 %v6315_v13, 1e-24  ;;  %v6305_v15 = vmul.f32 %v10443_v44, %v10443_v44 }
 0xc75   :  { %v5998_v40 = vadd.f32 %v10231_v53, %v5973_v51  ;;  %v5941_v54 = vadd.f32 %v7471_v58, %v7377_v16  ;;  %v10451_v20 = vadd.f32 %v10237_v39, %v6029_v49 }
 0xc76   :  { %8067 = vrsqrt.f32 %v6362_v11  ;;  %6350 = vadd.xlane.f32.xlu0 %v6305_v15 }
 0xc77   :  { %v6030_v24 = vmul.f32 %v10226_v5, %v5998_v40  ;;  %v5974_v52 = vadd.f32 %v5941_v54, %v10622_v61  ;;  %v6317_v0 = vpop.xlane.xlu1 %6316  ;;  %v6306_v46 = vmul.f32 %v10451_v20, %v10451_v20  ;;  %v6075_v41 = vpack.c.bf16 %v10451_v20, %v10443_v44 }
 0xc78   :  { %v6363_v59 = vmax.f32 %v6317_v0, 1e-24 }
 0xc79   :  { %v5999_v2 = vadd.f32 %v10231_v53, %v5974_v52  ;;  %6352 = vadd.xlane.f32.xlu1 %v6306_v46  ;;  %7556 = vmatmul.mubr.bf16.gmra.mxu0 %v6075_v41  ;;  %v10461_v35 = vadd.f32 %v10237_v39, %v6030_v24 }
 0xc7a   :  { %8069 = vrsqrt.f32 %v6363_v59  ;;  %7559 = vmatprep.mubr.msk.bf16.mxu0 %vm8367_vm0, %v8366_v34 }
 0xc7b   :  { %v8064_v62 = vpop.eup %8063  ;;  %v6031_v60 = vmul.f32 %v10226_v5, %v5999_v2  ;;  %v6319_v33 = vpop.xlane.xlu0 %6318  ;;  %v6307_v19 = vmul.f32 %v10461_v35, %v10461_v35 }
 0xc7c   :  { %v6410_v28 = vmul.f32 %v8064_v62, %v10243_v47  ;;  %v6364_v25 = vmax.f32 %v6319_v33, 1e-24 }
 0xc7d   :  { %6354 = vadd.xlane.f32.xlu0 %v6307_v19  ;;  %v10470_v45 = vadd.f32 %v10237_v39, %v6031_v60 }
 0xc7e   :  { %6460 = vst [vmem:[#allocation12] sm:$0xff] %v6410_v28  ;;  %8071 = vrsqrt.f32 %v6364_v25  ;;  %v6321_v55 = vpop.xlane.xlu1 %6320  ;;  %v10498_v25 = vld [vmem:[%s10562_s8] ss:$0 sm:$0xff]  ;;  %s6502_s8 = sshll.u32 %s8368_s6, 4  ;;  %s6503_s8 = int_to_ptr.vmem [resolvable:$true] %s6502_s8 }
 0xc7f   :  { %v8066_v56 = vpop.eup %8065  ;;  %v6365_v14 = vmax.f32 %v6321_v55, 1e-24  ;;  %v6308_v27 = vmul.f32 %v10470_v45, %v10470_v45  ;;  %v6076_v18 = vpack.c.bf16 %v10470_v45, %v10461_v35  ;;  %s8304_s12 = scalar_lea.vmem %s6503_s8, 3200  ;;  %p8309_p12 = scmp.lt.s32.totalorder %s6503_s8, %s6503_s8 }
 0xc80   :  { %v6411_v7 = vmul.f32 %v8066_v56, %v10251_v3  ;;  %p8305_p11 = scmp.ne.s32.totalorder %s6503_s8, %s8304_s12  ;;  %p8310_p13 = scmp.lt.s32.totalorder %s8304_s12, %s8304_s12 }
 0xc81   :  { %8073 = vrsqrt.f32 %v6365_v14  ;;  %6356 = vadd.xlane.f32.xlu1 %v6308_v27  ;;  %7560 = vmatmul.mubr.bf16.gmra.mxu0 %v6076_v18 }
 0xc82   :  { %6461 = vst [vmem:[#allocation12 + $0x8] sm:$0xff] %v6411_v7  ;;  %v7378_v47 = vpop.f32.mrf.mxu0  ;;  %v7472_v63 = vpop.f32.mrf.mxu1  ;;  %7563 = vmatprep.mubr.msk.bf16.mxu0 %vm8367_vm0, %v8366_v34  ;;  %p8311_p0 = por %p8310_p13, %p8309_p12 }
 0xc83   :  { %v8068_v29 = vpop.eup %8067  ;;  %v6323_v6 = vpop.xlane.xlu0 %6322 }
 0xc84   :  { %v6412_v12 = vmul.f32 %v8068_v29, %v10261_v10  ;;  %v6366_v36 = vmax.f32 %v6323_v6, 1e-24  ;;  %v7379_v49 = vpop.f32.mrf.mxu0  ;;  %v7473_v22 = vpop.f32.mrf.mxu1  ;;  %p8312_p1 = pnand %p8311_p0, %p8305_p11 }
 0xc85   :  { %v7380_v51 = vadd.f32 %v7379_v49, %v7378_v47  ;;  %v7474_v16 = vadd.f32 %v7473_v22, %v7472_v63 }
 0xc86   :  { %6462 = vst [vmem:[#allocation12 + $0x10] sm:$0xff] %v6412_v12  ;;  %8075 = vrsqrt.f32 %v6366_v36  ;;  %v7381_v3 = vpop.f32.mrf.mxu0  ;;  %v7475_v58 = vpop.f32.mrf.mxu1 }
 0xc87   :  { %v8070_v13 = vpop.eup %8069  ;;  %v5946_v11 = vadd.f32 %v7474_v16, %v7380_v51  ;;  %v6325_v15 = vpop.xlane.xlu1 %6324 }
 0xc88   :  { %v6413_v40 = vmul.f32 %v8070_v13, %v10271_v37  ;;  %v6367_v54 = vmax.f32 %v6325_v15, 1e-24  ;;  %v7382_v34 = vpop.f32.mrf.mxu0  ;;  %v7476_v24 = vpop.f32.mrf.mxu1 }
 0xc89   :  { %v5975_v61 = vadd.f32 %v5946_v11, %v9955_v1 }
 0xc8a   :  { %6463 = vst [vmem:[#allocation12 + $0x18] sm:$0xff] %v6413_v40  ;;  %8077 = vrsqrt.f32 %v6367_v54 }
 0xc8b   :  { %v8072_v10 = vpop.eup %8071  ;;  %v6000_v52 = vadd.f32 %v10231_v53, %v5975_v61 }
 0xc8c   :  { %v6414_v0 = vmul.f32 %v8072_v10, %v10281_v42 }
 0xc8d   :  { %v6032_v46 = vmul.f32 %v10226_v5, %v6000_v52 }
 0xc8e   :  { %v8074_v41 = vpop.eup %8073  ;;  %6464 = vst [vmem:[#allocation12 + $0x20] sm:$0xff] %v6414_v0 }
 0xc8f   :  { %v6415_v59 = vmul.f32 %v8074_v41, %v10291_v4  ;;  %v10487_v37 = vadd.f32 %v10237_v39, %v6032_v46 }
 0xc91   :  { %6465 = vst [vmem:[#allocation12 + $0x28] sm:$0xff] %v6415_v59  ;;  %v6309_v1 = vmul.f32 %v10487_v37, %v10487_v37  ;;  %v6077_v2 = vpack.c.bf16 %v10487_v37, %v10487_v37 }
 0xc93   :  { %v8076_v62 = vpop.eup %8075  ;;  %6358 = vadd.xlane.f32.xlu0 %v6309_v1  ;;  %7564 = vmatmul.mubr.bf16.gmra.mxu0 %v6077_v2 }
 0xc94   :  { %v6416_v53 = vmul.f32 %v8076_v62, %v10301_v48 }
 0xc96   :  { %6466 = vst [vmem:[#allocation12 + $0x30] sm:$0xff] %v6416_v53 }
 0xc97   :  { %v8078_v5 = vpop.eup %8077 }
 0xc98   :  { %v6417_v42 = vmul.f32 %v8078_v5, %v10309_v31 }
 0xc99   :  { %v6327_v4 = vpop.xlane.xlu0 %6326 }
 0xc9a   :  { %6467 = vst [vmem:[#allocation12 + $0x38] sm:$0xff] %v6417_v42  ;;  %v6368_v39 = vmax.f32 %v6327_v4, 1e-24 }
 0xc9c   :  { %8079 = vrsqrt.f32 %v6368_v39 }
 0xc9d   :  { %v6329_v60 = vpop.xlane.xlu1 %6328 }
 0xc9e   :  { %v6369_v33 = vmax.f32 %v6329_v60, 1e-24 }
 0xca0   :  { %8081 = vrsqrt.f32 %v6369_v33 }
 0xca1   :  { %v6331_v19 = vpop.xlane.xlu0 %6330 }
 0xca2   :  { %v6370_v28 = vmax.f32 %v6331_v19, 1e-24 }
 0xca4   :  { %8083 = vrsqrt.f32 %v6370_v28 }
 0xca5   :  { %v6333_v48 = vpop.xlane.xlu1 %6332 }
 0xca6   :  { %v6371_v55 = vmax.f32 %v6333_v48, 1e-24  ;;  %v6183_v56 = vpop.f32.mrf.mxu0 }
 0xca7   :  { %v6184_v31 = vadd.f32 %v10498_v25, %v6183_v56 }
 0xca8   :  { %8085 = vrsqrt.f32 %v6371_v55  ;;  %v7517_v14 = vpop.f32.mrf.mxu0 }
 0xca9   :  { %v8080_v27 = vpop.eup %8079  ;;  %6435 = vst [vmem:[#allocation11] sm:$0xff] %v6184_v31  ;;  %v6335_v18 = vpop.xlane.xlu0 %6334 }
 0xcaa   :  { %v6418_v7 = vmul.f32 %v8080_v27, %v10323_v50  ;;  %v6372_v47 = vmax.f32 %v6335_v18, 1e-24  ;;  %v6186_v63 = vpop.f32.mrf.mxu0 }
 0xcab   :  { %v6187_v29 = vadd.f32 %v10498_v25, %v6186_v63 }
 0xcac   :  { %6468 = vst [vmem:[#allocation12 + $0x40] sm:$0xff] %v6418_v7  ;;  %8087 = vrsqrt.f32 %v6372_v47  ;;  %v7518_v6 = vpop.f32.mrf.mxu0 }
 0xcad   :  { %v8082_v12 = vpop.eup %8081  ;;  %6436 = vst [vmem:[#allocation11 + $0x8] sm:$0xff] %v6187_v29  ;;  %v6337_v36 = vpop.xlane.xlu1 %6336 }
 0xcae   :  { %v6419_v49 = vmul.f32 %v8082_v12, %v10331_v23  ;;  %v6373_v22 = vmax.f32 %v6337_v36, 1e-24  ;;  %v6191_v51 = vpop.f32.mrf.mxu0 }
 0xcaf   :  { %v6192_v16 = vadd.f32 %v10498_v25, %v6191_v51 }
 0xcb0   :  { %6469 = vst [vmem:[#allocation12 + $0x48] sm:$0xff] %v6419_v49  ;;  %8089 = vrsqrt.f32 %v6373_v22  ;;  %v7521_v3 = vpop.f32.mrf.mxu0 }
 0xcb1   :  { %v8084_v50 = vpop.eup %8083  ;;  %6437 = vst [vmem:[#allocation11 + $0x10] sm:$0xff] %v6192_v16  ;;  %v6339_v58 = vpop.xlane.xlu0 %6338 }
 0xcb2   :  { %v6420_v13 = vmul.f32 %v8084_v50, %v10341_v30  ;;  %v6374_v11 = vmax.f32 %v6339_v58, 1e-24  ;;  %v6194_v15 = vpop.f32.mrf.mxu0 }
 0xcb3   :  { %v6195_v40 = vadd.f32 %v10498_v25, %v6194_v15 }
 0xcb4   :  { %6470 = vst [vmem:[#allocation12 + $0x50] sm:$0xff] %v6420_v13  ;;  %8091 = vrsqrt.f32 %v6374_v11  ;;  %v7522_v54 = vpop.f32.mrf.mxu0 }
 0xcb5   :  { %v8086_v23 = vpop.eup %8085  ;;  %6438 = vst [vmem:[#allocation11 + $0x18] sm:$0xff] %v6195_v40  ;;  %v6341_v34 = vpop.xlane.xlu1 %6340 }
 0xcb6   :  { %v6421_v24 = vmul.f32 %v8086_v23, %v10351_v57  ;;  %v6375_v61 = vmax.f32 %v6341_v34, 1e-24  ;;  %v6199_v10 = vpop.f32.mrf.mxu0 }
 0xcb7   :  { %v6200_v52 = vadd.f32 %v10498_v25, %v6199_v10 }
 0xcb8   :  { %6471 = vst [vmem:[#allocation12 + $0x58] sm:$0xff] %v6421_v24  ;;  %8093 = vrsqrt.f32 %v6375_v61  ;;  %v7525_v0 = vpop.f32.mrf.mxu0 }
 0xcb9   :  { %v8088_v30 = vpop.eup %8087  ;;  %6439 = vst [vmem:[#allocation11 + $0x20] sm:$0xff] %v6200_v52  ;;  %v6343_v46 = vpop.xlane.xlu0 %6342 }
 0xcba   :  { %v6422_v41 = vmul.f32 %v8088_v30, %v10361_v38  ;;  %v6376_v59 = vmax.f32 %v6343_v46, 1e-24  ;;  %v6202_v1 = vpop.f32.mrf.mxu0 }
 0xcbb   :  { %v6203_v2 = vadd.f32 %v10498_v25, %v6202_v1 }
 0xcbc   :  { %6472 = vst [vmem:[#allocation12 + $0x60] sm:$0xff] %v6422_v41  ;;  %8095 = vrsqrt.f32 %v6376_v59  ;;  %v7526_v62 = vpop.f32.mrf.mxu0  ;;  %v6345_v57 = vpop.xlane.xlu1 %6344 }
 0xcbd   :  { %v8090_v53 = vpop.eup %8089  ;;  %6440 = vst [vmem:[#allocation11 + $0x28] sm:$0xff] %v6203_v2  ;;  %v6377_v5 = vmax.f32 %v6345_v57, 1e-24 }
 0xcbe   :  { %v6423_v42 = vmul.f32 %v8090_v53, %v10371_v17  ;;  %v6207_v4 = vpop.f32.mrf.mxu0 }
 0xcbf   :  { %8097 = vrsqrt.f32 %v6377_v5  ;;  %v6208_v39 = vadd.f32 %v10498_v25, %v6207_v4 }
 0xcc0   :  { %6473 = vst [vmem:[#allocation12 + $0x68] sm:$0xff] %v6423_v42  ;;  %v7529_v60 = vpop.f32.mrf.mxu0  ;;  %v6347_v38 = vpop.xlane.xlu0 %6346 }
 0xcc1   :  { %v8092_v33 = vpop.eup %8091  ;;  %6441 = vst [vmem:[#allocation11 + $0x30] sm:$0xff] %v6208_v39  ;;  %v6378_v19 = vmax.f32 %v6347_v38, 1e-24 }
 0xcc2   :  { %v6424_v28 = vmul.f32 %v8092_v33, %v10381_v8  ;;  %v6210_v48 = vpop.f32.mrf.mxu0 }
 0xcc3   :  { %8099 = vrsqrt.f32 %v6378_v19  ;;  %v6211_v55 = vadd.f32 %v10498_v25, %v6210_v48 }
 0xcc4   :  { %6474 = vst [vmem:[#allocation12 + $0x70] sm:$0xff] %v6424_v28  ;;  %v7530_v56 = vpop.f32.mrf.mxu0  ;;  %v6349_v31 = vpop.xlane.xlu1 %6348 }
 0xcc5   :  { %v8094_v17 = vpop.eup %8093  ;;  %6442 = vst [vmem:[#allocation11 + $0x38] sm:$0xff] %v6211_v55  ;;  %v6379_v14 = vmax.f32 %v6349_v31, 1e-24 }
 0xcc6   :  { %v6425_v27 = vmul.f32 %v8094_v17, %v10391_v26 }
 0xcc7   :  { %8101 = vrsqrt.f32 %v6379_v14 }
 0xcc8   :  { %6475 = vst [vmem:[#allocation12 + $0x78] sm:$0xff] %v6425_v27 }
 0xcc9   :  { %v8096_v18 = vpop.eup %8095 }
 0xcca   :  { %v6426_v7 = vmul.f32 %v8096_v18, %v10401_v43 }
 0xccc   :  { %v8098_v47 = vpop.eup %8097  ;;  %6476 = vst [vmem:[#allocation12 + $0x80] sm:$0xff] %v6426_v7 }
 0xccd   :  { %v6427_v8 = vmul.f32 %v8098_v47, %v10411_v9 }
 0xccf   :  { %6477 = vst [vmem:[#allocation12 + $0x88] sm:$0xff] %v6427_v8 }
 0xcd0   :  { %v8100_v63 = vpop.eup %8099 }
 0xcd1   :  { %v6428_v29 = vmul.f32 %v8100_v63, %v10421_v21 }
 0xcd3   :  { %6478 = vst [vmem:[#allocation12 + $0x90] sm:$0xff] %v6428_v29 }
 0xcd4   :  { %v8102_v6 = vpop.eup %8101  ;;  %v6215_v12 = vpop.f32.mrf.mxu0 }
 0xcd5   :  { %v6429_v36 = vmul.f32 %v8102_v6, %v10429_v32  ;;  %v6216_v26 = vadd.f32 %v10498_v25, %v6215_v12 }
 0xcd6   :  { %v7533_v49 = vpop.f32.mrf.mxu0 }
 0xcd7   :  { %6479 = vst [vmem:[#allocation12 + $0x98] sm:$0xff] %v6429_v36  ;;  %6443 = vst [vmem:[#allocation11 + $0x40] sm:$0xff] %v6216_v26 }
 0xcd8   :  { %v6218_v22 = vpop.f32.mrf.mxu0 }
 0xcd9   :  { %v6219_v43 = vadd.f32 %v10498_v25, %v6218_v22 }
 0xcda   :  { %v7534_v51 = vpop.f32.mrf.mxu0 }
 0xcdb   :  { %6444 = vst [vmem:[#allocation11 + $0x48] sm:$0xff] %v6219_v43 }
 0xcdc   :  { %v6223_v9 = vpop.f32.mrf.mxu0 }
 0xcdd   :  { %v6224_v16 = vadd.f32 %v10498_v25, %v6223_v9 }
 0xcde   :  { %v7537_v3 = vpop.f32.mrf.mxu0 }
 0xcdf   :  { %6445 = vst [vmem:[#allocation11 + $0x50] sm:$0xff] %v6224_v16 }
 0xce0   :  { %v6226_v21 = vpop.f32.mrf.mxu0 }
 0xce1   :  { %v6227_v50 = vadd.f32 %v10498_v25, %v6226_v21 }
 0xce2   :  { %v7538_v58 = vpop.f32.mrf.mxu0 }
 0xce3   :  { %6446 = vst [vmem:[#allocation11 + $0x58] sm:$0xff] %v6227_v50 }
 0xce4   :  { %v6231_v32 = vpop.f32.mrf.mxu0 }
 0xce5   :  { %v6232_v13 = vadd.f32 %v10498_v25, %v6231_v32 }
 0xce6   :  { %v7541_v11 = vpop.f32.mrf.mxu0 }
 0xce7   :  { %6447 = vst [vmem:[#allocation11 + $0x60] sm:$0xff] %v6232_v13 }
 0xce8   :  { %v6234_v15 = vpop.f32.mrf.mxu0 }
 0xce9   :  { %v6235_v40 = vadd.f32 %v10498_v25, %v6234_v15 }
 0xcea   :  { %v7542_v54 = vpop.f32.mrf.mxu0 }
 0xceb   :  { %6448 = vst [vmem:[#allocation11 + $0x68] sm:$0xff] %v6235_v40 }
 0xcec   :  { %v6239_v23 = vpop.f32.mrf.mxu0 }
 0xced   :  { %v6240_v34 = vadd.f32 %v10498_v25, %v6239_v23 }
 0xcee   :  { %v7545_v24 = vpop.f32.mrf.mxu0 }
 0xcef   :  { %6449 = vst [vmem:[#allocation11 + $0x70] sm:$0xff] %v6240_v34 }
 0xcf0   :  { %v6242_v61 = vpop.f32.mrf.mxu0 }
 0xcf1   :  { %v6243_v10 = vadd.f32 %v10498_v25, %v6242_v61 }
 0xcf2   :  { %v7546_v52 = vpop.f32.mrf.mxu0 }
 0xcf3   :  { %6450 = vst [vmem:[#allocation11 + $0x78] sm:$0xff] %v6243_v10 }
 0xcf4   :  { %v6247_v0 = vpop.f32.mrf.mxu0 }
 0xcf5   :  { %v6248_v30 = vadd.f32 %v10498_v25, %v6247_v0 }
 0xcf6   :  { %v7549_v46 = vpop.f32.mrf.mxu0 }
 0xcf7   :  { %6451 = vst [vmem:[#allocation11 + $0x80] sm:$0xff] %v6248_v30 }
 0xcf8   :  { %v6250_v41 = vpop.f32.mrf.mxu0 }
 0xcf9   :  { %v6251_v59 = vadd.f32 %v10498_v25, %v6250_v41 }
 0xcfa   :  { %v7550_v1 = vpop.f32.mrf.mxu0 }
 0xcfb   :  { %6452 = vst [vmem:[#allocation11 + $0x88] sm:$0xff] %v6251_v59 }
 0xcfc   :  { %v6255_v2 = vpop.f32.mrf.mxu0 }
 0xcfd   :  { %v6256_v62 = vadd.f32 %v10498_v25, %v6255_v2 }
 0xcfe   :  { %v7553_v57 = vpop.f32.mrf.mxu0 }
 0xcff   :  { %6453 = vst [vmem:[#allocation11 + $0x90] sm:$0xff] %v6256_v62  ;;  %v6351_v53 = vpop.xlane.xlu0 %6350 }
 0xd00   :  { %v6380_v5 = vmax.f32 %v6351_v53, 1e-24  ;;  %v6258_v42 = vpop.f32.mrf.mxu0 }
 0xd01   :  { %v6259_v4 = vadd.f32 %v10498_v25, %v6258_v42 }
 0xd02   :  { %8103 = vrsqrt.f32 %v6380_v5  ;;  %v7554_v39 = vpop.f32.mrf.mxu0  ;;  %v6353_v60 = vpop.xlane.xlu1 %6352 }
 0xd03   :  { %6454 = vst [vmem:[#allocation11 + $0x98] sm:$0xff] %v6259_v4  ;;  %v6381_v38 = vmax.f32 %v6353_v60, 1e-24 }
 0xd05   :  { %8105 = vrsqrt.f32 %v6381_v38 }
 0xd06   :  { %v6355_v33 = vpop.xlane.xlu0 %6354 }
 0xd07   :  { %v6382_v19 = vmax.f32 %v6355_v33, 1e-24 }
 0xd09   :  { %8107 = vrsqrt.f32 %v6382_v19 }
 0xd0a   :  { %v6357_v28 = vpop.xlane.xlu1 %6356 }
 0xd0b   :  { %v6383_v48 = vmax.f32 %v6357_v28, 1e-24 }
 0xd0d   :  { %8109 = vrsqrt.f32 %v6383_v48 }
 0xd0f   :  { %v8104_v55 = vpop.eup %8103 }
 0xd10   :  { %v6430_v56 = vmul.f32 %v8104_v55, %v10443_v44 }
 0xd12   :  { %v8106_v31 = vpop.eup %8105  ;;  %6480 = vst [vmem:[#allocation12 + $0xa0] sm:$0xff] %v6430_v56 }
 0xd13   :  { %v6431_v17 = vmul.f32 %v8106_v31, %v10451_v20 }
 0xd15   :  { %6481 = vst [vmem:[#allocation12 + $0xa8] sm:$0xff] %v6431_v17 }
 0xd16   :  { %v8108_v14 = vpop.eup %8107 }
 0xd17   :  { %v6432_v27 = vmul.f32 %v8108_v14, %v10461_v35 }
 0xd19   :  { %6482 = vst [vmem:[#allocation12 + $0xb0] sm:$0xff] %v6432_v27 }
 0xd1a   :  { %v8110_v18 = vpop.eup %8109 }
 0xd1b   :  { %v6433_v7 = vmul.f32 %v8110_v18, %v10470_v45 }
 0xd1c   :  { %v6359_v47 = vpop.xlane.xlu0 %6358 }
 0xd1d   :  { %6483 = vst [vmem:[#allocation12 + $0xb8] sm:$0xff] %v6433_v7  ;;  %v6384_v8 = vmax.f32 %v6359_v47, 1e-24 }
 0xd1f   :  { %8111 = vrsqrt.f32 %v6384_v8 }
 0xd2c   :  { %v8112_v63 = vpop.eup %8111 }
 0xd2d   :  { %v6434_v44 = vmul.f32 %v8112_v63, %v10487_v37 }
 0xd2f   :  { %6484 = vst [vmem:[#allocation12 + $0xc0] sm:$0xff] %v6434_v44 }
 0xd30   :  { %8315 = shalt.err (!%p8312_p1)
}
 0xd31   :  { %6508 = dma.vmem_to_hbm [thread:$0]  %s6503_s8, 3200, %s10564_s10, [#allocation13], %s8361_s29, %s8361_s29, %s8362_s30  }
 0xd32   :  { %s8369_s10 = smov [#allocation11]  }
 0xd33   :  { %s6490_s3 = sshll.u32 %s8369_s10, 4  ;;  %s6491_s3 = int_to_ptr.vmem [resolvable:$true] %s6490_s3 }
 0xd34   :  { %s8324_s15 = scalar_lea.vmem %s6491_s3, 3200  ;;  %p8329_p3 = scmp.lt.s32.totalorder %s6491_s3, %s6491_s3 }
 0xd35   :  { %p8325_p2 = scmp.ne.s32.totalorder %s6491_s3, %s8324_s15  ;;  %p8330_p4 = scmp.lt.s32.totalorder %s8324_s15, %s8324_s15 }
 0xd37   :  { %p8331_p5 = por %p8330_p4, %p8329_p3 }
 0xd39   :  { %v6263_v20 = vpop.f32.mrf.mxu0  ;;  %p8332_p6 = pnand %p8331_p5, %p8325_p2 }
 0xd3a   :  { %v6264_v35 = vadd.f32 %v10498_v25, %v6263_v20 }
 0xd3b   :  { %v7557_v45 = vpop.f32.mrf.mxu0 }
 0xd3c   :  { %6455 = vst [vmem:[#allocation11 + $0xa0] sm:$0xff] %v6264_v35 }
 0xd3d   :  { %v6266_v37 = vpop.f32.mrf.mxu0 }
 0xd3e   :  { %v6267_v29 = vadd.f32 %v10498_v25, %v6266_v37 }
 0xd3f   :  { %v7558_v6 = vpop.f32.mrf.mxu0 }
 0xd40   :  { %6456 = vst [vmem:[#allocation11 + $0xa8] sm:$0xff] %v6267_v29 }
 0xd41   :  { %v6271_v12 = vpop.f32.mrf.mxu0 }
 0xd42   :  { %v6272_v36 = vadd.f32 %v10498_v25, %v6271_v12 }
 0xd43   :  { %v7561_v26 = vpop.f32.mrf.mxu0 }
 0xd44   :  { %6457 = vst [vmem:[#allocation11 + $0xb0] sm:$0xff] %v6272_v36 }
 0xd45   :  { %v6274_v49 = vpop.f32.mrf.mxu0 }
 0xd46   :  { %v6275_v22 = vadd.f32 %v10498_v25, %v6274_v49 }
 0xd47   :  { %v7562_v43 = vpop.f32.mrf.mxu0 }
 0xd48   :  { %6458 = vst [vmem:[#allocation11 + $0xb8] sm:$0xff] %v6275_v22 }
 0xd53   :  { %v6279_v51 = vpop.f32.mrf.mxu0 }
 0xd54   :  { %v6280_v9 = vadd.f32 %v10498_v25, %v6279_v51 }
 0xd55   :  { %v7565_v16 = vpop.f32.mrf.mxu0 }
 0xd56   :  { %6459 = vst [vmem:[#allocation11 + $0xc0] sm:$0xff] %v6280_v9 }
 0xd57   :  { %v6282_v3 = vpop.f32.mrf.mxu0 }
 0xd58   :  { %8335 = shalt.err (!%p8332_p6)
}
 0xd59   :  { %6496 = dma.vmem_to_hbm [thread:$0]  %s6491_s3, 3200, %s10563_s9, [#allocation4], %s8361_s29, %s8361_s29, %s8362_s30   ;;  %v7566_v21 = vpop.f32.mrf.mxu0 }
 0xd5a   :  { %8350 = dma.done.wait [#allocation4], 3200  }
 0xd5b   :  { %8351 = vsyncadd [#allocation4], 4294964096 }
 0xd5c   :  { %8352 = dma.done.wait [#allocation13], 3200  }
 0xd5d   :  { %8353 = vsyncadd [#allocation13], 4294964096 }
 0xd5e   :  { %6515 = vsyncpa [#allocation3], 1 }
 0xd5f   :  { %6516 = vsyncpa [#allocation6], 1 }
 0xd60   :  { %6517 = vsyncpa [#allocation9], 1 }
 0xd61   :  { %6518 = vsyncpa [#allocation4], 1 }
 0xd62   :  { %6519 = vsyncpa [#allocation13], 1 }

</bundles_post_ra>
